<compile_context>
chip_gen: v6e
topology: v6e:2x2x1
jax: 0.10.0
libtpu: 0.0.40
codegen_flags: <defaults>
</compile_context>

<pallas_src>
import functools
import math

import jax
import jax.numpy as jnp
from jax.experimental import pallas as pl
from jax.experimental.pallas import tpu as pltpu  # noqa: F401  (TPU backend)

CP = 128       # all channel dims padded to 128 -> lane-dense layouts
KSTEM = 128    # padded im2col K for the first conv (9 * 3 = 27 -> 128)

IN_CH = 3
FIRST_CONV_CH = 16
# (in_ch, out_ch, expand_ratio, stride, act)
BLOCK_CFG = [
    (16, 16, 1, 1, "relu"),
    (16, 24, 3, 2, "relu"),
    (24, 24, 3, 1, "relu"),
    (24, 32, 4, 2, "hswish"),
]
FINAL_EXPAND_CH = 64
FEATURE_MIX_CH = 96
N_CLASSES = 10


# ---------------------------------------------------------------------------
# Small helpers (usable both inside and outside kernels)
# ---------------------------------------------------------------------------
def _apply_act(y, act):
    if act == "hswish":                       # x * relu6(x + 3) / 6
        return y * jnp.clip(y + 3.0, 0.0, 6.0) * (1.0 / 6.0)
    if act == "relu":
        return jnp.maximum(y, 0.0)
    if act == "none":
        return y
    raise ValueError(f"unknown act {act}")


def _shift_rows(y, s):
    """val[r] = y[r + s] (row shift), zero-filled outside [0, M)."""
    m, c = y.shape
    if s == 0:
        return y
    if s > 0:
        return jnp.concatenate([y[s:, :], jnp.zeros((s, c), y.dtype)], axis=0)
    return jnp.concatenate([jnp.zeros((-s, c), y.dtype), y[:m + s, :]], axis=0)


# ---------------------------------------------------------------------------
# Fused inverted-residual block kernel
#   (optional stem) -> (optional expand 1x1) -> dw3x3 -> project 1x1
#   -> (optional residual) -> (optional head: final_expand + GAP + mix + cls)
# ---------------------------------------------------------------------------
def _block_kernel(*refs, cfg):
    (B, Hi, Wi, stride, act, has_stem, has_expand, residual, has_head) = cfg
    Ho, Wo = Hi // stride, Wi // stride          # Hi, Wi, Ho, Wo are powers of 2
    m_out = B * Ho * Wo

    it = iter(refs)
    x_ref = next(it)

    # --- first_conv (fused into block 0): im2col matmul + folded-BN bias + hswish
    if has_stem:
        sw_ref, sb_ref = next(it), next(it)
        cur = _apply_act(
            jnp.dot(x_ref[...], sw_ref[...], preferred_element_type=jnp.float32)
            + sb_ref[...], "hswish")
    else:
        cur = x_ref[...]
    resid = cur

    # --- expand 1x1 conv (+BN+act): bf16 MXU operands, f32 accumulate
    if has_expand:
        ew_ref, eb_ref = next(it), next(it)
        y = _apply_act(
            jnp.dot(cur.astype(jnp.bfloat16), ew_ref[...],
                    preferred_element_type=jnp.float32) + eb_ref[...], act)
    else:
        y = cur

    # --- depthwise 3x3 conv (+BN+act): 9 shifted-row taps on the VPU
    dw_ref, db_ref = next(it), next(it)
    wdw = dw_ref[...]                                   # (9, CP), BN scale folded in

    row = jax.lax.broadcasted_iota(jnp.int32, (m_out, 1), 0)
    w_idx = row & (Wo - 1)
    h_idx = (row >> int(math.log2(Wo))) & (Ho - 1)

    acc = jnp.zeros((m_out, CP), jnp.float32)
    for dh in range(3):
        for dwc in range(3):
            wk = wdw[3 * dh + dwc:3 * dh + dwc + 1, :]  # (1, CP)
            conds = []
            if stride == 1:
                tap = _shift_rows(y, (dh - 1) * Wi + (dwc - 1))
                if dh == 0:
                    conds.append(h_idx >= 1)
                elif dh == 2:
                    conds.append(h_idx <= Hi - 2)
                if dwc == 0:
                    conds.append(w_idx >= 1)
                elif dwc == 2:
                    conds.append(w_idx <= Wi - 2)
            else:
                # stride 2: the input arrived phase-split (p = 2*ph + pw with
                # input pixel (2*ho+ph, 2*wo+pw)), so every tap is a shift of
                # {0, -1} along ho / wo inside a single phase buffer.
                ph, oh = (dh + 1) % 2, (-1 if dh == 0 else 0)
                pw, ow = (dwc + 1) % 2, (-1 if dwc == 0 else 0)
                p = 2 * ph + pw
                tap = _shift_rows(y[p * m_out:(p + 1) * m_out, :], oh * Wo + ow)
                if oh == -1:
                    conds.append(h_idx >= 1)
                if ow == -1:
                    conds.append(w_idx >= 1)
            if conds:
                mask = conds[0]
                for c in conds[1:]:
                    mask = mask & c
                tap = jnp.where(mask, tap, 0.0)
            acc = acc + tap * wk
    z = _apply_act(acc + db_ref[...], act)

    # --- project 1x1 conv (+BN, no act) + fused residual add
    pw_ref, pb_ref = next(it), next(it)
    out = jnp.dot(z.astype(jnp.bfloat16), pw_ref[...],
                  preferred_element_type=jnp.float32) + pb_ref[...]
    if residual:
        out = out + resid

    if not has_head:
        o_ref = next(it)
        o_ref[...] = out
        return

    # --- fused head: final_expand + global_avg_pool + feature_mix + classifier
    few_ref, feb_ref = next(it), next(it)
    fmw_ref = next(it)
    cw_ref, cb_ref = next(it), next(it)

    f = _apply_act(jnp.dot(out.astype(jnp.bfloat16), few_ref[...],
                           preferred_element_type=jnp.float32) + feb_ref[...],
                   "hswish")
    g = jnp.sum(f.reshape(B, Ho * Wo, CP), axis=1) * (1.0 / (Ho * Wo))
    ft = _apply_act(jnp.dot(g.astype(jnp.bfloat16), fmw_ref[...],
                            preferred_element_type=jnp.float32), "hswish")
    logits = jnp.dot(ft.astype(jnp.bfloat16), cw_ref[...],
                     preferred_element_type=jnp.float32) + cb_ref[...]

    logits_ref = next(it)
    ft_ref = next(it)
    logits_ref[...] = logits
    ft_ref[...] = ft


# ---------------------------------------------------------------------------
# Cheap XLA glue (runs once per block boundary on tiny arrays)
# ---------------------------------------------------------------------------
def _stem_patches(x_nhwc):
    """3x3 / stride-2 / pad-1 im2col for the stem: (B,H,W,3) -> (B*Ho*Wo, KSTEM) bf16."""
    B, H, W, C = x_nhwc.shape
    xp = jnp.pad(x_nhwc, ((0, 0), (1, 1), (1, 1), (0, 0)))
    Ho, Wo = H // 2, W // 2
    taps = []
    for dh in range(3):
        for dw in range(3):
            taps.append(xp[:, dh:dh + 2 * Ho - 1:2, dw:dw + 2 * Wo - 1:2, :])
    pt = jnp.stack(taps, axis=3).reshape(B * Ho * Wo, 9 * C)
    pt = jnp.pad(pt, ((0, 0), (0, KSTEM - 9 * C)))
    return pt.astype(jnp.bfloat16), Ho, Wo


def _phase_split(x_rows, B, H, W):
    """(B*H*W, CP) rows in [b][h][w] order -> (4*B*(H//2)*(W//2), CP) rows in
    [phase(2*ph+pw)][b][ho][wo] order, with pixel (h, w) = (2*ho+ph, 2*wo+pw)."""
    x4 = x_rows.reshape(B, H, W, CP)
    phases = [x4[:, ph::2, pw::2, :] for ph in range(2) for pw in range(2)]
    return jnp.stack(phases, axis=0).reshape(4 * B * (H // 2) * (W // 2), CP)


def _spec2d(a):
    return pl.BlockSpec(a.shape, lambda i: (0, 0))


# ---------------------------------------------------------------------------
# Synthetic OFA-MobileNetV3 parameters (deterministic) + prep (fold/pad/cast)
# ---------------------------------------------------------------------------
def init_params(seed=0):
    keys = iter(jax.random.split(jax.random.PRNGKey(seed), 128))

    def conv_w(fan_in, cout):
        return (1.0 / math.sqrt(fan_in)) * jax.random.normal(
            next(keys), (fan_in, cout), jnp.float32)

    def bn(c):
        # folded eval-mode BN: scale = gamma/sqrt(var+eps), bias = beta - mean*scale
        s = 1.0 + 0.05 * jax.random.normal(next(keys), (c,), jnp.float32)
        b = 0.05 * jax.random.normal(next(keys), (c,), jnp.float32)
        return s, b

    p = {}
    p["first_w"] = conv_w(9 * IN_CH, FIRST_CONV_CH)
    p["first_s"], p["first_b"] = bn(FIRST_CONV_CH)

    p["blocks"] = []
    for (cin, cout, exp, stride, act) in BLOCK_CFG:
        mid = cin * exp
        bp = {}
        if exp != 1:
            bp["exp_w"] = conv_w(cin, mid)
            bp["exp_s"], bp["exp_b"] = bn(mid)
        bp["dw_w"] = (1.0 / 3.0) * jax.random.normal(next(keys), (9, mid), jnp.float32)
        bp["dw_s"], bp["dw_b"] = bn(mid)
        bp["proj_w"] = conv_w(mid, cout)
        bp["proj_s"], bp["proj_b"] = bn(cout)
        p["blocks"].append(bp)

    p["fexp_w"] = conv_w(BLOCK_CFG[-1][1], FINAL_EXPAND_CH)
    p["fexp_s"], p["fexp_b"] = bn(FINAL_EXPAND_CH)

    p["fmix_w"] = conv_w(FINAL_EXPAND_CH, FEATURE_MIX_CH)       # no BN, no bias

    p["cls_w"] = conv_w(FEATURE_MIX_CH, N_CLASSES)
    p["cls_b"] = 0.01 * jax.random.normal(next(keys), (N_CLASSES,), jnp.float32)
    return p


def _pad_mat(w, kp, npad):
    k, n = w.shape
    return jnp.zeros((kp, npad), jnp.float32).at[:k, :n].set(w)


def _pad_bias(v, npad):
    return jnp.zeros((1, npad), jnp.float32).at[0, :v.shape[0]].set(v)


def prepare_params(p):
    """Fold eval-mode BN scale into the conv weights, zero-pad every channel
    dim to CP=128 (lane-dense), cast MXU operands to bf16."""
    q = {}
    q["stem_w"] = _pad_mat(p["first_w"] * p["first_s"][None, :],
                           KSTEM, CP).astype(jnp.bfloat16)
    q["stem_b"] = _pad_bias(p["first_b"], CP)
    q["blocks"] = []
    for (cin, cout, exp, stride, act), bp in zip(BLOCK_CFG, p["blocks"]):
        qb = {}
        if exp != 1:
            qb["exp_w"] = _pad_mat(bp["exp_w"] * bp["exp_s"][None, :],
                                   CP, CP).astype(jnp.bfloat16)
            qb["exp_b"] = _pad_bias(bp["exp_b"], CP)
        qb["dw_w"] = _pad_mat(bp["dw_w"] * bp["dw_s"][None, :], 9, CP)   # f32 (VPU)
        qb["dw_b"] = _pad_bias(bp["dw_b"], CP)
        qb["proj_w"] = _pad_mat(bp["proj_w"] * bp["proj_s"][None, :],
                                CP, CP).astype(jnp.bfloat16)
        qb["proj_b"] = _pad_bias(bp["proj_b"], CP)
        q["blocks"].append(qb)
    q["fe_w"] = _pad_mat(p["fexp_w"] * p["fexp_s"][None, :], CP, CP).astype(jnp.bfloat16)
    q["fe_b"] = _pad_bias(p["fexp_b"], CP)
    q["fm_w"] = _pad_mat(p["fmix_w"], CP, CP).astype(jnp.bfloat16)
    q["cls_w"] = _pad_mat(p["cls_w"], CP, CP).astype(jnp.bfloat16)
    q["cls_b"] = _pad_bias(p["cls_b"], CP)
    return q


# ---------------------------------------------------------------------------
# Forward (mirrors OFANetModel.forward) -- 4 fused pallas_calls
# ---------------------------------------------------------------------------
def ofanet_forward(prep, x_nchw):
    B = x_nchw.shape[0]
    x = jnp.transpose(x_nchw, (0, 2, 3, 1)).astype(jnp.float32)   # NCHW -> NHWC
    patches, H, W = _stem_patches(x)                              # 16x16 spatial

    cur = None
    for bi, (cin, cout, exp, stride, act) in enumerate(BLOCK_CFG):
        qb = prep["blocks"][bi]
        has_stem = bi == 0
        has_expand = exp != 1
        residual = stride == 1 and cin == cout
        has_head = bi == len(BLOCK_CFG) - 1
        Ho, Wo = H // stride, W // stride
        m_out = B * Ho * Wo

        if has_stem:
            x_in = patches
        elif stride == 2:
            x_in = _phase_split(cur, B, H, W)
        else:
            x_in = cur

        args = [x_in]
        if has_stem:
            args += [prep["stem_w"], prep["stem_b"]]
        if has_expand:
            args += [qb["exp_w"], qb["exp_b"]]
        args += [qb["dw_w"], qb["dw_b"], qb["proj_w"], qb["proj_b"]]
        if has_head:
            args += [prep["fe_w"], prep["fe_b"], prep["fm_w"],
                     prep["cls_w"], prep["cls_b"]]

        cfg = (B, H, W, stride, act, has_stem, has_expand, residual, has_head)
        kernel = functools.partial(_block_kernel, cfg=cfg)

        if has_head:
            out_shape = (jax.ShapeDtypeStruct((B, CP), jnp.float32),
                         jax.ShapeDtypeStruct((B, CP), jnp.float32))
            out_specs = (pl.BlockSpec((B, CP), lambda i: (0, 0)),
                         pl.BlockSpec((B, CP), lambda i: (0, 0)))
        else:
            out_shape = jax.ShapeDtypeStruct((m_out, CP), jnp.float32)
            out_specs = pl.BlockSpec((m_out, CP), lambda i: (0, 0))

        res = pl.pallas_call(
            kernel,
            out_shape=out_shape,
            grid=(1,),
            in_specs=[_spec2d(a) for a in args],
            out_specs=out_specs,
        )(*args)

        if has_head:
            logits_pad, ft_pad = res
            return logits_pad[:, :N_CLASSES], ft_pad[:, :FEATURE_MIX_CH]
        cur = res
        H, W = Ho, Wo
    raise AssertionError("unreachable")


# ---------------------------------------------------------------------------
# Pure-jnp (non-Pallas) reference using the same folded/padded bf16 weights
# ---------------------------------------------------------------------------
def reference_forward(prep, x_nchw):
    B = x_nchw.shape[0]
    x = jnp.transpose(x_nchw, (0, 2, 3, 1)).astype(jnp.float32)
    patches, H, W = _stem_patches(x)
    cur = _apply_act(
        jnp.dot(patches, prep["stem_w"], preferred_element_type=jnp.float32)
        + prep["stem_b"], "hswish")
    for bi, (cin, cout, exp, stride, act) in enumerate(BLOCK_CFG):
        qb = prep["blocks"][bi]
        inp = cur
        if exp != 1:
            cur = _apply_act(
                jnp.dot(cur.astype(jnp.bfloat16), qb["exp_w"],
                        preferred_element_type=jnp.float32) + qb["exp_b"], act)
        x4 = cur.reshape(B, H, W, CP)
        xp = jnp.pad(x4, ((0, 0), (1, 1), (1, 1), (0, 0)))
        Ho, Wo = H // stride, W // stride
        acc = jnp.zeros((B, Ho, Wo, CP), jnp.float32)
        for dh in range(3):
            for dwc in range(3):
                tap = xp[:, dh:dh + stride * (Ho - 1) + 1:stride,
                         dwc:dwc + stride * (Wo - 1) + 1:stride, :]
                acc = acc + tap * qb["dw_w"][3 * dh + dwc]
        cur = _apply_act(acc + qb["dw_b"].reshape(1, 1, 1, CP),
                         act).reshape(B * Ho * Wo, CP)
        cur = jnp.dot(cur.astype(jnp.bfloat16), qb["proj_w"],
                      preferred_element_type=jnp.float32) + qb["proj_b"]
        if stride == 1 and cin == cout:
            cur = cur + inp
        H, W = Ho, Wo
    cur = _apply_act(
        jnp.dot(cur.astype(jnp.bfloat16), prep["fe_w"],
                preferred_element_type=jnp.float32) + prep["fe_b"], "hswish")
    g = jnp.mean(cur.reshape(B, H * W, CP), axis=1)
    ft = _apply_act(jnp.dot(g.astype(jnp.bfloat16), prep["fm_w"],
                            preferred_element_type=jnp.float32), "hswish")
    logits = jnp.dot(ft.astype(jnp.bfloat16), prep["cls_w"],
                     preferred_element_type=jnp.float32) + prep["cls_b"]
    return logits[:, :N_CLASSES], ft[:, :FEATURE_MIX_CH]


# ---------------------------------------------------------------------------
if __name__ == "__main__":
    # TODO(synk): BatchNorm is applied with folded eval-mode running stats; a
    # train-mode PyTorch module would use batch statistics instead.
    key = jax.random.PRNGKey(0)
    x = jax.random.normal(key, (2, 3, 32, 32), dtype=jnp.float32)   # NCHW, like PyTorch
    params = init_params(seed=0)
    prep = prepare_params(params)

    fwd = jax.jit(ofanet_forward)
    logits, ft = fwd(prep, x)
    jax.block_until_ready((logits, ft))

    ref_logits, ref_ft = jax.jit(reference_forward)(prep, x)
    jax.block_until_ready((ref_logits, ref_ft))

    assert logits.shape == (2, N_CLASSES), logits.shape
    assert ft.shape == (2, FEATURE_MIX_CH), ft.shape
    assert bool(jnp.all(jnp.isfinite(logits))) and bool(jnp.all(jnp.isfinite(ft)))
    assert bool(jnp.allclose(logits, ref_logits, atol=1e-2, rtol=1e-2)), (
        float(jnp.max(jnp.abs(logits - ref_logits))))
    assert bool(jnp.allclose(ft, ref_ft, atol=1e-2, rtol=1e-2)), (
        float(jnp.max(jnp.abs(ft - ref_ft))))
    print("KERNEL_OK")
</pallas_src>

<mosaic_0001>
module attributes {stable_mosaic.version = 11 : i64} {
  func.func @_block_kernel(%arg0: i32, %arg1: memref<512x128xf32, #tpu.memory_space<vmem>>, %arg2: memref<128x128xbf16, #tpu.memory_space<vmem>>, %arg3: memref<1x128xf32, #tpu.memory_space<vmem>>, %arg4: memref<9x128xf32, #tpu.memory_space<vmem>>, %arg5: memref<1x128xf32, #tpu.memory_space<vmem>>, %arg6: memref<128x128xbf16, #tpu.memory_space<vmem>>, %arg7: memref<1x128xf32, #tpu.memory_space<vmem>>, %arg8: memref<128x128xf32, #tpu.memory_space<vmem>>) attributes {dimension_semantics = [#tpu.dimension_semantics<arbitrary>], iteration_bounds = array<i64: 1>, scalar_prefetch = 0 : i64, scratch_operands = 0 : i64, tpu.core_type = #tpu.core_type<tc>, window_params = [{pipeline_mode = #tpu.pipeline_mode<synchronous>, transform_indices = @transform_0, window_bounds = array<i64: 512, 128>}, {pipeline_mode = #tpu.pipeline_mode<synchronous>, transform_indices = @transform_1, window_bounds = array<i64: 128, 128>}, {pipeline_mode = #tpu.pipeline_mode<synchronous>, transform_indices = @transform_2, window_bounds = array<i64: 1, 128>}, {pipeline_mode = #tpu.pipeline_mode<synchronous>, transform_indices = @transform_3, window_bounds = array<i64: 9, 128>}, {pipeline_mode = #tpu.pipeline_mode<synchronous>, transform_indices = @transform_4, window_bounds = array<i64: 1, 128>}, {pipeline_mode = #tpu.pipeline_mode<synchronous>, transform_indices = @transform_5, window_bounds = array<i64: 128, 128>}, {pipeline_mode = #tpu.pipeline_mode<synchronous>, transform_indices = @transform_6, window_bounds = array<i64: 1, 128>}, {pipeline_mode = #tpu.pipeline_mode<synchronous>, transform_indices = @transform_7, window_bounds = array<i64: 128, 128>}]} {
    %c0 = arith.constant 0 : index
    %c0_0 = arith.constant 0 : index
    %0 = vector.load %arg1[%c0, %c0_0] : memref<512x128xf32, #tpu.memory_space<vmem>>, vector<512x128xf32>
    %1 = arith.truncf %0 : vector<512x128xf32> to vector<512x128xbf16>
    %c0_1 = arith.constant 0 : index
    %c0_2 = arith.constant 0 : index
    %2 = vector.load %arg2[%c0_1, %c0_2] : memref<128x128xbf16, #tpu.memory_space<vmem>>, vector<128x128xbf16>
    %cst = arith.constant dense<0.000000e+00> : vector<512x128xf32>
    %3 = tpu.matmul %1, %2, %cst {dimension_numbers = #tpu.dot_dimension_numbers<[1], [0], [0], [1], [0, 0, 1, 1], [], []>} : vector<512x128xbf16>, vector<128x128xbf16>, vector<512x128xf32> -> vector<512x128xf32>
    %c0_3 = arith.constant 0 : index
    %c0_4 = arith.constant 0 : index
    %4 = vector.load %arg3[%c0_3, %c0_4] : memref<1x128xf32, #tpu.memory_space<vmem>>, vector<1x128xf32>
    %5 = vector.broadcast %4 : vector<1x128xf32> to vector<512x128xf32>
    %6 = arith.addf %3, %5 : vector<512x128xf32>
    %cst_5 = arith.constant 0.000000e+00 : f32
    %7 = vector.broadcast %cst_5 : f32 to vector<512x128xf32>
    %8 = arith.maximumf %6, %7 : vector<512x128xf32>
    %c0_6 = arith.constant 0 : index
    %c0_7 = arith.constant 0 : index
    %9 = vector.load %arg4[%c0_6, %c0_7] : memref<9x128xf32, #tpu.memory_space<vmem>>, vector<9x128xf32>
    %10 = tpu.iota {dimensions = array<i32: 0>} : vector<128x1xi32>
    %c7_i32 = arith.constant 7 : i32
    %11 = vector.broadcast %c7_i32 : i32 to vector<128x1xi32>
    %12 = arith.andi %10, %11 : vector<128x1xi32>
    %c3_i32 = arith.constant 3 : i32
    %13 = vector.broadcast %c3_i32 : i32 to vector<128x1xi32>
    %14 = arith.shrsi %10, %13 : vector<128x1xi32>
    %c7_i32_8 = arith.constant 7 : i32
    %15 = vector.broadcast %c7_i32_8 : i32 to vector<128x1xi32>
    %16 = arith.andi %14, %15 : vector<128x1xi32>
    %cst_9 = arith.constant 0.000000e+00 : f32
    %17 = vector.broadcast %cst_9 : f32 to vector<128x128xf32>
    %18 = vector.extract_strided_slice %9 {offsets = [0, 0], sizes = [1, 128], strides = [1, 1]} : vector<9x128xf32> to vector<1x128xf32>
    %19 = vector.extract_strided_slice %8 {offsets = [384, 0], sizes = [128, 128], strides = [1, 1]} : vector<512x128xf32> to vector<128x128xf32>
    %cst_10 = arith.constant 0.000000e+00 : f32
    %20 = vector.broadcast %cst_10 : f32 to vector<9x128xf32>
    %21 = vector.extract_strided_slice %19 {offsets = [0, 0], sizes = [119, 128], strides = [1, 1]} : vector<128x128xf32> to vector<119x128xf32>
    %22 = tpu.concatenate %20, %21 in 0 : vector<9x128xf32>, vector<119x128xf32> -> vector<128x128xf32>
    %c1_i32 = arith.constant 1 : i32
    %23 = vector.broadcast %c1_i32 : i32 to vector<128x1xi32>
    %24 = arith.cmpi sge, %16, %23 : vector<128x1xi32>
    %c1_i32_11 = arith.constant 1 : i32
    %25 = vector.broadcast %c1_i32_11 : i32 to vector<128x1xi32>
    %26 = arith.cmpi sge, %12, %25 : vector<128x1xi32>
    %27 = arith.andi %24, %26 : vector<128x1xi1>
    %cst_12 = arith.constant 0.000000e+00 : f32
    %28 = vector.shape_cast %27 : vector<128x1xi1> to vector<128x1xi1>
    %29 = vector.broadcast %28 : vector<128x1xi1> to vector<128x128xi1>
    %30 = vector.broadcast %cst_12 : f32 to vector<128x128xf32>
    %31 = arith.select %29, %22, %30 : vector<128x128xi1>, vector<128x128xf32>
    %32 = vector.broadcast %18 : vector<1x128xf32> to vector<128x128xf32>
    %33 = arith.mulf %31, %32 : vector<128x128xf32>
    %34 = arith.addf %17, %33 : vector<128x128xf32>
    %35 = vector.extract_strided_slice %9 {offsets = [1, 0], sizes = [1, 128], strides = [1, 1]} : vector<9x128xf32> to vector<1x128xf32>
    %36 = vector.extract_strided_slice %8 {offsets = [256, 0], sizes = [128, 128], strides = [1, 1]} : vector<512x128xf32> to vector<128x128xf32>
    %cst_13 = arith.constant 0.000000e+00 : f32
    %37 = vector.broadcast %cst_13 : f32 to vector<8x128xf32>
    %38 = vector.extract_strided_slice %36 {offsets = [0, 0], sizes = [120, 128], strides = [1, 1]} : vector<128x128xf32> to vector<120x128xf32>
    %39 = tpu.concatenate %37, %38 in 0 : vector<8x128xf32>, vector<120x128xf32> -> vector<128x128xf32>
    %c1_i32_14 = arith.constant 1 : i32
    %40 = vector.broadcast %c1_i32_14 : i32 to vector<128x1xi32>
    %41 = arith.cmpi sge, %16, %40 : vector<128x1xi32>
    %cst_15 = arith.constant 0.000000e+00 : f32
    %42 = vector.shape_cast %41 : vector<128x1xi1> to vector<128x1xi1>
    %43 = vector.broadcast %42 : vector<128x1xi1> to vector<128x128xi1>
    %44 = vector.broadcast %cst_15 : f32 to vector<128x128xf32>
    %45 = arith.select %43, %39, %44 : vector<128x128xi1>, vector<128x128xf32>
    %46 = vector.broadcast %35 : vector<1x128xf32> to vector<128x128xf32>
    %47 = arith.mulf %45, %46 : vector<128x128xf32>
    %48 = arith.addf %34, %47 : vector<128x128xf32>
    %49 = vector.extract_strided_slice %9 {offsets = [2, 0], sizes = [1, 128], strides = [1, 1]} : vector<9x128xf32> to vector<1x128xf32>
    %50 = vector.extract_strided_slice %8 {offsets = [384, 0], sizes = [128, 128], strides = [1, 1]} : vector<512x128xf32> to vector<128x128xf32>
    %cst_16 = arith.constant 0.000000e+00 : f32
    %51 = vector.broadcast %cst_16 : f32 to vector<8x128xf32>
    %52 = vector.extract_strided_slice %50 {offsets = [0, 0], sizes = [120, 128], strides = [1, 1]} : vector<128x128xf32> to vector<120x128xf32>
    %53 = tpu.concatenate %51, %52 in 0 : vector<8x128xf32>, vector<120x128xf32> -> vector<128x128xf32>
    %c1_i32_17 = arith.constant 1 : i32
    %54 = vector.broadcast %c1_i32_17 : i32 to vector<128x1xi32>
    %55 = arith.cmpi sge, %16, %54 : vector<128x1xi32>
    %cst_18 = arith.constant 0.000000e+00 : f32
    %56 = vector.shape_cast %55 : vector<128x1xi1> to vector<128x1xi1>
    %57 = vector.broadcast %56 : vector<128x1xi1> to vector<128x128xi1>
    %58 = vector.broadcast %cst_18 : f32 to vector<128x128xf32>
    %59 = arith.select %57, %53, %58 : vector<128x128xi1>, vector<128x128xf32>
    %60 = vector.broadcast %49 : vector<1x128xf32> to vector<128x128xf32>
    %61 = arith.mulf %59, %60 : vector<128x128xf32>
    %62 = arith.addf %48, %61 : vector<128x128xf32>
    %63 = vector.extract_strided_slice %9 {offsets = [3, 0], sizes = [1, 128], strides = [1, 1]} : vector<9x128xf32> to vector<1x128xf32>
    %64 = vector.extract_strided_slice %8 {offsets = [128, 0], sizes = [128, 128], strides = [1, 1]} : vector<512x128xf32> to vector<128x128xf32>
    %cst_19 = arith.constant 0.000000e+00 : f32
    %65 = vector.broadcast %cst_19 : f32 to vector<1x128xf32>
    %66 = vector.extract_strided_slice %64 {offsets = [0, 0], sizes = [127, 128], strides = [1, 1]} : vector<128x128xf32> to vector<127x128xf32>
    %67 = tpu.concatenate %65, %66 in 0 : vector<1x128xf32>, vector<127x128xf32> -> vector<128x128xf32>
    %c1_i32_20 = arith.constant 1 : i32
    %68 = vector.broadcast %c1_i32_20 : i32 to vector<128x1xi32>
    %69 = arith.cmpi sge, %12, %68 : vector<128x1xi32>
    %cst_21 = arith.constant 0.000000e+00 : f32
    %70 = vector.shape_cast %69 : vector<128x1xi1> to vector<128x1xi1>
    %71 = vector.broadcast %70 : vector<128x1xi1> to vector<128x128xi1>
    %72 = vector.broadcast %cst_21 : f32 to vector<128x128xf32>
    %73 = arith.select %71, %67, %72 : vector<128x128xi1>, vector<128x128xf32>
    %74 = vector.broadcast %63 : vector<1x128xf32> to vector<128x128xf32>
    %75 = arith.mulf %73, %74 : vector<128x128xf32>
    %76 = arith.addf %62, %75 : vector<128x128xf32>
    %77 = vector.extract_strided_slice %9 {offsets = [4, 0], sizes = [1, 128], strides = [1, 1]} : vector<9x128xf32> to vector<1x128xf32>
    %78 = vector.extract_strided_slice %8 {offsets = [0, 0], sizes = [128, 128], strides = [1, 1]} : vector<512x128xf32> to vector<128x128xf32>
    %79 = vector.broadcast %77 : vector<1x128xf32> to vector<128x128xf32>
    %80 = arith.mulf %78, %79 : vector<128x128xf32>
    %81 = arith.addf %76, %80 : vector<128x128xf32>
    %82 = vector.extract_strided_slice %9 {offsets = [5, 0], sizes = [1, 128], strides = [1, 1]} : vector<9x128xf32> to vector<1x128xf32>
    %83 = vector.extract_strided_slice %8 {offsets = [128, 0], sizes = [128, 128], strides = [1, 1]} : vector<512x128xf32> to vector<128x128xf32>
    %84 = vector.broadcast %82 : vector<1x128xf32> to vector<128x128xf32>
    %85 = arith.mulf %83, %84 : vector<128x128xf32>
    %86 = arith.addf %81, %85 : vector<128x128xf32>
    %87 = vector.extract_strided_slice %9 {offsets = [6, 0], sizes = [1, 128], strides = [1, 1]} : vector<9x128xf32> to vector<1x128xf32>
    %88 = vector.extract_strided_slice %8 {offsets = [384, 0], sizes = [128, 128], strides = [1, 1]} : vector<512x128xf32> to vector<128x128xf32>
    %cst_22 = arith.constant 0.000000e+00 : f32
    %89 = vector.broadcast %cst_22 : f32 to vector<1x128xf32>
    %90 = vector.extract_strided_slice %88 {offsets = [0, 0], sizes = [127, 128], strides = [1, 1]} : vector<128x128xf32> to vector<127x128xf32>
    %91 = tpu.concatenate %89, %90 in 0 : vector<1x128xf32>, vector<127x128xf32> -> vector<128x128xf32>
    %c1_i32_23 = arith.constant 1 : i32
    %92 = vector.broadcast %c1_i32_23 : i32 to vector<128x1xi32>
    %93 = arith.cmpi sge, %12, %92 : vector<128x1xi32>
    %cst_24 = arith.constant 0.000000e+00 : f32
    %94 = vector.shape_cast %93 : vector<128x1xi1> to vector<128x1xi1>
    %95 = vector.broadcast %94 : vector<128x1xi1> to vector<128x128xi1>
    %96 = vector.broadcast %cst_24 : f32 to vector<128x128xf32>
    %97 = arith.select %95, %91, %96 : vector<128x128xi1>, vector<128x128xf32>
    %98 = vector.broadcast %87 : vector<1x128xf32> to vector<128x128xf32>
    %99 = arith.mulf %97, %98 : vector<128x128xf32>
    %100 = arith.addf %86, %99 : vector<128x128xf32>
    %101 = vector.extract_strided_slice %9 {offsets = [7, 0], sizes = [1, 128], strides = [1, 1]} : vector<9x128xf32> to vector<1x128xf32>
    %102 = vector.extract_strided_slice %8 {offsets = [256, 0], sizes = [128, 128], strides = [1, 1]} : vector<512x128xf32> to vector<128x128xf32>
    %103 = vector.broadcast %101 : vector<1x128xf32> to vector<128x128xf32>
    %104 = arith.mulf %102, %103 : vector<128x128xf32>
    %105 = arith.addf %100, %104 : vector<128x128xf32>
    %106 = vector.extract_strided_slice %9 {offsets = [8, 0], sizes = [1, 128], strides = [1, 1]} : vector<9x128xf32> to vector<1x128xf32>
    %107 = vector.extract_strided_slice %8 {offsets = [384, 0], sizes = [128, 128], strides = [1, 1]} : vector<512x128xf32> to vector<128x128xf32>
    %108 = vector.broadcast %106 : vector<1x128xf32> to vector<128x128xf32>
    %109 = arith.mulf %107, %108 : vector<128x128xf32>
    %110 = arith.addf %105, %109 : vector<128x128xf32>
    %c0_25 = arith.constant 0 : index
    %c0_26 = arith.constant 0 : index
    %111 = vector.load %arg5[%c0_25, %c0_26] : memref<1x128xf32, #tpu.memory_space<vmem>>, vector<1x128xf32>
    %112 = vector.broadcast %111 : vector<1x128xf32> to vector<128x128xf32>
    %113 = arith.addf %110, %112 : vector<128x128xf32>
    %cst_27 = arith.constant 0.000000e+00 : f32
    %114 = vector.broadcast %cst_27 : f32 to vector<128x128xf32>
    %115 = arith.maximumf %113, %114 : vector<128x128xf32>
    %116 = arith.truncf %115 : vector<128x128xf32> to vector<128x128xbf16>
    %c0_28 = arith.constant 0 : index
    %c0_29 = arith.constant 0 : index
    %117 = vector.load %arg6[%c0_28, %c0_29] : memref<128x128xbf16, #tpu.memory_space<vmem>>, vector<128x128xbf16>
    %cst_30 = arith.constant dense<0.000000e+00> : vector<128x128xf32>
    %118 = tpu.matmul %116, %117, %cst_30 {dimension_numbers = #tpu.dot_dimension_numbers<[1], [0], [0], [1], [0, 0, 1, 1], [], []>} : vector<128x128xbf16>, vector<128x128xbf16>, vector<128x128xf32> -> vector<128x128xf32>
    %c0_31 = arith.constant 0 : index
    %c0_32 = arith.constant 0 : index
    %119 = vector.load %arg7[%c0_31, %c0_32] : memref<1x128xf32, #tpu.memory_space<vmem>>, vector<1x128xf32>
    %120 = vector.broadcast %119 : vector<1x128xf32> to vector<128x128xf32>
    %121 = arith.addf %118, %120 : vector<128x128xf32>
    %c0_33 = arith.constant 0 : index
    %c0_34 = arith.constant 0 : index
    %122 = vector.load %arg8[%c0_33, %c0_34] : memref<128x128xf32, #tpu.memory_space<vmem>>, vector<128x128xf32>
    tpu.vector_store %arg8[%c0_33, %c0_34], %121 {strides = array<i32>} : memref<128x128xf32, #tpu.memory_space<vmem>>, vector<128x128xf32>,
    return
  }
  func.func @transform_0(%arg0: i32) -> (i32, i32) {
    %c0_i32 = arith.constant 0 : i32
    %c0_i32_0 = arith.constant 0 : i32
    %c0_i32_1 = arith.constant 0 : i32
    return %c0_i32, %c0_i32_0 : i32, i32
  }
  func.func @transform_1(%arg0: i32) -> (i32, i32) {
    %c0_i32 = arith.constant 0 : i32
    %c0_i32_0 = arith.constant 0 : i32
    %c0_i32_1 = arith.constant 0 : i32
    return %c0_i32, %c0_i32_0 : i32, i32
  }
  func.func @transform_2(%arg0: i32) -> (i32, i32) {
    %c0_i32 = arith.constant 0 : i32
    %c0_i32_0 = arith.constant 0 : i32
    %c0_i32_1 = arith.constant 0 : i32
    return %c0_i32, %c0_i32_0 : i32, i32
  }
  func.func @transform_3(%arg0: i32) -> (i32, i32) {
    %c0_i32 = arith.constant 0 : i32
    %c0_i32_0 = arith.constant 0 : i32
    %c0_i32_1 = arith.constant 0 : i32
    return %c0_i32, %c0_i32_0 : i32, i32
  }
  func.func @transform_4(%arg0: i32) -> (i32, i32) {
    %c0_i32 = arith.constant 0 : i32
    %c0_i32_0 = arith.constant 0 : i32
    %c0_i32_1 = arith.constant 0 : i32
    return %c0_i32, %c0_i32_0 : i32, i32
  }
  func.func @transform_5(%arg0: i32) -> (i32, i32) {
    %c0_i32 = arith.constant 0 : i32
    %c0_i32_0 = arith.constant 0 : i32
    %c0_i32_1 = arith.constant 0 : i32
    return %c0_i32, %c0_i32_0 : i32, i32
  }
  func.func @transform_6(%arg0: i32) -> (i32, i32) {
    %c0_i32 = arith.constant 0 : i32
    %c0_i32_0 = arith.constant 0 : i32
    %c0_i32_1 = arith.constant 0 : i32
    return %c0_i32, %c0_i32_0 : i32, i32
  }
  func.func @transform_7(%arg0: i32) -> (i32, i32) {
    %c0_i32 = arith.constant 0 : i32
    %c0_i32_0 = arith.constant 0 : i32
    %c0_i32_1 = arith.constant 0 : i32
    return %c0_i32, %c0_i32_0 : i32, i32
  }
}

module attributes {stable_mosaic.version = 11 : i64} {
  func.func @_block_kernel(%arg0: i32, %arg1: memref<128x128xf32, #tpu.memory_space<vmem>>, %arg2: memref<128x128xbf16, #tpu.memory_space<vmem>>, %arg3: memref<1x128xf32, #tpu.memory_space<vmem>>, %arg4: memref<9x128xf32, #tpu.memory_space<vmem>>, %arg5: memref<1x128xf32, #tpu.memory_space<vmem>>, %arg6: memref<128x128xbf16, #tpu.memory_space<vmem>>, %arg7: memref<1x128xf32, #tpu.memory_space<vmem>>, %arg8: memref<128x128xf32, #tpu.memory_space<vmem>>) attributes {dimension_semantics = [#tpu.dimension_semantics<arbitrary>], iteration_bounds = array<i64: 1>, scalar_prefetch = 0 : i64, scratch_operands = 0 : i64, tpu.core_type = #tpu.core_type<tc>, window_params = [{pipeline_mode = #tpu.pipeline_mode<synchronous>, transform_indices = @transform_0, window_bounds = array<i64: 128, 128>}, {pipeline_mode = #tpu.pipeline_mode<synchronous>, transform_indices = @transform_1, window_bounds = array<i64: 128, 128>}, {pipeline_mode = #tpu.pipeline_mode<synchronous>, transform_indices = @transform_2, window_bounds = array<i64: 1, 128>}, {pipeline_mode = #tpu.pipeline_mode<synchronous>, transform_indices = @transform_3, window_bounds = array<i64: 9, 128>}, {pipeline_mode = #tpu.pipeline_mode<synchronous>, transform_indices = @transform_4, window_bounds = array<i64: 1, 128>}, {pipeline_mode = #tpu.pipeline_mode<synchronous>, transform_indices = @transform_5, window_bounds = array<i64: 128, 128>}, {pipeline_mode = #tpu.pipeline_mode<synchronous>, transform_indices = @transform_6, window_bounds = array<i64: 1, 128>}, {pipeline_mode = #tpu.pipeline_mode<synchronous>, transform_indices = @transform_7, window_bounds = array<i64: 128, 128>}]} {
    %c0 = arith.constant 0 : index
    %c0_0 = arith.constant 0 : index
    %0 = vector.load %arg1[%c0, %c0_0] : memref<128x128xf32, #tpu.memory_space<vmem>>, vector<128x128xf32>
    %1 = arith.truncf %0 : vector<128x128xf32> to vector<128x128xbf16>
    %c0_1 = arith.constant 0 : index
    %c0_2 = arith.constant 0 : index
    %2 = vector.load %arg2[%c0_1, %c0_2] : memref<128x128xbf16, #tpu.memory_space<vmem>>, vector<128x128xbf16>
    %cst = arith.constant dense<0.000000e+00> : vector<128x128xf32>
    %3 = tpu.matmul %1, %2, %cst {dimension_numbers = #tpu.dot_dimension_numbers<[1], [0], [0], [1], [0, 0, 1, 1], [], []>} : vector<128x128xbf16>, vector<128x128xbf16>, vector<128x128xf32> -> vector<128x128xf32>
    %c0_3 = arith.constant 0 : index
    %c0_4 = arith.constant 0 : index
    %4 = vector.load %arg3[%c0_3, %c0_4] : memref<1x128xf32, #tpu.memory_space<vmem>>, vector<1x128xf32>
    %5 = vector.broadcast %4 : vector<1x128xf32> to vector<128x128xf32>
    %6 = arith.addf %3, %5 : vector<128x128xf32>
    %cst_5 = arith.constant 0.000000e+00 : f32
    %7 = vector.broadcast %cst_5 : f32 to vector<128x128xf32>
    %8 = arith.maximumf %6, %7 : vector<128x128xf32>
    %c0_6 = arith.constant 0 : index
    %c0_7 = arith.constant 0 : index
    %9 = vector.load %arg4[%c0_6, %c0_7] : memref<9x128xf32, #tpu.memory_space<vmem>>, vector<9x128xf32>
    %10 = tpu.iota {dimensions = array<i32: 0>} : vector<128x1xi32>
    %c7_i32 = arith.constant 7 : i32
    %11 = vector.broadcast %c7_i32 : i32 to vector<128x1xi32>
    %12 = arith.andi %10, %11 : vector<128x1xi32>
    %c3_i32 = arith.constant 3 : i32
    %13 = vector.broadcast %c3_i32 : i32 to vector<128x1xi32>
    %14 = arith.shrsi %10, %13 : vector<128x1xi32>
    %c7_i32_8 = arith.constant 7 : i32
    %15 = vector.broadcast %c7_i32_8 : i32 to vector<128x1xi32>
    %16 = arith.andi %14, %15 : vector<128x1xi32>
    %cst_9 = arith.constant 0.000000e+00 : f32
    %17 = vector.broadcast %cst_9 : f32 to vector<128x128xf32>
    %18 = vector.extract_strided_slice %9 {offsets = [0, 0], sizes = [1, 128], strides = [1, 1]} : vector<9x128xf32> to vector<1x128xf32>
    %cst_10 = arith.constant 0.000000e+00 : f32
    %19 = vector.broadcast %cst_10 : f32 to vector<9x128xf32>
    %20 = vector.extract_strided_slice %8 {offsets = [0, 0], sizes = [119, 128], strides = [1, 1]} : vector<128x128xf32> to vector<119x128xf32>
    %21 = tpu.concatenate %19, %20 in 0 : vector<9x128xf32>, vector<119x128xf32> -> vector<128x128xf32>
    %c1_i32 = arith.constant 1 : i32
    %22 = vector.broadcast %c1_i32 : i32 to vector<128x1xi32>
    %23 = arith.cmpi sge, %16, %22 : vector<128x1xi32>
    %c1_i32_11 = arith.constant 1 : i32
    %24 = vector.broadcast %c1_i32_11 : i32 to vector<128x1xi32>
    %25 = arith.cmpi sge, %12, %24 : vector<128x1xi32>
    %26 = arith.andi %23, %25 : vector<128x1xi1>
    %cst_12 = arith.constant 0.000000e+00 : f32
    %27 = vector.shape_cast %26 : vector<128x1xi1> to vector<128x1xi1>
    %28 = vector.broadcast %27 : vector<128x1xi1> to vector<128x128xi1>
    %29 = vector.broadcast %cst_12 : f32 to vector<128x128xf32>
    %30 = arith.select %28, %21, %29 : vector<128x128xi1>, vector<128x128xf32>
    %31 = vector.broadcast %18 : vector<1x128xf32> to vector<128x128xf32>
    %32 = arith.mulf %30, %31 : vector<128x128xf32>
    %33 = arith.addf %17, %32 : vector<128x128xf32>
    %34 = vector.extract_strided_slice %9 {offsets = [1, 0], sizes = [1, 128], strides = [1, 1]} : vector<9x128xf32> to vector<1x128xf32>
    %cst_13 = arith.constant 0.000000e+00 : f32
    %35 = vector.broadcast %cst_13 : f32 to vector<8x128xf32>
    %36 = vector.extract_strided_slice %8 {offsets = [0, 0], sizes = [120, 128], strides = [1, 1]} : vector<128x128xf32> to vector<120x128xf32>
    %37 = tpu.concatenate %35, %36 in 0 : vector<8x128xf32>, vector<120x128xf32> -> vector<128x128xf32>
    %c1_i32_14 = arith.constant 1 : i32
    %38 = vector.broadcast %c1_i32_14 : i32 to vector<128x1xi32>
    %39 = arith.cmpi sge, %16, %38 : vector<128x1xi32>
    %cst_15 = arith.constant 0.000000e+00 : f32
    %40 = vector.shape_cast %39 : vector<128x1xi1> to vector<128x1xi1>
    %41 = vector.broadcast %40 : vector<128x1xi1> to vector<128x128xi1>
    %42 = vector.broadcast %cst_15 : f32 to vector<128x128xf32>
    %43 = arith.select %41, %37, %42 : vector<128x128xi1>, vector<128x128xf32>
    %44 = vector.broadcast %34 : vector<1x128xf32> to vector<128x128xf32>
    %45 = arith.mulf %43, %44 : vector<128x128xf32>
    %46 = arith.addf %33, %45 : vector<128x128xf32>
    %47 = vector.extract_strided_slice %9 {offsets = [2, 0], sizes = [1, 128], strides = [1, 1]} : vector<9x128xf32> to vector<1x128xf32>
    %cst_16 = arith.constant 0.000000e+00 : f32
    %48 = vector.broadcast %cst_16 : f32 to vector<7x128xf32>
    %49 = vector.extract_strided_slice %8 {offsets = [0, 0], sizes = [121, 128], strides = [1, 1]} : vector<128x128xf32> to vector<121x128xf32>
    %50 = tpu.concatenate %48, %49 in 0 : vector<7x128xf32>, vector<121x128xf32> -> vector<128x128xf32>
    %c1_i32_17 = arith.constant 1 : i32
    %51 = vector.broadcast %c1_i32_17 : i32 to vector<128x1xi32>
    %52 = arith.cmpi sge, %16, %51 : vector<128x1xi32>
    %c6_i32 = arith.constant 6 : i32
    %53 = vector.broadcast %c6_i32 : i32 to vector<128x1xi32>
    %54 = arith.cmpi sle, %12, %53 : vector<128x1xi32>
    %55 = arith.andi %52, %54 : vector<128x1xi1>
    %cst_18 = arith.constant 0.000000e+00 : f32
    %56 = vector.shape_cast %55 : vector<128x1xi1> to vector<128x1xi1>
    %57 = vector.broadcast %56 : vector<128x1xi1> to vector<128x128xi1>
    %58 = vector.broadcast %cst_18 : f32 to vector<128x128xf32>
    %59 = arith.select %57, %50, %58 : vector<128x128xi1>, vector<128x128xf32>
    %60 = vector.broadcast %47 : vector<1x128xf32> to vector<128x128xf32>
    %61 = arith.mulf %59, %60 : vector<128x128xf32>
    %62 = arith.addf %46, %61 : vector<128x128xf32>
    %63 = vector.extract_strided_slice %9 {offsets = [3, 0], sizes = [1, 128], strides = [1, 1]} : vector<9x128xf32> to vector<1x128xf32>
    %cst_19 = arith.constant 0.000000e+00 : f32
    %64 = vector.broadcast %cst_19 : f32 to vector<1x128xf32>
    %65 = vector.extract_strided_slice %8 {offsets = [0, 0], sizes = [127, 128], strides = [1, 1]} : vector<128x128xf32> to vector<127x128xf32>
    %66 = tpu.concatenate %64, %65 in 0 : vector<1x128xf32>, vector<127x128xf32> -> vector<128x128xf32>
    %c1_i32_20 = arith.constant 1 : i32
    %67 = vector.broadcast %c1_i32_20 : i32 to vector<128x1xi32>
    %68 = arith.cmpi sge, %12, %67 : vector<128x1xi32>
    %cst_21 = arith.constant 0.000000e+00 : f32
    %69 = vector.shape_cast %68 : vector<128x1xi1> to vector<128x1xi1>
    %70 = vector.broadcast %69 : vector<128x1xi1> to vector<128x128xi1>
    %71 = vector.broadcast %cst_21 : f32 to vector<128x128xf32>
    %72 = arith.select %70, %66, %71 : vector<128x128xi1>, vector<128x128xf32>
    %73 = vector.broadcast %63 : vector<1x128xf32> to vector<128x128xf32>
    %74 = arith.mulf %72, %73 : vector<128x128xf32>
    %75 = arith.addf %62, %74 : vector<128x128xf32>
    %76 = vector.extract_strided_slice %9 {offsets = [4, 0], sizes = [1, 128], strides = [1, 1]} : vector<9x128xf32> to vector<1x128xf32>
    %77 = vector.broadcast %76 : vector<1x128xf32> to vector<128x128xf32>
    %78 = arith.mulf %8, %77 : vector<128x128xf32>
    %79 = arith.addf %75, %78 : vector<128x128xf32>
    %80 = vector.extract_strided_slice %9 {offsets = [5, 0], sizes = [1, 128], strides = [1, 1]} : vector<9x128xf32> to vector<1x128xf32>
    %81 = vector.extract_strided_slice %8 {offsets = [1, 0], sizes = [127, 128], strides = [1, 1]} : vector<128x128xf32> to vector<127x128xf32>
    %cst_22 = arith.constant 0.000000e+00 : f32
    %82 = vector.broadcast %cst_22 : f32 to vector<1x128xf32>
    %83 = tpu.concatenate %81, %82 in 0 : vector<127x128xf32>, vector<1x128xf32> -> vector<128x128xf32>
    %c6_i32_23 = arith.constant 6 : i32
    %84 = vector.broadcast %c6_i32_23 : i32 to vector<128x1xi32>
    %85 = arith.cmpi sle, %12, %84 : vector<128x1xi32>
    %cst_24 = arith.constant 0.000000e+00 : f32
    %86 = vector.shape_cast %85 : vector<128x1xi1> to vector<128x1xi1>
    %87 = vector.broadcast %86 : vector<128x1xi1> to vector<128x128xi1>
    %88 = vector.broadcast %cst_24 : f32 to vector<128x128xf32>
    %89 = arith.select %87, %83, %88 : vector<128x128xi1>, vector<128x128xf32>
    %90 = vector.broadcast %80 : vector<1x128xf32> to vector<128x128xf32>
    %91 = arith.mulf %89, %90 : vector<128x128xf32>
    %92 = arith.addf %79, %91 : vector<128x128xf32>
    %93 = vector.extract_strided_slice %9 {offsets = [6, 0], sizes = [1, 128], strides = [1, 1]} : vector<9x128xf32> to vector<1x128xf32>
    %94 = vector.extract_strided_slice %8 {offsets = [7, 0], sizes = [121, 128], strides = [1, 1]} : vector<128x128xf32> to vector<121x128xf32>
    %cst_25 = arith.constant 0.000000e+00 : f32
    %95 = vector.broadcast %cst_25 : f32 to vector<7x128xf32>
    %96 = tpu.concatenate %94, %95 in 0 : vector<121x128xf32>, vector<7x128xf32> -> vector<128x128xf32>
    %c6_i32_26 = arith.constant 6 : i32
    %97 = vector.broadcast %c6_i32_26 : i32 to vector<128x1xi32>
    %98 = arith.cmpi sle, %16, %97 : vector<128x1xi32>
    %c1_i32_27 = arith.constant 1 : i32
    %99 = vector.broadcast %c1_i32_27 : i32 to vector<128x1xi32>
    %100 = arith.cmpi sge, %12, %99 : vector<128x1xi32>
    %101 = arith.andi %98, %100 : vector<128x1xi1>
    %cst_28 = arith.constant 0.000000e+00 : f32
    %102 = vector.shape_cast %101 : vector<128x1xi1> to vector<128x1xi1>
    %103 = vector.broadcast %102 : vector<128x1xi1> to vector<128x128xi1>
    %104 = vector.broadcast %cst_28 : f32 to vector<128x128xf32>
    %105 = arith.select %103, %96, %104 : vector<128x128xi1>, vector<128x128xf32>
    %106 = vector.broadcast %93 : vector<1x128xf32> to vector<128x128xf32>
    %107 = arith.mulf %105, %106 : vector<128x128xf32>
    %108 = arith.addf %92, %107 : vector<128x128xf32>
    %109 = vector.extract_strided_slice %9 {offsets = [7, 0], sizes = [1, 128], strides = [1, 1]} : vector<9x128xf32> to vector<1x128xf32>
    %110 = vector.extract_strided_slice %8 {offsets = [8, 0], sizes = [120, 128], strides = [1, 1]} : vector<128x128xf32> to vector<120x128xf32>
    %cst_29 = arith.constant 0.000000e+00 : f32
    %111 = vector.broadcast %cst_29 : f32 to vector<8x128xf32>
    %112 = tpu.concatenate %110, %111 in 0 : vector<120x128xf32>, vector<8x128xf32> -> vector<128x128xf32>
    %c6_i32_30 = arith.constant 6 : i32
    %113 = vector.broadcast %c6_i32_30 : i32 to vector<128x1xi32>
    %114 = arith.cmpi sle, %16, %113 : vector<128x1xi32>
    %cst_31 = arith.constant 0.000000e+00 : f32
    %115 = vector.shape_cast %114 : vector<128x1xi1> to vector<128x1xi1>
    %116 = vector.broadcast %115 : vector<128x1xi1> to vector<128x128xi1>
    %117 = vector.broadcast %cst_31 : f32 to vector<128x128xf32>
    %118 = arith.select %116, %112, %117 : vector<128x128xi1>, vector<128x128xf32>
    %119 = vector.broadcast %109 : vector<1x128xf32> to vector<128x128xf32>
    %120 = arith.mulf %118, %119 : vector<128x128xf32>
    %121 = arith.addf %108, %120 : vector<128x128xf32>
    %122 = vector.extract_strided_slice %9 {offsets = [8, 0], sizes = [1, 128], strides = [1, 1]} : vector<9x128xf32> to vector<1x128xf32>
    %123 = vector.extract_strided_slice %8 {offsets = [9, 0], sizes = [119, 128], strides = [1, 1]} : vector<128x128xf32> to vector<119x128xf32>
    %cst_32 = arith.constant 0.000000e+00 : f32
    %124 = vector.broadcast %cst_32 : f32 to vector<9x128xf32>
    %125 = tpu.concatenate %123, %124 in 0 : vector<119x128xf32>, vector<9x128xf32> -> vector<128x128xf32>
    %c6_i32_33 = arith.constant 6 : i32
    %126 = vector.broadcast %c6_i32_33 : i32 to vector<128x1xi32>
    %127 = arith.cmpi sle, %16, %126 : vector<128x1xi32>
    %c6_i32_34 = arith.constant 6 : i32
    %128 = vector.broadcast %c6_i32_34 : i32 to vector<128x1xi32>
    %129 = arith.cmpi sle, %12, %128 : vector<128x1xi32>
    %130 = arith.andi %127, %129 : vector<128x1xi1>
    %cst_35 = arith.constant 0.000000e+00 : f32
    %131 = vector.shape_cast %130 : vector<128x1xi1> to vector<128x1xi1>
    %132 = vector.broadcast %131 : vector<128x1xi1> to vector<128x128xi1>
    %133 = vector.broadcast %cst_35 : f32 to vector<128x128xf32>
    %134 = arith.select %132, %125, %133 : vector<128x128xi1>, vector<128x128xf32>
    %135 = vector.broadcast %122 : vector<1x128xf32> to vector<128x128xf32>
    %136 = arith.mulf %134, %135 : vector<128x128xf32>
    %137 = arith.addf %121, %136 : vector<128x128xf32>
    %c0_36 = arith.constant 0 : index
    %c0_37 = arith.constant 0 : index
    %138 = vector.load %arg5[%c0_36, %c0_37] : memref<1x128xf32, #tpu.memory_space<vmem>>, vector<1x128xf32>
    %139 = vector.broadcast %138 : vector<1x128xf32> to vector<128x128xf32>
    %140 = arith.addf %137, %139 : vector<128x128xf32>
    %cst_38 = arith.constant 0.000000e+00 : f32
    %141 = vector.broadcast %cst_38 : f32 to vector<128x128xf32>
    %142 = arith.maximumf %140, %141 : vector<128x128xf32>
    %143 = arith.truncf %142 : vector<128x128xf32> to vector<128x128xbf16>
    %c0_39 = arith.constant 0 : index
    %c0_40 = arith.constant 0 : index
    %144 = vector.load %arg6[%c0_39, %c0_40] : memref<128x128xbf16, #tpu.memory_space<vmem>>, vector<128x128xbf16>
    %cst_41 = arith.constant dense<0.000000e+00> : vector<128x128xf32>
    %145 = tpu.matmul %143, %144, %cst_41 {dimension_numbers = #tpu.dot_dimension_numbers<[1], [0], [0], [1], [0, 0, 1, 1], [], []>} : vector<128x128xbf16>, vector<128x128xbf16>, vector<128x128xf32> -> vector<128x128xf32>
    %c0_42 = arith.constant 0 : index
    %c0_43 = arith.constant 0 : index
    %146 = vector.load %arg7[%c0_42, %c0_43] : memref<1x128xf32, #tpu.memory_space<vmem>>, vector<1x128xf32>
    %147 = vector.broadcast %146 : vector<1x128xf32> to vector<128x128xf32>
    %148 = arith.addf %145, %147 : vector<128x128xf32>
    %149 = arith.addf %148, %0 : vector<128x128xf32>
    %c0_44 = arith.constant 0 : index
    %c0_45 = arith.constant 0 : index
    %150 = vector.load %arg8[%c0_44, %c0_45] : memref<128x128xf32, #tpu.memory_space<vmem>>, vector<128x128xf32>
    tpu.vector_store %arg8[%c0_44, %c0_45], %149 {strides = array<i32>} : memref<128x128xf32, #tpu.memory_space<vmem>>, vector<128x128xf32>,
    return
  }
  func.func @transform_0(%arg0: i32) -> (i32, i32) {
    %c0_i32 = arith.constant 0 : i32
    %c0_i32_0 = arith.constant 0 : i32
    %c0_i32_1 = arith.constant 0 : i32
    return %c0_i32, %c0_i32_0 : i32, i32
  }
  func.func @transform_1(%arg0: i32) -> (i32, i32) {
    %c0_i32 = arith.constant 0 : i32
    %c0_i32_0 = arith.constant 0 : i32
    %c0_i32_1 = arith.constant 0 : i32
    return %c0_i32, %c0_i32_0 : i32, i32
  }
  func.func @transform_2(%arg0: i32) -> (i32, i32) {
    %c0_i32 = arith.constant 0 : i32
    %c0_i32_0 = arith.constant 0 : i32
    %c0_i32_1 = arith.constant 0 : i32
    return %c0_i32, %c0_i32_0 : i32, i32
  }
  func.func @transform_3(%arg0: i32) -> (i32, i32) {
    %c0_i32 = arith.constant 0 : i32
    %c0_i32_0 = arith.constant 0 : i32
    %c0_i32_1 = arith.constant 0 : i32
    return %c0_i32, %c0_i32_0 : i32, i32
  }
  func.func @transform_4(%arg0: i32) -> (i32, i32) {
    %c0_i32 = arith.constant 0 : i32
    %c0_i32_0 = arith.constant 0 : i32
    %c0_i32_1 = arith.constant 0 : i32
    return %c0_i32, %c0_i32_0 : i32, i32
  }
  func.func @transform_5(%arg0: i32) -> (i32, i32) {
    %c0_i32 = arith.constant 0 : i32
    %c0_i32_0 = arith.constant 0 : i32
    %c0_i32_1 = arith.constant 0 : i32
    return %c0_i32, %c0_i32_0 : i32, i32
  }
  func.func @transform_6(%arg0: i32) -> (i32, i32) {
    %c0_i32 = arith.constant 0 : i32
    %c0_i32_0 = arith.constant 0 : i32
    %c0_i32_1 = arith.constant 0 : i32
    return %c0_i32, %c0_i32_0 : i32, i32
  }
  func.func @transform_7(%arg0: i32) -> (i32, i32) {
    %c0_i32 = arith.constant 0 : i32
    %c0_i32_0 = arith.constant 0 : i32
    %c0_i32_1 = arith.constant 0 : i32
    return %c0_i32, %c0_i32_0 : i32, i32
  }
}

module attributes {stable_mosaic.version = 11 : i64} {
  func.func @_block_kernel(%arg0: i32, %arg1: memref<512x128xbf16, #tpu.memory_space<vmem>>, %arg2: memref<128x128xbf16, #tpu.memory_space<vmem>>, %arg3: memref<1x128xf32, #tpu.memory_space<vmem>>, %arg4: memref<9x128xf32, #tpu.memory_space<vmem>>, %arg5: memref<1x128xf32, #tpu.memory_space<vmem>>, %arg6: memref<128x128xbf16, #tpu.memory_space<vmem>>, %arg7: memref<1x128xf32, #tpu.memory_space<vmem>>, %arg8: memref<512x128xf32, #tpu.memory_space<vmem>>) attributes {dimension_semantics = [#tpu.dimension_semantics<arbitrary>], iteration_bounds = array<i64: 1>, scalar_prefetch = 0 : i64, scratch_operands = 0 : i64, tpu.core_type = #tpu.core_type<tc>, window_params = [{pipeline_mode = #tpu.pipeline_mode<synchronous>, transform_indices = @transform_0, window_bounds = array<i64: 512, 128>}, {pipeline_mode = #tpu.pipeline_mode<synchronous>, transform_indices = @transform_1, window_bounds = array<i64: 128, 128>}, {pipeline_mode = #tpu.pipeline_mode<synchronous>, transform_indices = @transform_2, window_bounds = array<i64: 1, 128>}, {pipeline_mode = #tpu.pipeline_mode<synchronous>, transform_indices = @transform_3, window_bounds = array<i64: 9, 128>}, {pipeline_mode = #tpu.pipeline_mode<synchronous>, transform_indices = @transform_4, window_bounds = array<i64: 1, 128>}, {pipeline_mode = #tpu.pipeline_mode<synchronous>, transform_indices = @transform_5, window_bounds = array<i64: 128, 128>}, {pipeline_mode = #tpu.pipeline_mode<synchronous>, transform_indices = @transform_6, window_bounds = array<i64: 1, 128>}, {pipeline_mode = #tpu.pipeline_mode<synchronous>, transform_indices = @transform_7, window_bounds = array<i64: 512, 128>}]} {
    %c0 = arith.constant 0 : index
    %c0_0 = arith.constant 0 : index
    %0 = vector.load %arg1[%c0, %c0_0] : memref<512x128xbf16, #tpu.memory_space<vmem>>, vector<512x128xbf16>
    %c0_1 = arith.constant 0 : index
    %c0_2 = arith.constant 0 : index
    %1 = vector.load %arg2[%c0_1, %c0_2] : memref<128x128xbf16, #tpu.memory_space<vmem>>, vector<128x128xbf16>
    %cst = arith.constant dense<0.000000e+00> : vector<512x128xf32>
    %2 = tpu.matmul %0, %1, %cst {dimension_numbers = #tpu.dot_dimension_numbers<[1], [0], [0], [1], [0, 0, 1, 1], [], []>} : vector<512x128xbf16>, vector<128x128xbf16>, vector<512x128xf32> -> vector<512x128xf32>
    %c0_3 = arith.constant 0 : index
    %c0_4 = arith.constant 0 : index
    %3 = vector.load %arg3[%c0_3, %c0_4] : memref<1x128xf32, #tpu.memory_space<vmem>>, vector<1x128xf32>
    %4 = vector.broadcast %3 : vector<1x128xf32> to vector<512x128xf32>
    %5 = arith.addf %2, %4 : vector<512x128xf32>
    %cst_5 = arith.constant 3.000000e+00 : f32
    %6 = vector.broadcast %cst_5 : f32 to vector<512x128xf32>
    %7 = arith.addf %5, %6 : vector<512x128xf32>
    %cst_6 = arith.constant 0.000000e+00 : f32
    %cst_7 = arith.constant 6.000000e+00 : f32
    %8 = vector.broadcast %cst_6 : f32 to vector<512x128xf32>
    %9 = arith.maximumf %8, %7 : vector<512x128xf32>
    %10 = vector.broadcast %cst_7 : f32 to vector<512x128xf32>
    %11 = arith.minimumf %10, %9 : vector<512x128xf32>
    %12 = arith.mulf %5, %11 : vector<512x128xf32>
    %cst_8 = arith.constant 0.166666672 : f32
    %13 = vector.broadcast %cst_8 : f32 to vector<512x128xf32>
    %14 = arith.mulf %12, %13 : vector<512x128xf32>
    %c0_9 = arith.constant 0 : index
    %c0_10 = arith.constant 0 : index
    %15 = vector.load %arg4[%c0_9, %c0_10] : memref<9x128xf32, #tpu.memory_space<vmem>>, vector<9x128xf32>
    %16 = tpu.iota {dimensions = array<i32: 0>} : vector<512x1xi32>
    %c15_i32 = arith.constant 15 : i32
    %17 = vector.broadcast %c15_i32 : i32 to vector<512x1xi32>
    %18 = arith.andi %16, %17 : vector<512x1xi32>
    %c4_i32 = arith.constant 4 : i32
    %19 = vector.broadcast %c4_i32 : i32 to vector<512x1xi32>
    %20 = arith.shrsi %16, %19 : vector<512x1xi32>
    %c15_i32_11 = arith.constant 15 : i32
    %21 = vector.broadcast %c15_i32_11 : i32 to vector<512x1xi32>
    %22 = arith.andi %20, %21 : vector<512x1xi32>
    %cst_12 = arith.constant 0.000000e+00 : f32
    %23 = vector.broadcast %cst_12 : f32 to vector<512x128xf32>
    %24 = vector.extract_strided_slice %15 {offsets = [0, 0], sizes = [1, 128], strides = [1, 1]} : vector<9x128xf32> to vector<1x128xf32>
    %cst_13 = arith.constant 0.000000e+00 : f32
    %25 = vector.broadcast %cst_13 : f32 to vector<17x128xf32>
    %26 = vector.extract_strided_slice %14 {offsets = [0, 0], sizes = [495, 128], strides = [1, 1]} : vector<512x128xf32> to vector<495x128xf32>
    %27 = tpu.concatenate %25, %26 in 0 : vector<17x128xf32>, vector<495x128xf32> -> vector<512x128xf32>
    %c1_i32 = arith.constant 1 : i32
    %28 = vector.broadcast %c1_i32 : i32 to vector<512x1xi32>
    %29 = arith.cmpi sge, %22, %28 : vector<512x1xi32>
    %c1_i32_14 = arith.constant 1 : i32
    %30 = vector.broadcast %c1_i32_14 : i32 to vector<512x1xi32>
    %31 = arith.cmpi sge, %18, %30 : vector<512x1xi32>
    %32 = arith.andi %29, %31 : vector<512x1xi1>
    %cst_15 = arith.constant 0.000000e+00 : f32
    %33 = vector.shape_cast %32 : vector<512x1xi1> to vector<512x1xi1>
    %34 = vector.broadcast %33 : vector<512x1xi1> to vector<512x128xi1>
    %35 = vector.broadcast %cst_15 : f32 to vector<512x128xf32>
    %36 = arith.select %34, %27, %35 : vector<512x128xi1>, vector<512x128xf32>
    %37 = vector.broadcast %24 : vector<1x128xf32> to vector<512x128xf32>
    %38 = arith.mulf %36, %37 : vector<512x128xf32>
    %39 = arith.addf %23, %38 : vector<512x128xf32>
    %40 = vector.extract_strided_slice %15 {offsets = [1, 0], sizes = [1, 128], strides = [1, 1]} : vector<9x128xf32> to vector<1x128xf32>
    %cst_16 = arith.constant 0.000000e+00 : f32
    %41 = vector.broadcast %cst_16 : f32 to vector<16x128xf32>
    %42 = vector.extract_strided_slice %14 {offsets = [0, 0], sizes = [496, 128], strides = [1, 1]} : vector<512x128xf32> to vector<496x128xf32>
    %43 = tpu.concatenate %41, %42 in 0 : vector<16x128xf32>, vector<496x128xf32> -> vector<512x128xf32>
    %c1_i32_17 = arith.constant 1 : i32
    %44 = vector.broadcast %c1_i32_17 : i32 to vector<512x1xi32>
    %45 = arith.cmpi sge, %22, %44 : vector<512x1xi32>
    %cst_18 = arith.constant 0.000000e+00 : f32
    %46 = vector.shape_cast %45 : vector<512x1xi1> to vector<512x1xi1>
    %47 = vector.broadcast %46 : vector<512x1xi1> to vector<512x128xi1>
    %48 = vector.broadcast %cst_18 : f32 to vector<512x128xf32>
    %49 = arith.select %47, %43, %48 : vector<512x128xi1>, vector<512x128xf32>
    %50 = vector.broadcast %40 : vector<1x128xf32> to vector<512x128xf32>
    %51 = arith.mulf %49, %50 : vector<512x128xf32>
    %52 = arith.addf %39, %51 : vector<512x128xf32>
    %53 = vector.extract_strided_slice %15 {offsets = [2, 0], sizes = [1, 128], strides = [1, 1]} : vector<9x128xf32> to vector<1x128xf32>
    %cst_19 = arith.constant 0.000000e+00 : f32
    %54 = vector.broadcast %cst_19 : f32 to vector<15x128xf32>
    %55 = vector.extract_strided_slice %14 {offsets = [0, 0], sizes = [497, 128], strides = [1, 1]} : vector<512x128xf32> to vector<497x128xf32>
    %56 = tpu.concatenate %54, %55 in 0 : vector<15x128xf32>, vector<497x128xf32> -> vector<512x128xf32>
    %c1_i32_20 = arith.constant 1 : i32
    %57 = vector.broadcast %c1_i32_20 : i32 to vector<512x1xi32>
    %58 = arith.cmpi sge, %22, %57 : vector<512x1xi32>
    %c14_i32 = arith.constant 14 : i32
    %59 = vector.broadcast %c14_i32 : i32 to vector<512x1xi32>
    %60 = arith.cmpi sle, %18, %59 : vector<512x1xi32>
    %61 = arith.andi %58, %60 : vector<512x1xi1>
    %cst_21 = arith.constant 0.000000e+00 : f32
    %62 = vector.shape_cast %61 : vector<512x1xi1> to vector<512x1xi1>
    %63 = vector.broadcast %62 : vector<512x1xi1> to vector<512x128xi1>
    %64 = vector.broadcast %cst_21 : f32 to vector<512x128xf32>
    %65 = arith.select %63, %56, %64 : vector<512x128xi1>, vector<512x128xf32>
    %66 = vector.broadcast %53 : vector<1x128xf32> to vector<512x128xf32>
    %67 = arith.mulf %65, %66 : vector<512x128xf32>
    %68 = arith.addf %52, %67 : vector<512x128xf32>
    %69 = vector.extract_strided_slice %15 {offsets = [3, 0], sizes = [1, 128], strides = [1, 1]} : vector<9x128xf32> to vector<1x128xf32>
    %cst_22 = arith.constant 0.000000e+00 : f32
    %70 = vector.broadcast %cst_22 : f32 to vector<1x128xf32>
    %71 = vector.extract_strided_slice %14 {offsets = [0, 0], sizes = [511, 128], strides = [1, 1]} : vector<512x128xf32> to vector<511x128xf32>
    %72 = tpu.concatenate %70, %71 in 0 : vector<1x128xf32>, vector<511x128xf32> -> vector<512x128xf32>
    %c1_i32_23 = arith.constant 1 : i32
    %73 = vector.broadcast %c1_i32_23 : i32 to vector<512x1xi32>
    %74 = arith.cmpi sge, %18, %73 : vector<512x1xi32>
    %cst_24 = arith.constant 0.000000e+00 : f32
    %75 = vector.shape_cast %74 : vector<512x1xi1> to vector<512x1xi1>
    %76 = vector.broadcast %75 : vector<512x1xi1> to vector<512x128xi1>
    %77 = vector.broadcast %cst_24 : f32 to vector<512x128xf32>
    %78 = arith.select %76, %72, %77 : vector<512x128xi1>, vector<512x128xf32>
    %79 = vector.broadcast %69 : vector<1x128xf32> to vector<512x128xf32>
    %80 = arith.mulf %78, %79 : vector<512x128xf32>
    %81 = arith.addf %68, %80 : vector<512x128xf32>
    %82 = vector.extract_strided_slice %15 {offsets = [4, 0], sizes = [1, 128], strides = [1, 1]} : vector<9x128xf32> to vector<1x128xf32>
    %83 = vector.broadcast %82 : vector<1x128xf32> to vector<512x128xf32>
    %84 = arith.mulf %14, %83 : vector<512x128xf32>
    %85 = arith.addf %81, %84 : vector<512x128xf32>
    %86 = vector.extract_strided_slice %15 {offsets = [5, 0], sizes = [1, 128], strides = [1, 1]} : vector<9x128xf32> to vector<1x128xf32>
    %87 = vector.extract_strided_slice %14 {offsets = [1, 0], sizes = [511, 128], strides = [1, 1]} : vector<512x128xf32> to vector<511x128xf32>
    %cst_25 = arith.constant 0.000000e+00 : f32
    %88 = vector.broadcast %cst_25 : f32 to vector<1x128xf32>
    %89 = tpu.concatenate %87, %88 in 0 : vector<511x128xf32>, vector<1x128xf32> -> vector<512x128xf32>
    %c14_i32_26 = arith.constant 14 : i32
    %90 = vector.broadcast %c14_i32_26 : i32 to vector<512x1xi32>
    %91 = arith.cmpi sle, %18, %90 : vector<512x1xi32>
    %cst_27 = arith.constant 0.000000e+00 : f32
    %92 = vector.shape_cast %91 : vector<512x1xi1> to vector<512x1xi1>
    %93 = vector.broadcast %92 : vector<512x1xi1> to vector<512x128xi1>
    %94 = vector.broadcast %cst_27 : f32 to vector<512x128xf32>
    %95 = arith.select %93, %89, %94 : vector<512x128xi1>, vector<512x128xf32>
    %96 = vector.broadcast %86 : vector<1x128xf32> to vector<512x128xf32>
    %97 = arith.mulf %95, %96 : vector<512x128xf32>
    %98 = arith.addf %85, %97 : vector<512x128xf32>
    %99 = vector.extract_strided_slice %15 {offsets = [6, 0], sizes = [1, 128], strides = [1, 1]} : vector<9x128xf32> to vector<1x128xf32>
    %100 = vector.extract_strided_slice %14 {offsets = [15, 0], sizes = [497, 128], strides = [1, 1]} : vector<512x128xf32> to vector<497x128xf32>
    %cst_28 = arith.constant 0.000000e+00 : f32
    %101 = vector.broadcast %cst_28 : f32 to vector<15x128xf32>
    %102 = tpu.concatenate %100, %101 in 0 : vector<497x128xf32>, vector<15x128xf32> -> vector<512x128xf32>
    %c14_i32_29 = arith.constant 14 : i32
    %103 = vector.broadcast %c14_i32_29 : i32 to vector<512x1xi32>
    %104 = arith.cmpi sle, %22, %103 : vector<512x1xi32>
    %c1_i32_30 = arith.constant 1 : i32
    %105 = vector.broadcast %c1_i32_30 : i32 to vector<512x1xi32>
    %106 = arith.cmpi sge, %18, %105 : vector<512x1xi32>
    %107 = arith.andi %104, %106 : vector<512x1xi1>
    %cst_31 = arith.constant 0.000000e+00 : f32
    %108 = vector.shape_cast %107 : vector<512x1xi1> to vector<512x1xi1>
    %109 = vector.broadcast %108 : vector<512x1xi1> to vector<512x128xi1>
    %110 = vector.broadcast %cst_31 : f32 to vector<512x128xf32>
    %111 = arith.select %109, %102, %110 : vector<512x128xi1>, vector<512x128xf32>
    %112 = vector.broadcast %99 : vector<1x128xf32> to vector<512x128xf32>
    %113 = arith.mulf %111, %112 : vector<512x128xf32>
    %114 = arith.addf %98, %113 : vector<512x128xf32>
    %115 = vector.extract_strided_slice %15 {offsets = [7, 0], sizes = [1, 128], strides = [1, 1]} : vector<9x128xf32> to vector<1x128xf32>
    %116 = vector.extract_strided_slice %14 {offsets = [16, 0], sizes = [496, 128], strides = [1, 1]} : vector<512x128xf32> to vector<496x128xf32>
    %cst_32 = arith.constant 0.000000e+00 : f32
    %117 = vector.broadcast %cst_32 : f32 to vector<16x128xf32>
    %118 = tpu.concatenate %116, %117 in 0 : vector<496x128xf32>, vector<16x128xf32> -> vector<512x128xf32>
    %c14_i32_33 = arith.constant 14 : i32
    %119 = vector.broadcast %c14_i32_33 : i32 to vector<512x1xi32>
    %120 = arith.cmpi sle, %22, %119 : vector<512x1xi32>
    %cst_34 = arith.constant 0.000000e+00 : f32
    %121 = vector.shape_cast %120 : vector<512x1xi1> to vector<512x1xi1>
    %122 = vector.broadcast %121 : vector<512x1xi1> to vector<512x128xi1>
    %123 = vector.broadcast %cst_34 : f32 to vector<512x128xf32>
    %124 = arith.select %122, %118, %123 : vector<512x128xi1>, vector<512x128xf32>
    %125 = vector.broadcast %115 : vector<1x128xf32> to vector<512x128xf32>
    %126 = arith.mulf %124, %125 : vector<512x128xf32>
    %127 = arith.addf %114, %126 : vector<512x128xf32>
    %128 = vector.extract_strided_slice %15 {offsets = [8, 0], sizes = [1, 128], strides = [1, 1]} : vector<9x128xf32> to vector<1x128xf32>
    %129 = vector.extract_strided_slice %14 {offsets = [17, 0], sizes = [495, 128], strides = [1, 1]} : vector<512x128xf32> to vector<495x128xf32>
    %cst_35 = arith.constant 0.000000e+00 : f32
    %130 = vector.broadcast %cst_35 : f32 to vector<17x128xf32>
    %131 = tpu.concatenate %129, %130 in 0 : vector<495x128xf32>, vector<17x128xf32> -> vector<512x128xf32>
    %c14_i32_36 = arith.constant 14 : i32
    %132 = vector.broadcast %c14_i32_36 : i32 to vector<512x1xi32>
    %133 = arith.cmpi sle, %22, %132 : vector<512x1xi32>
    %c14_i32_37 = arith.constant 14 : i32
    %134 = vector.broadcast %c14_i32_37 : i32 to vector<512x1xi32>
    %135 = arith.cmpi sle, %18, %134 : vector<512x1xi32>
    %136 = arith.andi %133, %135 : vector<512x1xi1>
    %cst_38 = arith.constant 0.000000e+00 : f32
    %137 = vector.shape_cast %136 : vector<512x1xi1> to vector<512x1xi1>
    %138 = vector.broadcast %137 : vector<512x1xi1> to vector<512x128xi1>
    %139 = vector.broadcast %cst_38 : f32 to vector<512x128xf32>
    %140 = arith.select %138, %131, %139 : vector<512x128xi1>, vector<512x128xf32>
    %141 = vector.broadcast %128 : vector<1x128xf32> to vector<512x128xf32>
    %142 = arith.mulf %140, %141 : vector<512x128xf32>
    %143 = arith.addf %127, %142 : vector<512x128xf32>
    %c0_39 = arith.constant 0 : index
    %c0_40 = arith.constant 0 : index
    %144 = vector.load %arg5[%c0_39, %c0_40] : memref<1x128xf32, #tpu.memory_space<vmem>>, vector<1x128xf32>
    %145 = vector.broadcast %144 : vector<1x128xf32> to vector<512x128xf32>
    %146 = arith.addf %143, %145 : vector<512x128xf32>
    %cst_41 = arith.constant 0.000000e+00 : f32
    %147 = vector.broadcast %cst_41 : f32 to vector<512x128xf32>
    %148 = arith.maximumf %146, %147 : vector<512x128xf32>
    %149 = arith.truncf %148 : vector<512x128xf32> to vector<512x128xbf16>
    %c0_42 = arith.constant 0 : index
    %c0_43 = arith.constant 0 : index
    %150 = vector.load %arg6[%c0_42, %c0_43] : memref<128x128xbf16, #tpu.memory_space<vmem>>, vector<128x128xbf16>
    %cst_44 = arith.constant dense<0.000000e+00> : vector<512x128xf32>
    %151 = tpu.matmul %149, %150, %cst_44 {dimension_numbers = #tpu.dot_dimension_numbers<[1], [0], [0], [1], [0, 0, 1, 1], [], []>} : vector<512x128xbf16>, vector<128x128xbf16>, vector<512x128xf32> -> vector<512x128xf32>
    %c0_45 = arith.constant 0 : index
    %c0_46 = arith.constant 0 : index
    %152 = vector.load %arg7[%c0_45, %c0_46] : memref<1x128xf32, #tpu.memory_space<vmem>>, vector<1x128xf32>
    %153 = vector.broadcast %152 : vector<1x128xf32> to vector<512x128xf32>
    %154 = arith.addf %151, %153 : vector<512x128xf32>
    %155 = arith.addf %154, %14 : vector<512x128xf32>
    %c0_47 = arith.constant 0 : index
    %c0_48 = arith.constant 0 : index
    %156 = vector.load %arg8[%c0_47, %c0_48] : memref<512x128xf32, #tpu.memory_space<vmem>>, vector<512x128xf32>
    tpu.vector_store %arg8[%c0_47, %c0_48], %155 {strides = array<i32>} : memref<512x128xf32, #tpu.memory_space<vmem>>, vector<512x128xf32>,
    return
  }
  func.func @transform_0(%arg0: i32) -> (i32, i32) {
    %c0_i32 = arith.constant 0 : i32
    %c0_i32_0 = arith.constant 0 : i32
    %c0_i32_1 = arith.constant 0 : i32
    return %c0_i32, %c0_i32_0 : i32, i32
  }
  func.func @transform_1(%arg0: i32) -> (i32, i32) {
    %c0_i32 = arith.constant 0 : i32
    %c0_i32_0 = arith.constant 0 : i32
    %c0_i32_1 = arith.constant 0 : i32
    return %c0_i32, %c0_i32_0 : i32, i32
  }
  func.func @transform_2(%arg0: i32) -> (i32, i32) {
    %c0_i32 = arith.constant 0 : i32
    %c0_i32_0 = arith.constant 0 : i32
    %c0_i32_1 = arith.constant 0 : i32
    return %c0_i32, %c0_i32_0 : i32, i32
  }
  func.func @transform_3(%arg0: i32) -> (i32, i32) {
    %c0_i32 = arith.constant 0 : i32
    %c0_i32_0 = arith.constant 0 : i32
    %c0_i32_1 = arith.constant 0 : i32
    return %c0_i32, %c0_i32_0 : i32, i32
  }
  func.func @transform_4(%arg0: i32) -> (i32, i32) {
    %c0_i32 = arith.constant 0 : i32
    %c0_i32_0 = arith.constant 0 : i32
    %c0_i32_1 = arith.constant 0 : i32
    return %c0_i32, %c0_i32_0 : i32, i32
  }
  func.func @transform_5(%arg0: i32) -> (i32, i32) {
    %c0_i32 = arith.constant 0 : i32
    %c0_i32_0 = arith.constant 0 : i32
    %c0_i32_1 = arith.constant 0 : i32
    return %c0_i32, %c0_i32_0 : i32, i32
  }
  func.func @transform_6(%arg0: i32) -> (i32, i32) {
    %c0_i32 = arith.constant 0 : i32
    %c0_i32_0 = arith.constant 0 : i32
    %c0_i32_1 = arith.constant 0 : i32
    return %c0_i32, %c0_i32_0 : i32, i32
  }
  func.func @transform_7(%arg0: i32) -> (i32, i32) {
    %c0_i32 = arith.constant 0 : i32
    %c0_i32_0 = arith.constant 0 : i32
    %c0_i32_1 = arith.constant 0 : i32
    return %c0_i32, %c0_i32_0 : i32, i32
  }
}

module attributes {stable_mosaic.version = 11 : i64} {
  func.func @_block_kernel(%arg0: i32, %arg1: memref<128x128xf32, #tpu.memory_space<vmem>>, %arg2: memref<128x128xbf16, #tpu.memory_space<vmem>>, %arg3: memref<1x128xf32, #tpu.memory_space<vmem>>, %arg4: memref<9x128xf32, #tpu.memory_space<vmem>>, %arg5: memref<1x128xf32, #tpu.memory_space<vmem>>, %arg6: memref<128x128xbf16, #tpu.memory_space<vmem>>, %arg7: memref<1x128xf32, #tpu.memory_space<vmem>>, %arg8: memref<128x128xbf16, #tpu.memory_space<vmem>>, %arg9: memref<1x128xf32, #tpu.memory_space<vmem>>, %arg10: memref<128x128xbf16, #tpu.memory_space<vmem>>, %arg11: memref<128x128xbf16, #tpu.memory_space<vmem>>, %arg12: memref<1x128xf32, #tpu.memory_space<vmem>>, %arg13: memref<2x128xf32, #tpu.memory_space<vmem>>, %arg14: memref<2x128xf32, #tpu.memory_space<vmem>>) attributes {dimension_semantics = [#tpu.dimension_semantics<arbitrary>], iteration_bounds = array<i64: 1>, scalar_prefetch = 0 : i64, scratch_operands = 0 : i64, tpu.core_type = #tpu.core_type<tc>, window_params = [{pipeline_mode = #tpu.pipeline_mode<synchronous>, transform_indices = @transform_0, window_bounds = array<i64: 128, 128>}, {pipeline_mode = #tpu.pipeline_mode<synchronous>, transform_indices = @transform_1, window_bounds = array<i64: 128, 128>}, {pipeline_mode = #tpu.pipeline_mode<synchronous>, transform_indices = @transform_2, window_bounds = array<i64: 1, 128>}, {pipeline_mode = #tpu.pipeline_mode<synchronous>, transform_indices = @transform_3, window_bounds = array<i64: 9, 128>}, {pipeline_mode = #tpu.pipeline_mode<synchronous>, transform_indices = @transform_4, window_bounds = array<i64: 1, 128>}, {pipeline_mode = #tpu.pipeline_mode<synchronous>, transform_indices = @transform_5, window_bounds = array<i64: 128, 128>}, {pipeline_mode = #tpu.pipeline_mode<synchronous>, transform_indices = @transform_6, window_bounds = array<i64: 1, 128>}, {pipeline_mode = #tpu.pipeline_mode<synchronous>, transform_indices = @transform_7, window_bounds = array<i64: 128, 128>}, {pipeline_mode = #tpu.pipeline_mode<synchronous>, transform_indices = @transform_8, window_bounds = array<i64: 1, 128>}, {pipeline_mode = #tpu.pipeline_mode<synchronous>, transform_indices = @transform_9, window_bounds = array<i64: 128, 128>}, {pipeline_mode = #tpu.pipeline_mode<synchronous>, transform_indices = @transform_10, window_bounds = array<i64: 128, 128>}, {pipeline_mode = #tpu.pipeline_mode<synchronous>, transform_indices = @transform_11, window_bounds = array<i64: 1, 128>}, {pipeline_mode = #tpu.pipeline_mode<synchronous>, transform_indices = @transform_12, window_bounds = array<i64: 2, 128>}, {pipeline_mode = #tpu.pipeline_mode<synchronous>, transform_indices = @transform_13, window_bounds = array<i64: 2, 128>}]} {
    %c0 = arith.constant 0 : index
    %c0_0 = arith.constant 0 : index
    %0 = vector.load %arg1[%c0, %c0_0] : memref<128x128xf32, #tpu.memory_space<vmem>>, vector<128x128xf32>
    %1 = arith.truncf %0 : vector<128x128xf32> to vector<128x128xbf16>
    %c0_1 = arith.constant 0 : index
    %c0_2 = arith.constant 0 : index
    %2 = vector.load %arg2[%c0_1, %c0_2] : memref<128x128xbf16, #tpu.memory_space<vmem>>, vector<128x128xbf16>
    %cst = arith.constant dense<0.000000e+00> : vector<128x128xf32>
    %3 = tpu.matmul %1, %2, %cst {dimension_numbers = #tpu.dot_dimension_numbers<[1], [0], [0], [1], [0, 0, 1, 1], [], []>} : vector<128x128xbf16>, vector<128x128xbf16>, vector<128x128xf32> -> vector<128x128xf32>
    %c0_3 = arith.constant 0 : index
    %c0_4 = arith.constant 0 : index
    %4 = vector.load %arg3[%c0_3, %c0_4] : memref<1x128xf32, #tpu.memory_space<vmem>>, vector<1x128xf32>
    %5 = vector.broadcast %4 : vector<1x128xf32> to vector<128x128xf32>
    %6 = arith.addf %3, %5 : vector<128x128xf32>
    %cst_5 = arith.constant 3.000000e+00 : f32
    %7 = vector.broadcast %cst_5 : f32 to vector<128x128xf32>
    %8 = arith.addf %6, %7 : vector<128x128xf32>
    %cst_6 = arith.constant 0.000000e+00 : f32
    %cst_7 = arith.constant 6.000000e+00 : f32
    %9 = vector.broadcast %cst_6 : f32 to vector<128x128xf32>
    %10 = arith.maximumf %9, %8 : vector<128x128xf32>
    %11 = vector.broadcast %cst_7 : f32 to vector<128x128xf32>
    %12 = arith.minimumf %11, %10 : vector<128x128xf32>
    %13 = arith.mulf %6, %12 : vector<128x128xf32>
    %cst_8 = arith.constant 0.166666672 : f32
    %14 = vector.broadcast %cst_8 : f32 to vector<128x128xf32>
    %15 = arith.mulf %13, %14 : vector<128x128xf32>
    %c0_9 = arith.constant 0 : index
    %c0_10 = arith.constant 0 : index
    %16 = vector.load %arg4[%c0_9, %c0_10] : memref<9x128xf32, #tpu.memory_space<vmem>>, vector<9x128xf32>
    %17 = tpu.iota {dimensions = array<i32: 0>} : vector<32x1xi32>
    %c3_i32 = arith.constant 3 : i32
    %18 = vector.broadcast %c3_i32 : i32 to vector<32x1xi32>
    %19 = arith.andi %17, %18 : vector<32x1xi32>
    %c2_i32 = arith.constant 2 : i32
    %20 = vector.broadcast %c2_i32 : i32 to vector<32x1xi32>
    %21 = arith.shrsi %17, %20 : vector<32x1xi32>
    %c3_i32_11 = arith.constant 3 : i32
    %22 = vector.broadcast %c3_i32_11 : i32 to vector<32x1xi32>
    %23 = arith.andi %21, %22 : vector<32x1xi32>
    %cst_12 = arith.constant 0.000000e+00 : f32
    %24 = vector.broadcast %cst_12 : f32 to vector<32x128xf32>
    %25 = vector.extract_strided_slice %16 {offsets = [0, 0], sizes = [1, 128], strides = [1, 1]} : vector<9x128xf32> to vector<1x128xf32>
    %26 = vector.extract_strided_slice %15 {offsets = [96, 0], sizes = [32, 128], strides = [1, 1]} : vector<128x128xf32> to vector<32x128xf32>
    %cst_13 = arith.constant 0.000000e+00 : f32
    %27 = vector.broadcast %cst_13 : f32 to vector<5x128xf32>
    %28 = vector.extract_strided_slice %26 {offsets = [0, 0], sizes = [27, 128], strides = [1, 1]} : vector<32x128xf32> to vector<27x128xf32>
    %29 = tpu.concatenate %27, %28 in 0 : vector<5x128xf32>, vector<27x128xf32> -> vector<32x128xf32>
    %c1_i32 = arith.constant 1 : i32
    %30 = vector.broadcast %c1_i32 : i32 to vector<32x1xi32>
    %31 = arith.cmpi sge, %23, %30 : vector<32x1xi32>
    %c1_i32_14 = arith.constant 1 : i32
    %32 = vector.broadcast %c1_i32_14 : i32 to vector<32x1xi32>
    %33 = arith.cmpi sge, %19, %32 : vector<32x1xi32>
    %34 = arith.andi %31, %33 : vector<32x1xi1>
    %cst_15 = arith.constant 0.000000e+00 : f32
    %35 = vector.shape_cast %34 : vector<32x1xi1> to vector<32x1xi1>
    %36 = vector.broadcast %35 : vector<32x1xi1> to vector<32x128xi1>
    %37 = vector.broadcast %cst_15 : f32 to vector<32x128xf32>
    %38 = arith.select %36, %29, %37 : vector<32x128xi1>, vector<32x128xf32>
    %39 = vector.broadcast %25 : vector<1x128xf32> to vector<32x128xf32>
    %40 = arith.mulf %38, %39 : vector<32x128xf32>
    %41 = arith.addf %24, %40 : vector<32x128xf32>
    %42 = vector.extract_strided_slice %16 {offsets = [1, 0], sizes = [1, 128], strides = [1, 1]} : vector<9x128xf32> to vector<1x128xf32>
    %43 = vector.extract_strided_slice %15 {offsets = [64, 0], sizes = [32, 128], strides = [1, 1]} : vector<128x128xf32> to vector<32x128xf32>
    %cst_16 = arith.constant 0.000000e+00 : f32
    %44 = vector.broadcast %cst_16 : f32 to vector<4x128xf32>
    %45 = vector.extract_strided_slice %43 {offsets = [0, 0], sizes = [28, 128], strides = [1, 1]} : vector<32x128xf32> to vector<28x128xf32>
    %46 = tpu.concatenate %44, %45 in 0 : vector<4x128xf32>, vector<28x128xf32> -> vector<32x128xf32>
    %c1_i32_17 = arith.constant 1 : i32
    %47 = vector.broadcast %c1_i32_17 : i32 to vector<32x1xi32>
    %48 = arith.cmpi sge, %23, %47 : vector<32x1xi32>
    %cst_18 = arith.constant 0.000000e+00 : f32
    %49 = vector.shape_cast %48 : vector<32x1xi1> to vector<32x1xi1>
    %50 = vector.broadcast %49 : vector<32x1xi1> to vector<32x128xi1>
    %51 = vector.broadcast %cst_18 : f32 to vector<32x128xf32>
    %52 = arith.select %50, %46, %51 : vector<32x128xi1>, vector<32x128xf32>
    %53 = vector.broadcast %42 : vector<1x128xf32> to vector<32x128xf32>
    %54 = arith.mulf %52, %53 : vector<32x128xf32>
    %55 = arith.addf %41, %54 : vector<32x128xf32>
    %56 = vector.extract_strided_slice %16 {offsets = [2, 0], sizes = [1, 128], strides = [1, 1]} : vector<9x128xf32> to vector<1x128xf32>
    %57 = vector.extract_strided_slice %15 {offsets = [96, 0], sizes = [32, 128], strides = [1, 1]} : vector<128x128xf32> to vector<32x128xf32>
    %cst_19 = arith.constant 0.000000e+00 : f32
    %58 = vector.broadcast %cst_19 : f32 to vector<4x128xf32>
    %59 = vector.extract_strided_slice %57 {offsets = [0, 0], sizes = [28, 128], strides = [1, 1]} : vector<32x128xf32> to vector<28x128xf32>
    %60 = tpu.concatenate %58, %59 in 0 : vector<4x128xf32>, vector<28x128xf32> -> vector<32x128xf32>
    %c1_i32_20 = arith.constant 1 : i32
    %61 = vector.broadcast %c1_i32_20 : i32 to vector<32x1xi32>
    %62 = arith.cmpi sge, %23, %61 : vector<32x1xi32>
    %cst_21 = arith.constant 0.000000e+00 : f32
    %63 = vector.shape_cast %62 : vector<32x1xi1> to vector<32x1xi1>
    %64 = vector.broadcast %63 : vector<32x1xi1> to vector<32x128xi1>
    %65 = vector.broadcast %cst_21 : f32 to vector<32x128xf32>
    %66 = arith.select %64, %60, %65 : vector<32x128xi1>, vector<32x128xf32>
    %67 = vector.broadcast %56 : vector<1x128xf32> to vector<32x128xf32>
    %68 = arith.mulf %66, %67 : vector<32x128xf32>
    %69 = arith.addf %55, %68 : vector<32x128xf32>
    %70 = vector.extract_strided_slice %16 {offsets = [3, 0], sizes = [1, 128], strides = [1, 1]} : vector<9x128xf32> to vector<1x128xf32>
    %71 = vector.extract_strided_slice %15 {offsets = [32, 0], sizes = [32, 128], strides = [1, 1]} : vector<128x128xf32> to vector<32x128xf32>
    %cst_22 = arith.constant 0.000000e+00 : f32
    %72 = vector.broadcast %cst_22 : f32 to vector<1x128xf32>
    %73 = vector.extract_strided_slice %71 {offsets = [0, 0], sizes = [31, 128], strides = [1, 1]} : vector<32x128xf32> to vector<31x128xf32>
    %74 = tpu.concatenate %72, %73 in 0 : vector<1x128xf32>, vector<31x128xf32> -> vector<32x128xf32>
    %c1_i32_23 = arith.constant 1 : i32
    %75 = vector.broadcast %c1_i32_23 : i32 to vector<32x1xi32>
    %76 = arith.cmpi sge, %19, %75 : vector<32x1xi32>
    %cst_24 = arith.constant 0.000000e+00 : f32
    %77 = vector.shape_cast %76 : vector<32x1xi1> to vector<32x1xi1>
    %78 = vector.broadcast %77 : vector<32x1xi1> to vector<32x128xi1>
    %79 = vector.broadcast %cst_24 : f32 to vector<32x128xf32>
    %80 = arith.select %78, %74, %79 : vector<32x128xi1>, vector<32x128xf32>
    %81 = vector.broadcast %70 : vector<1x128xf32> to vector<32x128xf32>
    %82 = arith.mulf %80, %81 : vector<32x128xf32>
    %83 = arith.addf %69, %82 : vector<32x128xf32>
    %84 = vector.extract_strided_slice %16 {offsets = [4, 0], sizes = [1, 128], strides = [1, 1]} : vector<9x128xf32> to vector<1x128xf32>
    %85 = vector.extract_strided_slice %15 {offsets = [0, 0], sizes = [32, 128], strides = [1, 1]} : vector<128x128xf32> to vector<32x128xf32>
    %86 = vector.broadcast %84 : vector<1x128xf32> to vector<32x128xf32>
    %87 = arith.mulf %85, %86 : vector<32x128xf32>
    %88 = arith.addf %83, %87 : vector<32x128xf32>
    %89 = vector.extract_strided_slice %16 {offsets = [5, 0], sizes = [1, 128], strides = [1, 1]} : vector<9x128xf32> to vector<1x128xf32>
    %90 = vector.extract_strided_slice %15 {offsets = [32, 0], sizes = [32, 128], strides = [1, 1]} : vector<128x128xf32> to vector<32x128xf32>
    %91 = vector.broadcast %89 : vector<1x128xf32> to vector<32x128xf32>
    %92 = arith.mulf %90, %91 : vector<32x128xf32>
    %93 = arith.addf %88, %92 : vector<32x128xf32>
    %94 = vector.extract_strided_slice %16 {offsets = [6, 0], sizes = [1, 128], strides = [1, 1]} : vector<9x128xf32> to vector<1x128xf32>
    %95 = vector.extract_strided_slice %15 {offsets = [96, 0], sizes = [32, 128], strides = [1, 1]} : vector<128x128xf32> to vector<32x128xf32>
    %cst_25 = arith.constant 0.000000e+00 : f32
    %96 = vector.broadcast %cst_25 : f32 to vector<1x128xf32>
    %97 = vector.extract_strided_slice %95 {offsets = [0, 0], sizes = [31, 128], strides = [1, 1]} : vector<32x128xf32> to vector<31x128xf32>
    %98 = tpu.concatenate %96, %97 in 0 : vector<1x128xf32>, vector<31x128xf32> -> vector<32x128xf32>
    %c1_i32_26 = arith.constant 1 : i32
    %99 = vector.broadcast %c1_i32_26 : i32 to vector<32x1xi32>
    %100 = arith.cmpi sge, %19, %99 : vector<32x1xi32>
    %cst_27 = arith.constant 0.000000e+00 : f32
    %101 = vector.shape_cast %100 : vector<32x1xi1> to vector<32x1xi1>
    %102 = vector.broadcast %101 : vector<32x1xi1> to vector<32x128xi1>
    %103 = vector.broadcast %cst_27 : f32 to vector<32x128xf32>
    %104 = arith.select %102, %98, %103 : vector<32x128xi1>, vector<32x128xf32>
    %105 = vector.broadcast %94 : vector<1x128xf32> to vector<32x128xf32>
    %106 = arith.mulf %104, %105 : vector<32x128xf32>
    %107 = arith.addf %93, %106 : vector<32x128xf32>
    %108 = vector.extract_strided_slice %16 {offsets = [7, 0], sizes = [1, 128], strides = [1, 1]} : vector<9x128xf32> to vector<1x128xf32>
    %109 = vector.extract_strided_slice %15 {offsets = [64, 0], sizes = [32, 128], strides = [1, 1]} : vector<128x128xf32> to vector<32x128xf32>
    %110 = vector.broadcast %108 : vector<1x128xf32> to vector<32x128xf32>
    %111 = arith.mulf %109, %110 : vector<32x128xf32>
    %112 = arith.addf %107, %111 : vector<32x128xf32>
    %113 = vector.extract_strided_slice %16 {offsets = [8, 0], sizes = [1, 128], strides = [1, 1]} : vector<9x128xf32> to vector<1x128xf32>
    %114 = vector.extract_strided_slice %15 {offsets = [96, 0], sizes = [32, 128], strides = [1, 1]} : vector<128x128xf32> to vector<32x128xf32>
    %115 = vector.broadcast %113 : vector<1x128xf32> to vector<32x128xf32>
    %116 = arith.mulf %114, %115 : vector<32x128xf32>
    %117 = arith.addf %112, %116 : vector<32x128xf32>
    %c0_28 = arith.constant 0 : index
    %c0_29 = arith.constant 0 : index
    %118 = vector.load %arg5[%c0_28, %c0_29] : memref<1x128xf32, #tpu.memory_space<vmem>>, vector<1x128xf32>
    %119 = vector.broadcast %118 : vector<1x128xf32> to vector<32x128xf32>
    %120 = arith.addf %117, %119 : vector<32x128xf32>
    %cst_30 = arith.constant 3.000000e+00 : f32
    %121 = vector.broadcast %cst_30 : f32 to vector<32x128xf32>
    %122 = arith.addf %120, %121 : vector<32x128xf32>
    %cst_31 = arith.constant 0.000000e+00 : f32
    %cst_32 = arith.constant 6.000000e+00 : f32
    %123 = vector.broadcast %cst_31 : f32 to vector<32x128xf32>
    %124 = arith.maximumf %123, %122 : vector<32x128xf32>
    %125 = vector.broadcast %cst_32 : f32 to vector<32x128xf32>
    %126 = arith.minimumf %125, %124 : vector<32x128xf32>
    %127 = arith.mulf %120, %126 : vector<32x128xf32>
    %cst_33 = arith.constant 0.166666672 : f32
    %128 = vector.broadcast %cst_33 : f32 to vector<32x128xf32>
    %129 = arith.mulf %127, %128 : vector<32x128xf32>
    %130 = arith.truncf %129 : vector<32x128xf32> to vector<32x128xbf16>
    %c0_34 = arith.constant 0 : index
    %c0_35 = arith.constant 0 : index
    %131 = vector.load %arg6[%c0_34, %c0_35] : memref<128x128xbf16, #tpu.memory_space<vmem>>, vector<128x128xbf16>
    %cst_36 = arith.constant dense<0.000000e+00> : vector<32x128xf32>
    %132 = tpu.matmul %130, %131, %cst_36 {dimension_numbers = #tpu.dot_dimension_numbers<[1], [0], [0], [1], [0, 0, 1, 1], [], []>} : vector<32x128xbf16>, vector<128x128xbf16>, vector<32x128xf32> -> vector<32x128xf32>
    %c0_37 = arith.constant 0 : index
    %c0_38 = arith.constant 0 : index
    %133 = vector.load %arg7[%c0_37, %c0_38] : memref<1x128xf32, #tpu.memory_space<vmem>>, vector<1x128xf32>
    %134 = vector.broadcast %133 : vector<1x128xf32> to vector<32x128xf32>
    %135 = arith.addf %132, %134 : vector<32x128xf32>
    %136 = arith.truncf %135 : vector<32x128xf32> to vector<32x128xbf16>
    %c0_39 = arith.constant 0 : index
    %c0_40 = arith.constant 0 : index
    %137 = vector.load %arg8[%c0_39, %c0_40] : memref<128x128xbf16, #tpu.memory_space<vmem>>, vector<128x128xbf16>
    %cst_41 = arith.constant dense<0.000000e+00> : vector<32x128xf32>
    %138 = tpu.matmul %136, %137, %cst_41 {dimension_numbers = #tpu.dot_dimension_numbers<[1], [0], [0], [1], [0, 0, 1, 1], [], []>} : vector<32x128xbf16>, vector<128x128xbf16>, vector<32x128xf32> -> vector<32x128xf32>
    %c0_42 = arith.constant 0 : index
    %c0_43 = arith.constant 0 : index
    %139 = vector.load %arg9[%c0_42, %c0_43] : memref<1x128xf32, #tpu.memory_space<vmem>>, vector<1x128xf32>
    %140 = vector.broadcast %139 : vector<1x128xf32> to vector<32x128xf32>
    %141 = arith.addf %138, %140 : vector<32x128xf32>
    %cst_44 = arith.constant 3.000000e+00 : f32
    %142 = vector.broadcast %cst_44 : f32 to vector<32x128xf32>
    %143 = arith.addf %141, %142 : vector<32x128xf32>
    %cst_45 = arith.constant 0.000000e+00 : f32
    %cst_46 = arith.constant 6.000000e+00 : f32
    %144 = vector.broadcast %cst_45 : f32 to vector<32x128xf32>
    %145 = arith.maximumf %144, %143 : vector<32x128xf32>
    %146 = vector.broadcast %cst_46 : f32 to vector<32x128xf32>
    %147 = arith.minimumf %146, %145 : vector<32x128xf32>
    %148 = arith.mulf %141, %147 : vector<32x128xf32>
    %cst_47 = arith.constant 0.166666672 : f32
    %149 = vector.broadcast %cst_47 : f32 to vector<32x128xf32>
    %150 = arith.mulf %148, %149 : vector<32x128xf32>
    %151 = vector.shape_cast %150 : vector<32x128xf32> to vector<2x16x128xf32>
    %cst_48 = arith.constant dense<0.000000e+00> : vector<2x128xf32>
    %152 = vector.multi_reduction <add>, %151, %cst_48 [1] : vector<2x16x128xf32> to vector<2x128xf32>
    %cst_49 = arith.constant 6.250000e-02 : f32
    %153 = vector.broadcast %cst_49 : f32 to vector<2x128xf32>
    %154 = arith.mulf %152, %153 : vector<2x128xf32>
    %155 = arith.truncf %154 : vector<2x128xf32> to vector<2x128xbf16>
    %c0_50 = arith.constant 0 : index
    %c0_51 = arith.constant 0 : index
    %156 = vector.load %arg10[%c0_50, %c0_51] : memref<128x128xbf16, #tpu.memory_space<vmem>>, vector<128x128xbf16>
    %cst_52 = arith.constant dense<0.000000e+00> : vector<2x128xf32>
    %157 = tpu.matmul %155, %156, %cst_52 {dimension_numbers = #tpu.dot_dimension_numbers<[1], [0], [0], [1], [0, 0, 1, 1], [], []>} : vector<2x128xbf16>, vector<128x128xbf16>, vector<2x128xf32> -> vector<2x128xf32>
    %cst_53 = arith.constant 3.000000e+00 : f32
    %158 = vector.broadcast %cst_53 : f32 to vector<2x128xf32>
    %159 = arith.addf %157, %158 : vector<2x128xf32>
    %cst_54 = arith.constant 0.000000e+00 : f32
    %cst_55 = arith.constant 6.000000e+00 : f32
    %160 = vector.broadcast %cst_54 : f32 to vector<2x128xf32>
    %161 = arith.maximumf %160, %159 : vector<2x128xf32>
    %162 = vector.broadcast %cst_55 : f32 to vector<2x128xf32>
    %163 = arith.minimumf %162, %161 : vector<2x128xf32>
    %164 = arith.mulf %157, %163 : vector<2x128xf32>
    %cst_56 = arith.constant 0.166666672 : f32
    %165 = vector.broadcast %cst_56 : f32 to vector<2x128xf32>
    %166 = arith.mulf %164, %165 : vector<2x128xf32>
    %167 = arith.truncf %166 : vector<2x128xf32> to vector<2x128xbf16>
    %c0_57 = arith.constant 0 : index
    %c0_58 = arith.constant 0 : index
    %168 = vector.load %arg11[%c0_57, %c0_58] : memref<128x128xbf16, #tpu.memory_space<vmem>>, vector<128x128xbf16>
    %cst_59 = arith.constant dense<0.000000e+00> : vector<2x128xf32>
    %169 = tpu.matmul %167, %168, %cst_59 {dimension_numbers = #tpu.dot_dimension_numbers<[1], [0], [0], [1], [0, 0, 1, 1], [], []>} : vector<2x128xbf16>, vector<128x128xbf16>, vector<2x128xf32> -> vector<2x128xf32>
    %c0_60 = arith.constant 0 : index
    %c0_61 = arith.constant 0 : index
    %170 = vector.load %arg12[%c0_60, %c0_61] : memref<1x128xf32, #tpu.memory_space<vmem>>, vector<1x128xf32>
    %171 = vector.broadcast %170 : vector<1x128xf32> to vector<2x128xf32>
    %172 = arith.addf %169, %171 : vector<2x128xf32>
    %c0_62 = arith.constant 0 : index
    %c0_63 = arith.constant 0 : index
    %173 = vector.load %arg13[%c0_62, %c0_63] : memref<2x128xf32, #tpu.memory_space<vmem>>, vector<2x128xf32>
    tpu.vector_store %arg13[%c0_62, %c0_63], %172 {strides = array<i32>} : memref<2x128xf32, #tpu.memory_space<vmem>>, vector<2x128xf32>,
    %c0_64 = arith.constant 0 : index
    %c0_65 = arith.constant 0 : index
    %174 = vector.load %arg14[%c0_64, %c0_65] : memref<2x128xf32, #tpu.memory_space<vmem>>, vector<2x128xf32>
    tpu.vector_store %arg14[%c0_64, %c0_65], %166 {strides = array<i32>} : memref<2x128xf32, #tpu.memory_space<vmem>>, vector<2x128xf32>,
    return
  }
  func.func @transform_0(%arg0: i32) -> (i32, i32) {
    %c0_i32 = arith.constant 0 : i32
    %c0_i32_0 = arith.constant 0 : i32
    %c0_i32_1 = arith.constant 0 : i32
    return %c0_i32, %c0_i32_0 : i32, i32
  }
  func.func @transform_1(%arg0: i32) -> (i32, i32) {
    %c0_i32 = arith.constant 0 : i32
    %c0_i32_0 = arith.constant 0 : i32
    %c0_i32_1 = arith.constant 0 : i32
    return %c0_i32, %c0_i32_0 : i32, i32
  }
  func.func @transform_2(%arg0: i32) -> (i32, i32) {
    %c0_i32 = arith.constant 0 : i32
    %c0_i32_0 = arith.constant 0 : i32
    %c0_i32_1 = arith.constant 0 : i32
    return %c0_i32, %c0_i32_0 : i32, i32
  }
  func.func @transform_3(%arg0: i32) -> (i32, i32) {
    %c0_i32 = arith.constant 0 : i32
    %c0_i32_0 = arith.constant 0 : i32
    %c0_i32_1 = arith.constant 0 : i32
    return %c0_i32, %c0_i32_0 : i32, i32
  }
  func.func @transform_4(%arg0: i32) -> (i32, i32) {
    %c0_i32 = arith.constant 0 : i32
    %c0_i32_0 = arith.constant 0 : i32
    %c0_i32_1 = arith.constant 0 : i32
    return %c0_i32, %c0_i32_0 : i32, i32
  }
  func.func @transform_5(%arg0: i32) -> (i32, i32) {
    %c0_i32 = arith.constant 0 : i32
    %c0_i32_0 = arith.constant 0 : i32
    %c0_i32_1 = arith.constant 0 : i32
    return %c0_i32, %c0_i32_0 : i32, i32
  }
  func.func @transform_6(%arg0: i32) -> (i32, i32) {
    %c0_i32 = arith.constant 0 : i32
    %c0_i32_0 = arith.constant 0 : i32
    %c0_i32_1 = arith.constant 0 : i32
    return %c0_i32, %c0_i32_0 : i32, i32
  }
  func.func @transform_7(%arg0: i32) -> (i32, i32) {
    %c0_i32 = arith.constant 0 : i32
    %c0_i32_0 = arith.constant 0 : i32
    %c0_i32_1 = arith.constant 0 : i32
    return %c0_i32, %c0_i32_0 : i32, i32
  }
  func.func @transform_8(%arg0: i32) -> (i32, i32) {
    %c0_i32 = arith.constant 0 : i32
    %c0_i32_0 = arith.constant 0 : i32
    %c0_i32_1 = arith.constant 0 : i32
    return %c0_i32, %c0_i32_0 : i32, i32
  }
  func.func @transform_9(%arg0: i32) -> (i32, i32) {
    %c0_i32 = arith.constant 0 : i32
    %c0_i32_0 = arith.constant 0 : i32
    %c0_i32_1 = arith.constant 0 : i32
    return %c0_i32, %c0_i32_0 : i32, i32
  }
  func.func @transform_10(%arg0: i32) -> (i32, i32) {
    %c0_i32 = arith.constant 0 : i32
    %c0_i32_0 = arith.constant 0 : i32
    %c0_i32_1 = arith.constant 0 : i32
    return %c0_i32, %c0_i32_0 : i32, i32
  }
  func.func @transform_11(%arg0: i32) -> (i32, i32) {
    %c0_i32 = arith.constant 0 : i32
    %c0_i32_0 = arith.constant 0 : i32
    %c0_i32_1 = arith.constant 0 : i32
    return %c0_i32, %c0_i32_0 : i32, i32
  }
  func.func @transform_12(%arg0: i32) -> (i32, i32) {
    %c0_i32 = arith.constant 0 : i32
    %c0_i32_0 = arith.constant 0 : i32
    %c0_i32_1 = arith.constant 0 : i32
    return %c0_i32, %c0_i32_0 : i32, i32
  }
  func.func @transform_13(%arg0: i32) -> (i32, i32) {
    %c0_i32 = arith.constant 0 : i32
    %c0_i32_0 = arith.constant 0 : i32
    %c0_i32_1 = arith.constant 0 : i32
    return %c0_i32, %c0_i32_0 : i32, i32
  }
}

</mosaic_0001>

<bundles_post_ra>
// kernel: ofanet_forward.5
= control target key start
LH: loop header
LB: loop body
LE: loop exit
PB: predicated region body
PF: predicated region fallthrough
CT: control target
= control target key end

     0   :  { %vm627_vm8 = vcmask 1040384   ;;  %s3298_s1 = inlined_call_operand.vmem [shape: bf16[128,128], index: 1, kind: input, shape index: {}]   ;;  %s3299_s0 = inlined_call_operand.vmem [shape: f32[512,128], index: 0, kind: input, shape index: {}]   ;;  %s3300_s5 = inlined_call_operand.vmem [shape: bf16[128,128], index: 5, kind: input, shape index: {}]   ;;  %s3301_s3 = inlined_call_operand.vmem [shape: f32[9,128], index: 3, kind: input, shape index: {}]   ;;  %s3302_s2 = inlined_call_operand.vmem [shape: f32[1,128], index: 2, kind: input, shape index: {}]   ;;  %s3303_s4 = inlined_call_operand.vmem [shape: f32[1,128], index: 4, kind: input, shape index: {}]   ;;  %s3304_s6 = inlined_call_operand.vmem [shape: f32[1,128], index: 6, kind: input, shape index: {}]   ;;  %s3305_s7 = inlined_call_operand.vmem [shape: f32[128,128], index: 7, kind: output, shape index: {}]  }
   0x1   :  { %v1719_v0 = vld [vmem:[%s3298_s1 + $0x38] sm:$0xff]   ;;  %v1720_v1 = vld [vmem:[%s3298_s1 + $0x30] sm:$0xff]   ;;  %v1721_v2 = vld [vmem:[%s3298_s1 + $0x28] sm:$0xff]  }
   0x2   :  { %1591 = vmatprep.subr.bf16.mxu0 %v1719_v0  ;;  %1703 = vmatprep.subr.bf16.mxu1 %v1719_v0  ;;  %v1722_v3 = vld [vmem:[%s3298_s1 + $0x20] sm:$0xff]   ;;  %v28_v5 = vld [vmem:[%s3299_s0 + $0x8] sm:$0xff]  ;;  %v1723_v10 = vld [vmem:[%s3298_s1 + $0x18] sm:$0xff]  }
   0x3   :  { %1592 = vmatpush3.bf16.msra.mxu0 %v1719_v0  ;;  %1711 = vmatpush3.bf16.msra.mxu1 %v1719_v0  ;;  %v27_v4 = vld [vmem:[%s3299_s0] sm:$0xff]  ;;  %v68_v8 = vld [vmem:[%s3299_s0 + $0x148] sm:$0xff]  ;;  %v1724_v11 = vld [vmem:[%s3298_s1 + $0x10] sm:$0xff]  }
   0x4   :  { %1593 = vmatprep.subr.bf16.mxu0 %v1720_v1  ;;  %1704 = vmatprep.subr.bf16.mxu1 %v1720_v1  ;;  %v91_v6 = vpack.c.bf16 %v28_v5, %v27_v4  ;;  %v67_v7 = vld [vmem:[%s3299_s0 + $0x140] sm:$0xff]  ;;  %v1725_v12 = vld [vmem:[%s3298_s1 + $0x8] sm:$0xff]   ;;  %v29_v14 = vld [vmem:[%s3299_s0 + $0x10] sm:$0xff] }
   0x5   :  { %v111_v9 = vpack.c.bf16 %v68_v8, %v67_v7  ;;  %v1726_v13 = vld [vmem:[%s3298_s1] sm:$0xff]   ;;  %v30_v15 = vld [vmem:[%s3299_s0 + $0x18] sm:$0xff]  ;;  %v69_v16 = vld [vmem:[%s3299_s0 + $0x150] sm:$0xff] }
   0x6   :  { %1607 = vmatprep.mubr.bf16.mxu0 %v91_v6  ;;  %v70_v17 = vld [vmem:[%s3299_s0 + $0x158] sm:$0xff]  ;;  %v31_v18 = vld [vmem:[%s3299_s0 + $0x20] sm:$0xff]  ;;  %v32_v19 = vld [vmem:[%s3299_s0 + $0x28] sm:$0xff]  ;;  %v92_v22 = vpack.c.bf16 %v30_v15, %v29_v14 }
   0x7   :  { %1594 = vmatpush3.bf16.msra.mxu0 %v1720_v1  ;;  %1712 = vmatpush3.bf16.msra.mxu1 %v1720_v1  ;;  %v71_v20 = vld [vmem:[%s3299_s0 + $0x160] sm:$0xff]  ;;  %v72_v21 = vld [vmem:[%s3299_s0 + $0x168] sm:$0xff]  ;;  %v112_v23 = vpack.c.bf16 %v70_v17, %v69_v16  ;;  %v93_v24 = vpack.c.bf16 %v32_v19, %v31_v18  ;;  %v33_v26 = vld [vmem:[%s3299_s0 + $0x30] sm:$0xff] }
   0x8   :  { %1595 = vmatprep.subr.bf16.mxu0 %v1721_v2  ;;  %1705 = vmatprep.subr.bf16.mxu1 %v1721_v2  ;;  %v113_v25 = vpack.c.bf16 %v72_v21, %v71_v20  ;;  %v34_v27 = vld [vmem:[%s3299_s0 + $0x38] sm:$0xff]  ;;  %v73_v28 = vld [vmem:[%s3299_s0 + $0x170] sm:$0xff]  ;;  %v35_v30 = vld [vmem:[%s3299_s0 + $0x40] sm:$0xff] }
   0x9   :  { %1647 = vmatprep.mubr.bf16.mxu1 %v111_v9  ;;  %v74_v29 = vld [vmem:[%s3299_s0 + $0x178] sm:$0xff]  ;;  %v36_v31 = vld [vmem:[%s3299_s0 + $0x48] sm:$0xff]  ;;  %v75_v32 = vld [vmem:[%s3299_s0 + $0x180] sm:$0xff]  ;;  %v94_v34 = vpack.c.bf16 %v34_v27, %v33_v26 }
   0xa   :  { %v76_v33 = vld [vmem:[%s3299_s0 + $0x188] sm:$0xff]  ;;  %v114_v35 = vpack.c.bf16 %v74_v29, %v73_v28  ;;  %v95_v36 = vpack.c.bf16 %v36_v31, %v35_v30  ;;  %v37_v38 = vld [vmem:[%s3299_s0 + $0x50] sm:$0xff]  ;;  %v38_v39 = vld [vmem:[%s3299_s0 + $0x58] sm:$0xff] }
   0xb   :  { %1596 = vmatpush3.bf16.msra.mxu0 %v1721_v2  ;;  %1713 = vmatpush3.bf16.msra.mxu1 %v1721_v2  ;;  %v115_v37 = vpack.c.bf16 %v76_v33, %v75_v32  ;;  %v77_v40 = vld [vmem:[%s3299_s0 + $0x190] sm:$0xff]  ;;  %v78_v41 = vld [vmem:[%s3299_s0 + $0x198] sm:$0xff]  ;;  %v39_v42 = vld [vmem:[%s3299_s0 + $0x60] sm:$0xff]  ;;  %v96_v46 = vpack.c.bf16 %v38_v39, %v37_v38 }
   0xc   :  { %1597 = vmatprep.subr.bf16.mxu0 %v1722_v3  ;;  %1706 = vmatprep.subr.bf16.mxu1 %v1722_v3  ;;  %v40_v43 = vld [vmem:[%s3299_s0 + $0x68] sm:$0xff]  ;;  %v79_v44 = vld [vmem:[%s3299_s0 + $0x1a0] sm:$0xff]  ;;  %v116_v47 = vpack.c.bf16 %v78_v41, %v77_v40  ;;  %v41_v50 = vld [vmem:[%s3299_s0 + $0x70] sm:$0xff] }
   0xd   :  { %v80_v45 = vld [vmem:[%s3299_s0 + $0x1a8] sm:$0xff]  ;;  %v97_v48 = vpack.c.bf16 %v40_v43, %v39_v42  ;;  %v42_v51 = vld [vmem:[%s3299_s0 + $0x78] sm:$0xff]  ;;  %v81_v52 = vld [vmem:[%s3299_s0 + $0x1b0] sm:$0xff]  ;;  %v549_v43 = vlaneseq }
   0xe   :  { %v117_v49 = vpack.c.bf16 %v80_v45, %v79_v44  ;;  %v82_v53 = vld [vmem:[%s3299_s0 + $0x1b8] sm:$0xff]  ;;  %v43_v54 = vld [vmem:[%s3299_s0 + $0x80] sm:$0xff]  ;;  %v44_v55 = vld [vmem:[%s3299_s0 + $0x88] sm:$0xff]  ;;  %v98_v58 = vpack.c.bf16 %v42_v51, %v41_v50 }
   0xf   :  { %1598 = vmatpush3.bf16.msra.mxu0 %v1722_v3  ;;  %1714 = vmatpush3.bf16.msra.mxu1 %v1722_v3  ;;  %v83_v56 = vld [vmem:[%s3299_s0 + $0x1c0] sm:$0xff]  ;;  %v84_v57 = vld [vmem:[%s3299_s0 + $0x1c8] sm:$0xff]  ;;  %v118_v59 = vpack.c.bf16 %v82_v53, %v81_v52  ;;  %v99_v60 = vpack.c.bf16 %v44_v55, %v43_v54  ;;  %v45_v62 = vld [vmem:[%s3299_s0 + $0x90] sm:$0xff]  ;;  %v2002_v44 = vshrl.u32 %v549_v43, 7 }
  0x10   :  { %1599 = vmatprep.subr.bf16.mxu0 %v1723_v10  ;;  %1707 = vmatprep.subr.bf16.mxu1 %v1723_v10  ;;  %v119_v61 = vpack.c.bf16 %v84_v57, %v83_v56  ;;  %v46_v63 = vld [vmem:[%s3299_s0 + $0x98] sm:$0xff]  ;;  %v85_v0 = vld [vmem:[%s3299_s0 + $0x1d0] sm:$0xff]  ;;  %v47_v2 = vld [vmem:[%s3299_s0 + $0xa0] sm:$0xff] }
  0x11   :  { %v86_v1 = vld [vmem:[%s3299_s0 + $0x1d8] sm:$0xff]  ;;  %v48_v3 = vld [vmem:[%s3299_s0 + $0xa8] sm:$0xff]  ;;  %v87_v4 = vld [vmem:[%s3299_s0 + $0x1e0] sm:$0xff]  ;;  %v100_v6 = vpack.c.bf16 %v46_v63, %v45_v62  ;;  %v2005_v45 = vadd.s32 88, %v2002_v44  ;;  %v2016_v50 = vadd.s32 80, %v2002_v44  ;;  %v1082_v53 = vsub.s32 4, %v2002_v44 }
  0x12   :  { %v88_v5 = vld [vmem:[%s3299_s0 + $0x1e8] sm:$0xff]  ;;  %v120_v7 = vpack.c.bf16 %v86_v1, %v85_v0  ;;  %v101_v8 = vpack.c.bf16 %v48_v3, %v47_v2  ;;  %v51_v14 = vld [vmem:[%s3299_s0 + $0xc0] sm:$0xff]  ;;  %v53_v19 = vld [vmem:[%s3299_s0 + $0xd0] sm:$0xff]  ;;  %v1210_v54 = vsub.s32 7, %v2002_v44  ;;  %v2039_v63 = vadd.s32 104, %v2002_v44 }
  0x13   :  { %1600 = vmatpush3.bf16.msra.mxu0 %v1723_v10  ;;  %1715 = vmatpush3.bf16.msra.mxu1 %v1723_v10  ;;  %v121_v9 = vpack.c.bf16 %v88_v5, %v87_v4  ;;  %v49_v10 = vld [vmem:[%s3299_s0 + $0xb0] sm:$0xff]  ;;  %v52_v15 = vld [vmem:[%s3299_s0 + $0xc8] sm:$0xff]  ;;  %v54_v20 = vld [vmem:[%s3299_s0 + $0xd8] sm:$0xff]  ;;  %v592_v55 = vshra.s32 %v2005_v45, 3  ;;  %v591_v62 = vshra.s32 %v2016_v50, 3  ;;  %v2047_v3 = vadd.s32 112, %v2002_v44 }
  0x14   :  { %1601 = vmatprep.subr.bf16.mxu0 %v1724_v11  ;;  %1708 = vmatprep.subr.bf16.mxu1 %v1724_v11  ;;  %v103_v18 = vpack.c.bf16 %v52_v15, %v51_v14  ;;  %v55_v21 = vld [vmem:[%s3299_s0 + $0xe0] sm:$0xff]  ;;  %v58_v26 = vld [vmem:[%s3299_s0 + $0xf8] sm:$0xff]  ;;  %v60_v28 = vld [vmem:[%s3299_s0 + $0x108] sm:$0xff]  ;;  %v594_v15 = vshra.s32 %v2039_v63, 3 }
  0x15   :  { %v59_v27 = vld [vmem:[%s3299_s0 + $0x100] sm:$0xff]  ;;  %v61_v31 = vld [vmem:[%s3299_s0 + $0x110] sm:$0xff]  ;;  %v62_v32 = vld [vmem:[%s3299_s0 + $0x118] sm:$0xff]  ;;  %v2049_v4 = vand.u32 7, %v592_v55  ;;  %v2063_v14 = vand.u32 7, %v591_v62  ;;  %v2131_v62 = vadd.s32 64, %v2002_v44 }
  0x16   :  { %v107_v30 = vpack.c.bf16 %v60_v28, %v59_v27  ;;  %v63_v33 = vld [vmem:[%s3299_s0 + $0x120] sm:$0xff]  ;;  %v66_v38 = vld [vmem:[%s3299_s0 + $0x138] sm:$0xff]  ;;  %v1728_v41 = vld [vmem:[%s3300_s5 + $0x30] sm:$0xff]   ;;  %v2081_v27 = vadd.s32 8, %v2002_v44  ;;  %v2083_v28 = vand.u32 7, %v594_v15 }
  0x17   :  { %1602 = vmatpush3.bf16.msra.mxu0 %v1724_v11  ;;  %1716 = vmatpush3.bf16.msra.mxu1 %v1724_v11  ;;  %v50_v11 = vld [vmem:[%s3299_s0 + $0xb8] sm:$0xff]  ;;  %v1729_v42 = vld [vmem:[%s3300_s5 + $0x28] sm:$0xff]   ;;  %v1730_v51 = vld [vmem:[%s3300_s5 + $0x20] sm:$0xff]   ;;  %vm683_vm0 = vcmp.ge.s32.totalorder %v2049_v4, 1  ;;  %3354 = vst [vmem:[#allocation9_spill] sm:$0xff] %v2131_v62  ;;  %vm682_vm3 = vcmp.ge.s32.totalorder %v2063_v14, 1 }
  0x18   :  { %1603 = vmatprep.subr.bf16.mxu0 %v1725_v12  ;;  %1709 = vmatprep.subr.bf16.mxu1 %v1725_v12  ;;  %v102_v16 = vpack.c.bf16 %v50_v11, %v49_v10  ;;  %v1727_v40 = vld [vmem:[%s3300_s5 + $0x38] sm:$0xff]   ;;  %v547_v52 = vld [vmem:[%s3301_s3] sm:$0xff]  ;;  %vm685_vm5 = vcmp.ge.s32.totalorder %v2083_v28, 1 }
  0x19   :  { %v2041_v0 = vrot.slane %v547_v52, %v1082_v53  ;;  %v2044_v2 = vrot.slane %v547_v52, %v1210_v54 }
  0x1b   :  { %1604 = vmatpush3.bf16.msra.mxu0 %v1725_v12  ;;  %1717 = vmatpush3.bf16.msra.mxu1 %v1725_v12  ;;  %v89_v12 = vld [vmem:[%s3299_s0 + $0x1f0] sm:$0xff]  ;;  %3348 = vst [vmem:[#allocation3_spill] sm:$0xff] %v2044_v2 }
  0x1c   :  { %1605 = vmatprep.subr.bf16.mxu0 %v1726_v13  ;;  %1710 = vmatprep.subr.bf16.mxu1 %v1726_v13 }
  0x1f   :  { %1606 = vmatpush3.bf16.msra.mxu0 %v1726_v13  ;;  %1718 = vmatpush3.bf16.msra.mxu1 %v1726_v13  ;;  %v90_v13 = vld [vmem:[%s3299_s0 + $0x1f8] sm:$0xff] }
  0x20   :  { %v122_v17 = vpack.c.bf16 %v90_v13, %v89_v12  ;;  %1671 = vmatprep.subr.bf16.mxu1 %v1727_v40 }
  0x22   :  { %1608 = vmatmul.mubr.bf16.vlgmr.msra.gmra.mxu0 %v92_v22  ;;  %1648 = vmatmul.mubr.bf16.vlgmr.msra.gmra.mxu1 %v112_v23  ;;  %v56_v22 = vld [vmem:[%s3299_s0 + $0xe8] sm:$0xff]  ;;  %v104_v23 = vpack.c.bf16 %v54_v20, %v53_v19  ;;  %v2070_v19 = vadd.s32 24, %v2002_v44 }
  0x23   :  { %1611 = vmatprep.mubr.bf16.mxu0 %v93_v24  ;;  %1651 = vmatprep.mubr.bf16.mxu1 %v113_v25  ;;  %v105_v24 = vpack.c.bf16 %v56_v22, %v55_v21  ;;  %v57_v25 = vld [vmem:[%s3299_s0 + $0xf0] sm:$0xff] }
  0x24   :  { %v106_v29 = vpack.c.bf16 %v58_v26, %v57_v25  ;;  %1672 = vmatpush3.bf16.msra.mxu1 %v1727_v40  ;;  %v1174_v25 = vsub.s32 6, %v2002_v44  ;;  %v584_v26 = vshra.s32 %v2070_v19, 3 }
  0x25   :  { %1673 = vmatprep.subr.bf16.mxu1 %v1728_v41 }
  0x28   :  { %1674 = vmatpush3.bf16.msra.mxu1 %v1728_v41  ;;  %v2112_v41 = vadd.s32 56, %v2002_v44 }
  0x29   :  { %1675 = vmatprep.subr.bf16.mxu1 %v1729_v42 }
  0x2a   :  { %1612 = vmatmul.mubr.bf16.gmra.mxu0 %v94_v34  ;;  %1652 = vmatmul.mubr.bf16.gmra.mxu1 %v114_v35  ;;  %v64_v34 = vld [vmem:[%s3299_s0 + $0x128] sm:$0xff]  ;;  %v108_v35 = vpack.c.bf16 %v62_v32, %v61_v31  ;;  %v2090_v31 = vadd.s32 16, %v2002_v44  ;;  %v1731_v32 = vld [vmem:[%s3300_s5 + $0x18] sm:$0xff]   ;;  %3351 = vst [vmem:[#allocation6_spill] sm:$0xff] %v2112_v41 }
  0x2b   :  { %1615 = vmatprep.mubr.bf16.mxu0 %v95_v36  ;;  %1655 = vmatprep.mubr.bf16.mxu1 %v115_v37  ;;  %v109_v36 = vpack.c.bf16 %v64_v34, %v63_v33  ;;  %v65_v37 = vld [vmem:[%s3299_s0 + $0x130] sm:$0xff] }
  0x2c   :  { %v110_v39 = vpack.c.bf16 %v66_v38, %v65_v37  ;;  %1676 = vmatpush3.bf16.msra.mxu1 %v1729_v42  ;;  %3350 = vst [vmem:[#allocation5_spill] sm:$0xff] %v2090_v31  ;;  %v2105_v37 = vld [vmem:[%s3302_s2] ss:$0 sm:$0xff]  ;;  %v2115_v42 = vrot.slane %v547_v52, %v1174_v25 }
  0x2d   :  { %1677 = vmatprep.subr.bf16.mxu1 %v1730_v51 }
  0x30   :  { %1678 = vmatpush3.bf16.msra.mxu1 %v1730_v51 }
  0x31   :  { %1679 = vmatprep.subr.bf16.mxu1 %v1731_v32 }
  0x32   :  { %1616 = vmatmul.mubr.bf16.gmra.mxu0 %v96_v46  ;;  %1656 = vmatmul.mubr.bf16.gmra.mxu1 %v116_v47  ;;  %v847_v46 = vsub.s32 1, %v2002_v44  ;;  %v766_v47 = vsub.s32 0, %v2002_v44 }
  0x33   :  { %1619 = vmatprep.mubr.bf16.mxu0 %v97_v48  ;;  %1659 = vmatprep.mubr.bf16.mxu1 %v117_v49  ;;  %v2010_v48 = vadd.s32 72, %v2002_v44  ;;  %v2013_v49 = vadd.s32 96, %v2002_v44 }
  0x34   :  { %v2027_v56 = vrot.slane %v547_v52, %v847_v46  ;;  %v2029_v57 = vrot.slane %v547_v52, %v766_v47  ;;  %v2118_v46 = vand.u32 7, %v584_v26  ;;  %1680 = vmatpush3.bf16.msra.mxu1 %v1731_v32 }
  0x36   :  { %3347 = vst [vmem:[#allocation2_spill] sm:$0xff] %v2027_v56  ;;  %v768_v5 = vmul.f32 0.0, %v2029_v57  ;;  %3352 = vst [vmem:[#allocation7_spill] sm:$0xff] %v2118_v46  ;;  %vm675_vm7 = vcmp.ge.s32.totalorder %v2118_v46, 1 }
  0x3a   :  { %1620 = vmatmul.mubr.bf16.gmra.mxu0 %v98_v58  ;;  %1660 = vmatmul.mubr.bf16.gmra.mxu1 %v118_v59  ;;  %v898_v58 = vsub.s32 2, %v2002_v44  ;;  %v590_v59 = vshra.s32 %v2010_v48, 3 }
  0x3b   :  { %1623 = vmatprep.mubr.bf16.mxu0 %v99_v60  ;;  %1663 = vmatprep.mubr.bf16.mxu1 %v119_v61  ;;  %v2034_v60 = vadd.s32 120, %v2002_v44  ;;  %v593_v61 = vshra.s32 %v2013_v49, 3 }
  0x3d   :  { %v596_v11 = vshra.s32 %v2034_v60, 3  ;;  %v2060_v12 = vand.u32 7, %v593_v61 }
  0x3f   :  { %vm684_vm2 = vcmp.ge.s32.totalorder %v2060_v12, 1 }
  0x42   :  { %1624 = vmatmul.mubr.bf16.gmra.mxu0 %v100_v6  ;;  %1664 = vmatmul.mubr.bf16.gmra.mxu1 %v120_v7  ;;  %v849_v6 = vmul.f32 0.0, %v2027_v56  ;;  %v2053_v7 = vrot.slane %v547_v52, %v898_v58  ;;  %v583_v58 = vshra.s32 %v2090_v31, 3 }
  0x43   :  { %1627 = vmatprep.mubr.bf16.mxu0 %v101_v8  ;;  %1667 = vmatprep.mubr.bf16.mxu1 %v121_v9  ;;  %v2056_v9 = vand.u32 7, %v590_v59  ;;  %v2125_v59 = vadd.s32 40, %v2002_v44 }
  0x44   :  { %v865_v22 = vadd.f32 %v849_v6, %v768_v5  ;;  %v2134_v5 = vadd.s32 48, %v2002_v44  ;;  %v2146_v55 = vand.u32 7, %v583_v58 }
  0x45   :  { %vm681_vm1 = vcmp.ge.s32.totalorder %v2056_v9, 1  ;;  %3353 = vst [vmem:[#allocation8_spill] sm:$0xff] %v2125_v59  ;;  %v586_v26 = vshra.s32 %v2125_v59, 3 }
  0x46   :  { %3355 = vst [vmem:[#allocation10_spill] sm:$0xff] %v2134_v5  ;;  %3357 = vst [vmem:[#allocation12_spill] sm:$0xff] %v2146_v55 }
  0x4a   :  { %1628 = vmatmul.mubr.bf16.gmra.mxu0 %v102_v16  ;;  %1668 = vmatmul.mubr.bf16.gmra.mxu1 %v122_v17  ;;  %v595_v16 = vshra.s32 %v2047_v3, 3  ;;  %v1118_v17 = vsub.s32 5, %v2002_v44 }
  0x4b   :  { %1631 = vmatprep.mubr.bf16.mxu0 %v103_v18  ;;  %v1046_v18 = vsub.s32 3, %v2002_v44 }
  0x4c   :  { %v2095_v33 = vand.u32 7, %v595_v16  ;;  %v2097_v34 = vrot.slane %v547_v52, %v1118_v17 }
  0x4e   :  { %vm686_vm6 = vcmp.ge.s32.totalorder %v2095_v33, 1 }
  0x52   :  { %1632 = vmatmul.mubr.bf16.gmra.mxu0 %v104_v23  ;;  %v900_v23 = vmul.f32 0.0, %v2053_v7 }
  0x53   :  { %1635 = vmatprep.mubr.bf16.mxu0 %v105_v24  ;;  %v2076_v24 = vand.u32 7, %v596_v11 }
  0x54   :  { %v2107_v38 = vadd.f32 %v900_v23, %v865_v22 }
  0x55   :  { %vm687_vm4 = vcmp.ge.s32.totalorder %v2076_v24, 1 }
  0x5a   :  { %1636 = vmatmul.mubr.bf16.gmra.mxu0 %v106_v29  ;;  %v2162_v29 = vand.u32 7, %v586_v26 }
  0x5b   :  { %1639 = vmatprep.mubr.bf16.mxu0 %v107_v30  ;;  %v2087_v30 = vadd.s32 32, %v2002_v44 }
  0x5c   :  { %3359 = vst [vmem:[#allocation14_spill] sm:$0xff] %v2162_v29 }
  0x5d   :  { %3349 = vst [vmem:[#allocation4_spill] sm:$0xff] %v2087_v30  ;;  %v585_v40 = vshra.s32 %v2087_v30, 3 }
  0x5f   :  { %v2139_v16 = vand.u32 7, %v585_v40  ;;  %v589_v40 = vshra.s32 %v2131_v62, 3 }
  0x61   :  { %3356 = vst [vmem:[#allocation11_spill] sm:$0xff] %v2139_v16  ;;  %v2168_v1 = vand.u32 7, %v589_v40 }
  0x62   :  { %1640 = vmatmul.mubr.bf16.gmra.mxu0 %v108_v35 }
  0x63   :  { %1643 = vmatprep.mubr.bf16.mxu0 %v109_v36  ;;  %v2100_v36 = vrot.slane %v547_v52, %v1046_v18  ;;  %v588_v18 = vshra.s32 %v2112_v41, 3  ;;  %3361 = vst [vmem:[#allocation16_spill] sm:$0xff] %v2168_v1 }
  0x6a   :  { %1644 = vmatmul.mubr.bf16.gmra.mxu0 %v110_v39  ;;  %v582_v39 = vshra.s32 %v2081_v27, 3 }
  0x6c   :  { %v2137_v15 = vand.u32 7, %v582_v39  ;;  %v2158_v39 = vand.u32 7, %v588_v18 }
  0x6e   :  { %3358 = vst [vmem:[#allocation13_spill] sm:$0xff] %v2158_v39 }
  0xe2   :  { %v1609_v51 = vpop.f32.mrf.mxu0  ;;  %v1649_v53 = vpop.f32.mrf.mxu1 }
  0xe3   :  { %v237_v52 = vadd.f32 %v1609_v51, %v2105_v37  ;;  %v397_v61 = vadd.f32 %v1649_v53, %v2105_v37 }
  0xe4   :  { %v228_v6 = vpop.f32.mrf.mxu0  ;;  %v388_v11 = vpop.f32.mrf.mxu1 }
  0xe5   :  { %v229_v22 = vadd.f32 %v2105_v37, %v228_v6  ;;  %v525_v23 = vmax.f32 %v397_v61, 0.0  ;;  %v389_v25 = vadd.f32 %v2105_v37, %v388_v11  ;;  %v485_v32 = vmax.f32 %v237_v52, 0.0 }
  0xe6   :  { %v1610_v51 = vpop.f32.mrf.mxu0  ;;  %v1650_v53 = vpop.f32.mrf.mxu1  ;;  %v587_v6 = vshra.s32 %v2134_v5, 3 }
  0xe7   :  { %v483_v54 = vmax.f32 %v229_v22, 0.0  ;;  %v240_v17 = vadd.f32 %v1610_v51, %v2105_v37  ;;  %v840_v52 = vsel %vm683_vm0, %v525_v23, 0.0  ;;  %v523_v47 = vmax.f32 %v389_v25, 0.0 }
  0xe8   :  { %v231_v11 = vpop.f32.mrf.mxu0  ;;  %v400_v58 = vadd.f32 %v1650_v53, %v2105_v37  ;;  %v391_v20 = vpop.f32.mrf.mxu1  ;;  %v2166_v61 = vmul.f32 %v2041_v0, %v485_v32  ;;  %v2188_v35 = vand.u32 7, %v587_v6  ;;  %v1733_v6 = vld [vmem:[%s3300_s5 + $0x8] sm:$0xff]  }
  0xe9   :  { %v232_v22 = vadd.f32 %v2105_v37, %v231_v11  ;;  %v392_v51 = vadd.f32 %v2105_v37, %v391_v20  ;;  %v486_v21 = vmax.f32 %v240_v17, 0.0  ;;  %v2171_v18 = vmul.f32 %v2041_v0, %v483_v54 }
  0xea   :  { %3360 = vst [vmem:[#allocation15_spill] sm:$0xff] %v2166_v61  ;;  %v1613_v25 = vpop.f32.mrf.mxu0  ;;  %v526_v13 = vmax.f32 %v400_v58, 0.0  ;;  %v1653_v53 = vpop.f32.mrf.mxu1  ;;  %v2174_v11 = vmul.f32 %v2027_v56, %v840_v52  ;;  %v2177_v20 = vmul.f32 %v2044_v2, %v525_v23  ;;  %v838_v17 = vsel %vm681_vm1, %v523_v47, 0.0  ;;  %3364 = vst [vmem:[#allocation19_spill] sm:$0xff] %v2188_v35 }
  0xeb   :  { %v253_v26 = vadd.f32 %v1613_v25, %v2105_v37  ;;  %v484_v10 = vmax.f32 %v232_v22, 0.0  ;;  %v524_v58 = vmax.f32 %v392_v51, 0.0  ;;  %v413_v40 = vadd.f32 %v1653_v53, %v2105_v37 }
  0xec   :  { %3362 = vst [vmem:[#allocation17_spill] sm:$0xff] %v2177_v20  ;;  %v244_v32 = vpop.f32.mrf.mxu0  ;;  %v404_v8 = vpop.f32.mrf.mxu1  ;;  %v2185_v54 = vmul.f32 %v2044_v2, %v523_v47  ;;  %v2191_v22 = vmul.f32 %v2041_v0, %v486_v21  ;;  %v841_v25 = vsel %vm684_vm2, %v526_v13, 0.0  ;;  %v1732_v47 = vld [vmem:[%s3300_s5 + $0x10] sm:$0xff]   ;;  %v2206_v21 = vmul.f32 %v2044_v2, %v526_v13 }
  0xed   :  { %v489_v52 = vmax.f32 %v253_v26, 0.0  ;;  %v245_v23 = vadd.f32 %v2105_v37, %v244_v32  ;;  %v529_v43 = vmax.f32 %v413_v40, 0.0  ;;  %v405_v53 = vadd.f32 %v2105_v37, %v404_v8  ;;  %1681 = vmatprep.subr.bf16.mxu1 %v1732_v47 }
  0xee   :  { %3363 = vst [vmem:[#allocation18_spill] sm:$0xff] %v2185_v54  ;;  %3365 = vst [vmem:[#allocation20_spill] sm:$0xff] %v2191_v22  ;;  %v1614_v51 = vpop.f32.mrf.mxu0  ;;  %v1654_v20 = vpop.f32.mrf.mxu1  ;;  %v2203_v26 = vmul.f32 %v2027_v56, %v838_v17  ;;  %v839_v32 = vsel %vm682_vm3, %v524_v58, 0.0  ;;  %v2212_v40 = vmul.f32 %v2041_v0, %v484_v10  ;;  %v2219_v13 = vmul.f32 %v2027_v56, %v841_v25 }
  0xef   :  { %v256_v8 = vadd.f32 %v1614_v51, %v2105_v37  ;;  %v487_v54 = vmax.f32 %v245_v23, 0.0  ;;  %v527_v35 = vmax.f32 %v405_v53, 0.0  ;;  %v416_v61 = vadd.f32 %v1654_v20, %v2105_v37  ;;  %1682 = vmatpush3.bf16.msra.mxu1 %v1732_v47 }
  0xf0   :  { %3366 = vst [vmem:[#allocation21_spill] sm:$0xff] %v2212_v40  ;;  %v247_v5 = vpop.f32.mrf.mxu0  ;;  %v407_v62 = vpop.f32.mrf.mxu1  ;;  %v2216_v17 = vmul.f32 %v2041_v0, %v489_v52  ;;  %v2222_v1 = vmul.f32 %v2044_v2, %v524_v58  ;;  %v2227_v10 = vmul.f32 %v2027_v56, %v839_v32  ;;  %v844_v23 = vsel %vm687_vm4, %v529_v43, 0.0  ;;  %1683 = vmatprep.subr.bf16.mxu1 %v1733_v6  ;;  %v1734_v58 = vld [vmem:[%s3300_s5] sm:$0xff]  }
  0xf1   :  { %v248_v51 = vadd.f32 %v2105_v37, %v247_v5  ;;  %v490_v20 = vmax.f32 %v256_v8, 0.0  ;;  %v408_v53 = vadd.f32 %v2105_v37, %v407_v62  ;;  %v2236_v5 = vmul.f32 %v2044_v2, %v529_v43 }
  0xf2   :  { %3367 = vst [vmem:[#allocation22_spill] sm:$0xff] %v2216_v17  ;;  %3368 = vst [vmem:[#allocation23_spill] sm:$0xff] %v2222_v1  ;;  %v1617_v52 = vpop.f32.mrf.mxu0  ;;  %v1657_v25 = vpop.f32.mrf.mxu1  ;;  %v842_v47 = vsel %vm685_vm5, %v527_v35, 0.0  ;;  %v530_v8 = vmax.f32 %v416_v61, 0.0  ;;  %v2242_v17 = vmul.f32 %v2041_v0, %v487_v54  ;;  %v2246_v41 = vmul.f32 %v2027_v56, %v844_v23 }
  0xf3   :  { %3369 = vst [vmem:[#allocation24_spill] sm:$0xff] %v2236_v5  ;;  %v269_v32 = vadd.f32 %v1617_v52, %v2105_v37  ;;  %v488_v40 = vmax.f32 %v248_v51, 0.0  ;;  %v528_v59 = vmax.f32 %v408_v53, 0.0  ;;  %v429_v29 = vadd.f32 %v1657_v25, %v2105_v37  ;;  %1684 = vmatpush3.bf16.msra.mxu1 %v1733_v6 }
  0xf4   :  { %3370 = vst [vmem:[#allocation25_spill] sm:$0xff] %v2242_v17  ;;  %v260_v62 = vpop.f32.mrf.mxu0  ;;  %v420_v22 = vpop.f32.mrf.mxu1  ;;  %v2251_v61 = vmul.f32 %v2041_v0, %v490_v20  ;;  %v2254_v54 = vmul.f32 %v2027_v56, %v842_v47  ;;  %v2257_v51 = vmul.f32 %v2044_v2, %v527_v35  ;;  %1685 = vmatprep.subr.bf16.mxu1 %v1734_v58  ;;  %v3375_v20 = vand.u32 7, %v2070_v19 }
  0xf5   :  { %v493_v43 = vmax.f32 %v269_v32, 0.0  ;;  %v261_v5 = vadd.f32 %v2105_v37, %v260_v62  ;;  %v421_v39 = vadd.f32 %v2105_v37, %v420_v22  ;;  %v2259_v53 = vmax.f32 %v429_v29, 0.0 }
  0xf6   :  { %3371 = vst [vmem:[#allocation26_spill] sm:$0xff] %v2251_v61  ;;  %3372 = vst [vmem:[#allocation27_spill] sm:$0xff] %v2257_v51  ;;  %v1618_v52 = vpop.f32.mrf.mxu0  ;;  %v1658_v23 = vpop.f32.mrf.mxu1  ;;  %v2262_v25 = vmul.f32 %v2044_v2, %v530_v8  ;;  %v843_v22 = vsel %vm686_vm6, %v528_v59, 0.0  ;;  %vm2269_vm9 = vcmp.ge.s32.totalorder %v3375_v20, 1  ;;  %v3376_v47 = vmov 0 }
  0xf7   :  { %3373 = vst [vmem:[#allocation28_spill] sm:$0xff] %v2259_v53  ;;  %v491_v32 = vmax.f32 %v261_v5, 0.0  ;;  %v272_v6 = vadd.f32 %v1618_v52, %v2105_v37  ;;  %v3377_v47 = vsel %vm2269_vm9, 4294967295, %v3376_v47  ;;  %v2274_v29 = vmul.f32 %v2041_v0, %v488_v40  ;;  %v2282_v5 = vld [vmem:[%s3301_s3 + $0x8] ss:$0 sm:$0xff]  ;;  %1686 = vmatpush3.bf16.msra.mxu1 %v1734_v58  ;;  %vm2369_vm12 = vmand %vm675_vm7, %vm2269_vm9 }
  0xf8   :  { %3374 = vst [vmem:[#allocation29_spill] sm:$0xff] %v2262_v25  ;;  %3378 = vst [vmem:[#allocation30_spill] sm:$0xff] %v3377_v47  ;;  %v2277_v35 = vmul.f32 %v2044_v2, %v528_v59  ;;  %v263_v8 = vpop.f32.mrf.mxu0  ;;  %v2284_v62 = vmax.f32 %v421_v39, 0.0  ;;  %v432_v19 = vadd.f32 %v1658_v23, %v2105_v37  ;;  %v423_v52 = vpop.f32.mrf.mxu1  ;;  %v3382_v20 = vand.u32 7, %v2002_v44 }
  0xf9   :  { %3379 = vst [vmem:[#allocation31_spill] sm:$0xff] %v2274_v29  ;;  %v3383_v61 = vmov 0  ;;  %v2294_v59 = vmul.f32 %v2041_v0, %v493_v43  ;;  %v494_v40 = vmax.f32 %v272_v6, 0.0  ;;  %v264_v29 = vadd.f32 %v2105_v37, %v263_v8 }
  0xfa   :  { %3380 = vst [vmem:[#allocation32_spill] sm:$0xff] %v2277_v35  ;;  %3381 = vst [vmem:[#allocation33_spill] sm:$0xff] %v2284_v62  ;;  %vm2289_vm10 = vcmp.ge.s32.totalorder %v3382_v20, 1  ;;  %v424_v17 = vadd.f32 %v2105_v37, %v423_v52  ;;  %v2299_v39 = vmul.f32 %v2027_v56, %v843_v22  ;;  %v1621_v20 = vpop.f32.mrf.mxu0  ;;  %v2303_v35 = vmax.f32 %v432_v19, 0.0  ;;  %v1661_v25 = vpop.f32.mrf.mxu1 }
  0xfb   :  { %v3384_v61 = vsel %vm2289_vm10, 4294967295, %v3383_v61  ;;  %v2306_v43 = vmul.f32 %v2041_v0, %v491_v32  ;;  %v2310_v6 = vmul.f32 %v2282_v5, %v2259_v53  ;;  %v285_v58 = vadd.f32 %v1621_v20, %v2105_v37 }
  0xfc   :  { %3385 = vst [vmem:[#allocation34_spill] sm:$0xff] %v3384_v61  ;;  %3386 = vst [vmem:[#allocation35_spill] sm:$0xff] %v2303_v35  ;;  %v2313_v8 = vmax.f32 %v424_v17, 0.0  ;;  %v492_v22 = vmax.f32 %v264_v29, 0.0  ;;  %v2317_v52 = vmul.f32 %v2282_v5, %v2284_v62  ;;  %v276_v23 = vpop.f32.mrf.mxu0  ;;  %v445_v19 = vadd.f32 %v1661_v25, %v2105_v37  ;;  %v436_v44 = vpop.f32.mrf.mxu1 }
  0xfd   :  { %3387 = vst [vmem:[#allocation36_spill] sm:$0xff] %v2306_v43  ;;  %3388 = vst [vmem:[#allocation37_spill] sm:$0xff] %v2310_v6  ;;  %v883_v32 = vsel %vm675_vm7, %v2259_v53, 0.0  ;;  %v2324_v43 = vmul.f32 %v2041_v0, %v494_v40  ;;  %v3391_v20 = vrot.slane %v2284_v62, 7  ;;  %v277_v29 = vadd.f32 %v2105_v37, %v276_v23 }
  0xfe   :  { %3389 = vst [vmem:[#allocation38_spill] sm:$0xff] %v2313_v8  ;;  %3390 = vst [vmem:[#allocation39_spill] sm:$0xff] %v2317_v52  ;;  %v497_v52 = vmax.f32 %v285_v58, 0.0  ;;  %v1622_v51 = vpop.f32.mrf.mxu0  ;;  %v2334_v1 = vmax.f32 %v445_v19, 0.0  ;;  %v437_v2 = vadd.f32 %v2105_v37, %v436_v44  ;;  %v1662_v31 = vpop.f32.mrf.mxu1  ;;  %v3394_v40 = vand.u32 7, %v2010_v48 }
  0xff   :  { %v2329_v17 = vsel %vm627_vm8, 0.0, %v3391_v20  ;;  %v2345_v23 = vmul.f32 %v2282_v5, %v2303_v35  ;;  %v495_v20 = vmax.f32 %v277_v29, 0.0  ;;  %v288_v58 = vadd.f32 %v1622_v51, %v2105_v37 }
 0x100   :  { %3392 = vst [vmem:[#allocation40_spill] sm:$0xff] %v2329_v17  ;;  %3393 = vst [vmem:[#allocation41_spill] sm:$0xff] %v2334_v1  ;;  %vm2339_vm11 = vcmp.ge.s32.totalorder %v3394_v40, 1  ;;  %v448_v25 = vadd.f32 %v1662_v31, %v2105_v37  ;;  %v2350_v19 = vmul.f32 %v2041_v0, %v492_v22  ;;  %v2354_v44 = vmul.f32 %v2282_v5, %v2313_v8  ;;  %v279_v48 = vpop.f32.mrf.mxu0  ;;  %v439_v6 = vpop.f32.mrf.mxu1 }
 0x101   :  { %3397 = vst [vmem:[#allocation42_spill] sm:$0xff] %v2345_v23  ;;  %v2356_v40 = vmax.f32 %v437_v2, 0.0  ;;  %v3400_v55 = vrot.slane %v2259_v53, 7  ;;  %v3401_v23 = vrot.slane %v2313_v8, 7  ;;  %v498_v51 = vmax.f32 %v288_v58, 0.0  ;;  %vm2451_vm15 = vmand %vm681_vm1, %vm2339_vm11 }
 0x102   :  { %3398 = vst [vmem:[#allocation43_spill] sm:$0xff] %v2354_v44  ;;  %v280_v2 = vadd.f32 %v2105_v37, %v279_v48  ;;  %v2374_v22 = vmax.f32 %v448_v25, 0.0  ;;  %v1625_v53 = vpop.f32.mrf.mxu0  ;;  %v440_v35 = vadd.f32 %v2105_v37, %v439_v6  ;;  %v1665_v58 = vpop.f32.mrf.mxu1  ;;  %v3474_v62 = vand.u32 7, %v2081_v27 }
 0x103   :  { %3399 = vst [vmem:[#allocation44_spill] sm:$0xff] %v2356_v40  ;;  %v2363_v29 = vsel %vm627_vm8, %v3401_v23, %v3400_v55  ;;  %v2380_v55 = vmul.f32 %v2041_v0, %v497_v52  ;;  %v2383_v23 = vmul.f32 %v2041_v0, %v495_v20  ;;  %v301_v48 = vadd.f32 %v1625_v53, %v2105_v37 }
 0x104   :  { %3402 = vst [vmem:[#allocation45_spill] sm:$0xff] %v2363_v29  ;;  %3405 = vst [vmem:[#allocation46_spill] sm:$0xff] %v2374_v22  ;;  %v496_v47 = vmax.f32 %v280_v2, 0.0  ;;  %v751_v44 = vsel %vm2369_vm12, %v2363_v29, 0.0  ;;  %v2393_v52 = vmul.f32 %v2041_v0, %v498_v51  ;;  %v2397_v20 = vmul.f32 %v2282_v5, %v2356_v40  ;;  %v292_v8 = vpop.f32.mrf.mxu0  ;;  %v452_v2 = vpop.f32.mrf.mxu1 }
 0x105   :  { %3406 = vst [vmem:[#allocation47_spill] sm:$0xff] %v2380_v55  ;;  %v2399_v1 = vmax.f32 %v440_v35, 0.0  ;;  %v461_v6 = vadd.f32 %v1665_v58, %v2105_v37  ;;  %v501_v25 = vmax.f32 %v301_v48, 0.0  ;;  %v293_v55 = vadd.f32 %v2105_v37, %v292_v8 }
 0x106   :  { %3407 = vst [vmem:[#allocation48_spill] sm:$0xff] %v2393_v52  ;;  %3408 = vst [vmem:[#allocation49_spill] sm:$0xff] %v2397_v20  ;;  %v453_v31 = vadd.f32 %v2105_v37, %v452_v2  ;;  %v3410_v51 = vand.u32 7, %v2013_v49  ;;  %v2412_v20 = vmul.f32 %v2041_v0, %v496_v47  ;;  %v2416_v35 = vmul.f32 %v2282_v5, %v2374_v22  ;;  %v1626_v58 = vpop.f32.mrf.mxu0  ;;  %v1666_v53 = vpop.f32.mrf.mxu1 }
 0x107   :  { %3409 = vst [vmem:[#allocation50_spill] sm:$0xff] %v2399_v1  ;;  %v2418_v48 = vmax.f32 %v461_v6, 0.0  ;;  %v2421_v8 = vmul.f32 %v2029_v57, %v751_v44  ;;  %v499_v2 = vmax.f32 %v293_v55, 0.0  ;;  %v304_v0 = vadd.f32 %v1626_v58, %v2105_v37 }
 0x108   :  { %vm2407_vm13 = vcmp.ge.s32.totalorder %v3410_v51, 1  ;;  %3413 = vst [vmem:[#allocation51_spill] sm:$0xff] %v2412_v20  ;;  %3414 = vst [vmem:[#allocation52_spill] sm:$0xff] %v2416_v35  ;;  %v2426_v51 = vmul.f32 %v2282_v5, %v2399_v1  ;;  %v951_v47 = vrot.slane %v501_v25, 7  ;;  %v295_v6 = vpop.f32.mrf.mxu0  ;;  %v2432_v40 = vmax.f32 %v453_v31, 0.0 }
 0x109   :  { %3415 = vst [vmem:[#allocation53_spill] sm:$0xff] %v2421_v8  ;;  %v891_v35 = vsel %vm683_vm0, %v2418_v48, 0.0  ;;  %v2435_v44 = vmul.f32 %v2053_v7, %v883_v32  ;;  %v3418_v55 = vand.u32 7, %v2005_v45  ;;  %v948_v58 = vrot.slane %v499_v2, 7 }
 0x10a   :  { %3416 = vst [vmem:[#allocation54_spill] sm:$0xff] %v2426_v51  ;;  %v2444_v51 = vmul.f32 %v2097_v34, %v501_v25  ;;  %v502_v1 = vmax.f32 %v304_v0, 0.0  ;;  %v3424_v45 = vand.u32 7, %v2016_v50  ;;  %v1120_v25 = vmul.f32 %v2097_v34, %v499_v2 }
 0x10b   :  { %3417 = vst [vmem:[#allocation55_spill] sm:$0xff] %v2435_v44  ;;  %vm2439_vm14 = vcmp.ge.s32.totalorder %v3418_v55, 1  ;;  %v2464_v0 = vmul.f32 %v2282_v5, %v2418_v48  ;;  %v296_v55 = vadd.f32 %v2105_v37, %v295_v6  ;;  %v3342_v20 = vrot.slane %v2432_v40, 7  ;;  %v455_v44 = vpop.f32.mrf.mxu1 }
 0x10c   :  { %3421 = vst [vmem:[#allocation56_spill] sm:$0xff] %v2444_v51  ;;  %vm2457_vm12 = vcmp.ge.s32.totalorder %v3424_v45, 1  ;;  %v1629_v51 = vpop.f32.mrf.mxu0  ;;  %v995_v17 = vsel %vm627_vm8, 0.0, %v948_v58  ;;  %v2469_v8 = vrot.slane %v502_v1, 7  ;;  %v2472_v50 = vmul.f32 %v2053_v7, %v891_v35 }
 0x10d   :  { %3427 = vst [vmem:[#allocation57_spill] sm:$0xff] %v2464_v0  ;;  %v889_v2 = vsel %vm681_vm1, %v2432_v40, 0.0  ;;  %v1028_v45 = vsel %vm2289_vm10, %v995_v17, 0.0  ;;  %v500_v0 = vmax.f32 %v296_v55, 0.0  ;;  %v3428_v6 = vrot.slane %v2374_v22, 7  ;;  %v1669_v16 = vpop.f32.mrf.mxu1  ;;  %vm2518_vm1 = vmand %vm684_vm2, %vm2407_vm13 }
 0x10e   :  { %v317_v56 = vadd.f32 %v1629_v51, %v2105_v37  ;;  %v308_v30 = vpop.f32.mrf.mxu0  ;;  %v1048_v35 = vmul.f32 %v2100_v36, %v1028_v45  ;;  %v2493_v17 = vmul.f32 %v2282_v5, %v2432_v40  ;;  %v464_v55 = vadd.f32 %v1666_v53, %v2105_v37 }
 0x10f   :  { %v2484_v52 = vsel %vm627_vm8, %v3428_v6, %v3342_v20  ;;  %v949_v61 = vrot.slane %v500_v0, 7  ;;  %v909_v6 = vmul.f32 %v2053_v7, %v889_v2  ;;  %v309_v32 = vadd.f32 %v2105_v37, %v308_v30 }
 0x110   :  { %3429 = vst [vmem:[#allocation58_spill] sm:$0xff] %v2484_v52  ;;  %v757_v9 = vsel %vm2451_vm15, %v2484_v52, 0.0  ;;  %3430 = vst [vmem:[#allocation59_spill] sm:$0xff] %v2493_v17  ;;  %v505_v20 = vmax.f32 %v317_v56, 0.0  ;;  %v1630_v51 = vpop.f32.mrf.mxu0  ;;  %v1064_v45 = vadd.f32 %v1048_v35, %v2107_v38  ;;  %v2499_v46 = vmax.f32 %v464_v55, 0.0 }
 0x111   :  { %v777_v22 = vmul.f32 %v2029_v57, %v757_v9  ;;  %v456_v52 = vadd.f32 %v2105_v37, %v455_v44  ;;  %v2505_v17 = vsel %vm627_vm8, %v951_v47, %v2469_v8  ;;  %v2508_v53 = vmul.f32 %v2097_v34, %v502_v1 }
 0x112   :  { %v2511_v2 = vmul.f32 %v2097_v34, %v500_v0  ;;  %v311_v9 = vpop.f32.mrf.mxu0  ;;  %v1100_v38 = vadd.f32 %v2171_v18, %v1064_v45  ;;  %v2524_v44 = vsel %vm627_vm8, %v948_v58, %v949_v61  ;;  %v3346_v1 = vrot.slane %v2499_v46, 7 }
 0x113   :  { %3431 = vst [vmem:[#allocation60_spill] sm:$0xff] %v2508_v53  ;;  %v874_v56 = vadd.f32 %v2203_v26, %v777_v22  ;;  %3435 = vst [vmem:[#allocation62_spill] sm:$0xff] %v2524_v44  ;;  %v892_v26 = vsel %vm684_vm2, %v2499_v46, 0.0  ;;  %v2531_v22 = vsel %vm627_vm8, %v949_v61, %v951_v47  ;;  %v2533_v0 = vrot.slane %v505_v20, 7 }
 0x114   :  { %3432 = vst [vmem:[#allocation61_spill] sm:$0xff] %v2511_v2  ;;  %3436 = vst [vmem:[#allocation63_spill] sm:$0xff] %v2531_v22  ;;  %v2536_v35 = vmul.f32 %v2097_v34, %v505_v20  ;;  %v503_v55 = vmax.f32 %v309_v32, 0.0  ;;  %v468_v2 = vpop.f32.mrf.mxu1  ;;  %v1633_v18 = vpop.f32.mrf.mxu0  ;;  %v3438_v58 = vrot.slane %v2418_v48, 7  ;;  %v540_v53 = vmax.f32 %v456_v52, 0.0 }
 0x115   :  { %v2538_v45 = vadd.f32 %v909_v6, %v874_v56  ;;  %v320_v61 = vadd.f32 %v1630_v51, %v2105_v37  ;;  %vm2552_vm2 = vmand %vm683_vm0, %vm2439_vm14  ;;  %v912_v6 = vmul.f32 %v2053_v7, %v892_v26  ;;  %v2562_v32 = vmul.f32 %v2282_v5, %v2499_v46  ;;  %v3492_v56 = vld [vmem:[#allocation5_spill] sm:$0xff] }
 0x116   :  { %3437 = vst [vmem:[#allocation64_spill] sm:$0xff] %v2536_v35  ;;  %v2545_v12 = vsel %vm627_vm8, %v3438_v58, %v3346_v1  ;;  %v477_v52 = vadd.f32 %v1669_v16, %v2105_v37  ;;  %vm2569_vm0 = vmand %vm682_vm3, %vm2457_vm12  ;;  %v3444_v51 = vand.u32 7, %v2039_v63  ;;  %v2579_v30 = vadd.f32 %v1120_v25, %v1100_v38  ;;  %v324_v1 = vpop.f32.mrf.mxu0  ;;  %v1670_v63 = vpop.f32.mrf.mxu1  ;;  %v3028_v25 = vld [vmem:[%s3303_s4] ss:$0 sm:$0xff] }
 0x117   :  { %v760_v47 = vsel %vm2518_vm1, %v2545_v12, 0.0  ;;  %3441 = vst [vmem:[#allocation65_spill] sm:$0xff] %v2562_v32  ;;  %v955_v58 = vrot.slane %v503_v55, 7  ;;  %v645_v16 = vrot.slane %v540_v53, 7  ;;  %v2583_v35 = vmul.f32 %v2097_v34, %v503_v55 }
 0x118   :  { %vm2575_vm15 = vcmp.ge.s32.totalorder %v3444_v51, 1  ;;  %3447 = vst [vmem:[#allocation66_spill] sm:$0xff] %v2579_v30  ;;  %v780_v26 = vmul.f32 %v2029_v57, %v760_v47  ;;  %v890_v32 = vsel %vm682_vm3, %v540_v53, 0.0  ;;  %v506_v22 = vmax.f32 %v320_v61, 0.0  ;;  %v1634_v4 = vpop.f32.mrf.mxu0 }
 0x119   :  { %3448 = vst [vmem:[#allocation67_spill] sm:$0xff] %v2583_v35  ;;  %v2587_v44 = vmax.f32 %v477_v52, 0.0  ;;  %v3449_v51 = vand.u32 7, %v2047_v3  ;;  %v3452_v47 = vrot.slane %v2432_v40, 7  ;;  %v3453_v14 = vrot.slane %v2418_v48, 7 }
 0x11a   :  { %v877_v38 = vadd.f32 %v2219_v13, %v780_v26  ;;  %v312_v52 = vadd.f32 %v2105_v37, %v311_v9  ;;  %v3454_v35 = vand.u32 7, %v2034_v60  ;;  %v2618_v26 = vrot.slane %v506_v22, 7 }
 0x11b   :  { %vm2591_vm1 = vcmp.ge.s32.totalorder %v3449_v51, 1  ;;  %v2599_v55 = vsel %vm627_vm8, %v3452_v47, %v645_v16  ;;  %v648_v61 = vsel %vm627_vm8, %v645_v16, %v3453_v14  ;;  %v2622_v9 = vsel %vm627_vm8, %v2469_v8, %v955_v58  ;;  %v471_v14 = vpop.f32.mrf.mxu1 }
 0x11c   :  { %vm2607_vm3 = vcmp.ge.s32.totalorder %v3454_v35, 1  ;;  %v758_v13 = vsel %vm2569_vm0, %v2599_v55, 0.0  ;;  %v759_v40 = vsel %vm2552_vm2, %v648_v61, 0.0  ;;  %v1166_v48 = vsel %vm2457_vm12, %v648_v61, 0.0  ;;  %vm2669_vm2 = vmand %vm685_vm5, %vm2575_vm15 }
 0x11d   :  { %v778_v60 = vmul.f32 %v2029_v57, %v758_v13  ;;  %v910_v35 = vmul.f32 %v2053_v7, %v890_v32  ;;  %v2627_v16 = vmul.f32 %v2282_v5, %v540_v53  ;;  %v2629_v51 = vadd.f32 %v912_v6, %v877_v38  ;;  %vm2692_vm0 = vmand %vm686_vm6, %vm2591_vm1 }
 0x11e   :  { %v779_v20 = vmul.f32 %v2029_v57, %v759_v40  ;;  %v2633_v47 = vmul.f32 %v2115_v42, %v1166_v48  ;;  %v895_v8 = vsel %vm687_vm4, %v2587_v44, 0.0  ;;  %v2642_v53 = vsel %vm627_vm8, %v2533_v0, %v2618_v26 }
 0x11f   :  { %3457 = vst [vmem:[#allocation68_spill] sm:$0xff] %v2627_v16  ;;  %v875_v61 = vadd.f32 %v2227_v10, %v778_v60  ;;  %3459 = vst [vmem:[#allocation70_spill] sm:$0xff] %v2642_v53  ;;  %v2645_v6 = vmul.f32 %v2097_v34, %v506_v22  ;;  %v504_v32 = vmax.f32 %v312_v52, 0.0  ;;  %v469_v38 = vadd.f32 %v2105_v37, %v468_v2  ;;  %v327_v53 = vpop.f32.mrf.mxu0 }
 0x120   :  { %3458 = vst [vmem:[#allocation69_spill] sm:$0xff] %v2633_v47  ;;  %v333_v13 = vadd.f32 %v1633_v18, %v2105_v37  ;;  %v480_v40 = vadd.f32 %v1670_v63, %v2105_v37  ;;  %v325_v48 = vadd.f32 %v2105_v37, %v324_v1  ;;  %v655_v47 = vrot.slane %v2587_v44, 7 }
 0x121   :  { %3460 = vst [vmem:[#allocation71_spill] sm:$0xff] %v2645_v6  ;;  %v2653_v10 = vmul.f32 %v2053_v7, %v895_v8  ;;  %v957_v60 = vrot.slane %v504_v32, 7  ;;  %v472_v16 = vadd.f32 %v2105_v37, %v471_v14  ;;  %v2658_v22 = vmul.f32 %v2282_v5, %v2587_v44 }
 0x122   :  { %v543_v2 = vmax.f32 %v469_v38, 0.0  ;;  %v509_v52 = vmax.f32 %v333_v13, 0.0  ;;  %v546_v18 = vmax.f32 %v480_v40, 0.0  ;;  %v2660_v6 = vadd.f32 %v910_v35, %v875_v61  ;;  %v1637_v40 = vpop.f32.mrf.mxu0 }
 0x123   :  { %3461 = vst [vmem:[#allocation72_spill] sm:$0xff] %v2658_v22  ;;  %v2663_v1 = vmul.f32 %v2097_v34, %v504_v32  ;;  %v507_v63 = vmax.f32 %v325_v48, 0.0  ;;  %v544_v30 = vmax.f32 %v472_v16, 0.0  ;;  %v2674_v44 = vsel %vm627_vm8, %v955_v58, %v957_v60 }
 0x124   :  { %v2678_v35 = vsel %vm627_vm8, %v957_v60, %v2533_v0  ;;  %v651_v14 = vrot.slane %v543_v2, 7  ;;  %v893_v61 = vsel %vm685_vm5, %v543_v2, 0.0  ;;  %v2683_v16 = vmul.f32 %v2282_v5, %v543_v2  ;;  %vm2709_vm5 = vmand %vm687_vm4, %vm2607_vm3 }
 0x125   :  { %v2685_v32 = vrot.slane %v509_v52, 7  ;;  %v1153_v38 = vrot.slane %v546_v18, 7  ;;  %v336_v13 = vadd.f32 %v1634_v4, %v2105_v37  ;;  %v3467_v28 = vrot.slane %v2499_v46, 7 }
 0x126   :  { %3464 = vst [vmem:[#allocation73_spill] sm:$0xff] %v2683_v16  ;;  %v913_v48 = vmul.f32 %v2053_v7, %v893_v61  ;;  %v2703_v60 = vmul.f32 %v2097_v34, %v509_v52  ;;  %v653_v4 = vrot.slane %v544_v30, 7  ;;  %v963_v61 = vrot.slane %v507_v63, 7 }
 0x127   :  { %v2699_v58 = vsel %vm627_vm8, %v3467_v28, %v651_v14  ;;  %v2717_v28 = vmul.f32 %v2282_v5, %v546_v18  ;;  %v2720_v52 = vmul.f32 %v2097_v34, %v507_v63  ;;  %v2724_v16 = vsel %vm627_vm8, %v655_v47, %v1153_v38 }
 0x128   :  { %3468 = vst [vmem:[#allocation74_spill] sm:$0xff] %v2703_v60  ;;  %v761_v46 = vsel %vm2669_vm2, %v2699_v58, 0.0  ;;  %v2727_v24 = vsel %vm627_vm8, %v651_v14, %v653_v4  ;;  %v894_v60 = vsel %vm686_vm6, %v544_v30, 0.0  ;;  %v656_v8 = vsel %vm627_vm8, %v653_v4, %v655_v47 }
 0x129   :  { %3471 = vst [vmem:[#allocation75_spill] sm:$0xff] %v2717_v28  ;;  %3472 = vst [vmem:[#allocation76_spill] sm:$0xff] %v2720_v52  ;;  %v781_v22 = vmul.f32 %v2029_v57, %v761_v46  ;;  %v762_v18 = vsel %vm2692_vm0, %v2727_v24, 0.0  ;;  %v2736_v63 = vmul.f32 %v2282_v5, %v544_v30  ;;  %v510_v28 = vmax.f32 %v336_v13, 0.0  ;;  %v340_v46 = vpop.f32.mrf.mxu0 }
 0x12a   :  { %v763_v14 = vsel %vm2709_vm5, %v656_v8, 0.0  ;;  %v782_v52 = vmul.f32 %v2029_v57, %v762_v18  ;;  %v1170_v33 = vsel %vm2591_vm1, %v656_v8, 0.0  ;;  %v2749_v5 = vsel %vm627_vm8, %v2618_v26, %v963_v61 }
 0x12b   :  { %v878_v38 = vadd.f32 %v2254_v54, %v781_v22  ;;  %v876_v30 = vadd.f32 %v2174_v11, %v779_v20  ;;  %v969_v13 = vrot.slane %v510_v28, 7  ;;  %v783_v54 = vmul.f32 %v2029_v57, %v763_v14  ;;  %v1638_v20 = vpop.f32.mrf.mxu0 }
 0x12c   :  { %v879_v22 = vadd.f32 %v2299_v39, %v782_v52  ;;  %v914_v0 = vmul.f32 %v2053_v7, %v894_v60  ;;  %v2756_v4 = vmul.f32 %v2115_v42, %v1170_v33  ;;  %v1167_v26 = vsel %vm2439_vm14, %v2545_v12, 0.0 }
 0x12d   :  { %v2758_v2 = vadd.f32 %v913_v48, %v878_v38  ;;  %v970_v8 = vsel %vm627_vm8, %v2685_v32, %v969_v13  ;;  %v328_v11 = vadd.f32 %v2105_v37, %v327_v53  ;;  %v1131_v60 = vmul.f32 %v2097_v34, %v510_v28 }
 0x12e   :  { %3473 = vst [vmem:[#allocation77_spill] sm:$0xff] %v2756_v4  ;;  %v1039_v39 = vsel %vm2439_vm14, %v970_v8, 0.0  ;;  %v1165_v48 = vsel %vm2339_vm11, %v2599_v55, 0.0  ;;  %v349_v52 = vadd.f32 %v1637_v40, %v2105_v37  ;;  %v927_v18 = vadd.f32 %v2472_v50, %v876_v30  ;;  %v343_v40 = vpop.f32.mrf.mxu0 }
 0x12f   :  { %v1059_v38 = vmul.f32 %v2100_v36, %v1039_v39  ;;  %v508_v14 = vmax.f32 %v328_v11, 0.0  ;;  %v341_v12 = vadd.f32 %v2105_v37, %v340_v46  ;;  %v2776_v53 = vadd.f32 %v914_v0, %v879_v22 }
 0x130   :  { %v1187_v49 = vmul.f32 %v2115_v42, %v1167_v26  ;;  %v513_v33 = vmax.f32 %v349_v52, 0.0  ;;  %v352_v28 = vadd.f32 %v1638_v20, %v2105_v37  ;;  %v1185_v55 = vmul.f32 %v2115_v42, %v1165_v48 }
 0x131   :  { %v1075_v8 = vadd.f32 %v1059_v38, %v927_v18  ;;  %v965_v47 = vrot.slane %v508_v14, 7  ;;  %v511_v4 = vmax.f32 %v341_v12, 0.0  ;;  %v1129_v50 = vmul.f32 %v2097_v34, %v508_v14 }
 0x132   :  { %v1168_v30 = vsel %vm2407_vm13, %v2699_v58, 0.0  ;;  %v514_v46 = vmax.f32 %v352_v28, 0.0  ;;  %v880_v22 = vadd.f32 %v2246_v41, %v783_v54  ;;  %v975_v52 = vrot.slane %v513_v33, 7  ;;  %v1641_v54 = vpop.f32.mrf.mxu0 }
 0x133   :  { %v1111_v0 = vadd.f32 %v2324_v43, %v1075_v8  ;;  %v966_v26 = vsel %vm627_vm8, %v963_v61, %v965_v47  ;;  %v968_v11 = vsel %vm627_vm8, %v965_v47, %v2685_v32  ;;  %v971_v20 = vrot.slane %v511_v4, 7  ;;  %v3538_v32 = vld [vmem:[#allocation42_spill] sm:$0xff] }
 0x134   :  { %v1037_v39 = vsel %vm2339_vm11, %v966_v26, 0.0  ;;  %v1038_v48 = vsel %vm2457_vm12, %v968_v11, 0.0  ;;  %v2795_v58 = vmul.f32 %v2097_v34, %v513_v33  ;;  %vm673_vm4 = vcmp.ge.s32.totalorder %v2137_v15, 1 }
 0x135   :  { %v1147_v18 = vadd.f32 %v1131_v60, %v1111_v0  ;;  %v1057_v41 = vmul.f32 %v2100_v36, %v1037_v39  ;;  %v1058_v43 = vmul.f32 %v2100_v36, %v1038_v48  ;;  %v972_v61 = vsel %vm627_vm8, %v969_v13, %v971_v20 }
 0x136   :  { %vm2803_vm6 = vcmp.ge.s32.totalorder %v3474_v62, 1  ;;  %v1040_v31 = vsel %vm2407_vm13, %v972_v61, 0.0  ;;  %v1132_v47 = vmul.f32 %v2097_v34, %v511_v4  ;;  %v1188_v60 = vmul.f32 %v2115_v42, %v1168_v30  ;;  %v3484_v61 = vld [vmem:[#allocation2_spill] sm:$0xff] }
 0x137   :  { %v977_v38 = vrot.slane %v514_v46, 7  ;;  %v1203_v14 = vadd.f32 %v1187_v49, %v1147_v18  ;;  %v1073_v13 = vadd.f32 %v1057_v41, %v2538_v45  ;;  %v1060_v12 = vmul.f32 %v2100_v36, %v1040_v31  ;;  %v3479_v18 = vld [vmem:[#allocation11_spill] sm:$0xff]  ;;  %v3480_v41 = vld [vmem:[#allocation4_spill] sm:$0xff] }
 0x138   :  { %v931_v33 = vadd.f32 %v2653_v10, %v880_v22  ;;  %v1074_v27 = vadd.f32 %v1058_v43, %v2660_v6  ;;  %v344_v8 = vadd.f32 %v2105_v37, %v343_v40  ;;  %v365_v29 = vadd.f32 %v1641_v54, %v2105_v37 }
 0x139   :  { %v978_v28 = vsel %vm627_vm8, %v975_v52, %v977_v38  ;;  %v1109_v4 = vadd.f32 %v2350_v19, %v1073_v13  ;;  %v1076_v30 = vadd.f32 %v1060_v12, %v2629_v51  ;;  %v1135_v49 = vmul.f32 %v2097_v34, %v514_v46 }
 0x13a   :  { %v1169_v45 = vsel %vm2575_vm15, %v2727_v24, 0.0  ;;  %v1043_v10 = vsel %vm2607_vm3, %v978_v28, 0.0  ;;  %v3477_v6 = vsel %vm2607_vm3, %v2724_v16, 0.0  ;;  %v512_v22 = vmax.f32 %v344_v8, 0.0  ;;  %v356_v24 = vpop.f32.mrf.mxu0  ;;  %v3489_v28 = vld [vmem:[#allocation53_spill] sm:$0xff] }
 0x13b   :  { %v1191_v40 = vmul.f32 %v2115_v42, %v3477_v6  ;;  %v517_v0 = vmax.f32 %v365_v29, 0.0  ;;  %v2832_v19 = vadd.f32 %v2206_v21, %v1203_v14  ;;  %v1145_v51 = vadd.f32 %v1129_v50, %v1109_v4 }
 0x13c   :  { %v1112_v46 = vadd.f32 %v2383_v23, %v1076_v30  ;;  %v1063_v26 = vmul.f32 %v2100_v36, %v1043_v10  ;;  %v2837_v11 = vadd.f32 %v2294_v59, %v1074_v27  ;;  %v973_v39 = vrot.slane %v512_v22, 7  ;;  %v3488_v27 = vld [vmem:[#allocation48_spill] sm:$0xff] }
 0x13d   :  { %v1189_v3 = vmul.f32 %v2115_v42, %v1169_v45  ;;  %v832_v48 = vsel %vm675_vm7, %v517_v0, 0.0  ;;  %vm676_vm11 = vcmp.ge.s32.totalorder %v3479_v18, 1  ;;  %v3481_v21 = vand.u32 7, %v3480_v41  ;;  %vm2861_vm7 = vmand %vm673_vm4, %vm2803_vm6  ;;  %v3491_v10 = vld [vmem:[#allocation12_spill] sm:$0xff]  ;;  %v3498_v41 = vld [vmem:[#allocation33_spill] sm:$0xff] }
 0x13e   :  { %v1148_v23 = vadd.f32 %v1132_v47, %v1112_v46  ;;  %v1079_v43 = vadd.f32 %v1063_v26, %v931_v33  ;;  %v852_v54 = vmul.f32 %v3484_v61, %v832_v48  ;;  %v1031_v62 = vsel %vm2269_vm9, %v2505_v17, 0.0  ;;  %v3497_v46 = vld [vmem:[#allocation3_spill] sm:$0xff] }
 0x13f   :  { %vm2845_vm13 = vcmp.ge.s32.totalorder %v3481_v21, 1  ;;  %v974_v31 = vsel %vm627_vm8, %v971_v20, %v973_v39  ;;  %v976_v38 = vsel %vm627_vm8, %v973_v39, %v975_v52  ;;  %v1133_v14 = vmul.f32 %v2097_v34, %v512_v22 }
 0x140   :  { %v357_v13 = vadd.f32 %v2105_v37, %v356_v24  ;;  %v1201_v12 = vadd.f32 %v1185_v55, %v1145_v51  ;;  %v1204_v33 = vadd.f32 %v1188_v60, %v1148_v23  ;;  %v1115_v17 = vadd.f32 %v3488_v27, %v1079_v43  ;;  %v3490_v55 = vld [vmem:[#allocation40_spill] sm:$0xff]  ;;  %v3496_v51 = vld [vmem:[#allocation55_spill] sm:$0xff]  ;;  %v1642_v23 = vpop.f32.mrf.mxu0 }
 0x141   :  { %v1041_v20 = vsel %vm2575_vm15, %v974_v31, 0.0  ;;  %v1042_v34 = vsel %vm2591_vm1, %v976_v38, 0.0  ;;  %v868_v8 = vadd.f32 %v852_v54, %v3489_v28  ;;  %v1051_v45 = vmul.f32 %v2100_v36, %v1031_v62  ;;  %v3499_v43 = vld [vmem:[#allocation23_spill] sm:$0xff]  ;;  %v3502_v38 = vld [vmem:[#allocation62_spill] sm:$0xff]  ;;  %vm2912_vm15 = vmand %vm676_vm11, %vm2845_vm13 }
 0x142   :  { %v1061_v52 = vmul.f32 %v2100_v36, %v1041_v20  ;;  %v515_v29 = vmax.f32 %v357_v13, 0.0  ;;  %v1151_v4 = vadd.f32 %v1135_v49, %v1115_v17  ;;  %v1062_v30 = vmul.f32 %v2100_v36, %v1042_v34  ;;  %v3500_v54 = vld [vmem:[#allocation27_spill] sm:$0xff] }
 0x143   :  { %v749_v60 = vsel %vm2861_vm7, %v3490_v55, 0.0  ;;  %vm674_vm14 = vcmp.ge.s32.totalorder %v3491_v10, 1  ;;  %v3493_v6 = vand.u32 7, %v3492_v56  ;;  %v919_v49 = vadd.f32 %v3496_v51, %v868_v8 }
 0x144   :  { %v1077_v22 = vadd.f32 %v1061_v52, %v2758_v2  ;;  %v2887_v26 = vmul.f32 %v3497_v46, %v517_v0  ;;  %v830_v24 = vsel %vm673_vm4, %v515_v29, 0.0  ;;  %v1207_v39 = vadd.f32 %v1191_v40, %v1151_v4  ;;  %v3501_v0 = vld [vmem:[#allocation51_spill] sm:$0xff] }
 0x145   :  { %vm2880_vm12 = vcmp.ge.s32.totalorder %v3493_v6, 1  ;;  %v769_v16 = vmul.f32 %v2029_v57, %v749_v60  ;;  %v850_v48 = vmul.f32 %v3484_v61, %v830_v24  ;;  %v881_v21 = vsel %vm673_vm4, %v3498_v41, 0.0  ;;  %v3510_v60 = vld [vmem:[#allocation28_spill] sm:$0xff]  ;;  %v3512_v24 = vld [vmem:[#allocation13_spill] sm:$0xff] }
 0x146   :  { %v2897_v2 = vadd.f32 %v3499_v43, %v1201_v12  ;;  %v2900_v62 = vadd.f32 %v3500_v54, %v1204_v33  ;;  %v1113_v31 = vadd.f32 %v3501_v0, %v1077_v22  ;;  %v1029_v40 = vsel %vm2803_vm6, %v3502_v38, 0.0  ;;  %v3505_v33 = vld [vmem:[#allocation29_spill] sm:$0xff]  ;;  %v3518_v43 = vld [vmem:[#allocation66_spill] sm:$0xff]  ;;  %vm2960_vm3 = vmand %vm674_vm14, %vm2880_vm12 }
 0x147   :  { %v1078_v13 = vadd.f32 %v1062_v30, %v2776_v53  ;;  %v1067_v47 = vadd.f32 %v1051_v45, %v919_v49  ;;  %v866_v27 = vadd.f32 %v850_v48, %v769_v16  ;;  %v901_v15 = vmul.f32 %v2053_v7, %v881_v21  ;;  %v3508_v30 = vld [vmem:[#allocation35_spill] sm:$0xff]  ;;  %v359_v49 = vpop.f32.mrf.mxu0 }
 0x148   :  { %v2917_v17 = vadd.f32 %v3505_v33, %v1207_v39  ;;  %v1149_v20 = vadd.f32 %v1133_v14, %v1113_v31  ;;  %v3507_v53 = vsel %vm2289_vm10, %v3490_v55, 0.0  ;;  %v368_v28 = vadd.f32 %v1642_v23, %v2105_v37  ;;  %v3513_v39 = vld [vmem:[#allocation6_spill] sm:$0xff]  ;;  %v3517_v21 = vld [vmem:[#allocation47_spill] sm:$0xff] }
 0x149   :  { %v1176_v52 = vmul.f32 %v2115_v42, %v3507_v53  ;;  %v917_v8 = vadd.f32 %v901_v15, %v866_v27  ;;  %v1049_v4 = vmul.f32 %v2100_v36, %v1029_v40  ;;  %v3509_v45 = vrot.slane %v3508_v30, 7  ;;  %v3519_v40 = vld [vmem:[#allocation20_spill] sm:$0xff]  ;;  %v3522_v15 = vld [vmem:[#allocation14_spill] sm:$0xff] }
 0x14a   :  { %v3511_v56 = vrot.slane %v3510_v60, 7  ;;  %v884_v14 = vsel %vm676_vm11, %v3508_v30, 0.0  ;;  %v1205_v22 = vadd.f32 %v1189_v3, %v1149_v20  ;;  %v518_v51 = vmax.f32 %v368_v28, 0.0  ;;  %v3523_v20 = vld [vmem:[#allocation32_spill] sm:$0xff] }
 0x14b   :  { %v1032_v37 = vsel %vm2845_vm13, %v2622_v9, 0.0  ;;  %vm679_vm10 = vcmp.ge.s32.totalorder %v3512_v24, 1  ;;  %v3514_v16 = vand.u32 7, %v3513_v39  ;;  %v2947_v23 = vadd.f32 %v3517_v21, %v1078_v13  ;;  %v3524_v53 = vld [vmem:[#allocation60_spill] sm:$0xff]  ;;  %v1645_v13 = vpop.f32.mrf.mxu0 }
 0x14c   :  { %v634_v6 = vsel %vm627_vm8, %v3511_v56, %v3509_v45  ;;  %v1065_v3 = vadd.f32 %v1049_v4, %v917_v8  ;;  %v1192_v54 = vadd.f32 %v1176_v52, %v3518_v43  ;;  %v1212_v0 = vmul.f32 %v3497_v46, %v515_v29  ;;  %v3525_v8 = vld [vmem:[#allocation38_spill] sm:$0xff]  ;;  %v3528_v60 = vld [vmem:[#allocation8_spill] sm:$0xff] }
 0x14d   :  { %v752_v55 = vsel %vm2912_vm15, %v634_v6, 0.0  ;;  %vm2942_vm1 = vcmp.ge.s32.totalorder %v3514_v16, 1  ;;  %v833_v9 = vsel %vm676_vm11, %v518_v51, 0.0  ;;  %v904_v38 = vmul.f32 %v2053_v7, %v884_v14  ;;  %v3532_v16 = vld [vmem:[#allocation63_spill] sm:$0xff] }
 0x14e   :  { %v772_v31 = vmul.f32 %v2029_v57, %v752_v55  ;;  %v1103_v27 = vadd.f32 %v3519_v40, %v1067_v47  ;;  %vm677_vm2 = vcmp.ge.s32.totalorder %v3522_v15, 1  ;;  %v853_v29 = vmul.f32 %v3484_v61, %v833_v9  ;;  %v2972_v47 = vld [vmem:[%s3302_s2] ss:$0 sm:$0xff]  ;;  %v3533_v40 = vld [vmem:[#allocation21_spill] sm:$0xff]  ;;  %vm3018_vm0 = vmand %vm679_vm10, %vm2942_vm1 }
 0x14f   :  { %v1052_v12 = vmul.f32 %v2100_v36, %v1032_v37  ;;  %v1159_v18 = vsel %vm2269_vm9, %v634_v6, 0.0  ;;  %v360_v33 = vadd.f32 %v2972_v47, %v359_v49  ;;  %v2976_v34 = vadd.f32 %v3523_v20, %v1205_v22 }
 0x150   :  { %v1139_v52 = vadd.f32 %v3524_v53, %v1103_v27  ;;  %v1179_v28 = vmul.f32 %v2115_v42, %v1159_v18  ;;  %v3526_v4 = vrot.slane %v3525_v8, 7  ;;  %v3527_v45 = vrot.slane %v3498_v41, 7  ;;  %v3535_v53 = vld [vmem:[#allocation45_spill] sm:$0xff] }
 0x151   :  { %v3529_v56 = vand.u32 7, %v3528_v60  ;;  %v869_v14 = vadd.f32 %v853_v29, %v772_v31  ;;  %v516_v55 = vmax.f32 %v360_v33, 0.0  ;;  %v882_v37 = vsel %vm674_vm14, %v3525_v8, 0.0  ;;  %v3534_v33 = vld [vmem:[#allocation61_spill] sm:$0xff] }
 0x152   :  { %v630_v59 = vsel %vm627_vm8, %v3527_v45, %v3526_v4  ;;  %v1228_v49 = vadd.f32 %v1212_v0, %v1192_v54  ;;  %v1195_v39 = vadd.f32 %v1179_v28, %v1139_v52  ;;  %v1215_v41 = vmul.f32 %v3497_v46, %v518_v51 }
 0x153   :  { %vm2987_vm9 = vcmp.ge.s32.totalorder %v3529_v56, 1  ;;  %v750_v22 = vsel %vm2960_vm3, %v630_v59, 0.0  ;;  %v1030_v21 = vsel %vm2880_vm12, %v3532_v16, 0.0  ;;  %v831_v31 = vsel %vm674_vm14, %v516_v55, 0.0  ;;  %v3541_v56 = vld [vmem:[#allocation50_spill] sm:$0xff]  ;;  %v3545_v16 = vld [vmem:[#allocation9_spill] sm:$0xff] }
 0x154   :  { %v770_v43 = vmul.f32 %v2029_v57, %v750_v22  ;;  %v902_v9 = vmul.f32 %v2053_v7, %v882_v37  ;;  %v1101_v27 = vadd.f32 %v3533_v40, %v1065_v3  ;;  %v920_v29 = vadd.f32 %v904_v38, %v869_v14 }
 0x155   :  { %v1231_v18 = vadd.f32 %v1215_v41, %v1195_v39  ;;  %v851_v54 = vmul.f32 %v3484_v61, %v831_v31  ;;  %v1157_v51 = vsel %vm2803_vm6, %v630_v59, 0.0  ;;  %v1050_v0 = vmul.f32 %v2100_v36, %v1030_v21  ;;  %v3539_v59 = vld [vmem:[#allocation41_spill] sm:$0xff]  ;;  %v3544_v41 = vld [vmem:[#allocation16_spill] sm:$0xff]  ;;  %vm3064_vm6 = vmand %vm677_vm2, %vm2987_vm9 }
 0x156   :  { %v1137_v20 = vadd.f32 %v3534_v33, %v1101_v27  ;;  %v1158_v10 = vsel %vm2880_vm12, %v3535_v53, 0.0  ;;  %v1177_v52 = vmul.f32 %v2115_v42, %v1157_v51  ;;  %v1213_v8 = vmul.f32 %v3497_v46, %v516_v55  ;;  %v3543_v55 = vld [vmem:[#allocation70_spill] sm:$0xff] }
 0x157   :  { %v1267_v38 = vadd.f32 %v3538_v32, %v1231_v18  ;;  %v867_v28 = vadd.f32 %v851_v54, %v770_v43  ;;  %v381_v4 = vadd.f32 %v2972_v47, %v1645_v13  ;;  %v3540_v60 = vrot.slane %v3539_v59, 7  ;;  %v372_v18 = vpop.f32.mrf.mxu0  ;;  %v3549_v54 = vld [vmem:[#allocation39_spill] sm:$0xff] }
 0x158   :  { %v1193_v45 = vadd.f32 %v1177_v52, %v1137_v20  ;;  %v3542_v14 = vrot.slane %v3541_v56, 7  ;;  %v887_v37 = vsel %vm679_vm10, %v3539_v59, 0.0  ;;  %v1035_v39 = vsel %vm2942_vm1, %v3543_v55, 0.0  ;;  %v3557_v55 = vld [vmem:[#allocation10_spill] sm:$0xff] }
 0x159   :  { %vm680_vm5 = vcmp.ge.s32.totalorder %v3544_v41, 1  ;;  %v3546_v21 = vand.u32 7, %v3545_v16  ;;  %v3051_v31 = vadd.f32 %v3028_v25, %v1267_v38  ;;  %v918_v40 = vadd.f32 %v902_v9, %v867_v28  ;;  %v3552_v28 = vld [vmem:[#allocation44_spill] sm:$0xff] }
 0x15a   :  { %v3035_v22 = vsel %vm627_vm8, %v3542_v14, %v3540_v60  ;;  %v521_v27 = vmax.f32 %v381_v4, 0.0  ;;  %v3057_v51 = vadd.f32 %v3549_v54, %v1228_v49  ;;  %v1068_v33 = vadd.f32 %v1052_v12, %v920_v29  ;;  %v3562_v54 = vld [vmem:[#allocation56_spill] sm:$0xff] }
 0x15b   :  { %vm3046_vm4 = vcmp.ge.s32.totalorder %v3546_v21, 1  ;;  %v755_v13 = vsel %vm3018_vm0, %v3035_v22, 0.0  ;;  %v1229_v20 = vadd.f32 %v1213_v8, %v1193_v45  ;;  %v1066_v9 = vadd.f32 %v1050_v0, %v918_v40 }
 0x15c   :  { %v775_v53 = vmul.f32 %v2029_v57, %v755_v13  ;;  %v1178_v3 = vmul.f32 %v2115_v42, %v1158_v10  ;;  %v836_v32 = vsel %vm679_vm10, %v521_v27, 0.0  ;;  %v907_v49 = vmul.f32 %v2053_v7, %v887_v37  ;;  %v3555_v10 = vld [vmem:[#allocation15_spill] sm:$0xff] }
 0x15d   :  { %v856_v12 = vmul.f32 %v3484_v61, %v836_v32  ;;  %v1055_v29 = vmul.f32 %v2100_v36, %v1035_v39  ;;  %v373_v38 = vadd.f32 %v2972_v47, %v372_v18  ;;  %v3553_v8 = vrot.slane %v3552_v28, 7  ;;  %v3556_v37 = vld [vmem:[#allocation19_spill] sm:$0xff]  ;;  %v1646_v18 = vpop.f32.mrf.mxu0  ;;  %v3563_v32 = vld [vmem:[#allocation25_spill] sm:$0xff] }
 0x15e   :  { %v3554_v4 = vrot.slane %v3508_v30, 7  ;;  %v1306_v0 = vmax.f32 %v3051_v31, 0.0  ;;  %v1102_v60 = vadd.f32 %v3555_v10, %v1066_v9  ;;  %v3083_v24 = vmul.f32 %v3497_v46, %v521_v27  ;;  %v3561_v30 = vld [vmem:[#allocation43_spill] sm:$0xff] }
 0x15f   :  { %vm678_vm11 = vcmp.ge.s32.totalorder %v3556_v37, 1  ;;  %v3558_v39 = vand.u32 7, %v3557_v55  ;;  %v3095_v21 = vadd.f32 %v3561_v30, %v1229_v20  ;;  %v872_v40 = vadd.f32 %v856_v12, %v775_v53  ;;  %v3564_v55 = vld [vmem:[#allocation67_spill] sm:$0xff] }
 0x160   :  { %v636_v45 = vsel %vm627_vm8, %v3554_v4, %v3553_v8  ;;  %v519_v13 = vmax.f32 %v373_v38, 0.0  ;;  %v885_v27 = vsel %vm677_vm2, %v3552_v28, 0.0  ;;  %v1138_v52 = vadd.f32 %v3562_v54, %v1102_v60 }
 0x161   :  { %v753_v14 = vsel %vm3064_vm6, %v636_v45, 0.0  ;;  %vm3090_vm7 = vcmp.ge.s32.totalorder %v3558_v39, 1  ;;  %v1033_v9 = vsel %vm2987_vm9, %v2674_v44, 0.0  ;;  %v1104_v8 = vadd.f32 %v3563_v32, %v1068_v33 }
 0x162   :  { %v1160_v4 = vsel %vm2845_vm13, %v636_v45, 0.0  ;;  %v923_v20 = vadd.f32 %v907_v49, %v872_v40  ;;  %v773_v53 = vmul.f32 %v2029_v57, %v753_v14  ;;  %v834_v12 = vsel %vm677_vm2, %v519_v13, 0.0  ;;  %vm3118_vm13 = vmand %vm680_vm5, %vm3046_vm4 }
 0x163   :  { %v1180_v38 = vmul.f32 %v2115_v42, %v1160_v4  ;;  %v1194_v10 = vadd.f32 %v1178_v3, %v1138_v52  ;;  %v854_v60 = vmul.f32 %v3484_v61, %v834_v12  ;;  %v1140_v39 = vadd.f32 %v3564_v55, %v1104_v8  ;;  %v3567_v3 = vld [vmem:[#allocation46_spill] sm:$0xff]  ;;  %v375_v12 = vpop.f32.mrf.mxu0  ;;  %v3571_v55 = vld [vmem:[#allocation71_spill] sm:$0xff]  ;;  %vm3151_vm14 = vmand %vm678_vm11, %vm3090_vm7 }
 0x164   :  { %v384_v44 = vadd.f32 %v2972_v47, %v1646_v18  ;;  %v1071_v33 = vadd.f32 %v1055_v29, %v923_v20  ;;  %v905_v15 = vmul.f32 %v2053_v7, %v885_v27  ;;  %v1053_v49 = vmul.f32 %v2100_v36, %v1033_v9  ;;  %v3570_v9 = vld [vmem:[#allocation26_spill] sm:$0xff] }
 0x165   :  { %v3568_v45 = vrot.slane %v3567_v3, 7  ;;  %v3569_v14 = vrot.slane %v3539_v59, 7  ;;  %v870_v40 = vadd.f32 %v854_v60, %v773_v53  ;;  %v1196_v18 = vadd.f32 %v1180_v38, %v1140_v39 }
 0x166   :  { %v1216_v54 = vmul.f32 %v3497_v46, %v519_v13  ;;  %v522_v52 = vmax.f32 %v384_v44, 0.0  ;;  %v888_v29 = vsel %vm680_vm5, %v3567_v3, 0.0  ;;  %v1036_v27 = vsel %vm3046_vm4, %v2749_v5, 0.0  ;;  %v3580_v5 = vld [vmem:[#allocation37_spill] sm:$0xff] }
 0x167   :  { %v642_v30 = vsel %vm627_vm8, %v3569_v14, %v3568_v45  ;;  %v1107_v8 = vadd.f32 %v3570_v9, %v1071_v33  ;;  %v1230_v4 = vadd.f32 %v2887_v26, %v1194_v10  ;;  %v921_v20 = vadd.f32 %v905_v15, %v870_v40  ;;  %v3574_v15 = vld [vmem:[#allocation58_spill] sm:$0xff] }
 0x168   :  { %v756_v32 = vsel %vm3118_vm13, %v642_v30, 0.0  ;;  %v1232_v53 = vadd.f32 %v1216_v54, %v1196_v18  ;;  %v837_v13 = vsel %vm680_vm5, %v522_v52, 0.0  ;;  %v1163_v44 = vsel %vm2942_vm1, %v642_v30, 0.0 }
 0x169   :  { %v776_v38 = vmul.f32 %v2029_v57, %v756_v32  ;;  %v857_v60 = vmul.f32 %v3484_v61, %v837_v13  ;;  %v1143_v39 = vadd.f32 %v3571_v55, %v1107_v8  ;;  %v1069_v26 = vadd.f32 %v1053_v49, %v921_v20  ;;  %v3577_v49 = vld [vmem:[#allocation49_spill] sm:$0xff]  ;;  %v3578_v8 = vld [vmem:[#allocation31_spill] sm:$0xff]  ;;  %v3579_v55 = vld [vmem:[#allocation36_spill] sm:$0xff] }
 0x16a   :  { %v908_v41 = vmul.f32 %v2053_v7, %v888_v29  ;;  %v1056_v10 = vmul.f32 %v2100_v36, %v1036_v27  ;;  %v1183_v50 = vmul.f32 %v2115_v42, %v1163_v44  ;;  %v1164_v48 = vsel %vm3046_vm4, %v3574_v15, 0.0 }
 0x16b   :  { %v873_v33 = vadd.f32 %v857_v60, %v776_v38  ;;  %v376_v3 = vadd.f32 %v2972_v47, %v375_v12  ;;  %v3575_v45 = vrot.slane %v3541_v56, 7  ;;  %v3576_v14 = vrot.slane %v3552_v28, 7 }
 0x16c   :  { %v1268_v40 = vadd.f32 %v3577_v49, %v1232_v53  ;;  %v1199_v18 = vadd.f32 %v1183_v50, %v1143_v39  ;;  %v886_v32 = vsel %vm678_vm11, %v3541_v56, 0.0  ;;  %v1219_v29 = vmul.f32 %v3497_v46, %v522_v52 }
 0x16d   :  { %v638_v30 = vsel %vm627_vm8, %v3576_v14, %v3575_v45  ;;  %v924_v43 = vadd.f32 %v908_v41, %v873_v33  ;;  %v520_v47 = vmax.f32 %v376_v3, 0.0  ;;  %v1034_v28 = vsel %vm3090_vm7, %v2678_v35, 0.0 }
 0x16e   :  { %v754_v54 = vsel %vm3151_vm14, %v638_v30, 0.0  ;;  %v1184_v27 = vmul.f32 %v2115_v42, %v1164_v48  ;;  %v1105_v20 = vadd.f32 %v3578_v8, %v1069_v26  ;;  %v1161_v53 = vsel %vm2987_vm9, %v638_v30, 0.0  ;;  %v3581_v26 = vld [vmem:[#allocation76_spill] sm:$0xff]  ;;  %v3584_v30 = vld [vmem:[#allocation54_spill] sm:$0xff] }
 0x16f   :  { %v774_v9 = vmul.f32 %v2029_v57, %v754_v54  ;;  %v1072_v13 = vadd.f32 %v1056_v10, %v924_v43  ;;  %v1235_v12 = vadd.f32 %v1219_v29, %v1199_v18  ;;  %v835_v56 = vsel %vm678_vm11, %v520_v47, 0.0  ;;  %v3582_v10 = vld [vmem:[#allocation52_spill] sm:$0xff]  ;;  %v3585_v54 = vld [vmem:[#allocation74_spill] sm:$0xff] }
 0x170   :  { %v906_v52 = vmul.f32 %v2053_v7, %v886_v32  ;;  %v855_v38 = vmul.f32 %v3484_v61, %v835_v56  ;;  %v1054_v35 = vmul.f32 %v2100_v36, %v1034_v28  ;;  %v1141_v60 = vadd.f32 %v2663_v1, %v1105_v20  ;;  %v3586_v43 = vld [vmem:[#allocation18_spill] sm:$0xff] }
 0x171   :  { %v1181_v57 = vmul.f32 %v2115_v42, %v1161_v53  ;;  %v1108_v39 = vadd.f32 %v3579_v55, %v1072_v13  ;;  %v1162_v6 = vsel %vm3090_vm7, %v3035_v22, 0.0  ;;  %v1287_v37 = vadd.f32 %v3028_v25, %v3057_v51  ;;  %v3590_v53 = vld [vmem:[#allocation69_spill] sm:$0xff] }
 0x172   :  { %v1288_v7 = vadd.f32 %v3028_v25, %v3095_v21  ;;  %v871_v44 = vadd.f32 %v855_v38, %v774_v9  ;;  %v1217_v36 = vmul.f32 %v3497_v46, %v520_v47  ;;  %v1266_v1 = vadd.f32 %v3580_v5, %v1230_v4  ;;  %v3583_v46 = vld [vmem:[#allocation68_spill] sm:$0xff]  ;;  %v3587_v47 = vld [vmem:[#allocation65_spill] sm:$0xff]  ;;  %v3589_v9 = vld [vmem:[#allocation22_spill] sm:$0xff] }
 0x173   :  { %v1197_v61 = vadd.f32 %v1181_v57, %v1141_v60  ;;  %v1144_v41 = vadd.f32 %v3581_v26, %v1108_v39  ;;  %v1271_v50 = vadd.f32 %v3582_v10, %v1235_v12  ;;  %v1303_v33 = vmax.f32 %v1287_v37, 0.0  ;;  %v3591_v12 = vld [vmem:[#allocation59_spill] sm:$0xff]  ;;  %v3593_v60 = vld [vmem:[#allocation17_spill] sm:$0xff] }
 0x174   :  { %v1304_v15 = vmax.f32 %v1288_v7, 0.0  ;;  %v922_v16 = vadd.f32 %v906_v52, %v871_v44  ;;  %v1182_v22 = vmul.f32 %v2115_v42, %v1162_v6  ;;  %v1289_v51 = vadd.f32 %v3028_v25, %v1266_v1  ;;  %v3595_v5 = vld [vmem:[#allocation77_spill] sm:$0xff]  ;;  %v3596_v26 = vld [vmem:[#allocation75_spill] sm:$0xff] }
 0x175   :  { %v1233_v48 = vadd.f32 %v1217_v36, %v1197_v61  ;;  %v1291_v21 = vadd.f32 %v3028_v25, %v1268_v40  ;;  %v1200_v45 = vadd.f32 %v1184_v27, %v1144_v41  ;;  %v1273_v14 = vadd.f32 %v3583_v46, %v2897_v2  ;;  %v3588_v40 = vld [vmem:[#allocation73_spill] sm:$0xff]  ;;  %v1736_v10 = vld [vmem:[%s3301_s3 + $0x8] ss:$0 sm:$0xff] }
 0x176   :  { %v1319_v3 = vpack.c.bf16 %v1304_v15, %v1303_v33  ;;  %v1070_v4 = vadd.f32 %v1054_v35, %v922_v16  ;;  %v1305_v18 = vmax.f32 %v1289_v51, 0.0  ;;  %v1146_v32 = vadd.f32 %v3585_v54, %v2837_v11 }
 0x177   :  { %v1269_v49 = vadd.f32 %v3584_v30, %v1233_v48  ;;  %v1236_v42 = vadd.f32 %v3586_v43, %v1200_v45  ;;  %v1296_v29 = vadd.f32 %v3028_v25, %v1273_v14  ;;  %v1275_v28 = vadd.f32 %v3587_v47, %v2832_v19  ;;  %v3592_v19 = vld [vmem:[#allocation64_spill] sm:$0xff] }
 0x178   :  { %1687 = vmatprep.mubr.bf16.mxu1 %v1319_v3  ;;  %v1276_v27 = vadd.f32 %v3588_v40, %v2900_v62  ;;  %v1106_v2 = vadd.f32 %v3589_v9, %v1070_v4  ;;  %v1320_v8 = vpack.c.bf16 %v1306_v0, %v1305_v18  ;;  %v1202_v11 = vadd.f32 %v3590_v53, %v1146_v32  ;;  %v3598_v45 = vld [vmem:[#allocation72_spill] sm:$0xff] }
 0x179   :  { %v1292_v20 = vadd.f32 %v3028_v25, %v1269_v49  ;;  %v1307_v13 = vmax.f32 %v1291_v21, 0.0  ;;  %v1272_v56 = vadd.f32 %v3591_v12, %v1236_v42  ;;  %v1312_v52 = vmax.f32 %v1296_v29, 0.0 }
 0x17a   :  { %v1277_v38 = vadd.f32 %v2736_v63, %v2976_v34  ;;  %v1142_v35 = vadd.f32 %v3592_v19, %v1106_v2  ;;  %1688 = vmatmul.mubr.bf16.vlgmr.msra.gmra.mxu1 %v1320_v8  ;;  %v1238_v57 = vadd.f32 %v3593_v60, %v1202_v11  ;;  %v1299_v31 = vadd.f32 %v3028_v25, %v1276_v27  ;;  %v3594_v63 = vld [vmem:[#allocation57_spill] sm:$0xff] }
 0x17b   :  { %v1308_v62 = vmax.f32 %v1292_v20, 0.0  ;;  %v1295_v0 = vadd.f32 %v3028_v25, %v1272_v56  ;;  %v1298_v55 = vadd.f32 %v3028_v25, %v1275_v28  ;;  %v1150_v6 = vadd.f32 %v2795_v58, %v2947_v23 }
 0x17c   :  { %v1300_v39 = vadd.f32 %v3028_v25, %v1277_v38  ;;  %v1198_v7 = vadd.f32 %v1182_v22, %v1142_v35  ;;  %v1274_v34 = vadd.f32 %v3594_v63, %v1238_v57  ;;  %v1315_v44 = vmax.f32 %v1299_v31, 0.0  ;;  %v3597_v22 = vld [vmem:[#allocation24_spill] sm:$0xff] }
 0x17d   :  { %v1321_v37 = vpack.c.bf16 %v1308_v62, %v1307_v13  ;;  %v1311_v61 = vmax.f32 %v1295_v0, 0.0  ;;  %v1206_v1 = vadd.f32 %v3595_v5, %v1150_v6  ;;  %v1279_v41 = vadd.f32 %v3596_v26, %v2917_v17 }
 0x17e   :  { %v1316_v36 = vmax.f32 %v1300_v39, 0.0  ;;  %v1254_v33 = vmul.f32 %v1736_v10, %v3539_v59  ;;  %v1234_v58 = vadd.f32 %v3083_v24, %v1198_v7  ;;  %v1297_v23 = vadd.f32 %v3028_v25, %v1274_v34 }
 0x17f   :  { %1691 = vmatprep.mubr.bf16.mxu1 %v1321_v37  ;;  %v1323_v15 = vpack.c.bf16 %v1312_v52, %v1311_v61  ;;  %v1242_v48 = vadd.f32 %v3597_v22, %v1206_v1  ;;  %v1294_v3 = vadd.f32 %v3028_v25, %v1271_v50  ;;  %v1314_v17 = vmax.f32 %v1298_v55, 0.0  ;;  %v1526_v50 = vld [vmem:[%s3304_s6] ss:$0 sm:$0xff] }
 0x180   :  { %v1325_v16 = vpack.c.bf16 %v1316_v36, %v1315_v44  ;;  %v1270_v51 = vadd.f32 %v1254_v33, %v1234_v58  ;;  %v1313_v21 = vmax.f32 %v1297_v23, 0.0  ;;  %v1302_v14 = vadd.f32 %v3028_v25, %v1279_v41 }
 0x181   :  { %v1278_v46 = vadd.f32 %v3598_v45, %v1242_v48  ;;  %v1310_v49 = vmax.f32 %v1294_v3, 0.0 }
 0x182   :  { %v1293_v59 = vadd.f32 %v3028_v25, %v1270_v51  ;;  %v1324_v4 = vpack.c.bf16 %v1314_v17, %v1313_v21  ;;  %v1318_v54 = vmax.f32 %v1302_v14, 0.0 }
 0x183   :  { %v1301_v24 = vadd.f32 %v3028_v25, %v1278_v46 }
 0x184   :  { %v1309_v30 = vmax.f32 %v1293_v59, 0.0 }
 0x185   :  { %v1317_v18 = vmax.f32 %v1301_v24, 0.0 }
 0x186   :  { %v1322_v32 = vpack.c.bf16 %v1310_v49, %v1309_v30 }
 0x187   :  { %v1326_v43 = vpack.c.bf16 %v1318_v54, %v1317_v18 }
 0x188   :  { %1692 = vmatmul.mubr.bf16.gmra.mxu1 %v1322_v32 }
 0x189   :  { %1695 = vmatprep.mubr.bf16.mxu1 %v1323_v15 }
 0x190   :  { %1696 = vmatmul.mubr.bf16.gmra.mxu1 %v1324_v4 }
 0x191   :  { %1699 = vmatprep.mubr.bf16.mxu1 %v1325_v16 }
 0x198   :  { %1700 = vmatmul.mubr.bf16.gmra.mxu1 %v1326_v43 }
 0x23a   :  { %v1689_v42 = vpop.f32.mrf.mxu1 }
 0x23b   :  { %v1441_v29 = vadd.f32 %v1689_v42, %v1526_v50 }
 0x23c   :  { %v1432_v47 = vpop.f32.mrf.mxu1 }
 0x23d   :  { %1497 = vst [vmem:[%s3305_s7 + $0x10] sm:$0xff] %v1441_v29  ;;  %v1433_v25 = vadd.f32 %v1526_v50, %v1432_v47 }
 0x23e   :  { %v1690_v28 = vpop.f32.mrf.mxu1 }
 0x23f   :  { %1495 = vst [vmem:[%s3305_s7] sm:$0xff] %v1433_v25  ;;  %v1444_v40 = vadd.f32 %v1690_v28, %v1526_v50 }
 0x240   :  { %v1435_v27 = vpop.f32.mrf.mxu1 }
 0x241   :  { %1498 = vst [vmem:[%s3305_s7 + $0x18] sm:$0xff] %v1444_v40  ;;  %v1436_v9 = vadd.f32 %v1526_v50, %v1435_v27 }
 0x243   :  { %1496 = vst [vmem:[%s3305_s7 + $0x8] sm:$0xff] %v1436_v9 }
 0x248   :  { %v1693_v2 = vpop.f32.mrf.mxu1 }
 0x249   :  { %v1457_v8 = vadd.f32 %v1693_v2, %v1526_v50 }
 0x24a   :  { %v1448_v20 = vpop.f32.mrf.mxu1 }
 0x24b   :  { %1501 = vst [vmem:[%s3305_s7 + $0x30] sm:$0xff] %v1457_v8  ;;  %v1449_v53 = vadd.f32 %v1526_v50, %v1448_v20 }
 0x24c   :  { %v1694_v11 = vpop.f32.mrf.mxu1 }
 0x24d   :  { %1499 = vst [vmem:[%s3305_s7 + $0x20] sm:$0xff] %v1449_v53  ;;  %v1460_v13 = vadd.f32 %v1694_v11, %v1526_v50 }
 0x24e   :  { %v1451_v12 = vpop.f32.mrf.mxu1 }
 0x24f   :  { %1502 = vst [vmem:[%s3305_s7 + $0x38] sm:$0xff] %v1460_v13  ;;  %v1452_v56 = vadd.f32 %v1526_v50, %v1451_v12 }
 0x250   :  { %v1697_v52 = vpop.f32.mrf.mxu1 }
 0x251   :  { %1500 = vst [vmem:[%s3305_s7 + $0x28] sm:$0xff] %v1452_v56  ;;  %v1473_v38 = vadd.f32 %v1697_v52, %v1526_v50 }
 0x252   :  { %v1464_v19 = vpop.f32.mrf.mxu1 }
 0x253   :  { %1505 = vst [vmem:[%s3305_s7 + $0x50] sm:$0xff] %v1473_v38  ;;  %v1465_v35 = vadd.f32 %v1526_v50, %v1464_v19 }
 0x254   :  { %v1698_v62 = vpop.f32.mrf.mxu1 }
 0x255   :  { %1503 = vst [vmem:[%s3305_s7 + $0x40] sm:$0xff] %v1465_v35  ;;  %v1476_v60 = vadd.f32 %v1698_v62, %v1526_v50 }
 0x256   :  { %v1467_v57 = vpop.f32.mrf.mxu1 }
 0x257   :  { %1506 = vst [vmem:[%s3305_s7 + $0x58] sm:$0xff] %v1476_v60  ;;  %v1468_v31 = vadd.f32 %v1526_v50, %v1467_v57 }
 0x258   :  { %v1701_v0 = vpop.f32.mrf.mxu1 }
 0x259   :  { %1504 = vst [vmem:[%s3305_s7 + $0x48] sm:$0xff] %v1468_v31  ;;  %v1489_v55 = vadd.f32 %v1701_v0, %v1526_v50 }
 0x25a   :  { %v1480_v39 = vpop.f32.mrf.mxu1 }
 0x25b   :  { %1509 = vst [vmem:[%s3305_s7 + $0x70] sm:$0xff] %v1489_v55  ;;  %v1481_v6 = vadd.f32 %v1526_v50, %v1480_v39 }
 0x25c   :  { %v1702_v37 = vpop.f32.mrf.mxu1 }
 0x25d   :  { %1507 = vst [vmem:[%s3305_s7 + $0x60] sm:$0xff] %v1481_v6  ;;  %v1492_v7 = vadd.f32 %v1702_v37, %v1526_v50 }
 0x25e   :  { %v1483_v63 = vpop.f32.mrf.mxu1 }
 0x25f   :  { %1510 = vst [vmem:[%s3305_s7 + $0x78] sm:$0xff] %v1492_v7  ;;  %v1484_v34 = vadd.f32 %v1526_v50, %v1483_v63 }
 0x261   :  { %1508 = vst [vmem:[%s3305_s7 + $0x68] sm:$0xff] %v1484_v34 }

// kernel: ofanet_forward.6
= control target key start
LH: loop header
LB: loop body
LE: loop exit
PB: predicated region body
PF: predicated region fallthrough
CT: control target
= control target key end

     0   :  { %v237_v40 = vlaneseq  ;;  %vm3754_vm2 = vcmask 1040384   ;;  %vm3724_vm7 = vcmask 1046528   ;;  %s3687_s1 = inlined_call_operand.vmem [shape: bf16[128,128], index: 1, kind: input, shape index: {}]   ;;  %s3688_s0 = inlined_call_operand.vmem [shape: f32[128,128], index: 0, kind: input, shape index: {}]   ;;  %s3689_s5 = inlined_call_operand.vmem [shape: bf16[128,128], index: 5, kind: input, shape index: {}]   ;;  %s3690_s3 = inlined_call_operand.vmem [shape: f32[9,128], index: 3, kind: input, shape index: {}]   ;;  %s3691_s2 = inlined_call_operand.vmem [shape: f32[1,128], index: 2, kind: input, shape index: {}]   ;;  %s3692_s4 = inlined_call_operand.vmem [shape: f32[1,128], index: 4, kind: input, shape index: {}]   ;;  %s3693_s6 = inlined_call_operand.vmem [shape: f32[1,128], index: 6, kind: input, shape index: {}]   ;;  %s3694_s7 = inlined_call_operand.vmem [shape: f32[128,128], index: 7, kind: output, shape index: {}]  }
   0x1   :  { %v1609_v0 = vld [vmem:[%s3687_s1 + $0x38] sm:$0xff]   ;;  %v1610_v1 = vld [vmem:[%s3687_s1 + $0x30] sm:$0xff]   ;;  %v1611_v2 = vld [vmem:[%s3687_s1 + $0x28] sm:$0xff]  }
   0x2   :  { %1545 = vmatprep.subr.bf16.mxu0 %v1609_v0  ;;  %v1612_v3 = vld [vmem:[%s3687_s1 + $0x20] sm:$0xff]   ;;  %v28_v5 = vld [vmem:[%s3688_s0 + $0x8] sm:$0xff]  ;;  %v1613_v7 = vld [vmem:[%s3687_s1 + $0x18] sm:$0xff]   ;;  %v1777_v41 = vshrl.u32 %v237_v40, 7  ;;  %v3842_v40 = vmov 0 }
   0x3   :  { %1546 = vmatpush3.bf16.msra.mxu0 %v1609_v0  ;;  %v27_v4 = vld [vmem:[%s3688_s0] sm:$0xff]  ;;  %v1614_v8 = vld [vmem:[%s3687_s1 + $0x10] sm:$0xff]   ;;  %v1615_v9 = vld [vmem:[%s3687_s1 + $0x8] sm:$0xff]  }
   0x4   :  { %1547 = vmatprep.subr.bf16.mxu0 %v1610_v1  ;;  %v43_v6 = vpack.c.bf16 %v28_v5, %v27_v4  ;;  %v1616_v10 = vld [vmem:[%s3687_s1] sm:$0xff]   ;;  %v29_v11 = vld [vmem:[%s3688_s0 + $0x10] sm:$0xff]  ;;  %v30_v12 = vld [vmem:[%s3688_s0 + $0x18] sm:$0xff]  ;;  %v1780_v42 = vadd.s32 24, %v1777_v41  ;;  %v1783_v43 = vadd.s32 8, %v1777_v41  ;;  %v1786_v44 = vadd.s32 32, %v1777_v41 }
   0x5   :  { %v31_v13 = vld [vmem:[%s3688_s0 + $0x20] sm:$0xff]  ;;  %v32_v14 = vld [vmem:[%s3688_s0 + $0x28] sm:$0xff]  ;;  %v44_v15 = vpack.c.bf16 %v30_v12, %v29_v11  ;;  %v33_v17 = vld [vmem:[%s3688_s0 + $0x30] sm:$0xff]  ;;  %v1789_v45 = vadd.s32 16, %v1777_v41  ;;  %v1792_v46 = vadd.s32 56, %v1777_v41  ;;  %v538_v48 = vsub.s32 1, %v1777_v41 }
   0x6   :  { %1561 = vmatprep.mubr.bf16.mxu0 %v43_v6  ;;  %v45_v16 = vpack.c.bf16 %v32_v14, %v31_v13  ;;  %v34_v18 = vld [vmem:[%s3688_s0 + $0x38] sm:$0xff]  ;;  %v35_v19 = vld [vmem:[%s3688_s0 + $0x40] sm:$0xff]  ;;  %v36_v20 = vld [vmem:[%s3688_s0 + $0x48] sm:$0xff]  ;;  %3818 = vst [vmem:[#allocation2_spill] sm:$0xff] %v1786_v44  ;;  %v273_v47 = vshra.s32 %v1780_v42, 3  ;;  %v827_v49 = vsub.s32 4, %v1777_v41 }
   0x7   :  { %1548 = vmatpush3.bf16.msra.mxu0 %v1610_v1  ;;  %v46_v21 = vpack.c.bf16 %v34_v18, %v33_v17  ;;  %v47_v22 = vpack.c.bf16 %v36_v20, %v35_v19  ;;  %v37_v23 = vld [vmem:[%s3688_s0 + $0x50] sm:$0xff]  ;;  %v38_v24 = vld [vmem:[%s3688_s0 + $0x58] sm:$0xff]  ;;  %v39_v25 = vld [vmem:[%s3688_s0 + $0x60] sm:$0xff]  ;;  %3819 = vst [vmem:[#allocation3_spill] sm:$0xff] %v1792_v46  ;;  %v271_v50 = vshra.s32 %v1783_v43, 3  ;;  %v1802_v52 = vadd.s32 40, %v1777_v41 }
   0x8   :  { %1549 = vmatprep.subr.bf16.mxu0 %v1611_v2  ;;  %v40_v26 = vld [vmem:[%s3688_s0 + $0x68] sm:$0xff]  ;;  %v48_v27 = vpack.c.bf16 %v38_v24, %v37_v23  ;;  %v41_v29 = vld [vmem:[%s3688_s0 + $0x70] sm:$0xff]  ;;  %v42_v30 = vld [vmem:[%s3688_s0 + $0x78] sm:$0xff]  ;;  %v457_v53 = vsub.s32 0, %v1777_v41  ;;  %v791_v54 = vsub.s32 3, %v1777_v41  ;;  %v274_v55 = vshra.s32 %v1786_v44, 3 }
   0x9   :  { %v49_v28 = vpack.c.bf16 %v40_v26, %v39_v25  ;;  %v50_v31 = vpack.c.bf16 %v42_v30, %v41_v29  ;;  %v1617_v32 = vld [vmem:[%s3689_s5 + $0x38] sm:$0xff]   ;;  %v1618_v33 = vld [vmem:[%s3689_s5 + $0x30] sm:$0xff]   ;;  %v1619_v34 = vld [vmem:[%s3689_s5 + $0x28] sm:$0xff]   ;;  %3820 = vst [vmem:[#allocation4_spill] sm:$0xff] %v1802_v52  ;;  %v272_v56 = vshra.s32 %v1789_v45, 3  ;;  %v277_v57 = vshra.s32 %v1792_v46, 3 }
   0xa   :  { %1577 = vmatprep.subr.bf16.mxu1 %v1617_v32  ;;  %v1620_v35 = vld [vmem:[%s3689_s5 + $0x20] sm:$0xff]   ;;  %v1621_v36 = vld [vmem:[%s3689_s5 + $0x18] sm:$0xff]   ;;  %v1622_v37 = vld [vmem:[%s3689_s5 + $0x10] sm:$0xff]   ;;  %v1810_v58 = vadd.s32 64, %v1777_v41  ;;  %v1813_v59 = vadd.s32 48, %v1777_v41  ;;  %v1815_v60 = vand.u32 7, %v273_v47 }
   0xb   :  { %1550 = vmatpush3.bf16.msra.mxu0 %v1611_v2  ;;  %1578 = vmatpush3.bf16.msra.mxu1 %v1617_v32  ;;  %v1623_v38 = vld [vmem:[%s3689_s5 + $0x8] sm:$0xff]   ;;  %v1624_v39 = vld [vmem:[%s3689_s5] sm:$0xff]   ;;  %v1821_v63 = vand.u32 7, %v271_v50  ;;  %v3697_v0 = vand.u32 7, %v1777_v41  ;;  %v3696_v1 = vand.u32 7, %v1783_v43  ;;  %v275_v2 = vshra.s32 %v1802_v52, 3 }
   0xc   :  { %1551 = vmatprep.subr.bf16.mxu0 %v1612_v3  ;;  %1579 = vmatprep.subr.bf16.mxu1 %v1618_v33  ;;  %v235_v51 = vld [vmem:[%s3690_s3] sm:$0xff]  ;;  %3821 = vst [vmem:[#allocation5_spill] sm:$0xff] %v1810_v58  ;;  %3822 = vst [vmem:[#allocation6_spill] sm:$0xff] %v1813_v59  ;;  %v3695_v6 = vand.u32 7, %v1786_v44  ;;  %v276_v11 = vshra.s32 %v1813_v59, 3  ;;  %v1841_v12 = vadd.s32 88, %v1777_v41 }
   0xd   :  { %v1817_v61 = vrot.slane %v235_v51, %v538_v48  ;;  %v1819_v62 = vrot.slane %v235_v51, %v827_v49  ;;  %v1827_v4 = vrot.slane %v235_v51, %v457_v53  ;;  %v1829_v5 = vrot.slane %v235_v51, %v791_v54  ;;  %v1884_v29 = vld [vmem:[%s3691_s2] ss:$0 sm:$0xff] }
   0xe   :  { %3826 = vst [vmem:[#allocation10_spill] sm:$0xff] %v1841_v12  ;;  %v1844_v13 = vadd.s32 72, %v1777_v41  ;;  %v1847_v14 = vadd.s32 96, %v1777_v41  ;;  %v1853_v17 = vadd.s32 80, %v1777_v41  ;;  %v270_v19 = vshra.s32 %v1777_v41, 3 }
   0xf   :  { %1552 = vmatpush3.bf16.msra.mxu0 %v1612_v3  ;;  %1580 = vmatpush3.bf16.msra.mxu1 %v1618_v33  ;;  %v1112_v3 = vsub.s32 7, %v1777_v41  ;;  %3823 = vst [vmem:[#allocation7_spill] sm:$0xff] %v1829_v5  ;;  %v3698_v20 = vand.u32 7, %v1802_v52  ;;  %v1031_v23 = vsub.s32 6, %v1777_v41  ;;  %vm3729_vm0 = vcmp.ge.s32.totalorder %v1815_v60, 1 }
  0x10   :  { %1553 = vmatprep.subr.bf16.mxu0 %v1613_v7  ;;  %1581 = vmatprep.subr.bf16.mxu1 %v1619_v34  ;;  %3827 = vst [vmem:[#allocation11_spill] sm:$0xff] %v1844_v13  ;;  %3828 = vst [vmem:[#allocation12_spill] sm:$0xff] %v1847_v14  ;;  %vm1867_vm1 = vcmp.ge.s32.totalorder %v3696_v1, 1  ;;  %v3832_v24 = vmov 0  ;;  %v1873_v26 = vand.u32 7, %v276_v11  ;;  %v281_v30 = vshra.s32 %v1841_v12, 3 }
  0x11   :  { %3830 = vst [vmem:[#allocation14_spill] sm:$0xff] %v1853_v17  ;;  %v1855_v18 = vrot.slane %v235_v51, %v1112_v3  ;;  %v3833_v24 = vsel %vm1867_vm1, 4294967295, %v3832_v24  ;;  %v282_v32 = vshra.s32 %v1847_v14, 3  ;;  %vm3706_vm3 = vcmp.ge.s32.totalorder %v1821_v63, 1 }
  0x12   :  { %3834 = vst [vmem:[#allocation16_spill] sm:$0xff] %v3833_v24  ;;  %3836 = vst [vmem:[#allocation18_spill] sm:$0xff] %v1873_v26  ;;  %vm1899_vm4 = vcmp.ge.s32.totalorder %v3697_v0, 1  ;;  %vm1906_vm6 = vcmp.ge.s32.totalorder %v3695_v6, 1  ;;  %v1913_v49 = vrot.slane %v235_v51, %v1031_v23  ;;  %v3699_v50 = vand.u32 7, %v1789_v45 }
  0x13   :  { %1554 = vmatpush3.bf16.msra.mxu0 %v1613_v7  ;;  %1582 = vmatpush3.bf16.msra.mxu1 %v1619_v34  ;;  %v1832_v7 = vand.u32 7, %v274_v55  ;;  %3831 = vst [vmem:[#allocation15_spill] sm:$0xff] %v1855_v18  ;;  %v3843_v40 = vsel %vm1906_vm6, 4294967295, %v3842_v40  ;;  %vm3705_vm10 = vcmp.le.s32.totalorder %v1821_v63, 6  ;;  %vm1966_vm11 = vmand %vm3706_vm3, %vm1867_vm1  ;;  %vm1980_vm13 = vcmp.ge.s32.totalorder %v3698_v20, 1 }
  0x14   :  { %1555 = vmatprep.subr.bf16.mxu0 %v1614_v8  ;;  %1583 = vmatprep.subr.bf16.mxu1 %v1620_v35  ;;  %3844 = vst [vmem:[#allocation22_spill] sm:$0xff] %v3843_v40  ;;  %3846 = vst [vmem:[#allocation24_spill] sm:$0xff] %v1913_v49  ;;  %vm1986_vm14 = vcmp.ge.s32.totalorder %v3699_v50, 1  ;;  %v3862_v50 = vand.u32 7, %v1810_v58  ;;  %v3863_v12 = vmov 0  ;;  %v3920_v40 = vand.u32 7, %v1780_v42 }
  0x15   :  { %3824 = vst [vmem:[#allocation8_spill] sm:$0xff] %v1832_v7  ;;  %vm3713_vm5 = vcmp.ge.s32.totalorder %v1832_v7, 1  ;;  %vm3974_vm1 = vcmp.ge.s32.totalorder %v1815_v60, 1 }
  0x16   :  { %vm2002_vm15 = vcmp.ge.s32.totalorder %v3862_v50, 1 }
  0x17   :  { %1556 = vmatpush3.bf16.msra.mxu0 %v1614_v8  ;;  %1584 = vmatpush3.bf16.msra.mxu1 %v1620_v35  ;;  %v1834_v8 = vand.u32 7, %v272_v56  ;;  %v3864_v12 = vsel %vm2002_vm15, 4294967295, %v3863_v12 }
  0x18   :  { %1557 = vmatprep.subr.bf16.mxu0 %v1615_v9  ;;  %1585 = vmatprep.subr.bf16.mxu1 %v1621_v36  ;;  %3865 = vst [vmem:[#allocation34_spill] sm:$0xff] %v3864_v12 }
  0x19   :  { %vm3730_vm8 = vcmp.ge.s32.totalorder %v1834_v8, 1 }
  0x1b   :  { %1558 = vmatpush3.bf16.msra.mxu0 %v1615_v9  ;;  %1586 = vmatpush3.bf16.msra.mxu1 %v1621_v36  ;;  %v1836_v9 = vand.u32 7, %v277_v57  ;;  %v280_v36 = vshra.s32 %v1853_v17, 3 }
  0x1c   :  { %1559 = vmatprep.subr.bf16.mxu0 %v1616_v10  ;;  %1587 = vmatprep.subr.bf16.mxu1 %v1622_v37 }
  0x1d   :  { %3825 = vst [vmem:[#allocation9_spill] sm:$0xff] %v1836_v9  ;;  %vm3725_vm9 = vcmp.ge.s32.totalorder %v1836_v9, 1 }
  0x1f   :  { %1560 = vmatpush3.bf16.msra.mxu0 %v1616_v10  ;;  %1588 = vmatpush3.bf16.msra.mxu1 %v1622_v37  ;;  %v278_v10 = vshra.s32 %v1810_v58, 3  ;;  %v1895_v37 = vand.u32 7, %v270_v19  ;;  %v459_v19 = vmul.f32 0.0, %v1827_v4 }
  0x20   :  { %1589 = vmatprep.subr.bf16.mxu1 %v1623_v38 }
  0x21   :  { %v1871_v25 = vand.u32 7, %v278_v10 }
  0x22   :  { %1562 = vmatmul.mubr.bf16.vlgmr.msra.gmra.mxu0 %v44_v15  ;;  %v704_v15 = vsub.s32 2, %v1777_v41 }
  0x23   :  { %1565 = vmatprep.mubr.bf16.mxu0 %v45_v16  ;;  %1590 = vmatpush3.bf16.msra.mxu1 %v1623_v38  ;;  %v1850_v16 = vand.u32 7, %v275_v2  ;;  %3835 = vst [vmem:[#allocation17_spill] sm:$0xff] %v1871_v25  ;;  %v1920_v2 = vand.u32 7, %v281_v30 }
  0x24   :  { %1591 = vmatprep.subr.bf16.mxu1 %v1624_v39  ;;  %v1889_v33 = vrot.slane %v235_v51, %v704_v15  ;;  %v1929_v15 = vand.u32 7, %v280_v36  ;;  %v3857_v36 = vmov 0 }
  0x25   :  { %3829 = vst [vmem:[#allocation13_spill] sm:$0xff] %v1850_v16  ;;  %3847 = vst [vmem:[#allocation25_spill] sm:$0xff] %v1920_v2  ;;  %vm3731_vm12 = vcmp.ge.s32.totalorder %v1850_v16, 1  ;;  %v3858_v36 = vsel %vm1980_vm13, 4294967295, %v3857_v36 }
  0x26   :  { %3850 = vst [vmem:[#allocation28_spill] sm:$0xff] %v1929_v15 }
  0x27   :  { %1592 = vmatpush3.bf16.msra.mxu1 %v1624_v39  ;;  %v3839_v39 = vmov 0 }
  0x28   :  { %v3840_v39 = vsel %vm1899_vm4, 4294967295, %v3839_v39 }
  0x29   :  { %3841 = vst [vmem:[#allocation21_spill] sm:$0xff] %v3840_v39 }
  0x2a   :  { %1566 = vmatmul.mubr.bf16.gmra.mxu0 %v46_v21  ;;  %v1860_v21 = vadd.s32 120, %v1777_v41 }
  0x2b   :  { %1569 = vmatprep.mubr.bf16.mxu0 %v47_v22  ;;  %v913_v22 = vsub.s32 5, %v1777_v41 }
  0x2c   :  { %v285_v47 = vshra.s32 %v1860_v21, 3 }
  0x2d   :  { %v1911_v48 = vrot.slane %v235_v51, %v913_v22  ;;  %v1925_v51 = vand.u32 7, %v282_v32  ;;  %v540_v22 = vmul.f32 0.0, %v1817_v61 }
  0x2e   :  { %v1937_v6 = vand.u32 7, %v285_v47 }
  0x2f   :  { %3845 = vst [vmem:[#allocation23_spill] sm:$0xff] %v1911_v48  ;;  %3849 = vst [vmem:[#allocation27_spill] sm:$0xff] %v1925_v51  ;;  %v1952_v32 = vadd.f32 %v540_v22, %v459_v19 }
  0x31   :  { %3853 = vst [vmem:[#allocation31_spill] sm:$0xff] %v1952_v32 }
  0x32   :  { %1570 = vmatmul.mubr.bf16.gmra.mxu0 %v48_v27  ;;  %v1876_v27 = vadd.s32 104, %v1777_v41 }
  0x33   :  { %1573 = vmatprep.mubr.bf16.mxu0 %v49_v28  ;;  %v1879_v28 = vadd.s32 112, %v1777_v41 }
  0x34   :  { %3837 = vst [vmem:[#allocation19_spill] sm:$0xff] %v1876_v27  ;;  %v283_v54 = vshra.s32 %v1876_v27, 3 }
  0x35   :  { %3838 = vst [vmem:[#allocation20_spill] sm:$0xff] %v1879_v28  ;;  %v284_v55 = vshra.s32 %v1879_v28, 3 }
  0x37   :  { %v1943_v1 = vand.u32 7, %v284_v55 }
  0x39   :  { %3852 = vst [vmem:[#allocation30_spill] sm:$0xff] %v1943_v1 }
  0x3a   :  { %1574 = vmatmul.mubr.bf16.gmra.mxu0 %v50_v31  ;;  %v279_v31 = vshra.s32 %v1844_v13, 3 }
  0x3c   :  { %v1923_v10 = vand.u32 7, %v279_v31  ;;  %v3859_v31 = vmov 0 }
  0x3d   :  { %v3860_v31 = vsel %vm1986_vm14, 4294967295, %v3859_v31 }
  0x3e   :  { %3848 = vst [vmem:[#allocation26_spill] sm:$0xff] %v1923_v10  ;;  %3861 = vst [vmem:[#allocation33_spill] sm:$0xff] %v3860_v31 }
  0xe2   :  { %v1563_v38 = vpop.f32.mrf.mxu0 }
  0xe3   :  { %v165_v53 = vadd.f32 %v1563_v38, %v1884_v29 }
  0xe4   :  { %v156_v57 = vpop.f32.mrf.mxu0 }
  0xe5   :  { %v157_v11 = vadd.f32 %v1884_v29, %v156_v57  ;;  %v1933_v23 = vmax.f32 %v165_v53, 0.0  ;;  %v1940_v57 = vand.u32 7, %v283_v54 }
  0xe6   :  { %v1564_v30 = vpop.f32.mrf.mxu0 }
  0xe7   :  { %3851 = vst [vmem:[#allocation29_spill] sm:$0xff] %v1940_v57  ;;  %v1945_v0 = vmax.f32 %v157_v11, 0.0  ;;  %v168_v53 = vadd.f32 %v1564_v30, %v1884_v29  ;;  %v321_v11 = vrot.slane %v1933_v23, 7  ;;  %v523_v30 = vsel %vm3729_vm0, %v1933_v23, 0.0 }
  0xe8   :  { %v159_v56 = vpop.f32.mrf.mxu0  ;;  %v1972_v22 = vmul.f32 %v1819_v62, %v1933_v23  ;;  %v1096_v3 = vsel %vm3705_vm10, %v1933_v23, 0.0  ;;  %vm2015_vm10 = vmand %vm3713_vm5, %vm1906_vm6  ;;  %vm3941_vm6 = vcmask 1040384  }
  0xe9   :  { %v160_v47 = vadd.f32 %v1884_v29, %v159_v56  ;;  %v318_v38 = vrot.slane %v1945_v0, 7  ;;  %v1975_v54 = vmax.f32 %v168_v53, 0.0  ;;  %v521_v35 = vsel %vm3706_vm3, %v1945_v0, 0.0 }
  0xea   :  { %v1567_v19 = vpop.f32.mrf.mxu0  ;;  %3856 = vst [vmem:[#allocation32_spill] sm:$0xff] %v1972_v22  ;;  %vm3752_vm3 = vcmp.ge.s32.totalorder %v1871_v25, 1  ;;  %v2024_v56 = vmul.f32 %v1817_v61, %v523_v30  ;;  %v2032_v49 = vmul.f32 %v1855_v18, %v1096_v3  ;;  %v541_v44 = vmul.f32 %v1817_v61, %v521_v35 }
  0xeb   :  { %v362_v53 = vsel %vm3754_vm2, 0.0, %v318_v38  ;;  %v1997_v20 = vmax.f32 %v160_v47, 0.0  ;;  %v181_v55 = vadd.f32 %v1567_v19, %v1884_v29  ;;  %v323_v52 = vrot.slane %v1975_v54, 7  ;;  %vm2141_vm0 = vmand %vm3752_vm3, %vm2002_vm15 }
  0xec   :  { %v172_v34 = vpop.f32.mrf.mxu0  ;;  %v440_v46 = vsel %vm1966_vm11, %v362_v53, 0.0  ;;  %v773_v22 = vsel %vm1899_vm4, %v362_v53, 0.0  ;;  %v524_v50 = vsel %vm3713_vm5, %v1975_v54, 0.0  ;;  %v2029_v53 = vmul.f32 %v1819_v62, %v1945_v0  ;;  %3869 = vst [vmem:[#allocation36_spill] sm:$0xff] %v2032_v49 }
  0xed   :  { %v460_v19 = vmul.f32 %v1827_v4, %v440_v46  ;;  %v3870_v7 = vrot.slane %v1945_v0, 1  ;;  %v2041_v30 = vmul.f32 %v1829_v5, %v773_v22  ;;  %v2044_v46 = vsel %vm3754_vm2, %v321_v11, %v323_v52 }
  0xee   :  { %3868 = vst [vmem:[#allocation35_spill] sm:$0xff] %v2029_v53  ;;  %v1568_v58 = vpop.f32.mrf.mxu0  ;;  %3872 = vst [vmem:[#allocation38_spill] sm:$0xff] %v2044_v46  ;;  %vm3753_vm11 = vcmp.ge.s32.totalorder %v1873_v26, 1  ;;  %v3873_v53 = vand.u32 7, %v1813_v59  ;;  %v3874_v3 = vmov 0  ;;  %v443_v35 = vsel %vm2015_vm10, %v2044_v46, 0.0 }
  0xef   :  { %v2038_v48 = vsel %vm3724_vm7, 0.0, %v3870_v7  ;;  %3871 = vst [vmem:[#allocation37_spill] sm:$0xff] %v2041_v30  ;;  %v544_v7 = vmul.f32 %v1817_v61, %v524_v50  ;;  %v319_v22 = vrot.slane %v1997_v20, 7  ;;  %v522_v49 = vsel %vm3730_vm8, %v1997_v20, 0.0 }
  0xf0   :  { %vm2049_vm5 = vcmp.ge.s32.totalorder %v3873_v53, 1  ;;  %v175_v18 = vpop.f32.mrf.mxu0  ;;  %v463_v30 = vmul.f32 %v1827_v4, %v443_v35  ;;  %v2063_v59 = vmax.f32 %v181_v55, 0.0  ;;  %v173_v5 = vadd.f32 %v1884_v29, %v172_v34 }
  0xf1   :  { %v3875_v3 = vsel %vm2049_vm5, 4294967295, %v3874_v3  ;;  %v2066_v39 = vadd.f32 %v541_v44, %v460_v19  ;;  %v2070_v47 = vmul.f32 %v1819_v62, %v1975_v54  ;;  %v184_v50 = vadd.f32 %v1568_v58, %v1884_v29  ;;  %vm2169_vm10 = vmand %vm3753_vm11, %vm2049_vm5 }
  0xf2   :  { %3876 = vst [vmem:[#allocation39_spill] sm:$0xff] %v3875_v3  ;;  %3877 = vst [vmem:[#allocation40_spill] sm:$0xff] %v2063_v59  ;;  %v176_v32 = vadd.f32 %v1884_v29, %v175_v18  ;;  %v1571_v46 = vpop.f32.mrf.mxu0  ;;  %v2075_v24 = vmul.f32 %v1817_v61, %v522_v49  ;;  %v2080_v55 = vmul.f32 %v1819_v62, %v1997_v20  ;;  %v527_v44 = vsel %vm3725_vm9, %v2063_v59, 0.0 }
  0xf3   :  { %3878 = vst [vmem:[#allocation41_spill] sm:$0xff] %v2066_v39  ;;  %3879 = vst [vmem:[#allocation42_spill] sm:$0xff] %v2070_v47  ;;  %v2086_v34 = vmax.f32 %v173_v5, 0.0  ;;  %v2088_v58 = vmax.f32 %v184_v50, 0.0  ;;  %v3882_v49 = vand.u32 7, %v1844_v13  ;;  %v3883_v19 = vmov 0 }
  0xf4   :  { %3880 = vst [vmem:[#allocation43_spill] sm:$0xff] %v2080_v55  ;;  %v188_v18 = vpop.f32.mrf.mxu0  ;;  %v2097_v53 = vsel %vm3754_vm2, %v318_v38, %v319_v22  ;;  %v2100_v35 = vsel %vm3754_vm2, %v319_v22, %v321_v11  ;;  %vm2106_vm9 = vmand %vm3730_vm8, %vm1986_vm14  ;;  %v2110_v50 = vadd.f32 %v544_v7, %v463_v30  ;;  %v2114_v9 = vmax.f32 %v176_v32, 0.0  ;;  %v4036_v5 = vld [vmem:[#allocation16_spill] sm:$0xff] }
  0xf5   :  { %3881 = vst [vmem:[#allocation44_spill] sm:$0xff] %v2086_v34  ;;  %vm2092_vm7 = vcmp.ge.s32.totalorder %v3882_v49, 1  ;;  %v2118_v38 = vmul.f32 %v1817_v61, %v527_v44  ;;  %v2122_v11 = vmul.f32 %v1819_v62, %v2063_v59  ;;  %v325_v22 = vrot.slane %v2086_v34, 7  ;;  %vm2129_vm8 = vmand %vm3731_vm12, %vm1980_vm13 }
  0xf6   :  { %v3884_v19 = vsel %vm2092_vm7, 4294967295, %v3883_v19  ;;  %3887 = vst [vmem:[#allocation45_spill] sm:$0xff] %v2110_v50  ;;  %v525_v32 = vsel %vm3731_vm12, %v2086_v34, 0.0  ;;  %v1572_v7 = vpop.f32.mrf.mxu0  ;;  %v331_v44 = vrot.slane %v2088_v58, 7  ;;  %v197_v49 = vadd.f32 %v1571_v46, %v1884_v29 }
  0xf7   :  { %3888 = vst [vmem:[#allocation46_spill] sm:$0xff] %v2118_v38  ;;  %3889 = vst [vmem:[#allocation47_spill] sm:$0xff] %v2122_v11  ;;  %v189_v11 = vadd.f32 %v1884_v29, %v188_v18  ;;  %v3894_v38 = vand.u32 7, %v1847_v14  ;;  %v2158_v47 = vsel %vm3754_vm2, %v323_v52, %v325_v22  ;;  %v528_v46 = vsel %vm3752_vm3, %v2088_v58, 0.0 }
  0xf8   :  { %v191_v16 = vpop.f32.mrf.mxu0  ;;  %v444_v52 = vsel %vm2129_vm8, %v2158_v47, 0.0  ;;  %v545_v55 = vmul.f32 %v1817_v61, %v525_v32  ;;  %v2179_v14 = vmul.f32 %v1819_v62, %v2086_v34  ;;  %v3900_v18 = vrot.slane %v2063_v59, 7 }
  0xf9   :  { %vm2150_vm12 = vcmp.ge.s32.totalorder %v3894_v38, 1  ;;  %v464_v3 = vmul.f32 %v1827_v4, %v444_v52  ;;  %v3902_v30 = vrot.slane %v2114_v9, 7  ;;  %v526_v32 = vsel %vm3753_vm11, %v2114_v9, 0.0 }
  0xfa   :  { %3899 = vst [vmem:[#allocation48_spill] sm:$0xff] %v2179_v14  ;;  %v2184_v25 = vsel %vm3754_vm2, %v3900_v18, %v331_v44  ;;  %v1575_v14 = vpop.f32.mrf.mxu0  ;;  %v548_v52 = vmul.f32 %v1817_v61, %v528_v46  ;;  %v2219_v59 = vmax.f32 %v197_v49, 0.0  ;;  %v546_v26 = vmul.f32 %v1817_v61, %v526_v32 }
  0xfb   :  { %3901 = vst [vmem:[#allocation49_spill] sm:$0xff] %v2184_v25  ;;  %v447_v39 = vsel %vm2141_vm0, %v2184_v25, 0.0  ;;  %v2193_v31 = vsel %vm3754_vm2, %v325_v22, %v3902_v30  ;;  %v3903_v22 = vand.u32 7, %v1853_v17  ;;  %v3904_v30 = vmov 0 }
  0xfc   :  { %v467_v18 = vmul.f32 %v1827_v4, %v447_v39  ;;  %v445_v13 = vsel %vm2169_vm10, %v2193_v31, 0.0  ;;  %v2216_v39 = vmul.f32 %v1819_v62, %v2088_v58  ;;  %3908 = vst [vmem:[#allocation52_spill] sm:$0xff] %v2219_v59  ;;  %v204_v38 = vpop.f32.mrf.mxu0  ;;  %v2222_v17 = vmax.f32 %v189_v11, 0.0 }
  0xfd   :  { %vm2207_vm0 = vcmp.ge.s32.totalorder %v3903_v22, 1  ;;  %v465_v46 = vmul.f32 %v1827_v4, %v445_v13  ;;  %v200_v22 = vadd.f32 %v1572_v7, %v1884_v29  ;;  %v192_v34 = vadd.f32 %v1884_v29, %v191_v16 }
  0xfe   :  { %v3905_v30 = vsel %vm2207_vm0, 4294967295, %v3904_v30  ;;  %3907 = vst [vmem:[#allocation51_spill] sm:$0xff] %v2216_v39  ;;  %v2227_v25 = vadd.f32 %v545_v55, %v464_v3  ;;  %vm3909_vm3 = vcmp.ge.s32.totalorder %v1920_v2, 1  ;;  %v3910_v11 = vand.u32 7, %v1876_v27 }
  0xff   :  { %3906 = vst [vmem:[#allocation50_spill] sm:$0xff] %v3905_v30  ;;  %v531_v32 = vsel %vm3909_vm3, %v2219_v59, 0.0  ;;  %v3911_v7 = vmov 0  ;;  %v2242_v16 = vadd.f32 %v548_v52, %v467_v18  ;;  %v2244_v3 = vadd.f32 %v546_v26, %v465_v46 }
 0x100   :  { %vm2238_vm11 = vcmp.ge.s32.totalorder %v3910_v11, 1  ;;  %v2248_v55 = vmul.f32 %v1819_v62, %v2114_v9  ;;  %v333_v13 = vrot.slane %v2222_v17, 7  ;;  %vm3916_vm3 = vcmp.ge.s32.totalorder %v1923_v10, 1  ;;  %v1576_v11 = vpop.f32.mrf.mxu0 }
 0x101   :  { %v3912_v7 = vsel %vm2238_vm11, 4294967295, %v3911_v7  ;;  %3914 = vst [vmem:[#allocation54_spill] sm:$0xff] %v2242_v16  ;;  %3915 = vst [vmem:[#allocation55_spill] sm:$0xff] %v2244_v3  ;;  %v2265_v46 = vmax.f32 %v200_v22, 0.0  ;;  %vm2269_vm5 = vcmp.ge.s32.totalorder %v3920_v40, 1  ;;  %v3921_v27 = vmov 0 }
 0x102   :  { %3913 = vst [vmem:[#allocation53_spill] sm:$0xff] %v3912_v7  ;;  %vm2255_vm10 = vmand %vm3916_vm3, %vm2092_vm7  ;;  %v3922_v27 = vsel %vm2269_vm5, 4294967295, %v3921_v27  ;;  %v2274_v2 = vmul.f32 %v1817_v61, %v531_v32  ;;  %v2279_v26 = vmax.f32 %v192_v34, 0.0  ;;  %v213_v16 = vadd.f32 %v1575_v14, %v1884_v29 }
 0x103   :  { %vm3919_vm2 = vmmov %vm3916_vm3  ;;  %vm3924_vm3 = vcmask 1040384   ;;  %v339_v39 = vrot.slane %v2265_v46, 7  ;;  %v205_v14 = vadd.f32 %v1884_v29, %v204_v38  ;;  %v3931_v49 = vmov 0 }
 0x104   :  { %v529_v52 = vsel %vm3919_vm2, %v2222_v17, 0.0  ;;  %3923 = vst [vmem:[#allocation56_spill] sm:$0xff] %v2274_v2  ;;  %v2277_v18 = vsel %vm3924_vm3, %v331_v44, %v333_v13  ;;  %vm3926_vm2 = vcmp.ge.s32.totalorder %v1925_v51, 1  ;;  %v3930_v44 = vand.u32 7, %v1860_v21  ;;  %vm2445_vm7 = vmand %vm3974_vm1, %vm2269_vm5 }
 0x105   :  { %3925 = vst [vmem:[#allocation57_spill] sm:$0xff] %v2277_v18  ;;  %v448_v22 = vsel %vm2255_vm10, %v2277_v18, 0.0  ;;  %vm2290_vm8 = vmand %vm3926_vm2, %vm2150_vm12  ;;  %v2306_v32 = vmul.f32 %v1819_v62, %v2219_v59  ;;  %v549_v2 = vmul.f32 %v1817_v61, %v529_v52  ;;  %v2312_v51 = vmul.f32 %v1819_v62, %v2222_v17 }
 0x106   :  { %vm3929_vm3 = vmmov %vm3926_vm2  ;;  %vm2300_vm13 = vcmp.le.s32.totalorder %v3930_v44, 6  ;;  %v3936_v38 = vand.u32 7, %v1879_v28  ;;  %v3937_v44 = vmov 0  ;;  %v3940_v10 = vrot.slane %v2219_v59, 7 }
 0x107   :  { %v532_v34 = vsel %vm3929_vm3, %v2265_v46, 0.0  ;;  %v3932_v49 = vsel %vm2300_vm13, 4294967295, %v3931_v49  ;;  %3934 = vst [vmem:[#allocation59_spill] sm:$0xff] %v2306_v32  ;;  %3935 = vst [vmem:[#allocation60_spill] sm:$0xff] %v2312_v51  ;;  %v468_v32 = vmul.f32 %v1827_v4, %v448_v22  ;;  %vm3943_vm10 = vcmp.ge.s32.totalorder %v1929_v15, 1 }
 0x108   :  { %3933 = vst [vmem:[#allocation58_spill] sm:$0xff] %v3932_v49  ;;  %vm2317_vm2 = vcmp.ge.s32.totalorder %v3936_v38, 1  ;;  %v2329_v51 = vsel %vm3941_vm6, %v3940_v10, %v339_v39  ;;  %vm2336_vm4 = vmand %vm3943_vm10, %vm2207_vm0  ;;  %v3946_v22 = vand.u32 7, %v1860_v21  ;;  %v207_v10 = vpop.f32.mrf.mxu0  ;;  %v552_v3 = vmul.f32 %v1817_v61, %v532_v34  ;;  %v4038_v49 = vld [vmem:[#allocation33_spill] sm:$0xff]  ;;  %v2700_v38 = vld [vmem:[%s3690_s3 + $0x8] ss:$0 sm:$0xff] }
 0x109   :  { %v3938_v44 = vsel %vm2317_vm2, 4294967295, %v3937_v44  ;;  %3942 = vst [vmem:[#allocation62_spill] sm:$0xff] %v2329_v51  ;;  %v451_v52 = vsel %vm2290_vm8, %v2329_v51, 0.0  ;;  %vm3949_vm6 = vmmov %vm3943_vm10  ;;  %v3950_v21 = vand.u32 7, %v1777_v41  ;;  %v3953_v40 = vrot.slane %v2279_v26, 7 }
 0x10a   :  { %3939 = vst [vmem:[#allocation61_spill] sm:$0xff] %v3938_v44  ;;  %vm2342_vm3 = vcmp.ge.s32.totalorder %v3946_v22, 1  ;;  %v530_v12 = vsel %vm3949_vm6, %v2279_v26, 0.0  ;;  %v471_v59 = vmul.f32 %v1827_v4, %v451_v52  ;;  %vm3954_vm8 = vcmask 1040384  }
 0x10b   :  { %vm2358_vm0 = vcmp.le.s32.totalorder %v3950_v21, 6  ;;  %v2366_v34 = vsel %vm3954_vm8, %v333_v13, %v3953_v40  ;;  %v2368_v30 = vmax.f32 %v213_v16, 0.0  ;;  %v2370_v51 = vmax.f32 %v205_v14, 0.0 }
 0x10c   :  { %v3955_v15 = vand.u32 7, %v1780_v42  ;;  %v2380_v41 = vmul.f32 %v1819_v62, %v2265_v46  ;;  %v449_v52 = vsel %vm2336_vm4, %v2366_v34, 0.0  ;;  %v216_v13 = vadd.f32 %v1576_v11, %v1884_v29 }
 0x10d   :  { %v208_v16 = vadd.f32 %v1884_v29, %v207_v10  ;;  %v2387_v14 = vadd.f32 %v549_v2, %v468_v32  ;;  %v469_v42 = vmul.f32 %v1827_v4, %v449_v52  ;;  %vm3959_vm8 = vcmp.ge.s32.totalorder %v1937_v6, 1 }
 0x10e   :  { %vm2374_vm6 = vcmp.le.s32.totalorder %v3955_v15, 6  ;;  %3958 = vst [vmem:[#allocation63_spill] sm:$0xff] %v2380_v41  ;;  %v535_v21 = vsel %vm3959_vm8, %v2368_v30, 0.0  ;;  %v3960_v40 = vand.u32 7, %v1789_v45  ;;  %v3961_v41 = vmov 0 }
 0x10f   :  { %v550_v11 = vmul.f32 %v1817_v61, %v530_v12  ;;  %v2403_v29 = vmul.f32 %v1819_v62, %v2279_v26  ;;  %v2407_v2 = vmul.f32 %v1819_v62, %v2368_v30  ;;  %v341_v32 = vrot.slane %v2370_v51, 7 }
 0x110   :  { %vm2396_vm10 = vcmp.le.s32.totalorder %v3960_v40, 6  ;;  %vm3965_vm4 = vcmp.ge.s32.totalorder %v1940_v57, 1  ;;  %v3968_v12 = vand.u32 7, %v1783_v43  ;;  %v2424_v10 = vadd.f32 %v552_v3, %v471_v59 }
 0x111   :  { %v3962_v41 = vsel %vm2396_vm10, 4294967295, %v3961_v41  ;;  %3963 = vst [vmem:[#allocation64_spill] sm:$0xff] %v2403_v29  ;;  %3964 = vst [vmem:[#allocation65_spill] sm:$0xff] %v2407_v2  ;;  %v533_v15 = vsel %vm3965_vm4, %v2370_v51, 0.0  ;;  %v2434_v2 = vmul.f32 %v1817_v61, %v535_v21  ;;  %vm3973_vm14 = vcmask 1040384  }
 0x112   :  { %vm2414_vm8 = vmand %vm3965_vm4, %vm2238_vm11  ;;  %vm2420_vm15 = vcmp.le.s32.totalorder %v3968_v12, 6  ;;  %3971 = vst [vmem:[#allocation66_spill] sm:$0xff] %v2424_v10  ;;  %v2437_v43 = vsel %vm3973_vm14, %v339_v39, %v341_v32  ;;  %v234_v12 = vmax.f32 %v216_v13, 0.0  ;;  %v2439_v29 = vmax.f32 %v208_v16, 0.0 }
 0x113   :  { %3972 = vst [vmem:[#allocation67_spill] sm:$0xff] %v2434_v2  ;;  %v2449_v3 = vadd.f32 %v550_v11, %v469_v42  ;;  %v452_v39 = vsel %vm2414_vm8, %v2437_v43, 0.0  ;;  %vm3978_vm14 = vcmp.ge.s32.totalorder %v1943_v1, 1  ;;  %v3979_v16 = vmov 0 }
 0x114   :  { %vm2460_vm4 = vmand %vm3978_vm14, %vm2317_vm2  ;;  %v553_v21 = vmul.f32 %v1817_v61, %v533_v15  ;;  %v603_v42 = vrot.slane %v234_v12, 1  ;;  %vm3981_vm1 = vcmp.ge.s32.totalorder %v1937_v6, 1  ;;  %v738_v45 = vrot.slane %v234_v12, 7 }
 0x115   :  { %3977 = vst [vmem:[#allocation68_spill] sm:$0xff] %v2449_v3  ;;  %v3980_v16 = vsel %vm2460_vm4, 4294967295, %v3979_v16  ;;  %vm2469_vm5 = vmand %vm3981_vm1, %vm2300_vm13  ;;  %v2474_v13 = vmul.f32 %v1819_v62, %v234_v12  ;;  %v472_v40 = vmul.f32 %v1827_v4, %v452_v39  ;;  %vm3985_vm8 = vcmp.le.s32.totalorder %v1943_v1, 6 }
 0x116   :  { %vm2481_vm14 = vmand %vm3985_vm8, %vm2317_vm2  ;;  %v3986_v15 = vmov 0  ;;  %vm3991_vm1 = vcmp.ge.s32.totalorder %v1943_v1, 1  ;;  %v3992_v39 = vrot.slane %v2368_v30, 1  ;;  %vm3993_vm11 = vcmask 1046528  }
 0x117   :  { %3984 = vst [vmem:[#allocation69_spill] sm:$0xff] %v2474_v13  ;;  %v3987_v15 = vsel %vm2481_vm14, 4294967295, %v3986_v15  ;;  %vm3989_vm10 = vmmov %vm3985_vm8  ;;  %v534_v13 = vsel %vm3991_vm1, %v2439_v29, 0.0  ;;  %v3994_v44 = vrot.slane %v2368_v30, 7  ;;  %vm3995_vm8 = vcmask 1040384  }
 0x118   :  { %3988 = vst [vmem:[#allocation70_spill] sm:$0xff] %v3987_v15  ;;  %v2487_v52 = vsel %vm3989_vm10, %v234_v12, 0.0  ;;  %v2496_v10 = vsel %vm3993_vm11, %v3992_v39, %v603_v42  ;;  %vm3997_vm2 = vmmov %vm3993_vm11  ;;  %vm3999_vm10 = vcmp.le.s32.totalorder %v1937_v6, 6  ;;  %v4000_v12 = vmov 0 }
 0x119   :  { %3990 = vst [vmem:[#allocation71_spill] sm:$0xff] %v2487_v52  ;;  %v2501_v57 = vsel %vm3995_vm8, %v3994_v44, %v738_v45  ;;  %v2504_v3 = vsel %vm3997_vm2, %v603_v42, 0.0  ;;  %vm2510_vm4 = vmand %vm3999_vm10, %vm2342_vm3  ;;  %v4003_v39 = vsel %vm2106_vm9, %v2097_v53, 0.0  ;;  %vm4006_vm9 = vcmp.ge.s32.totalorder %v1895_v37, 1  ;;  %v4040_v44 = vld [vmem:[#allocation38_spill] sm:$0xff] }
 0x11a   :  { %3996 = vst [vmem:[#allocation72_spill] sm:$0xff] %v2501_v57  ;;  %3998 = vst [vmem:[#allocation73_spill] sm:$0xff] %v2504_v3  ;;  %v4001_v12 = vsel %vm2510_vm4, 4294967295, %v4000_v12  ;;  %v461_v2 = vmul.f32 %v1827_v4, %v4003_v39  ;;  %v2545_v52 = vmul.f32 %v1819_v62, %v2370_v51  ;;  %v442_v42 = vsel %vm2445_vm7, %v2100_v35, 0.0  ;;  %v4096_v57 = vld [vmem:[#allocation13_spill] sm:$0xff] }
 0x11b   :  { %4002 = vst [vmem:[#allocation74_spill] sm:$0xff] %v4001_v12  ;;  %vm4004_vm11 = vmmov %vm3995_vm8  ;;  %vm4010_vm8 = vcmp.ge.s32.totalorder %v1815_v60, 1  ;;  %v2561_v39 = vadd.f32 %v553_v21, %v472_v40  ;;  %vm4016_vm7 = vcmp.ge.s32.totalorder %v1821_v63, 1  ;;  %v554_v21 = vmul.f32 %v1817_v61, %v534_v13 }
 0x11c   :  { %v2529_v1 = vsel %vm4004_vm11, %v738_v45, 0.0  ;;  %vm2535_vm2 = vmand %vm4006_vm9, %vm2358_vm0  ;;  %4009 = vst [vmem:[#allocation76_spill] sm:$0xff] %v2545_v52  ;;  %v4014_v45 = vrot.slane %v2439_v29, 7  ;;  %vm4022_vm1 = vnez %v3962_v41  ;;  %v462_v61 = vmul.f32 %v1827_v4, %v442_v42 }
 0x11d   :  { %4005 = vst [vmem:[#allocation75_spill] sm:$0xff] %v2529_v1  ;;  %vm2557_vm10 = vmand %vm4010_vm8, %vm2374_vm6  ;;  %vm4019_vm8 = vnez %v3980_v16  ;;  %v558_v13 = vadd.f32 %v2075_v24, %v461_v2  ;;  %v4027_v59 = vrot.slane %v1945_v0, 1  ;;  %v4029_v1 = vrot.slane %v1933_v23, 1 }
 0x11e   :  { %4013 = vst [vmem:[#allocation77_spill] sm:$0xff] %v2561_v39  ;;  %v2569_v15 = vsel %vm4004_vm11, %v341_v32, %v4014_v45  ;;  %vm2576_vm9 = vmand %vm4016_vm7, %vm2420_vm15  ;;  %v2589_v45 = vmul.f32 %v1819_v62, %v2439_v29  ;;  %vm4023_vm7 = vcmp.ge.s32.totalorder %v1834_v8, 1  ;;  %v4026_v32 = vrot.slane %v1997_v20, 1  ;;  %v4049_v39 = vld [vmem:[#allocation7_spill] sm:$0xff] }
 0x11f   :  { %4015 = vst [vmem:[#allocation78_spill] sm:$0xff] %v2569_v15  ;;  %v453_v40 = vsel %vm4019_vm8, %v2569_v15, 0.0  ;;  %vm2595_vm14 = vmand %vm4023_vm7, %vm4022_vm1  ;;  %vm4028_vm8 = vcmask 1046528   ;;  %v4032_v52 = vrot.slane %v1975_v54, 1  ;;  %v686_v24 = vsel %vm2535_vm2, %v2038_v48, 0.0 }
 0x120   :  { %4021 = vst [vmem:[#allocation79_spill] sm:$0xff] %v2589_v45  ;;  %v473_v16 = vmul.f32 %v1827_v4, %v453_v40  ;;  %v576_v62 = vsel %vm4028_vm8, %v4027_v59, %v4026_v32  ;;  %v4030_v12 = vmov %v4026_v32  ;;  %vm4031_vm7 = vmmov %vm4028_vm8  ;;  %v4033_v40 = vmov %v4029_v1 }
 0x121   :  { %v578_v45 = vsel %vm4031_vm7, %v4030_v12, %v4029_v1  ;;  %vm4034_vm4 = vmmov %vm4031_vm7  ;;  %v687_v0 = vsel %vm2576_vm9, %v576_v62, 0.0  ;;  %v559_v59 = vadd.f32 %v2024_v56, %v462_v61  ;;  %vm4037_vm2 = vnez %v4036_v5  ;;  %v4042_v61 = vld [vmem:[#allocation31_spill] sm:$0xff] }
 0x122   :  { %v580_v42 = vsel %vm4034_vm4, %v4033_v40, %v4032_v52  ;;  %v2623_v2 = vadd.f32 %v554_v21, %v473_v16  ;;  %v688_v1 = vsel %vm2595_vm14, %v578_v45, 0.0  ;;  %v706_v52 = vmul.f32 %v1889_v33, %v686_v24  ;;  %v4043_v24 = vld [vmem:[#allocation41_spill] sm:$0xff] }
 0x123   :  { %v689_v23 = vsel %vm2557_vm10, %v580_v42, 0.0  ;;  %v707_v48 = vmul.f32 %v1889_v33, %v687_v0  ;;  %v708_v3 = vmul.f32 %v1889_v33, %v688_v1  ;;  %v774_v56 = vsel %vm4037_vm2, %v2097_v53, 0.0 }
 0x124   :  { %4035 = vst [vmem:[#allocation80_spill] sm:$0xff] %v2623_v2  ;;  %v709_v12 = vmul.f32 %v1889_v33, %v689_v23  ;;  %vm4039_vm14 = vnez %v4038_v49  ;;  %vm4041_vm10 = vnez %v3922_v27  ;;  %v895_v16 = vsel %vm2358_vm0, %v576_v62, 0.0  ;;  %v4044_v2 = vld [vmem:[#allocation21_spill] sm:$0xff]  ;;  %v4077_v49 = vld [vmem:[#allocation44_spill] sm:$0xff] }
 0x125   :  { %v775_v21 = vsel %vm4039_vm14, %v2100_v35, 0.0  ;;  %v776_v32 = vsel %vm4041_vm10, %v4040_v44, 0.0  ;;  %v722_v40 = vadd.f32 %v706_v52, %v4042_v61  ;;  %v723_v0 = vadd.f32 %v707_v48, %v4043_v24  ;;  %v4087_v27 = vld [vmem:[#allocation32_spill] sm:$0xff]  ;;  %v4302_v50 = vld [vmem:[#allocation77_spill] sm:$0xff] }
 0x126   :  { %v724_v1 = vadd.f32 %v708_v3, %v558_v13  ;;  %v725_v23 = vadd.f32 %v709_v12, %v559_v59  ;;  %vm4045_vm9 = vnez %v4044_v2  ;;  %vm4046_vm7 = vcmp.le.s32.totalorder %v1895_v37, 6  ;;  %v4053_v2 = vld [vmem:[#allocation37_spill] sm:$0xff]  ;;  %v4054_v3 = vld [vmem:[#allocation23_spill] sm:$0xff] }
 0x127   :  { %vm2652_vm4 = vmand %vm4046_vm7, %vm4045_vm9  ;;  %v794_v15 = vmul.f32 %v4049_v39, %v774_v56  ;;  %v795_v7 = vmul.f32 %v4049_v39, %v775_v21  ;;  %v796_v62 = vmul.f32 %v4049_v39, %v776_v32  ;;  %v896_v52 = vsel %vm2420_vm15, %v578_v45, 0.0  ;;  %v4058_v21 = vld [vmem:[#allocation2_spill] sm:$0xff] }
 0x128   :  { %vm4050_vm8 = vcmp.le.s32.totalorder %v1821_v63, 6  ;;  %v809_v59 = vadd.f32 %v4053_v2, %v722_v40  ;;  %v897_v48 = vsel %vm4022_vm1, %v580_v42, 0.0  ;;  %v915_v12 = vmul.f32 %v4054_v3, %v895_v16 }
 0x129   :  { %vm2665_vm13 = vmand %vm4050_vm8, %vm4037_vm2  ;;  %v916_v56 = vmul.f32 %v4054_v3, %v896_v52  ;;  %v4059_v32 = vand.u32 7, %v4058_v21  ;;  %v810_v40 = vadd.f32 %v794_v15, %v723_v0  ;;  %v811_v24 = vadd.f32 %v795_v7, %v724_v1  ;;  %v4065_v52 = vld [vmem:[#allocation35_spill] sm:$0xff] }
 0x12a   :  { %vm4055_vm9 = vmmov %vm4050_vm8  ;;  %v812_v2 = vadd.f32 %v796_v62, %v725_v23  ;;  %v917_v16 = vmul.f32 %v4054_v3, %v897_v48  ;;  %vm4062_vm2 = vcmp.le.s32.totalorder %v1895_v37, 6  ;;  %v845_v21 = vadd.f32 %v4065_v52, %v809_v59  ;;  %v4067_v0 = vld [vmem:[#allocation43_spill] sm:$0xff]  ;;  %v4068_v23 = vld [vmem:[#allocation24_spill] sm:$0xff] }
 0x12b   :  { %vm2678_vm7 = vmand %vm4055_vm9, %vm2420_vm15  ;;  %vm2684_vm8 = vcmp.le.s32.totalorder %v4059_v32, 6  ;;  %v1013_v7 = vsel %vm2652_vm4, %v2097_v53, 0.0  ;;  %v1014_v22 = vsel %vm2665_vm13, %v2100_v35, 0.0  ;;  %v846_v1 = vadd.f32 %v4067_v0, %v810_v40  ;;  %v4069_v32 = vld [vmem:[#allocation15_spill] sm:$0xff]  ;;  %v4073_v53 = vld [vmem:[#allocation4_spill] sm:$0xff] }
 0x12c   :  { %vm2693_vm11 = vmand %vm4062_vm2, %vm2358_vm0  ;;  %v1033_v62 = vmul.f32 %v4068_v23, %v1013_v7  ;;  %v1034_v48 = vmul.f32 %v4068_v23, %v1014_v22  ;;  %vm4070_vm0 = vcmp.le.s32.totalorder %v1834_v8, 6  ;;  %v4074_v35 = vand.u32 7, %v4073_v53 }
 0x12d   :  { %vm4066_vm15 = vmmov %vm4062_vm2  ;;  %v931_v37 = vadd.f32 %v915_v12, %v845_v21  ;;  %v1191_v13 = vsel %vm2693_vm11, %v578_v45, 0.0  ;;  %v1192_v40 = vsel %vm2678_vm7, %v580_v42, 0.0  ;;  %v4078_v52 = vrot.slane %v4077_v49, 1 }
 0x12e   :  { %v1095_v15 = vsel %vm4066_vm15, %v1997_v20, 0.0  ;;  %vm2720_vm4 = vmand %vm4070_vm0, %vm4039_vm14  ;;  %vm2726_vm13 = vcmp.le.s32.totalorder %v4074_v35, 6  ;;  %v4079_v7 = vrot.slane %v1975_v54, 1  ;;  %vm4080_vm14 = vcmask 1046528   ;;  %v4088_v35 = vld [vmem:[#allocation42_spill] sm:$0xff] }
 0x12f   :  { %v1114_v59 = vmul.f32 %v4069_v32, %v1095_v15  ;;  %vm4081_vm9 = vcmp.le.s32.totalorder %v1815_v60, 6  ;;  %v932_v12 = vadd.f32 %v916_v56, %v846_v1  ;;  %v1210_v45 = vmul.f32 %v2700_v38, %v1191_v13  ;;  %vm4086_vm11 = vmmov %vm4080_vm14  ;;  %v4097_v15 = vld [vmem:[#allocation36_spill] sm:$0xff] }
 0x130   :  { %v582_v22 = vsel %vm4080_vm14, %v4079_v7, %v4078_v52  ;;  %vm2743_vm2 = vmand %vm4081_vm9, %vm4041_vm10  ;;  %v1211_v5 = vmul.f32 %v2700_v38, %v1192_v40  ;;  %v4084_v42 = vrot.slane %v2114_v9, 1  ;;  %v4085_v63 = vmov %v4078_v52 }
 0x131   :  { %v1049_v0 = vadd.f32 %v1033_v62, %v931_v37  ;;  %v847_v53 = vadd.f32 %v4087_v27, %v811_v24  ;;  %v848_v52 = vadd.f32 %v4088_v35, %v812_v2  ;;  %v898_v7 = vsel %vm2374_vm6, %v582_v22, 0.0  ;;  %vm4089_vm10 = vmmov %vm4070_vm0  ;;  %v4092_v2 = vld [vmem:[#allocation8_spill] sm:$0xff]  ;;  %v4100_v35 = vld [vmem:[#allocation3_spill] sm:$0xff] }
 0x132   :  { %v2754_v21 = vsel %vm4086_vm11, %v4085_v63, %v4084_v42  ;;  %v1050_v56 = vadd.f32 %v1034_v48, %v932_v12  ;;  %v918_v1 = vmul.f32 %v4054_v3, %v898_v7  ;;  %v1015_v13 = vsel %vm2720_vm4, %v4040_v44, 0.0  ;;  %vm2771_vm7 = vmand %vm4089_vm10, %vm4022_vm1 }
 0x133   :  { %v1016_v40 = vsel %vm2743_vm2, %v2158_v47, 0.0  ;;  %vm953_vm15 = vcmp.le.s32.totalorder %v4092_v2, 6  ;;  %v1130_v62 = vadd.f32 %v1114_v59, %v1049_v0  ;;  %v933_v48 = vadd.f32 %v917_v16, %v847_v53  ;;  %vm4093_vm0 = vmmov %vm4081_vm9  ;;  %v2791_v16 = vld [vmem:[%s3692_s4] ss:$0 sm:$0xff] }
 0x134   :  { %v1035_v37 = vmul.f32 %v4068_v23, %v1015_v13  ;;  %v1036_v44 = vmul.f32 %v4068_v23, %v1016_v40  ;;  %vm2782_vm4 = vmand %vm4093_vm0, %vm2374_vm6  ;;  %vm954_vm1 = vcmp.le.s32.totalorder %v4096_v57, 6  ;;  %v1131_v12 = vadd.f32 %v4097_v15, %v1050_v56 }
 0x135   :  { %v934_v59 = vadd.f32 %v918_v1, %v848_v52  ;;  %vm4098_vm14 = vmmov %vm4089_vm10  ;;  %v1226_v63 = vadd.f32 %v1210_v45, %v1130_v62  ;;  %v4101_v7 = vand.u32 7, %v4100_v35  ;;  %v1193_v8 = vsel %vm2771_vm7, %v582_v22, 0.0 }
 0x136   :  { %v1097_v18 = vsel %vm4098_vm14, %v1975_v54, 0.0  ;;  %vm4099_vm6 = vmmov %vm4093_vm0  ;;  %v1051_v0 = vadd.f32 %v1035_v37, %v933_v48  ;;  %v1227_v52 = vadd.f32 %v1211_v5, %v1131_v12  ;;  %v1194_v60 = vsel %vm2782_vm4, %v2754_v21, 0.0 }
 0x137   :  { %v1098_v42 = vsel %vm4099_vm6, %v4077_v49, 0.0  ;;  %v1116_v27 = vmul.f32 %v4069_v32, %v1097_v18  ;;  %vm2803_vm9 = vcmp.ge.s32.totalorder %v4101_v7, 1  ;;  %v1052_v1 = vadd.f32 %v1036_v44, %v934_v59  ;;  %v4107_v49 = vld [vmem:[#allocation6_spill] sm:$0xff]  ;;  %v4118_v59 = vld [vmem:[#allocation40_spill] sm:$0xff] }
 0x138   :  { %v1117_v53 = vmul.f32 %v4069_v32, %v1098_v42  ;;  %vm4104_vm2 = vcmp.ge.s32.totalorder %v4092_v2, 1  ;;  %v4108_v45 = vand.u32 7, %v4107_v49  ;;  %v4111_v13 = vsel %vm2469_vm5, %v2496_v10, 0.0  ;;  %v4189_v44 = vld [vmem:[#allocation10_spill] sm:$0xff] }
 0x139   :  { %vm2816_vm11 = vmand %vm4104_vm2, %vm2684_vm8  ;;  %v2831_v40 = vmul.f32 %v1889_v33, %v4111_v13  ;;  %v1249_v24 = vadd.f32 %v2791_v16, %v1226_v63  ;;  %v1132_v62 = vadd.f32 %v1116_v27, %v1051_v0  ;;  %v1212_v48 = vmul.f32 %v2700_v38, %v1193_v8 }
 0x13a   :  { %vm2822_vm10 = vcmp.le.s32.totalorder %v4108_v45, 6  ;;  %vm4112_vm7 = vcmp.ge.s32.totalorder %v4096_v57, 1  ;;  %v4115_v11 = vmov %v4101_v7  ;;  %v1250_v41 = vadd.f32 %v2791_v16, %v1227_v52 }
 0x13b   :  { %vm2839_vm0 = vmand %vm4112_vm7, %vm2726_vm13  ;;  %vm2845_vm4 = vcmp.le.s32.totalorder %v4115_v11, 6  ;;  %v1133_v15 = vadd.f32 %v1117_v53, %v1052_v1  ;;  %v1213_v12 = vmul.f32 %v2700_v38, %v1194_v60  ;;  %v4119_v18 = vrot.slane %v4118_v59, 7 }
 0x13c   :  { %v4120_v42 = vrot.slane %v2114_v9, 7  ;;  %vm4121_vm5 = vcmask 1040384   ;;  %v1265_v0 = vmax.f32 %v1249_v24, 0.0  ;;  %v1228_v27 = vadd.f32 %v1212_v48, %v1132_v62 }
 0x13d   :  { %v4122_v35 = vrot.slane %v4118_v59, 1  ;;  %v4123_v7 = vrot.slane %v2114_v9, 1  ;;  %vm4124_vm14 = vcmask 1046528   ;;  %v690_v53 = vsel %vm2816_vm11, %v582_v22, 0.0  ;;  %v4128_v22 = vld [vmem:[#allocation22_spill] sm:$0xff] }
 0x13e   :  { %v2856_v63 = vsel %vm4121_vm5, %v4120_v42, %v4119_v18  ;;  %v1266_v52 = vmax.f32 %v1250_v41, 0.0  ;;  %v1229_v1 = vadd.f32 %v1213_v12, %v1133_v15  ;;  %v691_v60 = vsel %vm2839_vm0, %v2754_v21, 0.0  ;;  %vm4127_vm6 = vmmov %vm4124_vm14  ;;  %v4133_v12 = vld [vmem:[#allocation45_spill] sm:$0xff] }
 0x13f   :  { %v586_v8 = vsel %vm4124_vm14, %v4123_v7, %v4122_v35  ;;  %v710_v49 = vmul.f32 %v1889_v33, %v690_v53  ;;  %v1251_v45 = vadd.f32 %v2791_v16, %v1228_v27  ;;  %v4125_v13 = vrot.slane %v2088_v58, 1 }
 0x140   :  { %v4126_v24 = vmov %v4122_v35  ;;  %v711_v54 = vmul.f32 %v1889_v33, %v691_v60  ;;  %vm4129_vm2 = vnez %v4128_v22  ;;  %v1281_v41 = vpack.c.bf16 %v1266_v52, %v1265_v0  ;;  %v4138_v52 = vld [vmem:[#allocation18_spill] sm:$0xff]  ;;  %v4163_v22 = vld [vmem:[#allocation11_spill] sm:$0xff] }
 0x141   :  { %v2875_v62 = vsel %vm4127_vm6, %v4126_v24, %v4125_v13  ;;  %v4130_v48 = vsel %vm4129_vm2, %v2158_v47, 0.0  ;;  %vm2887_vm11 = vmand %vm953_vm15, %vm4129_vm2  ;;  %v1252_v15 = vadd.f32 %v2791_v16, %v1229_v1  ;;  %v726_v18 = vadd.f32 %v710_v49, %v4133_v12  ;;  %v4139_v1 = vld [vmem:[#allocation39_spill] sm:$0xff] }
 0x142   :  { %v797_v37 = vmul.f32 %v4049_v39, %v4130_v48  ;;  %vm4134_vm7 = vnez %v3858_v36  ;;  %v1267_v35 = vmax.f32 %v1251_v45, 0.0  ;;  %v727_v0 = vadd.f32 %v711_v54, %v2227_v25  ;;  %1593 = vmatprep.mubr.bf16.mxu1 %v1281_v41  ;;  %vm2921_vm6 = vmand %vm953_vm15, %vm2684_vm8 }
 0x143   :  { %v4135_v42 = vsel %vm4134_vm7, %v2193_v31, 0.0  ;;  %vm2902_vm0 = vmand %vm954_vm1, %vm4134_vm7  ;;  %v899_v7 = vsel %vm2684_vm8, %v2754_v21, 0.0  ;;  %v900_v53 = vsel %vm2726_vm13, %v586_v8, 0.0  ;;  %vm955_vm5 = vcmp.le.s32.totalorder %v4138_v52, 6  ;;  %v4143_v21 = vld [vmem:[#allocation9_spill] sm:$0xff] }
 0x144   :  { %v798_v47 = vmul.f32 %v4049_v39, %v4135_v42  ;;  %v1268_v36 = vmax.f32 %v1252_v15, 0.0  ;;  %vm4140_vm14 = vnez %v4139_v1  ;;  %v813_v49 = vadd.f32 %v797_v37, %v726_v18  ;;  %vm2939_vm8 = vmand %vm954_vm1, %vm2726_vm13  ;;  %v4146_v37 = vld [vmem:[#allocation48_spill] sm:$0xff]  ;;  %v4153_v42 = vld [vmem:[#allocation5_spill] sm:$0xff] }
 0x145   :  { %v779_v60 = vsel %vm4140_vm14, %v2856_v63, 0.0  ;;  %v919_v45 = vmul.f32 %v4054_v3, %v899_v7  ;;  %vm956_vm2 = vcmp.le.s32.totalorder %v4143_v21, 6  ;;  %v1017_v24 = vsel %vm2887_vm11, %v2193_v31, 0.0 }
 0x146   :  { %v814_v13 = vadd.f32 %v798_v47, %v727_v0  ;;  %v1018_v54 = vsel %vm2902_vm0, %v2856_v63, 0.0  ;;  %v1099_v61 = vsel %vm953_vm15, %v2114_v9, 0.0  ;;  %v1282_v48 = vpack.c.bf16 %v1268_v36, %v1267_v35 }
 0x147   :  { %v849_v11 = vadd.f32 %v4146_v37, %v813_v49  ;;  %v920_v31 = vmul.f32 %v4054_v3, %v900_v53  ;;  %v1037_v41 = vmul.f32 %v4068_v23, %v1017_v24  ;;  %vm4147_vm11 = vcmp.ge.s32.totalorder %v4143_v21, 1 }
 0x148   :  { %vm2950_vm15 = vmand %vm4147_vm11, %vm2803_vm9  ;;  %v850_v20 = vadd.f32 %v2248_v55, %v814_v13  ;;  %v1038_v2 = vmul.f32 %v4068_v23, %v1018_v54  ;;  %v1100_v15 = vsel %vm954_vm1, %v4118_v59, 0.0  ;;  %v1195_v12 = vsel %vm2921_vm6, %v586_v8, 0.0  ;;  %1594 = vmatmul.mubr.bf16.vlgmr.msra.gmra.mxu1 %v1282_v48 }
 0x149   :  { %vm4150_vm13 = vcmp.ge.s32.totalorder %v4138_v52, 1  ;;  %v4154_v47 = vand.u32 7, %v4153_v42  ;;  %v935_v57 = vadd.f32 %v919_v45, %v849_v11  ;;  %v1118_v59 = vmul.f32 %v4069_v32, %v1099_v61  ;;  %vm4157_vm1 = vmmov %vm4147_vm11 }
 0x14a   :  { %vm2965_vm7 = vmand %vm4150_vm13, %vm2822_vm10  ;;  %v1119_v27 = vmul.f32 %v4069_v32, %v1100_v15  ;;  %v1196_v35 = vsel %vm2939_vm8, %v2875_v62, 0.0  ;;  %v936_v7 = vadd.f32 %v920_v31, %v850_v20  ;;  %v1214_v53 = vmul.f32 %v2700_v38, %v1195_v12  ;;  %v4168_v15 = vld [vmem:[#allocation46_spill] sm:$0xff] }
 0x14b   :  { %vm2971_vm0 = vcmp.le.s32.totalorder %v4154_v47, 6  ;;  %vm2984_vm6 = vmand %vm4157_vm1, %vm2845_vm4  ;;  %v1215_v36 = vmul.f32 %v2700_v38, %v1196_v35  ;;  %v446_v49 = vsel %vm2950_vm15, %v2856_v63, 0.0  ;;  %v1053_v45 = vadd.f32 %v1037_v41, %v935_v57  ;;  %v4167_v41 = vld [vmem:[#allocation49_spill] sm:$0xff] }
 0x14c   :  { %v466_v25 = vmul.f32 %v1827_v4, %v446_v49  ;;  %v4160_v13 = vrot.slane %v2222_v17, 1  ;;  %v4161_v24 = vrot.slane %v2088_v58, 1  ;;  %vm4162_vm8 = vcmask 1046528   ;;  %vm3029_vm13 = vmand %vm955_vm5, %vm4140_vm14 }
 0x14d   :  { %v692_v61 = vsel %vm2965_vm7, %v586_v8, 0.0  ;;  %v4164_v48 = vand.u32 7, %v4163_v22  ;;  %v1054_v63 = vadd.f32 %v1038_v2, %v936_v7  ;;  %v693_v11 = vsel %vm2984_vm6, %v2875_v62, 0.0  ;;  %vm4171_vm15 = vmmov %vm4162_vm8 }
 0x14e   :  { %v2999_v54 = vsel %vm4162_vm8, %v4161_v24, %v4160_v13  ;;  %v712_v31 = vmul.f32 %v1889_v33, %v692_v61  ;;  %v780_v9 = vsel %vm2803_vm9, %v4167_v41, 0.0  ;;  %v1134_v20 = vadd.f32 %v1118_v59, %v1053_v45  ;;  %v4174_v59 = vld [vmem:[#allocation55_spill] sm:$0xff]  ;;  %vm3042_vm7 = vmand %vm956_vm2, %vm2803_vm9  ;;  %v4178_v61 = vld [vmem:[#allocation26_spill] sm:$0xff] }
 0x14f   :  { %vm3005_vm11 = vcmp.le.s32.totalorder %v4164_v48, 6  ;;  %v563_v8 = vadd.f32 %v4168_v15, %v466_v25  ;;  %v4169_v12 = vrot.slane %v2279_v26, 1  ;;  %v4170_v18 = vmov %v4160_v13  ;;  %v4177_v25 = vld [vmem:[#allocation17_spill] sm:$0xff]  ;;  %vm3065_vm1 = vmand %vm955_vm5, %vm2822_vm10 }
 0x150   :  { %v713_v2 = vmul.f32 %v1889_v33, %v693_v11  ;;  %v1135_v57 = vadd.f32 %v1119_v27, %v1054_v63  ;;  %v728_v35 = vadd.f32 %v712_v31, %v4174_v59  ;;  %v799_v0 = vmul.f32 %v4049_v39, %v779_v60  ;;  %v4179_v63 = vld [vmem:[#allocation57_spill] sm:$0xff]  ;;  %vm3079_vm6 = vmand %vm956_vm2, %vm2845_vm4 }
 0x151   :  { %v3022_v42 = vsel %vm4171_vm15, %v4170_v18, %v4169_v12  ;;  %v901_v7 = vsel %vm2822_vm10, %v2875_v62, 0.0  ;;  %v1230_v49 = vadd.f32 %v1214_v53, %v1134_v20  ;;  %v800_v27 = vmul.f32 %v4049_v39, %v780_v9  ;;  %v4185_v12 = vld [vmem:[#allocation51_spill] sm:$0xff] }
 0x152   :  { %v729_v45 = vadd.f32 %v713_v2, %v563_v8  ;;  %v902_v60 = vsel %vm2845_vm4, %v2999_v54, 0.0  ;;  %vm957_vm14 = vcmp.le.s32.totalorder %v4177_v25, 6  ;;  %v1231_v13 = vadd.f32 %v1215_v36, %v1135_v57  ;;  %v4262_v57 = vld [vmem:[#allocation68_spill] sm:$0xff] }
 0x153   :  { %v815_v62 = vadd.f32 %v799_v0, %v728_v35  ;;  %v921_v56 = vmul.f32 %v4054_v3, %v901_v7  ;;  %v1019_v24 = vsel %vm3029_vm13, %v4167_v41, 0.0  ;;  %vm958_vm9 = vcmp.le.s32.totalorder %v4178_v61, 6  ;;  %v4182_v41 = vld [vmem:[#allocation47_spill] sm:$0xff]  ;;  %v4196_v7 = vld [vmem:[#allocation14_spill] sm:$0xff] }
 0x154   :  { %v1253_v53 = vadd.f32 %v2791_v16, %v1230_v49  ;;  %v816_v22 = vadd.f32 %v800_v27, %v729_v45  ;;  %v922_v48 = vmul.f32 %v4054_v3, %v902_v60  ;;  %v1020_v11 = vsel %vm3042_vm7, %v4179_v63, 0.0  ;;  %v4298_v49 = vld [vmem:[#allocation78_spill] sm:$0xff] }
 0x155   :  { %v1254_v31 = vadd.f32 %v2791_v16, %v1231_v13  ;;  %v851_v9 = vadd.f32 %v4182_v41, %v815_v62  ;;  %v1039_v20 = vmul.f32 %v4068_v23, %v1019_v24  ;;  %v1101_v15 = vsel %vm955_vm5, %v2088_v58, 0.0 }
 0x156   :  { %v1269_v8 = vmax.f32 %v1253_v53, 0.0  ;;  %v852_v18 = vadd.f32 %v4185_v12, %v816_v22  ;;  %v1040_v2 = vmul.f32 %v4068_v23, %v1020_v11  ;;  %v1102_v47 = vsel %vm956_vm2, %v2222_v17, 0.0  ;;  %v4203_v11 = vld [vmem:[#allocation52_spill] sm:$0xff] }
 0x157   :  { %vm4186_vm10 = vcmp.ge.s32.totalorder %v4177_v25, 1  ;;  %v4190_v52 = vand.u32 7, %v4189_v44  ;;  %v1270_v59 = vmax.f32 %v1254_v31, 0.0  ;;  %v937_v35 = vadd.f32 %v921_v56, %v851_v9 }
 0x158   :  { %vm3092_vm5 = vmand %vm4186_vm10, %vm2971_vm0  ;;  %v1120_v0 = vmul.f32 %v4069_v32, %v1101_v15  ;;  %v1197_v17 = vsel %vm3065_vm1, %v2999_v54, 0.0  ;;  %vm4193_vm2 = vcmp.ge.s32.totalorder %v4178_v61, 1  ;;  %v4197_v1 = vand.u32 7, %v4196_v7 }
 0x159   :  { %vm3098_vm4 = vcmp.ge.s32.totalorder %v4190_v52, 1  ;;  %vm3110_vm8 = vmand %vm4193_vm2, %vm3005_vm11  ;;  %v938_v45 = vadd.f32 %v922_v48, %v852_v18  ;;  %v1121_v27 = vmul.f32 %v4069_v32, %v1102_v47  ;;  %v1198_v60 = vsel %vm3079_vm6, %v3022_v42, 0.0 }
 0x15a   :  { %vm3116_vm15 = vcmp.le.s32.totalorder %v4197_v1, 6  ;;  %v1216_v13 = vmul.f32 %v2700_v38, %v1197_v17  ;;  %v4200_v62 = vmov %v4190_v52  ;;  %v1283_v24 = vpack.c.bf16 %v1270_v59, %v1269_v8  ;;  %v4213_v59 = vld [vmem:[#allocation34_spill] sm:$0xff] }
 0x15b   :  { %vm3127_vm13 = vcmp.le.s32.totalorder %v4200_v62, 6  ;;  %v1055_v53 = vadd.f32 %v1039_v20, %v937_v35  ;;  %v1217_v22 = vmul.f32 %v2700_v38, %v1198_v60  ;;  %v4204_v48 = vrot.slane %v4203_v11, 7 }
 0x15c   :  { %v4205_v36 = vrot.slane %v2279_v26, 7  ;;  %vm4206_vm7 = vcmask 1040384   ;;  %v1056_v41 = vadd.f32 %v1040_v2, %v938_v45  ;;  %v4207_v9 = vrot.slane %v4203_v11, 1  ;;  %1597 = vmatprep.mubr.bf16.mxu1 %v1283_v24  ;;  %v4222_v45 = vld [vmem:[#allocation54_spill] sm:$0xff]  ;;  %v4223_v24 = vld [vmem:[#allocation28_spill] sm:$0xff] }
 0x15d   :  { %v4208_v15 = vrot.slane %v2279_v26, 1  ;;  %vm4209_vm1 = vcmask 1046528   ;;  %v694_v20 = vsel %vm3092_vm5, %v2999_v54, 0.0  ;;  %v695_v8 = vsel %vm3110_vm8, %v3022_v42, 0.0 }
 0x15e   :  { %v3137_v31 = vsel %vm4206_vm7, %v4205_v36, %v4204_v48  ;;  %v1136_v12 = vadd.f32 %v1120_v0, %v1055_v53  ;;  %v4210_v18 = vrot.slane %v2265_v46, 1  ;;  %v4211_v2 = vmov %v4207_v9  ;;  %vm4212_vm6 = vmmov %vm4209_vm1  ;;  %v4226_v36 = vld [vmem:[#allocation25_spill] sm:$0xff] }
 0x15f   :  { %v3144_v5 = vsel %vm4209_vm1, %v4208_v15, %v4207_v9  ;;  %v714_v44 = vmul.f32 %v1889_v33, %v694_v20  ;;  %v715_v52 = vmul.f32 %v1889_v33, %v695_v8  ;;  %vm4214_vm10 = vnez %v4213_v59  ;;  %v4249_v15 = vld [vmem:[#allocation19_spill] sm:$0xff] }
 0x160   :  { %v3157_v47 = vsel %vm4212_vm6, %v4211_v2, %v4210_v18  ;;  %vm3165_vm5 = vmand %vm957_vm14, %vm4214_vm10  ;;  %v1137_v58 = vadd.f32 %v1121_v27, %v1056_v41  ;;  %v4217_v35 = vsel %vm4214_vm10, %v4179_v63, 0.0  ;;  %vm4218_vm2 = vnez %v3884_v19  ;;  %v4224_v19 = vld [vmem:[#allocation50_spill] sm:$0xff]  ;;  %v4231_v2 = vld [vmem:[#allocation60_spill] sm:$0xff] }
 0x161   :  { %v801_v0 = vmul.f32 %v4049_v39, %v4217_v35  ;;  %v4219_v17 = vsel %vm4218_vm2, %v2366_v34, 0.0  ;;  %v903_v7 = vsel %vm2971_vm0, %v3022_v42, 0.0  ;;  %vm3186_vm8 = vmand %vm958_vm9, %vm4218_vm2  ;;  %v1232_v63 = vadd.f32 %v1216_v13, %v1136_v12 }
 0x162   :  { %v802_v21 = vmul.f32 %v4049_v39, %v4219_v17  ;;  %v730_v27 = vadd.f32 %v714_v44, %v4222_v45  ;;  %v731_v60 = vadd.f32 %v715_v52, %v2387_v14  ;;  %v904_v62 = vsel %vm3005_vm11, %v3144_v5, 0.0  ;;  %vm3212_vm10 = vmand %vm957_vm14, %vm2971_vm0  ;;  %v4232_v52 = vld [vmem:[#allocation64_spill] sm:$0xff] }
 0x163   :  { %vm959_vm7 = vcmp.le.s32.totalorder %v4223_v24, 6  ;;  %v1233_v42 = vadd.f32 %v1217_v22, %v1137_v58  ;;  %vm4225_vm1 = vnez %v4224_v19  ;;  %v923_v48 = vmul.f32 %v4054_v3, %v903_v7 }
 0x164   :  { %v783_v53 = vsel %vm4225_vm1, %v3137_v31, 0.0  ;;  %v1021_v13 = vsel %vm3165_vm5, %v2366_v34, 0.0  ;;  %vm960_vm6 = vcmp.le.s32.totalorder %v4226_v36, 6  ;;  %v1255_v14 = vadd.f32 %v2791_v16, %v1232_v63  ;;  %vm3226_vm5 = vmand %vm958_vm9, %vm3005_vm11 }
 0x165   :  { %v817_v41 = vadd.f32 %v801_v0, %v730_v27  ;;  %v818_v9 = vadd.f32 %v802_v21, %v731_v60  ;;  %v1022_v22 = vsel %vm3186_vm8, %v3137_v31, 0.0  ;;  %v1256_v34 = vadd.f32 %v2791_v16, %v1233_v42 }
 0x166   :  { %v924_v20 = vmul.f32 %v4054_v3, %v904_v62  ;;  %v1041_v8 = vmul.f32 %v4068_v23, %v1021_v13  ;;  %v1103_v12 = vsel %vm957_vm14, %v2279_v26, 0.0  ;;  %v1271_v18 = vmax.f32 %v1255_v14, 0.0  ;;  %v4259_v26 = vld [vmem:[#allocation56_spill] sm:$0xff] }
 0x167   :  { %v853_v44 = vadd.f32 %v4231_v2, %v817_v41  ;;  %v854_v59 = vadd.f32 %v4232_v52, %v818_v9  ;;  %v1104_v54 = vsel %vm958_vm9, %v4203_v11, 0.0  ;;  %vm4233_vm0 = vcmp.ge.s32.totalorder %v4226_v36, 1  ;;  %v4239_v11 = vld [vmem:[#allocation12_spill] sm:$0xff]  ;;  %v4256_v2 = vld [vmem:[#allocation62_spill] sm:$0xff] }
 0x168   :  { %vm3239_vm14 = vmand %vm4233_vm0, %vm3098_vm4  ;;  %v1272_v37 = vmax.f32 %v1256_v34, 0.0  ;;  %v1042_v25 = vmul.f32 %v4068_v23, %v1022_v22  ;;  %v1122_v58 = vmul.f32 %v4069_v32, %v1103_v12  ;;  %v1199_v35 = vsel %vm3212_vm10, %v3144_v5, 0.0 }
 0x169   :  { %vm4236_vm11 = vcmp.ge.s32.totalorder %v4223_v24, 1  ;;  %v4240_v0 = vand.u32 7, %v4239_v11  ;;  %v939_v21 = vadd.f32 %v923_v48, %v853_v44  ;;  %v940_v7 = vadd.f32 %v924_v20, %v854_v59  ;;  %vm4243_vm8 = vmmov %vm4233_vm0 }
 0x16a   :  { %vm3252_vm9 = vmand %vm4236_vm11, %vm3116_vm15  ;;  %v1123_v1 = vmul.f32 %v4069_v32, %v1104_v54  ;;  %v1200_v63 = vsel %vm3226_vm5, %v3157_v47, 0.0  ;;  %v1284_v27 = vpack.c.bf16 %v1272_v37, %v1271_v18  ;;  %v1218_v60 = vmul.f32 %v2700_v38, %v1199_v35 }
 0x16b   :  { %vm3258_vm2 = vcmp.le.s32.totalorder %v4240_v0, 6  ;;  %vm3270_vm10 = vmand %vm4243_vm8, %vm3127_vm13  ;;  %v1219_v62 = vmul.f32 %v2700_v38, %v1200_v63  ;;  %v450_v42 = vsel %vm3239_vm14, %v3137_v31, 0.0  ;;  %v1057_v48 = vadd.f32 %v1041_v8, %v939_v21 }
 0x16c   :  { %v1058_v13 = vadd.f32 %v1042_v25, %v940_v7  ;;  %v470_v14 = vmul.f32 %v1827_v4, %v450_v42  ;;  %v4246_v41 = vrot.slane %v2370_v51, 1  ;;  %v4247_v9 = vrot.slane %v2265_v46, 1  ;;  %1598 = vmatmul.mubr.bf16.gmra.mxu1 %v1284_v27  ;;  %vm3311_vm11 = vmand %vm959_vm7, %vm4225_vm1 }
 0x16d   :  { %vm4248_vm5 = vcmask 1046528   ;;  %v4250_v34 = vand.u32 7, %v4249_v15  ;;  %v4253_v12 = vrot.slane %v2439_v29, 1  ;;  %v696_v55 = vsel %vm3252_vm9, %v3144_v5, 0.0  ;;  %vm3321_vm9 = vmand %vm960_vm6, %vm3098_vm4 }
 0x16e   :  { %v598_v22 = vsel %vm4248_vm5, %v4247_v9, %v4246_v41  ;;  %v4254_v31 = vmov %v4246_v41  ;;  %vm4255_vm14 = vmmov %vm4248_vm5  ;;  %v697_v18 = vsel %vm3270_vm10, %v3157_v47, 0.0  ;;  %v784_v44 = vsel %vm3098_vm4, %v4256_v2, 0.0 }
 0x16f   :  { %vm3287_vm0 = vcmp.le.s32.totalorder %v4250_v34, 6  ;;  %v3296_v8 = vsel %vm4255_vm14, %v4254_v31, %v4253_v12  ;;  %v1138_v59 = vadd.f32 %v1122_v58, %v1057_v48  ;;  %v1139_v54 = vadd.f32 %v1123_v1, %v1058_v13  ;;  %v4263_v1 = vld [vmem:[#allocation27_spill] sm:$0xff]  ;;  %vm3358_vm5 = vmand %vm959_vm7, %vm3116_vm15  ;;  %v4294_v13 = vld [vmem:[#allocation66_spill] sm:$0xff] }
 0x170   :  { %v567_v5 = vadd.f32 %v4259_v26, %v470_v14  ;;  %v716_v37 = vmul.f32 %v1889_v33, %v696_v55  ;;  %v717_v19 = vmul.f32 %v1889_v33, %v697_v18  ;;  %v803_v35 = vmul.f32 %v4049_v39, %v783_v53  ;;  %vm3373_vm14 = vmand %vm960_vm6, %vm3127_vm13  ;;  %v4272_v31 = vld [vmem:[#allocation59_spill] sm:$0xff] }
 0x171   :  { %v905_v58 = vsel %vm3116_vm15, %v3157_v47, 0.0  ;;  %v906_v61 = vsel %vm3127_vm13, %v598_v22, 0.0  ;;  %v1234_v11 = vadd.f32 %v1218_v60, %v1138_v59  ;;  %v1235_v0 = vadd.f32 %v1219_v62, %v1139_v54  ;;  %v4267_v60 = vld [vmem:[#allocation29_spill] sm:$0xff] }
 0x172   :  { %v732_v21 = vadd.f32 %v716_v37, %v4262_v57  ;;  %v804_v7 = vmul.f32 %v4049_v39, %v784_v44  ;;  %vm961_vm4 = vcmp.le.s32.totalorder %v4263_v1, 6  ;;  %vm4264_vm1 = vcmp.ge.s32.totalorder %v1937_v6, 1 }
 0x173   :  { %vm3339_vm8 = vmand %vm4264_vm1, %vm2342_vm3  ;;  %v733_v47 = vadd.f32 %v717_v19, %v567_v5  ;;  %v925_v63 = vmul.f32 %v4054_v3, %v905_v58  ;;  %v1023_v45 = vsel %vm3311_vm11, %v4256_v2, 0.0  ;;  %v1024_v27 = vsel %vm3321_vm9, %v2437_v43, 0.0 }
 0x174   :  { %vm962_vm10 = vcmp.le.s32.totalorder %v4267_v60, 6  ;;  %v1257_v62 = vadd.f32 %v2791_v16, %v1234_v11  ;;  %v1258_v6 = vadd.f32 %v2791_v16, %v1235_v0  ;;  %v819_v42 = vadd.f32 %v803_v35, %v732_v21  ;;  %v4286_v0 = vld [vmem:[#allocation20_spill] sm:$0xff] }
 0x175   :  { %v926_v48 = vmul.f32 %v4054_v3, %v906_v61  ;;  %v820_v14 = vadd.f32 %v804_v7, %v733_v47  ;;  %v1043_v41 = vmul.f32 %v4068_v23, %v1023_v45  ;;  %v1105_v9 = vsel %vm959_vm7, %v2265_v46, 0.0  ;;  %v4276_v46 = vld [vmem:[#allocation63_spill] sm:$0xff] }
 0x176   :  { %v1106_v15 = vsel %vm960_vm6, %v2370_v51, 0.0  ;;  %v1273_v34 = vmax.f32 %v1257_v62, 0.0  ;;  %v1274_v12 = vmax.f32 %v1258_v6, 0.0  ;;  %v855_v55 = vadd.f32 %v4272_v31, %v819_v42  ;;  %v4290_v6 = vld [vmem:[#allocation61_spill] sm:$0xff] }
 0x177   :  { %v1044_v18 = vmul.f32 %v4068_v23, %v1024_v27  ;;  %vm4273_vm15 = vcmp.ge.s32.totalorder %v4263_v1, 1  ;;  %v856_v56 = vadd.f32 %v4276_v46, %v820_v14  ;;  %v1124_v24 = vmul.f32 %v4069_v32, %v1105_v9  ;;  %v4303_v46 = vld [vmem:[#allocation72_spill] sm:$0xff] }
 0x178   :  { %vm3383_vm7 = vmand %vm4273_vm15, %vm3258_vm2  ;;  %v1125_v36 = vmul.f32 %v4069_v32, %v1106_v15  ;;  %v1201_v2 = vsel %vm3358_vm5, %v598_v22, 0.0  ;;  %vm4277_vm13 = vcmp.ge.s32.totalorder %v4267_v60, 1  ;;  %v1285_v52 = vpack.c.bf16 %v1274_v12, %v1273_v34  ;;  %v4296_v15 = vld [vmem:[#allocation53_spill] sm:$0xff] }
 0x179   :  { %vm3396_vm6 = vmand %vm4277_vm13, %vm3287_vm0  ;;  %v941_v59 = vadd.f32 %v925_v63, %v855_v55  ;;  %v1202_v54 = vsel %vm3373_vm14, %v3296_v8, 0.0  ;;  %v1220_v26 = vmul.f32 %v2700_v38, %v1201_v2  ;;  %v942_v5 = vadd.f32 %v926_v48, %v856_v56 }
 0x17a   :  { %v4280_v37 = vrot.slane %v2368_v30, 7  ;;  %v4281_v25 = vrot.slane %v2439_v29, 7  ;;  %vm4282_vm11 = vcmask 1040384   ;;  %v4283_v35 = vrot.slane %v2368_v30, 1  ;;  %1601 = vmatprep.mubr.bf16.mxu1 %v1285_v52 }
 0x17b   :  { %v4284_v58 = vrot.slane %v2439_v29, 1  ;;  %vm4285_vm9 = vcmask 1046528   ;;  %v698_v11 = vsel %vm3383_vm7, %v598_v22, 0.0  ;;  %v4287_v57 = vand.u32 7, %v4286_v0 }
 0x17c   :  { %v3409_v19 = vsel %vm4282_vm11, %v4281_v25, %v4280_v37  ;;  %v1059_v7 = vadd.f32 %v1043_v41, %v941_v59  ;;  %v699_v63 = vsel %vm3396_vm6, %v3296_v8, 0.0  ;;  %v718_v45 = vmul.f32 %v1889_v33, %v698_v11 }
 0x17d   :  { %v602_v61 = vsel %vm4285_vm9, %v4284_v58, %v4283_v35  ;;  %vm3420_vm1 = vcmp.le.s32.totalorder %v4287_v57, 6  ;;  %v454_v47 = vsel %vm3339_vm8, %v3409_v19, 0.0  ;;  %v1060_v27 = vadd.f32 %v1044_v18, %v942_v5  ;;  %vm3440_vm8 = vmand %vm961_vm4, %vm2150_vm12  ;;  %v4310_v35 = vld [vmem:[#allocation79_spill] sm:$0xff] }
 0x17e   :  { %v1221_v22 = vmul.f32 %v2700_v38, %v1202_v54  ;;  %v719_v62 = vmul.f32 %v1889_v33, %v699_v63  ;;  %vm4291_vm5 = vnez %v4290_v6  ;;  %v1140_v48 = vadd.f32 %v1124_v24, %v1059_v7  ;;  %v4311_v63 = vld [vmem:[#allocation30_spill] sm:$0xff] }
 0x17f   :  { %v787_v42 = vsel %vm4291_vm5, %v3409_v19, 0.0  ;;  %v734_v14 = vadd.f32 %v718_v45, %v4294_v13  ;;  %v4295_v41 = vsel %vm2150_vm12, %v2437_v43, 0.0  ;;  %vm4297_vm14 = vnez %v4296_v15  ;;  %vm3485_vm12 = vmand %vm961_vm4, %vm3258_vm2 }
 0x180   :  { %v805_v9 = vmul.f32 %v4049_v39, %v4295_v41  ;;  %v4299_v34 = vsel %vm4297_vm14, %v4298_v49, 0.0  ;;  %vm3459_vm15 = vmand %vm962_vm10, %vm4297_vm14  ;;  %v1141_v55 = vadd.f32 %v1125_v36, %v1060_v27  ;;  %v735_v18 = vadd.f32 %v719_v62, %v4302_v50  ;;  %v4313_v62 = vld [vmem:[#allocation67_spill] sm:$0xff]  ;;  %v4317_v50 = vld [vmem:[#allocation80_spill] sm:$0xff] }
 0x181   :  { %v806_v12 = vmul.f32 %v4049_v39, %v4299_v34  ;;  %v907_v43 = vsel %vm3258_vm2, %v3296_v8, 0.0  ;;  %v908_v51 = vsel %vm3287_vm0, %v602_v61, 0.0  ;;  %v4304_v56 = vsel %vm2342_vm3, %v4303_v46, 0.0  ;;  %vm3497_vm3 = vmand %vm962_vm10, %vm3287_vm0 }
 0x182   :  { %v808_v24 = vmul.f32 %v4049_v39, %v4304_v56  ;;  %v1236_v2 = vadd.f32 %v1220_v26, %v1140_v48  ;;  %v474_v44 = vmul.f32 %v1827_v4, %v454_v47  ;;  %v821_v52 = vadd.f32 %v805_v9, %v734_v14  ;;  %v4307_v26 = vld [vmem:[#allocation76_spill] sm:$0xff] }
 0x183   :  { %v1237_v36 = vadd.f32 %v1221_v22, %v1141_v55  ;;  %v822_v59 = vadd.f32 %v806_v12, %v735_v18  ;;  %v1025_v54 = vsel %vm3440_vm8, %v4298_v49, 0.0  ;;  %v1026_v8 = vsel %vm3459_vm15, %v3409_v19, 0.0 }
 0x184   :  { %v1259_v4 = vadd.f32 %v2791_v16, %v1236_v2  ;;  %v857_v5 = vadd.f32 %v4307_v26, %v821_v52  ;;  %v927_v37 = vmul.f32 %v4054_v3, %v907_v43  ;;  %v928_v25 = vmul.f32 %v4054_v3, %v908_v51  ;;  %v4318_v51 = vld [vmem:[#allocation73_spill] sm:$0xff] }
 0x185   :  { %v1260_v19 = vadd.f32 %v2791_v16, %v1237_v36  ;;  %v858_v58 = vadd.f32 %v4310_v35, %v822_v59  ;;  %v1107_v11 = vsel %vm961_vm4, %v2439_v29, 0.0  ;;  %v1108_v0 = vsel %vm962_vm10, %v2368_v30, 0.0  ;;  %v4322_v52 = vld [vmem:[#allocation69_spill] sm:$0xff]  ;;  %v4325_v36 = vld [vmem:[#allocation75_spill] sm:$0xff] }
 0x186   :  { %v1275_v57 = vmax.f32 %v1259_v4, 0.0  ;;  %v943_v20 = vadd.f32 %v927_v37, %v857_v5  ;;  %v1045_v7 = vmul.f32 %v4068_v23, %v1025_v54  ;;  %v1046_v47 = vmul.f32 %v4068_v23, %v1026_v8  ;;  %v4327_v8 = vld [vmem:[#allocation65_spill] sm:$0xff] }
 0x187   :  { %vm4312_vm2 = vcmp.ge.s32.totalorder %v4311_v63, 1  ;;  %v1276_v45 = vmax.f32 %v1260_v19, 0.0  ;;  %v944_v27 = vadd.f32 %v928_v25, %v858_v58  ;;  %v1203_v29 = vsel %vm3485_vm12, %v602_v61, 0.0  ;;  %v4328_v19 = vld [vmem:[#allocation70_spill] sm:$0xff] }
 0x188   :  { %vm652_vm0 = vmand %vm4312_vm2, %vm3420_vm1  ;;  %v1204_v30 = vsel %vm3497_vm3, %v2496_v10, 0.0  ;;  %v1061_v1 = vadd.f32 %v1045_v7, %v943_v20  ;;  %v1126_v60 = vmul.f32 %v4069_v32, %v1107_v11  ;;  %v1127_v22 = vmul.f32 %v4069_v32, %v1108_v0  ;;  %v4331_v20 = vld [vmem:[#allocation71_spill] sm:$0xff] }
 0x189   :  { %v571_v6 = vadd.f32 %v4313_v62, %v474_v44  ;;  %v1286_v53 = vpack.c.bf16 %v1276_v45, %v1275_v57  ;;  %v1062_v48 = vadd.f32 %v1046_v47, %v944_v27  ;;  %v1222_v13 = vmul.f32 %v2700_v38, %v1203_v29 }
 0x18a   :  { %v700_v14 = vsel %vm652_vm0, %v602_v61, 0.0  ;;  %vm4314_vm4 = vcmp.le.s32.totalorder %v4311_v63, 6  ;;  %v1142_v9 = vadd.f32 %v1126_v60, %v1061_v1  ;;  %v909_v34 = vsel %vm3420_vm1, %v2496_v10, 0.0 }
 0x18b   :  { %vm3528_vm10 = vmand %vm4314_vm4, %vm3420_vm1  ;;  %v720_v15 = vmul.f32 %v1889_v33, %v700_v14  ;;  %v737_v49 = vadd.f32 %v2831_v40, %v571_v6  ;;  %1602 = vmatmul.mubr.bf16.gmra.mxu1 %v1286_v53  ;;  %v1143_v12 = vadd.f32 %v1127_v22, %v1062_v48  ;;  %v1223_v61 = vmul.f32 %v2700_v38, %v1204_v30  ;;  %v4319_v40 = vld [vmem:[#allocation58_spill] sm:$0xff] }
 0x18c   :  { %v807_v31 = vmul.f32 %v4049_v39, %v787_v42  ;;  %v1238_v55 = vadd.f32 %v1222_v13, %v1142_v9  ;;  %v1205_v33 = vsel %vm3528_vm10, %v4318_v51, 0.0  ;;  %vm4320_vm7 = vnez %v4319_v40  ;;  %v4323_v42 = vld [vmem:[#allocation74_spill] sm:$0xff] }
 0x18d   :  { %v736_v18 = vadd.f32 %v720_v15, %v4317_v50  ;;  %v824_v43 = vadd.f32 %v808_v24, %v737_v49  ;;  %v1239_v56 = vadd.f32 %v1223_v61, %v1143_v12  ;;  %v4321_v21 = vsel %vm4320_vm7, %v4318_v51, 0.0  ;;  %v1626_v13 = vld [vmem:[%s3688_s0] sm:$0xff]  ;;  %v1627_v15 = vld [vmem:[%s3688_s0 + $0x18] sm:$0xff]  ;;  %v1628_v12 = vld [vmem:[%s3688_s0 + $0x8] sm:$0xff] }
 0x18e   :  { %v930_v10 = vmul.f32 %v4054_v3, %v4321_v21  ;;  %v1261_v2 = vadd.f32 %v2791_v16, %v1238_v55  ;;  %vm4324_vm13 = vnez %v4323_v42  ;;  %v929_v4 = vmul.f32 %v4054_v3, %v909_v34 }
 0x18f   :  { %v823_v44 = vadd.f32 %v807_v31, %v736_v18  ;;  %v860_v39 = vadd.f32 %v4322_v52, %v824_v43  ;;  %v4326_v24 = vsel %vm4324_vm13, %v4325_v36, 0.0  ;;  %v1262_v54 = vadd.f32 %v2791_v16, %v1239_v56  ;;  %v1629_v18 = vld [vmem:[%s3688_s0 + $0x30] sm:$0xff]  ;;  %v1630_v56 = vld [vmem:[%s3688_s0 + $0x20] sm:$0xff] }
 0x190   :  { %v1048_v59 = vmul.f32 %v4068_v23, %v4326_v24  ;;  %v1129_v5 = vmul.f32 0.0, %v4069_v32  ;;  %v1277_v37 = vmax.f32 %v1261_v2, 0.0  ;;  %vm4329_vm6 = vnez %v4328_v19  ;;  %v1631_v2 = vld [vmem:[%s3688_s0 + $0x38] sm:$0xff] }
 0x191   :  { %v859_v28 = vadd.f32 %v4327_v8, %v823_v44  ;;  %v946_v26 = vadd.f32 %v930_v10, %v860_v39  ;;  %v1278_v25 = vmax.f32 %v1262_v54, 0.0  ;;  %v4330_v35 = vsel %vm4329_vm6, %v4303_v46, 0.0  ;;  %v1632_v39 = vld [vmem:[%s3688_s0 + $0x28] sm:$0xff]  ;;  %v1633_v54 = vld [vmem:[%s3688_s0 + $0x50] sm:$0xff] }
 0x192   :  { %v1047_v58 = vmul.f32 %v4068_v23, %v4330_v35  ;;  %v1225_v0 = vmul.f32 0.0, %v2700_v38  ;;  %v1128_v7 = vmul.f32 %v4069_v32, %v4331_v20  ;;  %v1224_v45 = vmul.f32 %v2700_v38, %v1205_v33  ;;  %v3573_v32 = vld [vmem:[%s3693_s6] ss:$0 sm:$0xff]  ;;  %v1625_v38 = vld [vmem:[%s3688_s0 + $0x10] sm:$0xff] }
 0x193   :  { %v945_v17 = vadd.f32 %v929_v4, %v859_v28  ;;  %v1064_v11 = vadd.f32 %v1048_v59, %v946_v26  ;;  %v1287_v57 = vpack.c.bf16 %v1278_v25, %v1277_v37  ;;  %v1634_v26 = vld [vmem:[%s3688_s0 + $0x40] sm:$0xff] }
 0x195   :  { %v1063_v3 = vadd.f32 %v1047_v58, %v945_v17  ;;  %v1145_v47 = vadd.f32 %v1129_v5, %v1064_v11  ;;  %1605 = vmatprep.mubr.bf16.mxu1 %v1287_v57  ;;  %v1635_v17 = vld [vmem:[%s3688_s0 + $0x58] sm:$0xff]  ;;  %v1636_v58 = vld [vmem:[%s3688_s0 + $0x48] sm:$0xff] }
 0x197   :  { %v1144_v63 = vadd.f32 %v1128_v7, %v1063_v3  ;;  %v1241_v27 = vadd.f32 %v1225_v0, %v1145_v47  ;;  %v1637_v7 = vld [vmem:[%s3688_s0 + $0x70] sm:$0xff] }
 0x199   :  { %v1240_v29 = vadd.f32 %v1224_v45, %v1144_v63  ;;  %v1264_v30 = vadd.f32 %v2791_v16, %v1241_v27  ;;  %v1638_v45 = vld [vmem:[%s3688_s0 + $0x60] sm:$0xff] }
 0x19b   :  { %v1263_v46 = vadd.f32 %v2791_v16, %v1240_v29  ;;  %v1280_v23 = vmax.f32 %v1264_v30, 0.0 }
 0x19d   :  { %v1279_v1 = vmax.f32 %v1263_v46, 0.0  ;;  %v1639_v46 = vld [vmem:[%s3688_s0 + $0x78] sm:$0xff] }
 0x19f   :  { %v1288_v60 = vpack.c.bf16 %v1280_v23, %v1279_v1 }
 0x1a1   :  { %1606 = vmatmul.mubr.bf16.gmra.mxu1 %v1288_v60  ;;  %v1640_v60 = vld [vmem:[%s3688_s0 + $0x68] sm:$0xff] }
 0x208   :  { %v1595_v22 = vpop.f32.mrf.mxu1 }
 0x209   :  { %v1403_v62 = vadd.f32 %v1595_v22, %v3573_v32 }
 0x20a   :  { %v1394_v6 = vpop.f32.mrf.mxu1 }
 0x20b   :  { %v1459_v53 = vadd.f32 %v1625_v38, %v1403_v62  ;;  %v1395_v16 = vadd.f32 %v3573_v32, %v1394_v6 }
 0x20c   :  { %v1596_v48 = vpop.f32.mrf.mxu1 }
 0x20d   :  { %1475 = vst [vmem:[%s3694_s7 + $0x10] sm:$0xff] %v1459_v53  ;;  %v1457_v14 = vadd.f32 %v1626_v13, %v1395_v16  ;;  %v1406_v41 = vadd.f32 %v1596_v48, %v3573_v32 }
 0x20e   :  { %v1397_v9 = vpop.f32.mrf.mxu1 }
 0x20f   :  { %1473 = vst [vmem:[%s3694_s7] sm:$0xff] %v1457_v14  ;;  %v1460_v49 = vadd.f32 %v1627_v15, %v1406_v41  ;;  %v1398_v34 = vadd.f32 %v3573_v32, %v1397_v9 }
 0x211   :  { %1476 = vst [vmem:[%s3694_s7 + $0x18] sm:$0xff] %v1460_v49  ;;  %v1458_v61 = vadd.f32 %v1628_v12, %v1398_v34 }
 0x213   :  { %1474 = vst [vmem:[%s3694_s7 + $0x8] sm:$0xff] %v1458_v61 }
 0x22c   :  { %v1599_v31 = vpop.f32.mrf.mxu1 }
 0x22d   :  { %v1419_v55 = vadd.f32 %v1599_v31, %v3573_v32 }
 0x22e   :  { %v1410_v50 = vpop.f32.mrf.mxu1 }
 0x22f   :  { %v1463_v43 = vadd.f32 %v1629_v18, %v1419_v55  ;;  %v1411_v51 = vadd.f32 %v3573_v32, %v1410_v50 }
 0x230   :  { %v1600_v33 = vpop.f32.mrf.mxu1 }
 0x231   :  { %1479 = vst [vmem:[%s3694_s7 + $0x30] sm:$0xff] %v1463_v43  ;;  %v1461_v40 = vadd.f32 %v1630_v56, %v1411_v51  ;;  %v1422_v21 = vadd.f32 %v1600_v33, %v3573_v32 }
 0x232   :  { %v1413_v10 = vpop.f32.mrf.mxu1 }
 0x233   :  { %1477 = vst [vmem:[%s3694_s7 + $0x20] sm:$0xff] %v1461_v40  ;;  %v1464_v44 = vadd.f32 %v1631_v2, %v1422_v21  ;;  %v1414_v52 = vadd.f32 %v3573_v32, %v1413_v10 }
 0x235   :  { %1480 = vst [vmem:[%s3694_s7 + $0x38] sm:$0xff] %v1464_v44  ;;  %v1462_v42 = vadd.f32 %v1632_v39, %v1414_v52 }
 0x237   :  { %1478 = vst [vmem:[%s3694_s7 + $0x28] sm:$0xff] %v1462_v42 }
 0x24b   :  { %v1603_v36 = vpop.f32.mrf.mxu1 }
 0x24c   :  { %v1435_v24 = vadd.f32 %v1603_v36, %v3573_v32 }
 0x24d   :  { %v1426_v59 = vpop.f32.mrf.mxu1 }
 0x24e   :  { %v1467_v8 = vadd.f32 %v1633_v54, %v1435_v24  ;;  %v1427_v28 = vadd.f32 %v3573_v32, %v1426_v59 }
 0x24f   :  { %v1604_v4 = vpop.f32.mrf.mxu1 }
 0x250   :  { %1483 = vst [vmem:[%s3694_s7 + $0x50] sm:$0xff] %v1467_v8  ;;  %v1465_v5 = vadd.f32 %v1634_v26, %v1427_v28  ;;  %v1438_v37 = vadd.f32 %v1604_v4, %v3573_v32 }
 0x251   :  { %v1429_v25 = vpop.f32.mrf.mxu1 }
 0x252   :  { %1481 = vst [vmem:[%s3694_s7 + $0x40] sm:$0xff] %v1465_v5  ;;  %v1468_v19 = vadd.f32 %v1635_v17, %v1438_v37  ;;  %v1430_v35 = vadd.f32 %v3573_v32, %v1429_v25 }
 0x254   :  { %1484 = vst [vmem:[%s3694_s7 + $0x58] sm:$0xff] %v1468_v19  ;;  %v1466_v11 = vadd.f32 %v1636_v58, %v1430_v35 }
 0x256   :  { %1482 = vst [vmem:[%s3694_s7 + $0x48] sm:$0xff] %v1466_v11 }
 0x261   :  { %v1607_v0 = vpop.f32.mrf.mxu1 }
 0x262   :  { %v1451_v57 = vadd.f32 %v1607_v0, %v3573_v32 }
 0x263   :  { %v1442_v20 = vpop.f32.mrf.mxu1 }
 0x264   :  { %v1471_v3 = vadd.f32 %v1637_v7, %v1451_v57  ;;  %v1443_v47 = vadd.f32 %v3573_v32, %v1442_v20 }
 0x265   :  { %v1608_v63 = vpop.f32.mrf.mxu1 }
 0x266   :  { %1487 = vst [vmem:[%s3694_s7 + $0x70] sm:$0xff] %v1471_v3  ;;  %v1469_v27 = vadd.f32 %v1638_v45, %v1443_v47  ;;  %v1454_v29 = vadd.f32 %v1608_v63, %v3573_v32 }
 0x267   :  { %v1445_v30 = vpop.f32.mrf.mxu1 }
 0x268   :  { %1485 = vst [vmem:[%s3694_s7 + $0x60] sm:$0xff] %v1469_v27  ;;  %v1472_v23 = vadd.f32 %v1639_v46, %v1454_v29  ;;  %v1446_v1 = vadd.f32 %v3573_v32, %v1445_v30 }
 0x26a   :  { %1488 = vst [vmem:[%s3694_s7 + $0x78] sm:$0xff] %v1472_v23  ;;  %v1470_v22 = vadd.f32 %v1640_v60, %v1446_v1 }
 0x26c   :  { %1486 = vst [vmem:[%s3694_s7 + $0x68] sm:$0xff] %v1470_v22 }

// kernel: ofanet_forward.7
= control target key start
LH: loop header
LB: loop body
LE: loop exit
PB: predicated region body
PF: predicated region fallthrough
CT: control target
= control target key end

     0   :  { %19 = vsyncpa [#allocation3], 0  ;;  %s2071_s0 = inlined_call_operand.vmem [shape: f32[128,128], index: 0, kind: input, shape index: {}]   ;;  %s2072_s1 = inlined_call_operand.vmem [shape: bf16[128,128], index: 1, kind: input, shape index: {}]   ;;  %s2073_s2 = inlined_call_operand.vmem [shape: f32[1,128], index: 2, kind: input, shape index: {}]   ;;  %s2074_s3 = inlined_call_operand.vmem [shape: f32[9,128], index: 3, kind: input, shape index: {}]   ;;  %s2075_s4 = inlined_call_operand.vmem [shape: f32[1,128], index: 4, kind: input, shape index: {}]   ;;  %s2076_s5 = inlined_call_operand.vmem [shape: bf16[128,128], index: 5, kind: input, shape index: {}]   ;;  %s2077_s6 = inlined_call_operand.vmem [shape: f32[1,128], index: 6, kind: input, shape index: {}]   ;;  %s2078_s7 = inlined_call_operand.vmem [shape: bf16[128,128], index: 7, kind: input, shape index: {}]   ;;  %s2079_s8 = inlined_call_operand.vmem [shape: f32[1,128], index: 8, kind: input, shape index: {}]   ;;  %s2080_s9 = inlined_call_operand.vmem [shape: bf16[128,128], index: 9, kind: input, shape index: {}]   ;;  %s2081_s10 = inlined_call_operand.vmem [shape: bf16[128,128], index: 10, kind: input, shape index: {}]   ;;  %s2082_s11 = inlined_call_operand.vmem [shape: f32[1,128], index: 11, kind: input, shape index: {}]   ;;  %s2083_s12 = inlined_call_operand.hbm [shape: f32[2,128], index: 12, kind: output, shape index: {0}]   ;;  %s2084_s13 = inlined_call_operand.hbm [shape: f32[2,128], index: 13, kind: output, shape index: {1}]  }
   0x1   :  { %v1364_v0 = vld [vmem:[%s2072_s1 + $0x38] sm:$0xff]   ;;  %v1365_v1 = vld [vmem:[%s2072_s1 + $0x30] sm:$0xff]   ;;  %v1366_v2 = vld [vmem:[%s2072_s1 + $0x28] sm:$0xff]  }
   0x2   :  { %1248 = vmatprep.subr.bf16.mxu0 %v1364_v0  ;;  %v1367_v3 = vld [vmem:[%s2072_s1 + $0x20] sm:$0xff]   ;;  %v47_v5 = vld [vmem:[%s2071_s0 + $0x8] sm:$0xff]  ;;  %v1368_v7 = vld [vmem:[%s2072_s1 + $0x18] sm:$0xff]  }
   0x3   :  { %1249 = vmatpush3.bf16.msra.mxu0 %v1364_v0  ;;  %v46_v4 = vld [vmem:[%s2071_s0] sm:$0xff]  ;;  %v1369_v8 = vld [vmem:[%s2072_s1 + $0x10] sm:$0xff]   ;;  %v1370_v9 = vld [vmem:[%s2072_s1 + $0x8] sm:$0xff]  }
   0x4   :  { %1250 = vmatprep.subr.bf16.mxu0 %v1365_v1  ;;  %v62_v6 = vpack.c.bf16 %v47_v5, %v46_v4  ;;  %v1371_v10 = vld [vmem:[%s2072_s1] sm:$0xff]   ;;  %v48_v11 = vld [vmem:[%s2071_s0 + $0x10] sm:$0xff]  ;;  %v49_v12 = vld [vmem:[%s2071_s0 + $0x18] sm:$0xff] }
   0x5   :  { %v50_v13 = vld [vmem:[%s2071_s0 + $0x20] sm:$0xff]  ;;  %v51_v14 = vld [vmem:[%s2071_s0 + $0x28] sm:$0xff]  ;;  %v63_v15 = vpack.c.bf16 %v49_v12, %v48_v11 }
   0x6   :  { %1264 = vmatprep.mubr.bf16.mxu0 %v62_v6  ;;  %v64_v16 = vpack.c.bf16 %v51_v14, %v50_v13 }
   0x7   :  { %1251 = vmatpush3.bf16.msra.mxu0 %v1365_v1 }
   0x8   :  { %1252 = vmatprep.subr.bf16.mxu0 %v1366_v2 }
   0xb   :  { %1253 = vmatpush3.bf16.msra.mxu0 %v1366_v2 }
   0xc   :  { %1254 = vmatprep.subr.bf16.mxu0 %v1367_v3 }
   0xf   :  { %1255 = vmatpush3.bf16.msra.mxu0 %v1367_v3 }
  0x10   :  { %1256 = vmatprep.subr.bf16.mxu0 %v1368_v7 }
  0x13   :  { %1257 = vmatpush3.bf16.msra.mxu0 %v1368_v7 }
  0x14   :  { %1258 = vmatprep.subr.bf16.mxu0 %v1369_v8 }
  0x17   :  { %1259 = vmatpush3.bf16.msra.mxu0 %v1369_v8 }
  0x18   :  { %1260 = vmatprep.subr.bf16.mxu0 %v1370_v9 }
  0x1b   :  { %1261 = vmatpush3.bf16.msra.mxu0 %v1370_v9 }
  0x1c   :  { %1262 = vmatprep.subr.bf16.mxu0 %v1371_v10 }
  0x1f   :  { %1263 = vmatpush3.bf16.msra.mxu0 %v1371_v10 }
  0x22   :  { %1265 = vmatmul.mubr.bf16.vlgmr.msra.gmra.mxu0 %v63_v15 }
  0x23   :  { %20 = vsyncpa [#allocation5], 0  ;;  %1268 = vmatprep.mubr.bf16.mxu0 %v64_v16  ;;  %v52_v17 = vld [vmem:[%s2071_s0 + $0x30] sm:$0xff]  ;;  %v53_v18 = vld [vmem:[%s2071_s0 + $0x38] sm:$0xff]  ;;  %v320_v46 = vlaneseq  ;;  %vm463_vm0 = vcmask 1040384   ;;  %vm394_vm2 = vcmask 1043456  }
  0x24   :  { %v54_v19 = vld [vmem:[%s2071_s0 + $0x40] sm:$0xff]  ;;  %v55_v20 = vld [vmem:[%s2071_s0 + $0x48] sm:$0xff]  ;;  %v65_v21 = vpack.c.bf16 %v53_v18, %v52_v17  ;;  %v56_v23 = vld [vmem:[%s2071_s0 + $0x50] sm:$0xff]  ;;  %vm341_vm10 = vcmask 1044480   ;;  %vm1449_vm15 = vmmov 0   ;;  %s1450_s24 = smov [#allocation4]  }
  0x25   :  { %v66_v22 = vpack.c.bf16 %v55_v20, %v54_v19  ;;  %v57_v24 = vld [vmem:[%s2071_s0 + $0x58] sm:$0xff]  ;;  %v58_v25 = vld [vmem:[%s2071_s0 + $0x60] sm:$0xff]  ;;  %v59_v26 = vld [vmem:[%s2071_s0 + $0x68] sm:$0xff]  ;;  %v1641_v49 = vshrl.u32 %v320_v46, 7  ;;  %s1136_s25 = sshll.u32 %s1450_s24, 4  ;;  %s1137_s25 = int_to_ptr.vmem [resolvable:$true] %s1136_s25 }
  0x26   :  { %v67_v27 = vpack.c.bf16 %v57_v24, %v56_v23  ;;  %v68_v28 = vpack.c.bf16 %v59_v26, %v58_v25  ;;  %v60_v29 = vld [vmem:[%s2071_s0 + $0x70] sm:$0xff]  ;;  %v61_v30 = vld [vmem:[%s2071_s0 + $0x78] sm:$0xff]  ;;  %v1374_v34 = vld [vmem:[%s2076_s5 + $0x28] sm:$0xff]   ;;  %s1404_s0 = scalar_lea.vmem %s1137_s25, 32  ;;  %p1409_p1 = scmp.lt.s32.totalorder %s1137_s25, %s1137_s25 }
  0x27   :  { %v69_v31 = vpack.c.bf16 %v61_v30, %v60_v29  ;;  %v1372_v32 = vld [vmem:[%s2076_s5 + $0x38] sm:$0xff]   ;;  %v1373_v33 = vld [vmem:[%s2076_s5 + $0x30] sm:$0xff]   ;;  %v1375_v35 = vld [vmem:[%s2076_s5 + $0x20] sm:$0xff]   ;;  %v502_v52 = vsub.s32 4, %v1641_v49  ;;  %v514_v55 = vsub.s32 5, %v1641_v49  ;;  %v490_v59 = vsub.s32 3, %v1641_v49  ;;  %p1405_p0 = scmp.ne.s32.totalorder %s1137_s25, %s1404_s0  ;;  %p1410_p2 = scmp.lt.s32.totalorder %s1404_s0, %s1404_s0 }
  0x28   :  { %1280 = vmatprep.subr.bf16.mxu1 %v1372_v32  ;;  %v1376_v36 = vld [vmem:[%s2076_s5 + $0x18] sm:$0xff]   ;;  %v1377_v37 = vld [vmem:[%s2076_s5 + $0x10] sm:$0xff]   ;;  %v1378_v38 = vld [vmem:[%s2076_s5 + $0x8] sm:$0xff]   ;;  %v1661_v60 = vadd.s32 24, %v1641_v49  ;;  %v1668_v63 = vadd.s32 8, %v1641_v49  ;;  %v1671_v0 = vadd.s32 16, %v1641_v49 }
  0x29   :  { %1281 = vmatpush3.bf16.msra.mxu1 %v1372_v32  ;;  %v1379_v39 = vld [vmem:[%s2076_s5] sm:$0xff]   ;;  %v1380_v40 = vld [vmem:[%s2078_s7 + $0x38] sm:$0xff]   ;;  %v1381_v41 = vld [vmem:[%s2078_s7 + $0x30] sm:$0xff]   ;;  %v325_v7 = vand.u32 3, %v1641_v49  ;;  %v554_v8 = vsub.s32 7, %v1641_v49  ;;  %v329_v9 = vshra.s32 %v1641_v49, 2  ;;  %p1411_p3 = por %p1410_p2, %p1409_p1 }
  0x2a   :  { %1269 = vmatmul.mubr.bf16.gmra.mxu0 %v65_v21  ;;  %1282 = vmatprep.subr.bf16.mxu1 %v1373_v33  ;;  %v1382_v42 = vld [vmem:[%s2078_s7 + $0x28] sm:$0xff]   ;;  %v1383_v43 = vld [vmem:[%s2078_s7 + $0x20] sm:$0xff]   ;;  %v1384_v44 = vld [vmem:[%s2078_s7 + $0x18] sm:$0xff]   ;;  %v328_v13 = vand.u32 3, %v1661_v60  ;;  %v421_v14 = vsub.s32 1, %v1641_v49  ;;  %v326_v16 = vand.u32 3, %v1668_v63 }
  0x2b   :  { %1272 = vmatprep.mubr.bf16.mxu0 %v66_v22  ;;  %1300 = vmatprep.subr.bf16.mxu0 %v1380_v40  ;;  %v1385_v45 = vld [vmem:[%s2078_s7 + $0x10] sm:$0xff]   ;;  %v1639_v48 = vld [vmem:[%s2073_s2] ss:$0 sm:$0xff]  ;;  %v327_v17 = vand.u32 3, %v1671_v0  ;;  %v332_v18 = vshra.s32 %v1661_v60, 2  ;;  %v1698_v26 = vand.u32 3, %v329_v9  ;;  %p1412_p4 = pnand %p1411_p3, %p1405_p0 }
  0x2c   :  { %1301 = vmatpush3.bf16.msra.mxu0 %v1380_v40  ;;  %v1654_v56 = vld [vmem:[%s2074_s3] sm:$0xff]  ;;  %vm1721_vm1 = vcmp.ge.s32.totalorder %v325_v7, 1  ;;  %vm1743_vm3 = vcmp.ge.s32.totalorder %v328_v13, 1  ;;  %vm1788_vm8 = vcmp.ge.s32.totalorder %v326_v16, 1 }
  0x2d   :  { %1283 = vmatpush3.bf16.msra.mxu1 %v1373_v33  ;;  %1302 = vmatprep.subr.bf16.mxu0 %v1381_v41  ;;  %v1674_v1 = vrot.slane %v1654_v56, %v502_v52  ;;  %v1679_v5 = vrot.slane %v1654_v56, %v514_v55  ;;  %v1687_v12 = vrot.slane %v1654_v56, %v490_v59  ;;  %vm354_vm4 = vcmp.ge.s32.totalorder %v1698_v26, 1 }
  0x2e   :  { %1284 = vmatprep.subr.bf16.mxu1 %v1374_v34  ;;  %v1696_v25 = vrot.slane %v1654_v56, %v554_v8  ;;  %v1703_v32 = vrot.slane %v1654_v56, %v421_v14  ;;  %vm1794_vm9 = vcmp.ge.s32.totalorder %v327_v17, 1  ;;  %vm1857_vm11 = vmand %vm354_vm4, %vm1721_vm1 }
  0x30   :  { %1303 = vmatpush3.bf16.msra.mxu0 %v1381_v41 }
  0x31   :  { %1285 = vmatpush3.bf16.msra.mxu1 %v1374_v34  ;;  %1304 = vmatprep.subr.bf16.mxu0 %v1382_v42 }
  0x32   :  { %1273 = vmatmul.mubr.bf16.gmra.mxu0 %v67_v27  ;;  %1286 = vmatprep.subr.bf16.mxu1 %v1375_v35  ;;  %v330_v27 = vshra.s32 %v1668_v63, 2 }
  0x33   :  { %1276 = vmatprep.mubr.bf16.mxu0 %v68_v28 }
  0x34   :  { %1305 = vmatpush3.bf16.msra.mxu0 %v1382_v42 }
  0x35   :  { %1287 = vmatpush3.bf16.msra.mxu1 %v1375_v35  ;;  %1306 = vmatprep.subr.bf16.mxu0 %v1383_v43  ;;  %v1706_v35 = vand.u32 3, %v332_v18 }
  0x36   :  { %1288 = vmatprep.subr.bf16.mxu1 %v1376_v36 }
  0x37   :  { %vm357_vm5 = vcmp.ge.s32.totalorder %v1706_v35, 1 }
  0x38   :  { %1307 = vmatpush3.bf16.msra.mxu0 %v1383_v43  ;;  %vm1869_vm12 = vmand %vm357_vm5, %vm1743_vm3 }
  0x39   :  { %1289 = vmatpush3.bf16.msra.mxu1 %v1376_v36  ;;  %1308 = vmatprep.subr.bf16.mxu0 %v1384_v44  ;;  %v331_v36 = vshra.s32 %v1671_v0, 2 }
  0x3a   :  { %1277 = vmatmul.mubr.bf16.gmra.mxu0 %v69_v31  ;;  %1290 = vmatprep.subr.bf16.mxu1 %v1377_v37 }
  0x3c   :  { %1309 = vmatpush3.bf16.msra.mxu0 %v1384_v44 }
  0x3d   :  { %1291 = vmatpush3.bf16.msra.mxu1 %v1377_v37  ;;  %1310 = vmatprep.subr.bf16.mxu0 %v1385_v45 }
  0x3e   :  { %1292 = vmatprep.subr.bf16.mxu1 %v1378_v38 }
  0x40   :  { %1311 = vmatpush3.bf16.msra.mxu0 %v1385_v45  ;;  %v1710_v45 = vand.u32 3, %v330_v27 }
  0x41   :  { %1293 = vmatpush3.bf16.msra.mxu1 %v1378_v38 }
  0x42   :  { %1294 = vmatprep.subr.bf16.mxu1 %v1379_v39  ;;  %vm355_vm6 = vcmp.ge.s32.totalorder %v1710_v45, 1 }
  0x43   :  { %vm1885_vm13 = vmand %vm355_vm6, %vm1788_vm8 }
  0x45   :  { %1295 = vmatpush3.bf16.msra.mxu1 %v1379_v39 }
  0xe2   :  { %v1266_v47 = vpop.f32.mrf.mxu0 }
  0xe3   :  { %v1644_v51 = vadd.f32 %v1266_v47, %v1639_v48 }
  0xe4   :  { %v175_v50 = vpop.f32.mrf.mxu0 }
  0xe5   :  { %v1648_v53 = vadd.f32 %v1639_v48, %v175_v50  ;;  %v240_v61 = vadd.f32 3.0, %v1644_v51 }
  0xe6   :  { %v1267_v54 = vpop.f32.mrf.mxu0 }
  0xe7   :  { %v1657_v57 = vadd.f32 %v1267_v54, %v1639_v48  ;;  %v238_v2 = vadd.f32 3.0, %v1648_v53  ;;  %v256_v15 = vmax.f32 %v240_v61, 0.0  ;;  %v380_v54 = vsub.s32 0, %v1641_v49 }
  0xe8   :  { %v178_v58 = vpop.f32.mrf.mxu0 }
  0xe9   :  { %v1665_v62 = vadd.f32 %v1639_v48, %v178_v58  ;;  %v241_v3 = vadd.f32 3.0, %v1657_v57  ;;  %v254_v19 = vmax.f32 %v238_v2, 0.0  ;;  %v272_v33 = vmin.f32 %v256_v15, 6.0 }
  0xea   :  { %v1270_v4 = vpop.f32.mrf.mxu0 }
  0xeb   :  { %v239_v6 = vadd.f32 3.0, %v1665_v62  ;;  %v200_v10 = vadd.f32 %v1270_v4, %v1639_v48  ;;  %v257_v20 = vmax.f32 %v241_v3, 0.0  ;;  %v270_v37 = vmin.f32 %v254_v19, 6.0 }
  0xec   :  { %v191_v11 = vpop.f32.mrf.mxu0  ;;  %v288_v55 = vmul.f32 %v272_v33, %v1644_v51 }
  0xed   :  { %v244_v21 = vadd.f32 3.0, %v200_v10  ;;  %v192_v22 = vadd.f32 %v1639_v48, %v191_v11  ;;  %v255_v24 = vmax.f32 %v239_v6, 0.0  ;;  %v273_v38 = vmin.f32 %v257_v20, 6.0 }
  0xee   :  { %v1271_v23 = vpop.f32.mrf.mxu0  ;;  %v286_v2 = vmul.f32 %v270_v37, %v1648_v53 }
  0xef   :  { %v260_v28 = vmax.f32 %v244_v21, 0.0  ;;  %v242_v29 = vadd.f32 3.0, %v192_v22  ;;  %v203_v30 = vadd.f32 %v1271_v23, %v1639_v48  ;;  %v271_v42 = vmin.f32 %v255_v24, 6.0 }
  0xf0   :  { %v194_v31 = vpop.f32.mrf.mxu0  ;;  %v289_v3 = vmul.f32 %v273_v38, %v1657_v57  ;;  %v449_v57 = vsub.s32 2, %v1641_v49  ;;  %v302_v27 = vmul.f32 0.16666667, %v286_v2 }
  0xf1   :  { %v195_v34 = vadd.f32 %v1639_v48, %v194_v31  ;;  %v258_v39 = vmax.f32 %v242_v29, 0.0  ;;  %v245_v40 = vadd.f32 3.0, %v203_v30  ;;  %v276_v46 = vmin.f32 %v260_v28, 6.0 }
  0xf2   :  { %v1274_v41 = vpop.f32.mrf.mxu0  ;;  %v287_v9 = vmul.f32 %v271_v42, %v1665_v62  ;;  %v304_v62 = vmul.f32 0.16666667, %v288_v55  ;;  %v305_v31 = vmul.f32 0.16666667, %v289_v3 }
  0xf3   :  { %v243_v43 = vadd.f32 3.0, %v195_v34  ;;  %v216_v44 = vadd.f32 %v1274_v41, %v1639_v48  ;;  %v274_v47 = vmin.f32 %v258_v39, 6.0  ;;  %v261_v50 = vmax.f32 %v245_v40, 0.0 }
  0xf4   :  { %v207_v52 = vpop.f32.mrf.mxu0  ;;  %v292_v18 = vmul.f32 %v276_v46, %v200_v10  ;;  %v542_v10 = vsub.s32 6, %v1641_v49  ;;  %v303_v7 = vmul.f32 0.16666667, %v287_v9  ;;  %v1736_v46 = vrot.slane %v1654_v56, %v380_v54 }
  0xf5   :  { %v259_v58 = vmax.f32 %v243_v43, 0.0  ;;  %v248_v59 = vadd.f32 3.0, %v216_v44  ;;  %v208_v61 = vadd.f32 %v1639_v48, %v207_v52  ;;  %v290_v4 = vmul.f32 %v274_v47, %v192_v22 }
  0xf6   :  { %v277_v6 = vmin.f32 %v261_v50, 6.0  ;;  %v1275_v8 = vpop.f32.mrf.mxu0  ;;  %v1728_v38 = vmul.f32 0.16666667, %v292_v18  ;;  %v1739_v49 = vrot.slane %v1654_v56, %v449_v57  ;;  %v1748_v55 = vrot.slane %v1654_v56, %v542_v10 }
  0xf7   :  { %v264_v11 = vmax.f32 %v248_v59, 0.0  ;;  %v246_v14 = vadd.f32 3.0, %v208_v61  ;;  %v219_v15 = vadd.f32 %v1275_v8, %v1639_v48  ;;  %v1719_v51 = vmul.f32 0.16666667, %v290_v4 }
  0xf8   :  { %v275_v20 = vmin.f32 %v259_v58, 6.0  ;;  %v210_v53 = vpop.f32.mrf.mxu0  ;;  %v293_v21 = vmul.f32 %v277_v6, %v203_v30  ;;  %v1731_v30 = vand.u32 3, %v331_v36  ;;  %v1754_v54 = vmul.f32 %v1674_v1, %v302_v27 }
  0xf9   :  { %v280_v22 = vmin.f32 %v264_v11, 6.0  ;;  %v262_v23 = vmax.f32 %v246_v14, 0.0  ;;  %v249_v24 = vadd.f32 3.0, %v219_v15  ;;  %v211_v28 = vadd.f32 %v1639_v48, %v210_v53 }
  0xfa   :  { %v1278_v29 = vpop.f32.mrf.mxu0  ;;  %v464_v39 = vrot.slane %v1719_v51, 7  ;;  %v291_v40 = vmul.f32 %v275_v20, %v195_v34  ;;  %v1733_v42 = vmul.f32 0.16666667, %v293_v21  ;;  %v1757_v58 = vmul.f32 %v1674_v1, %v305_v31 }
  0xfb   :  { %v278_v33 = vmin.f32 %v262_v23, 6.0  ;;  %v265_v37 = vmax.f32 %v249_v24, 0.0  ;;  %v296_v43 = vmul.f32 %v280_v22, %v216_v44  ;;  %v247_v36 = vadd.f32 3.0, %v211_v28 }
  0xfc   :  { %v223_v41 = vpop.f32.mrf.mxu0  ;;  %v1751_v44 = vmul.f32 %v1674_v1, %v304_v62  ;;  %v1760_v60 = vmul.f32 %v1674_v1, %v303_v7  ;;  %v467_v13 = vrot.slane %v1728_v38, 7  ;;  %v475_v59 = vsel %vm463_vm0, 0.0, %v464_v39 }
  0xfd   :  { %v294_v34 = vmul.f32 %v278_v33, %v208_v61  ;;  %v281_v50 = vmin.f32 %v265_v37, 6.0  ;;  %v1768_v56 = vmul.f32 %v1679_v5, %v1719_v51  ;;  %v1770_v61 = vmul.f32 0.16666667, %v291_v40 }
  0xfe   :  { %v1279_v52 = vpop.f32.mrf.mxu0  ;;  %v469_v1 = vrot.slane %v1733_v42, 7  ;;  %v1775_v3 = vmul.f32 0.16666667, %v296_v43  ;;  %v263_v8 = vmax.f32 %v247_v36, 0.0  ;;  %vm356_vm7 = vcmp.ge.s32.totalorder %v1731_v30, 1 }
  0xff   :  { %v1777_v4 = vmul.f32 0.16666667, %v294_v34  ;;  %v297_v6 = vmul.f32 %v281_v50, %v219_v15  ;;  %v232_v9 = vadd.f32 %v1278_v29, %v1639_v48  ;;  %v224_v11 = vadd.f32 %v1639_v48, %v223_v41  ;;  %vm1899_vm14 = vmand %vm356_vm7, %vm1794_vm9 }
 0x100   :  { %v226_v2 = vpop.f32.mrf.mxu0  ;;  %v235_v14 = vadd.f32 %v1279_v52, %v1639_v48  ;;  %v484_v18 = vsel %vm1721_vm1, %v475_v59, 0.0  ;;  %v279_v22 = vmin.f32 %v263_v8, 6.0  ;;  %v1803_v16 = vsel %vm463_vm0, %v467_v13, %v469_v1 }
 0x101   :  { %v395_v53 = vrot.slane %v1777_v4, 4  ;;  %v1799_v57 = vmul.f32 0.16666667, %v297_v6  ;;  %v227_v21 = vadd.f32 %v1639_v48, %v226_v2  ;;  %v252_v23 = vadd.f32 3.0, %v232_v9 }
 0x102   :  { %v250_v24 = vadd.f32 3.0, %v224_v11  ;;  %v253_v63 = vadd.f32 3.0, %v235_v14  ;;  %v465_v62 = vrot.slane %v1770_v61, 7  ;;  %v398_v27 = vrot.slane %v1775_v3, 4 }
 0x103   :  { %v400_v0 = vrot.slane %v1799_v57, 4  ;;  %v251_v17 = vadd.f32 3.0, %v227_v21  ;;  %v295_v29 = vmul.f32 %v279_v22, %v211_v28  ;;  %v268_v10 = vmax.f32 %v252_v23, 0.0 }
 0x104   :  { %v266_v31 = vmax.f32 %v250_v24, 0.0  ;;  %v1809_v48 = vmul.f32 %v1687_v12, %v484_v18  ;;  %v406_v7 = vsel %vm394_vm2, 0.0, %v395_v53  ;;  %v269_v33 = vmax.f32 %v253_v63, 0.0 }
 0x105   :  { %v267_v37 = vmax.f32 %v251_v17, 0.0  ;;  %v401_v40 = vsel %vm394_vm2, %v398_v27, %v400_v0  ;;  %v1813_v41 = vmul.f32 0.16666667, %v295_v29  ;;  %v284_v43 = vmin.f32 %v268_v10, 6.0 }
 0x106   :  { %v282_v34 = vmin.f32 %v266_v31, 6.0  ;;  %v487_v28 = vsel %vm1743_vm3, %v1803_v16, 0.0  ;;  %v1821_v50 = vsel %vm463_vm0, %v464_v39, %v465_v62  ;;  %v285_v36 = vmin.f32 %v269_v33, 6.0 }
 0x107   :  { %v283_v52 = vmin.f32 %v267_v37, 6.0  ;;  %v1824_v59 = vsel %vm463_vm0, %v465_v62, %v467_v13  ;;  %v396_v2 = vrot.slane %v1813_v41, 4  ;;  %v300_v1 = vmul.f32 %v284_v43, %v232_v9 }
 0x108   :  { %v298_v6 = vmul.f32 %v282_v34, %v224_v11  ;;  %v415_v8 = vsel %vm354_vm4, %v406_v7, 0.0  ;;  %v418_v18 = vsel %vm357_vm5, %v401_v40, 0.0  ;;  %v301_v22 = vmul.f32 %v285_v36, %v235_v14 }
 0x109   :  { %v299_v51 = vmul.f32 %v283_v52, %v227_v21  ;;  %v397_v39 = vsel %vm394_vm2, %v395_v53, %v396_v2  ;;  %v399_v23 = vsel %vm394_vm2, %v396_v2, %v398_v27  ;;  %v1833_v24 = vmul.f32 0.16666667, %v300_v1 }
 0x10a   :  { %v1835_v13 = vmul.f32 0.16666667, %v298_v6  ;;  %v416_v9 = vsel %vm355_vm6, %v397_v39, 0.0  ;;  %v417_v11 = vsel %vm356_vm7, %v399_v23, 0.0  ;;  %v1841_v63 = vmul.f32 0.16666667, %v301_v22 }
 0x10b   :  { %v1843_v62 = vmul.f32 0.16666667, %v299_v51  ;;  %v485_v14 = vsel %vm1788_vm8, %v1821_v50, 0.0  ;;  %v486_v53 = vsel %vm1794_vm9, %v1824_v59, 0.0  ;;  %v423_v21 = vmul.f32 %v1703_v32, %v415_v8 }
 0x10c   :  { %v426_v0 = vmul.f32 %v1703_v32, %v418_v18  ;;  %v424_v27 = vmul.f32 %v1703_v32, %v416_v9  ;;  %v425_v29 = vmul.f32 %v1703_v32, %v417_v11  ;;  %v342_v10 = vrot.slane %v1835_v13, 3 }
 0x10d   :  { %v431_v31 = vrot.slane %v1835_v13, 4  ;;  %v345_v33 = vrot.slane %v1833_v24, 3  ;;  %v524_v37 = vrot.slane %v1835_v13, 7  ;;  %v347_v40 = vrot.slane %v1841_v63, 3 }
 0x10e   :  { %v436_v32 = vrot.slane %v1841_v63, 4  ;;  %v434_v43 = vrot.slane %v1833_v24, 4  ;;  %v353_v34 = vsel %vm341_vm10, 0.0, %v342_v10  ;;  %v343_v36 = vrot.slane %v1843_v62, 3 }
 0x10f   :  { %v442_v50 = vsel %vm394_vm2, 0.0, %v431_v31  ;;  %v527_v59 = vrot.slane %v1833_v24, 7  ;;  %v374_v2 = vsel %vm1857_vm11, %v353_v34, 0.0  ;;  %v348_v6 = vsel %vm341_vm10, %v345_v33, %v347_v40 }
 0x110   :  { %v443_v1 = vsel %vm354_vm4, %v442_v50, 0.0  ;;  %v382_v18 = vmul.f32 %v1736_v46, %v374_v2  ;;  %v377_v22 = vsel %vm1869_vm12, %v348_v6, 0.0  ;;  %v437_v51 = vsel %vm394_vm2, %v434_v43, %v436_v32 }
 0x111   :  { %v529_v26 = vrot.slane %v1841_v63, 7  ;;  %v535_v39 = vsel %vm463_vm0, 0.0, %v524_v37  ;;  %v385_v23 = vmul.f32 %v1736_v46, %v377_v22  ;;  %v446_v9 = vsel %vm357_vm5, %v437_v51, 0.0 }
 0x112   :  { %v344_v11 = vsel %vm341_vm10, %v342_v10, %v343_v36  ;;  %v427_v17 = vadd.f32 %v423_v21, %v382_v18  ;;  %v451_v40 = vmul.f32 %v1739_v49, %v443_v1  ;;  %v454_v34 = vmul.f32 %v1739_v49, %v446_v9 }
 0x113   :  { %v346_v7 = vsel %vm341_vm10, %v343_v36, %v345_v33  ;;  %v430_v50 = vadd.f32 %v426_v0, %v385_v23  ;;  %v375_v32 = vsel %vm1885_vm13, %v344_v11, 0.0  ;;  %v432_v6 = vrot.slane %v1843_v62, 4 }
 0x114   :  { %v376_v2 = vsel %vm1899_vm14, %v346_v7, 0.0  ;;  %v455_v35 = vadd.f32 %v451_v40, %v427_v17  ;;  %v383_v22 = vmul.f32 %v1736_v46, %v375_v32  ;;  %v525_v10 = vrot.slane %v1843_v62, 7 }
 0x115   :  { %v384_v21 = vmul.f32 %v1736_v46, %v376_v2  ;;  %v458_v1 = vadd.f32 %v454_v34, %v430_v50  ;;  %v530_v18 = vsel %vm463_vm0, %v527_v59, %v529_v26  ;;  %v433_v0 = vsel %vm394_vm2, %v431_v31, %v432_v6 }
 0x116   :  { %v435_v33 = vsel %vm394_vm2, %v432_v6, %v434_v43  ;;  %v428_v36 = vadd.f32 %v424_v27, %v383_v22  ;;  %v444_v8 = vsel %vm355_vm6, %v433_v0, 0.0  ;;  %v496_v9 = vadd.f32 %v1809_v48, %v455_v35 }
 0x117   :  { %v429_v52 = vadd.f32 %v425_v29, %v384_v21  ;;  %v445_v51 = vsel %vm356_vm7, %v435_v33, 0.0  ;;  %v452_v23 = vmul.f32 %v1739_v49, %v444_v8  ;;  %v536_v26 = vsel %vm1721_vm1, %v535_v39, 0.0 }
 0x118   :  { %v453_v46 = vmul.f32 %v1739_v49, %v445_v51  ;;  %v495_v27 = vmul.f32 %v1687_v12, %v487_v28  ;;  %v493_v45 = vmul.f32 %v1687_v12, %v485_v14  ;;  %v494_v30 = vmul.f32 %v1687_v12, %v486_v53 }
 0x119   :  { %v526_v29 = vsel %vm463_vm0, %v524_v37, %v525_v10  ;;  %v528_v49 = vsel %vm463_vm0, %v525_v10, %v527_v59  ;;  %v456_v43 = vadd.f32 %v452_v23, %v428_v36  ;;  %v508_v48 = vadd.f32 %v1754_v54, %v496_v9 }
 0x11a   :  { %v457_v31 = vadd.f32 %v453_v46, %v429_v52  ;;  %v518_v19 = vmul.f32 %v1679_v5, %v1728_v38  ;;  %v539_v16 = vsel %vm1743_vm3, %v530_v18, 0.0  ;;  %v544_v28 = vmul.f32 %v1748_v55, %v536_v26 }
 0x11b   :  { %v499_v39 = vadd.f32 %v495_v27, %v458_v1  ;;  %v497_v14 = vadd.f32 %v493_v45, %v456_v43  ;;  %v520_v12 = vadd.f32 %v1768_v56, %v508_v48  ;;  %v537_v53 = vsel %vm1788_vm8, %v526_v29, 0.0  ;;  %v1157_v56 = vld [vmem:[%s2074_s3 + $0x8] ss:$0 sm:$0xff] }
 0x11c   :  { %v498_v37 = vadd.f32 %v494_v30, %v457_v31  ;;  %v519_v59 = vmul.f32 %v1679_v5, %v1733_v42  ;;  %v517_v54 = vmul.f32 %v1679_v5, %v1770_v61  ;;  %v538_v38 = vsel %vm1794_vm9, %v528_v49, 0.0 }
 0x11d   :  { %v511_v47 = vadd.f32 %v1757_v58, %v499_v39  ;;  %v556_v11 = vmul.f32 %v1696_v25, %v1777_v4  ;;  %v509_v20 = vadd.f32 %v1760_v60, %v497_v14  ;;  %v548_v17 = vadd.f32 %v544_v28, %v520_v12  ;;  %v1386_v14 = vld [vmem:[%s2078_s7 + $0x8] sm:$0xff]   ;;  %v1387_v12 = vld [vmem:[%s2078_s7] sm:$0xff]  }
 0x11e   :  { %v510_v42 = vadd.f32 %v1751_v44, %v498_v37  ;;  %v545_v40 = vmul.f32 %v1748_v55, %v537_v53  ;;  %v568_v5 = vmul.f32 %v1157_v56, %v1835_v13  ;;  %v547_v15 = vmul.f32 %v1748_v55, %v539_v16  ;;  %v1158_v44 = vld [vmem:[%s2075_s4] ss:$0 sm:$0xff]  ;;  %1312 = vmatprep.subr.bf16.mxu0 %v1386_v14 }
 0x11f   :  { %v523_v61 = vadd.f32 %v519_v59, %v511_v47  ;;  %v521_v58 = vadd.f32 %v517_v54, %v509_v20  ;;  %v560_v34 = vadd.f32 %v556_v11, %v548_v17  ;;  %v546_v4 = vmul.f32 %v1748_v55, %v538_v38  ;;  %1313 = vmatpush3.bf16.msra.mxu0 %v1386_v14  ;;  %v1159_v54 = vld [vmem:[%s2077_s6] ss:$0 sm:$0xff] }
 0x120   :  { %v522_v7 = vadd.f32 %v518_v19, %v510_v42  ;;  %v558_v50 = vmul.f32 %v1696_v25, %v1775_v3  ;;  %v559_v60 = vmul.f32 %v1696_v25, %v1799_v57  ;;  %v557_v13 = vmul.f32 %v1696_v25, %v1813_v41  ;;  %1314 = vmatprep.subr.bf16.mxu0 %v1387_v12 }
 0x121   :  { %v551_v32 = vadd.f32 %v547_v15, %v523_v61  ;;  %v549_v2 = vadd.f32 %v545_v40, %v521_v58  ;;  %v572_v6 = vadd.f32 %v568_v5, %v560_v34  ;;  %v570_v22 = vmul.f32 %v1157_v56, %v1833_v24  ;;  %v1388_v40 = vld [vmem:[%s2080_s9 + $0x38] sm:$0xff]   ;;  %v1389_v61 = vld [vmem:[%s2080_s9 + $0x30] sm:$0xff]   ;;  %v1390_v15 = vld [vmem:[%s2080_s9 + $0x28] sm:$0xff]  }
 0x122   :  { %v550_v35 = vadd.f32 %v546_v4, %v522_v7  ;;  %v571_v55 = vmul.f32 %v1157_v56, %v1841_v63  ;;  %v569_v10 = vmul.f32 %v1157_v56, %v1843_v62  ;;  %v1448_v5 = vmov 0.0   ;;  %v1391_v58 = vld [vmem:[%s2080_s9 + $0x20] sm:$0xff]   ;;  %v1392_v34 = vld [vmem:[%s2080_s9 + $0x18] sm:$0xff]   ;;  %v1393_v7 = vld [vmem:[%s2080_s9 + $0x10] sm:$0xff]  }
 0x123   :  { %v563_v21 = vadd.f32 %v559_v60, %v551_v32  ;;  %v561_v3 = vadd.f32 %v557_v13, %v549_v2  ;;  %v583_v57 = vadd.f32 %v1158_v44, %v572_v6  ;;  %1315 = vmatpush3.bf16.msra.mxu0 %v1387_v12  ;;  %1320 = vmatprep.subr.bf16.mxu1 %v1448_v5  ;;  %v1394_v4 = vld [vmem:[%s2080_s9 + $0x8] sm:$0xff]   ;;  %v1397_v60 = vld [vmem:[%s2081_s10 + $0x30] sm:$0xff]   ;;  %v1399_v13 = vld [vmem:[%s2081_s10 + $0x20] sm:$0xff]   ;;  %vm909_vm0 = vcmask 1041409  }
 0x124   :  { %v562_v1 = vadd.f32 %v558_v50, %v550_v35  ;;  %1340 = vmatprep.subr.bf16.mxu0 %v1448_v5  ;;  %v1396_v50 = vld [vmem:[%s2081_s10 + $0x38] sm:$0xff]   ;;  %v1398_v32 = vld [vmem:[%s2081_s10 + $0x28] sm:$0xff]   ;;  %v1168_v6 = vld [vmem:[%s2079_s8] ss:$0 sm:$0xff] }
 0x125   :  { %v575_v18 = vadd.f32 %v571_v55, %v563_v21  ;;  %v573_v0 = vadd.f32 %v569_v10, %v561_v3  ;;  %v587_v33 = vadd.f32 3.0, %v583_v57  ;;  %v1400_v2 = vld [vmem:[%s2081_s10 + $0x18] sm:$0xff]  }
 0x126   :  { %v574_v36 = vadd.f32 %v570_v22, %v562_v1 }
 0x127   :  { %v586_v52 = vadd.f32 %v1158_v44, %v575_v18  ;;  %v584_v8 = vadd.f32 %v1158_v44, %v573_v0  ;;  %v591_v25 = vmax.f32 %v587_v33, 0.0 }
 0x128   :  { %v585_v41 = vadd.f32 %v1158_v44, %v574_v36  ;;  %v1395_v44 = vld [vmem:[%s2080_s9] sm:$0xff]  }
 0x129   :  { %v590_v51 = vadd.f32 3.0, %v586_v52  ;;  %v588_v23 = vadd.f32 3.0, %v584_v8  ;;  %v595_v46 = vmin.f32 %v591_v25, 6.0 }
 0x12a   :  { %v589_v24 = vadd.f32 3.0, %v585_v41 }
 0x12b   :  { %v594_v9 = vmax.f32 %v590_v51, 0.0  ;;  %v592_v63 = vmax.f32 %v588_v23, 0.0  ;;  %v599_v27 = vmul.f32 %v595_v46, %v583_v57 }
 0x12c   :  { %v593_v26 = vmax.f32 %v589_v24, 0.0 }
 0x12d   :  { %v598_v45 = vmin.f32 %v594_v9, 6.0  ;;  %v596_v62 = vmin.f32 %v592_v63, 6.0  ;;  %v603_v43 = vmul.f32 0.16666667, %v599_v27 }
 0x12e   :  { %v597_v30 = vmin.f32 %v593_v26, 6.0 }
 0x12f   :  { %v602_v29 = vmul.f32 %v598_v45, %v586_v52  ;;  %v600_v31 = vmul.f32 %v596_v62, %v584_v8 }
 0x130   :  { %v601_v49 = vmul.f32 %v597_v30, %v585_v41 }
 0x131   :  { %v604_v48 = vmul.f32 0.16666667, %v600_v31  ;;  %v606_v16 = vmul.f32 0.16666667, %v602_v29 }
 0x132   :  { %v605_v19 = vmul.f32 0.16666667, %v601_v49 }
 0x133   :  { %v607_v28 = vpack.c.bf16 %v604_v48, %v603_v43 }
 0x134   :  { %v608_v39 = vpack.c.bf16 %v606_v16, %v605_v19 }
 0x135   :  { %1296 = vmatprep.mubr.bf16.mxu1 %v607_v28 }
 0x136   :  { %1297 = vmatmul.mubr.bf16.vlgmr.msra.gmra.mxu1 %v608_v39 }
 0x137   :  { %1321 = vmatpush3.bf16.msra.mxu1 %v1388_v40  ;;  %1336 = vmatprep.mubr.msk.bf16.mxu1 %vm1449_vm15, %v1448_v5 }
 0x138   :  { %1322 = vmatprep.subr.bf16.mxu1 %v1448_v5 }
 0x13b   :  { %1323 = vmatpush3.bf16.msra.mxu1 %v1389_v61  ;;  %v1401_v61 = vld [vmem:[%s2081_s10 + $0x10] sm:$0xff]  }
 0x13c   :  { %1324 = vmatprep.subr.bf16.mxu1 %v1448_v5 }
 0x13f   :  { %1325 = vmatpush3.bf16.msra.mxu1 %v1390_v15  ;;  %v1402_v15 = vld [vmem:[%s2081_s10 + $0x8] sm:$0xff]  }
 0x140   :  { %1326 = vmatprep.subr.bf16.mxu1 %v1448_v5 }
 0x143   :  { %1327 = vmatpush3.bf16.msra.mxu1 %v1391_v58  ;;  %v1403_v58 = vld [vmem:[%s2081_s10] sm:$0xff]  }
 0x144   :  { %1328 = vmatprep.subr.bf16.mxu1 %v1448_v5 }
 0x147   :  { %1329 = vmatpush3.bf16.msra.mxu1 %v1392_v34 }
 0x148   :  { %1330 = vmatprep.subr.bf16.mxu1 %v1448_v5 }
 0x14b   :  { %1331 = vmatpush3.bf16.msra.mxu1 %v1393_v7 }
 0x14c   :  { %1332 = vmatprep.subr.bf16.mxu1 %v1448_v5 }
 0x14f   :  { %1333 = vmatpush3.bf16.msra.mxu1 %v1394_v4 }
 0x150   :  { %1334 = vmatprep.subr.bf16.mxu1 %v1448_v5 }
 0x153   :  { %1335 = vmatpush3.bf16.msra.mxu1 %v1395_v44 }
 0x1f6   :  { %v1298_v53 = vpop.f32.mrf.mxu1 }
 0x1f7   :  { %v723_v20 = vadd.f32 %v1298_v53, %v1159_v54 }
 0x1f8   :  { %v714_v37 = vpop.f32.mrf.mxu1 }
 0x1f9   :  { %v715_v11 = vadd.f32 %v1159_v54, %v714_v37 }
 0x1fa   :  { %v1299_v59 = vpop.f32.mrf.mxu1 }
 0x1fb   :  { %v726_v38 = vadd.f32 %v1299_v59, %v1159_v54 }
 0x1fc   :  { %v717_v47 = vpop.f32.mrf.mxu1 }
 0x1fd   :  { %v718_v56 = vadd.f32 %v1159_v54, %v717_v47  ;;  %v730_v42 = vpack.c.bf16 %v726_v38, %v723_v20 }
 0x1ff   :  { %v729_v17 = vpack.c.bf16 %v718_v56, %v715_v11 }
 0x201   :  { %1316 = vmatprep.mubr.bf16.mxu0 %v729_v17 }
 0x202   :  { %1317 = vmatmul.mubr.bf16.vlgmr.msra.gmra.mxu0 %v730_v42 }
 0x203   :  { %1356 = vmatprep.mubr.msk.bf16.mxu0 %vm1449_vm15, %v1448_v5  ;;  %1341 = vmatpush3.bf16.msra.mxu0 %v1396_v50 }
 0x204   :  { %1342 = vmatprep.subr.bf16.mxu0 %v1448_v5 }
 0x207   :  { %1343 = vmatpush3.bf16.msra.mxu0 %v1397_v60 }
 0x208   :  { %1344 = vmatprep.subr.bf16.mxu0 %v1448_v5 }
 0x20b   :  { %1345 = vmatpush3.bf16.msra.mxu0 %v1398_v32 }
 0x20c   :  { %1346 = vmatprep.subr.bf16.mxu0 %v1448_v5 }
 0x20f   :  { %1347 = vmatpush3.bf16.msra.mxu0 %v1399_v13 }
 0x210   :  { %1348 = vmatprep.subr.bf16.mxu0 %v1448_v5 }
 0x213   :  { %1349 = vmatpush3.bf16.msra.mxu0 %v1400_v2 }
 0x214   :  { %1350 = vmatprep.subr.bf16.mxu0 %v1448_v5 }
 0x217   :  { %1351 = vmatpush3.bf16.msra.mxu0 %v1401_v61 }
 0x218   :  { %1352 = vmatprep.subr.bf16.mxu0 %v1448_v5 }
 0x21b   :  { %1353 = vmatpush3.bf16.msra.mxu0 %v1402_v15 }
 0x21c   :  { %1354 = vmatprep.subr.bf16.mxu0 %v1448_v5 }
 0x21f   :  { %1355 = vmatpush3.bf16.msra.mxu0 %v1403_v58 }
 0x2c2   :  { %v1318_v35 = vpop.f32.mrf.mxu0 }
 0x2c3   :  { %v845_v22 = vadd.f32 %v1318_v35, %v1168_v6 }
 0x2c4   :  { %v836_v55 = vpop.f32.mrf.mxu0 }
 0x2c5   :  { %v853_v21 = vadd.f32 3.0, %v845_v22  ;;  %v837_v3 = vadd.f32 %v1168_v6, %v836_v55 }
 0x2c6   :  { %v1319_v10 = vpop.f32.mrf.mxu0 }
 0x2c7   :  { %v857_v57 = vmax.f32 %v853_v21, 0.0  ;;  %v851_v1 = vadd.f32 3.0, %v837_v3  ;;  %v848_v18 = vadd.f32 %v1319_v10, %v1168_v6 }
 0x2c8   :  { %v839_v0 = vpop.f32.mrf.mxu0 }
 0x2c9   :  { %v861_v33 = vmin.f32 %v857_v57, 6.0  ;;  %v855_v36 = vmax.f32 %v851_v1, 0.0  ;;  %v854_v52 = vadd.f32 3.0, %v848_v18  ;;  %v840_v8 = vadd.f32 %v1168_v6, %v839_v0 }
 0x2cb   :  { %v859_v25 = vmin.f32 %v855_v36, 6.0  ;;  %v858_v41 = vmax.f32 %v854_v52, 0.0  ;;  %v852_v51 = vadd.f32 3.0, %v840_v8  ;;  %v865_v23 = vmul.f32 %v861_v33, %v845_v22 }
 0x2cd   :  { %v862_v46 = vmin.f32 %v858_v41, 6.0  ;;  %v856_v24 = vmax.f32 %v852_v51, 0.0  ;;  %v863_v9 = vmul.f32 %v859_v25, %v837_v3  ;;  %v869_v27 = vmul.f32 0.16666667, %v865_v23 }
 0x2cf   :  { %v866_v63 = vmul.f32 %v862_v46, %v848_v18  ;;  %v860_v26 = vmin.f32 %v856_v24, 6.0  ;;  %v867_v30 = vmul.f32 0.16666667, %v863_v9 }
 0x2d1   :  { %v870_v45 = vmul.f32 0.16666667, %v866_v63  ;;  %v864_v62 = vmul.f32 %v860_v26, %v840_v8 }
 0x2d3   :  { %v878_v29 = vadd.f32 %v870_v45, %v869_v27  ;;  %v868_v31 = vmul.f32 0.16666667, %v864_v62 }
 0x2d5   :  { %v879_v49 = vrot.slane %v878_v29, 4  ;;  %v871_v43 = vadd.f32 %v868_v31, %v867_v30 }
 0x2d7   :  { %v880_v48 = vadd.f32 %v879_v49, %v878_v29  ;;  %v872_v19 = vrot.slane %v871_v43, 4 }
 0x2d9   :  { %v881_v16 = vrot.slane %v880_v48, 2  ;;  %v873_v28 = vadd.f32 %v872_v19, %v871_v43 }
 0x2db   :  { %v882_v39 = vadd.f32 %v881_v16, %v880_v48  ;;  %v874_v14 = vrot.slane %v873_v28, 2 }
 0x2dd   :  { %v883_v12 = vrot.slane %v882_v39, 1  ;;  %v875_v53 = vadd.f32 %v874_v14, %v873_v28 }
 0x2df   :  { %v884_v37 = vadd.f32 %v883_v12, %v882_v39  ;;  %v876_v59 = vrot.slane %v875_v53, 1 }
 0x2e1   :  { %v886_v54 = vmul.f32 0.0625, %v884_v37  ;;  %v877_v38 = vadd.f32 %v876_v59, %v875_v53 }
 0x2e3   :  { %v888_v47 = vpack.c.bf16 %v886_v54, %v886_v54  ;;  %v885_v11 = vmul.f32 0.0625, %v877_v38 }
 0x2e5   :  { %v887_v56 = vpack.c.bf16 %v885_v11, %v885_v11  ;;  %v908_v17 = vunpack.c.l.b16 %v888_v47 }
 0x2e7   :  { %v907_v20 = vunpack.c.l.b16 %v887_v56 }
 0x2e9   :  { %v910_v42 = vsel %vm909_vm0, %v908_v17, %v907_v20 }
 0x2ea   :  { %v911_v40 = vpack.c.b16 %v910_v42, %v910_v42 }
 0x2ec   :  { %1337 = vmatmul.mubr.bf16.vlgmr.msra.gmra.mxu1 %v911_v40 }
 0x3ac   :  { %v995_v34 = vpop.f32.mrf.mxu1 }
 0x3ad   :  { %v1001_v7 = vadd.f32 3.0, %v995_v34 }
 0x3ae   :  { %v1338_v4 = vpop.f32.mrf.mxu1 }
 0x3af   :  { %v1002_v50 = vmax.f32 %v1001_v7, 0.0 }
 0x3b0   :  { %v998_v60 = vpop.f32.mrf.mxu1 }
 0x3b1   :  { %v1003_v44 = vmin.f32 %v1002_v50, 6.0 }
 0x3b2   :  { %v1339_v32 = vpop.f32.mrf.mxu1 }
 0x3b3   :  { %v1004_v13 = vmul.f32 %v1003_v44, %v995_v34 }
 0x3b5   :  { %v1005_v2 = vmul.f32 0.16666667, %v1004_v13 }
 0x3b7   :  { %v1006_v6 = vpack.c.bf16 %v1005_v2, %v1005_v2  ;;  %1119 = vst [vmem:[#allocation4] sm:$0x3] %v1005_v2 }
 0x3b9   :  { %1357 = vmatmul.mubr.bf16.vlgmr.msra.gmra.mxu0 %v1006_v6 }
 0x3ba   :  { %1415 = shalt.err (!%p1412_p4)
}
 0x3bb   :  { %1139 = dma.vmem_to_hbm [thread:$0]  %s1137_s25, 32, %s2084_s13, [#allocation5]   ;;  %v1185_v5 = vld [vmem:[%s2082_s11] ss:$0 sm:$0xff] }
 0x3bc   :  { %s1451_s29 = smov [#allocation2]  }
 0x3bd   :  { %s1126_s30 = sshll.u32 %s1451_s29, 4  ;;  %s1127_s30 = int_to_ptr.vmem [resolvable:$true] %s1126_s30 }
 0x3be   :  { %s1424_s2 = scalar_lea.vmem %s1127_s30, 32  ;;  %p1429_p6 = scmp.lt.s32.totalorder %s1127_s30, %s1127_s30 }
 0x3bf   :  { %p1425_p5 = scmp.ne.s32.totalorder %s1127_s30, %s1424_s2  ;;  %p1430_p7 = scmp.lt.s32.totalorder %s1424_s2, %s1424_s2 }
 0x3c1   :  { %p1431_p8 = por %p1430_p7, %p1429_p6 }
 0x3c3   :  { %p1432_p9 = pnand %p1431_p8, %p1425_p5 }
 0x479   :  { %v1112_v35 = vpop.f32.mrf.mxu0 }
 0x47a   :  { %v1113_v22 = vadd.f32 %v1185_v5, %v1112_v35 }
 0x47b   :  { %v1358_v55 = vpop.f32.mrf.mxu0 }
 0x47c   :  { %1118 = vst [vmem:[#allocation2] sm:$0x3] %v1113_v22 }
 0x47d   :  { %v1115_v21 = vpop.f32.mrf.mxu0 }
 0x47e   :  { %1435 = shalt.err (!%p1432_p9)
}
 0x47f   :  { %1129 = dma.vmem_to_hbm [thread:$0]  %s1127_s30, 32, %s2083_s12, [#allocation3]   ;;  %v1359_v3 = vpop.f32.mrf.mxu0 }
 0x480   :  { %1444 = dma.done.wait [#allocation3], 32  }
 0x481   :  { %1445 = vsyncadd [#allocation3], 4294967264 }
 0x482   :  { %1446 = dma.done.wait [#allocation5], 32  }
 0x483   :  { %1447 = vsyncadd [#allocation5], 4294967264 }
 0x484   :  { %1146 = vsyncpa [#allocation3], 1 }
 0x485   :  { %1147 = vsyncpa [#allocation5], 1 }

// kernel: ofanet_forward.4
= control target key start
LH: loop header
LB: loop body
LE: loop exit
PB: predicated region body
PF: predicated region fallthrough
CT: control target
= control target key end

     0   :  { %v965_v48 = vlaneseq  ;;  %vm1284_vm2 = vcmask 1040384   ;;  %vm2293_vm12 = vcmask 1046528   ;;  %s10560_s1 = inlined_call_operand.vmem [shape: bf16[128,128], index: 1, kind: input, shape index: {}]   ;;  %s10561_s0 = inlined_call_operand.vmem [shape: bf16[512,128], index: 0, kind: input, shape index: {}]   ;;  %s10562_s5 = inlined_call_operand.vmem [shape: bf16[128,128], index: 5, kind: input, shape index: {}]   ;;  %s10563_s3 = inlined_call_operand.vmem [shape: f32[9,128], index: 3, kind: input, shape index: {}]   ;;  %s10564_s2 = inlined_call_operand.vmem [shape: f32[1,128], index: 2, kind: input, shape index: {}]   ;;  %s10565_s4 = inlined_call_operand.vmem [shape: f32[1,128], index: 4, kind: input, shape index: {}]   ;;  %s10566_s6 = inlined_call_operand.vmem [shape: f32[1,128], index: 6, kind: input, shape index: {}]   ;;  %s10567_s7 = inlined_call_operand.vmem [shape: f32[512,128], index: 7, kind: output, shape index: {}]  }
   0x1   :  { %v5819_v0 = vld [vmem:[%s10560_s1 + $0x38] sm:$0xff]   ;;  %v5820_v1 = vld [vmem:[%s10560_s1 + $0x30] sm:$0xff]   ;;  %v5821_v2 = vld [vmem:[%s10560_s1 + $0x28] sm:$0xff]  }
   0x2   :  { %5659 = vmatprep.subr.bf16.mxu0 %v5819_v0  ;;  %v5822_v3 = vld [vmem:[%s10560_s1 + $0x20] sm:$0xff]   ;;  %v5823_v5 = vld [vmem:[%s10560_s1 + $0x18] sm:$0xff]   ;;  %v5824_v6 = vld [vmem:[%s10560_s1 + $0x10] sm:$0xff]   ;;  %v6062_v49 = vshrl.u32 %v965_v48, 7 }
   0x3   :  { %5660 = vmatpush3.bf16.msra.mxu0 %v5819_v0  ;;  %v5827_v4 = vld [vmem:[%s10561_s0] sm:$0xff]   ;;  %v5825_v7 = vld [vmem:[%s10560_s1 + $0x8] sm:$0xff]   ;;  %v5829_v10 = vld [vmem:[%s10561_s0 + $0x10] sm:$0xff]  }
   0x4   :  { %5661 = vmatprep.subr.bf16.mxu0 %v5820_v1  ;;  %5675 = vmatprep.mubr.bf16.mxu0 %v5827_v4  ;;  %v5826_v8 = vld [vmem:[%s10560_s1] sm:$0xff]   ;;  %v5828_v9 = vld [vmem:[%s10561_s0 + $0x8] sm:$0xff]   ;;  %v5830_v11 = vld [vmem:[%s10561_s0 + $0x18] sm:$0xff]   ;;  %10740 = vst [vmem:[#allocation2_spill] sm:$0xff] %v6062_v49  ;;  %v6065_v50 = vadd.s32 16, %v6062_v49  ;;  %v2164_v51 = vsub.s32 1, %v6062_v49 }
   0x5   :  { %v5831_v12 = vld [vmem:[%s10561_s0 + $0x20] sm:$0xff]   ;;  %v5832_v13 = vld [vmem:[%s10561_s0 + $0x28] sm:$0xff]   ;;  %v5833_v14 = vld [vmem:[%s10561_s0 + $0x30] sm:$0xff]   ;;  %v6069_v52 = vadd.s32 32, %v6062_v49  ;;  %v1848_v53 = vsub.s32 0, %v6062_v49  ;;  %v6076_v55 = vadd.s32 24, %v6062_v49 }
   0x6   :  { %v5834_v15 = vld [vmem:[%s10561_s0 + $0x38] sm:$0xff]   ;;  %v5835_v16 = vld [vmem:[%s10561_s0 + $0x40] sm:$0xff]   ;;  %v5836_v17 = vld [vmem:[%s10561_s0 + $0x48] sm:$0xff]   ;;  %v1096_v56 = vshra.s32 %v6065_v50, 4  ;;  %v1094_v57 = vshra.s32 %v6062_v49, 4  ;;  %v2801_v61 = vsub.s32 2, %v6062_v49 }
   0x7   :  { %5662 = vmatpush3.bf16.msra.mxu0 %v5820_v1  ;;  %v5837_v18 = vld [vmem:[%s10561_s0 + $0x50] sm:$0xff]   ;;  %v5838_v19 = vld [vmem:[%s10561_s0 + $0x58] sm:$0xff]   ;;  %v5839_v20 = vld [vmem:[%s10561_s0 + $0x60] sm:$0xff]   ;;  %v1098_v59 = vshra.s32 %v6069_v52, 4  ;;  %v1097_v62 = vshra.s32 %v6076_v55, 4  ;;  %v6088_v63 = vadd.s32 8, %v6062_v49 }
   0x8   :  { %5663 = vmatprep.subr.bf16.mxu0 %v5821_v2  ;;  %v5840_v21 = vld [vmem:[%s10561_s0 + $0x68] sm:$0xff]   ;;  %v5841_v22 = vld [vmem:[%s10561_s0 + $0x70] sm:$0xff]   ;;  %v5842_v23 = vld [vmem:[%s10561_s0 + $0x78] sm:$0xff]   ;;  %v6091_v0 = vadd.s32 40, %v6062_v49  ;;  %v6093_v1 = vand.u32 15, %v1096_v56 }
   0x9   :  { %v5843_v24 = vld [vmem:[%s10561_s0 + $0x80] sm:$0xff]   ;;  %v5844_v25 = vld [vmem:[%s10561_s0 + $0x88] sm:$0xff]   ;;  %v5845_v26 = vld [vmem:[%s10561_s0 + $0x90] sm:$0xff]  }
   0xa   :  { %v5846_v27 = vld [vmem:[%s10561_s0 + $0x98] sm:$0xff]   ;;  %v5847_v28 = vld [vmem:[%s10561_s0 + $0xa0] sm:$0xff]   ;;  %v5848_v29 = vld [vmem:[%s10561_s0 + $0xa8] sm:$0xff]   ;;  %vm1472_vm1 = vcmp.ge.s32.totalorder %v6093_v1, 1 }
   0xb   :  { %5664 = vmatpush3.bf16.msra.mxu0 %v5821_v2  ;;  %v5849_v30 = vld [vmem:[%s10561_s0 + $0xb0] sm:$0xff]   ;;  %v5859_v31 = vld [vmem:[%s10562_s5 + $0x38] sm:$0xff]   ;;  %v5851_v34 = vld [vmem:[%s10561_s0 + $0xc0] sm:$0xff]   ;;  %v6095_v2 = vand.u32 15, %v1094_v57 }
   0xc   :  { %5665 = vmatprep.subr.bf16.mxu0 %v5822_v3  ;;  %5739 = vmatprep.subr.bf16.mxu1 %v5859_v31  ;;  %v5860_v32 = vld [vmem:[%s10562_s5 + $0x30] sm:$0xff]   ;;  %v5850_v33 = vld [vmem:[%s10561_s0 + $0xb8] sm:$0xff]   ;;  %v5861_v35 = vld [vmem:[%s10562_s5 + $0x28] sm:$0xff]  }
   0xd   :  { %5740 = vmatpush3.bf16.msra.mxu1 %v5859_v31  ;;  %v5862_v36 = vld [vmem:[%s10562_s5 + $0x20] sm:$0xff]   ;;  %v5852_v37 = vld [vmem:[%s10561_s0 + $0xc8] sm:$0xff]   ;;  %v5853_v38 = vld [vmem:[%s10561_s0 + $0xd0] sm:$0xff]  }
   0xe   :  { %5741 = vmatprep.subr.bf16.mxu1 %v5860_v32  ;;  %v5863_v39 = vld [vmem:[%s10562_s5 + $0x18] sm:$0xff]   ;;  %v5864_v40 = vld [vmem:[%s10562_s5 + $0x10] sm:$0xff]   ;;  %v5855_v42 = vld [vmem:[%s10561_s0 + $0xe0] sm:$0xff]  }
   0xf   :  { %5666 = vmatpush3.bf16.msra.mxu0 %v5822_v3  ;;  %v5854_v41 = vld [vmem:[%s10561_s0 + $0xd8] sm:$0xff]   ;;  %v5865_v43 = vld [vmem:[%s10562_s5 + $0x8] sm:$0xff]   ;;  %v5857_v45 = vld [vmem:[%s10561_s0 + $0xf0] sm:$0xff]   ;;  %v6097_v3 = vand.u32 15, %v1098_v59 }
  0x10   :  { %5667 = vmatprep.subr.bf16.mxu0 %v5823_v5  ;;  %v5856_v44 = vld [vmem:[%s10561_s0 + $0xe8] sm:$0xff]   ;;  %v5858_v46 = vld [vmem:[%s10561_s0 + $0xf8] sm:$0xff]   ;;  %v5866_v47 = vld [vmem:[%s10562_s5] sm:$0xff]  }
  0x11   :  { %5742 = vmatpush3.bf16.msra.mxu1 %v5860_v32  ;;  %v963_v54 = vld [vmem:[%s10563_s3] sm:$0xff]  ;;  %v6144_v32 = vadd.s32 80, %v6062_v49  ;;  %vm1474_vm0 = vcmp.ge.s32.totalorder %v6097_v3, 1 }
  0x12   :  { %5743 = vmatprep.subr.bf16.mxu1 %v5861_v35  ;;  %v6080_v58 = vrot.slane %v963_v54, %v2164_v51  ;;  %v6083_v60 = vrot.slane %v963_v54, %v1848_v53 }
  0x13   :  { %5668 = vmatpush3.bf16.msra.mxu0 %v5823_v5  ;;  %10745 = vst [vmem:[#allocation7_spill] sm:$0xff] %v6144_v32  ;;  %v1104_v53 = vshra.s32 %v6144_v32, 4 }
  0x14   :  { %5669 = vmatprep.subr.bf16.mxu0 %v5824_v6  ;;  %v1850_v4 = vmul.f32 0.0, %v6083_v60  ;;  %v2166_v5 = vmul.f32 0.0, %v6080_v58 }
  0x15   :  { %5744 = vmatpush3.bf16.msra.mxu1 %v5861_v35 }
  0x16   :  { %5745 = vmatprep.subr.bf16.mxu1 %v5862_v36 }
  0x17   :  { %5670 = vmatpush3.bf16.msra.mxu0 %v5824_v6  ;;  %v6101_v6 = vrot.slane %v963_v54, %v2801_v61 }
  0x18   :  { %5671 = vmatprep.subr.bf16.mxu0 %v5825_v7 }
  0x19   :  { %5746 = vmatpush3.bf16.msra.mxu1 %v5862_v36 }
  0x1a   :  { %5747 = vmatprep.subr.bf16.mxu1 %v5863_v39 }
  0x1b   :  { %5672 = vmatpush3.bf16.msra.mxu0 %v5825_v7  ;;  %v6103_v7 = vand.u32 15, %v1097_v62 }
  0x1c   :  { %5673 = vmatprep.subr.bf16.mxu0 %v5826_v8 }
  0x1d   :  { %5748 = vmatpush3.bf16.msra.mxu1 %v5863_v39  ;;  %vm1473_vm3 = vcmp.ge.s32.totalorder %v6103_v7, 1 }
  0x1e   :  { %5749 = vmatprep.subr.bf16.mxu1 %v5864_v40 }
  0x1f   :  { %5674 = vmatpush3.bf16.msra.mxu0 %v5826_v8 }
  0x21   :  { %5750 = vmatpush3.bf16.msra.mxu1 %v5864_v40 }
  0x22   :  { %5676 = vmatmul.mubr.bf16.vlgmr.msra.gmra.mxu0 %v5828_v9  ;;  %5751 = vmatprep.subr.bf16.mxu1 %v5865_v43  ;;  %v1095_v9 = vshra.s32 %v6088_v63, 4 }
  0x23   :  { %5679 = vmatprep.mubr.bf16.mxu0 %v5829_v10  ;;  %v1099_v10 = vshra.s32 %v6091_v0, 4 }
  0x25   :  { %5752 = vmatpush3.bf16.msra.mxu1 %v5865_v43 }
  0x26   :  { %5753 = vmatprep.subr.bf16.mxu1 %v5866_v47 }
  0x29   :  { %5754 = vmatpush3.bf16.msra.mxu1 %v5866_v47 }
  0x2a   :  { %5680 = vmatmul.mubr.bf16.gmra.mxu0 %v5830_v11 }
  0x2b   :  { %5683 = vmatprep.mubr.bf16.mxu0 %v5831_v12 }
  0x32   :  { %5684 = vmatmul.mubr.bf16.gmra.mxu0 %v5832_v13 }
  0x33   :  { %5687 = vmatprep.mubr.bf16.mxu0 %v5833_v14  ;;  %v6112_v14 = vadd.s32 48, %v6062_v49 }
  0x35   :  { %10741 = vst [vmem:[#allocation3_spill] sm:$0xff] %v6112_v14  ;;  %v1100_v31 = vshra.s32 %v6112_v14, 4 }
  0x37   :  { %v6170_v51 = vand.u32 15, %v1100_v31  ;;  %v6188_v31 = vadd.s32 96, %v6062_v49 }
  0x39   :  { %10747 = vst [vmem:[#allocation9_spill] sm:$0xff] %v6170_v51  ;;  %10752 = vst [vmem:[#allocation14_spill] sm:$0xff] %v6188_v31 }
  0x3a   :  { %5688 = vmatmul.mubr.bf16.gmra.mxu0 %v5834_v15 }
  0x3b   :  { %5691 = vmatprep.mubr.bf16.mxu0 %v5835_v16  ;;  %v3132_v16 = vsub.s32 3, %v6062_v49 }
  0x42   :  { %5692 = vmatmul.mubr.bf16.gmra.mxu0 %v5836_v17  ;;  %v3264_v17 = vsub.s32 4, %v6062_v49 }
  0x43   :  { %5695 = vmatprep.mubr.bf16.mxu0 %v5837_v18  ;;  %v6118_v18 = vadd.s32 56, %v6062_v49 }
  0x44   :  { %v6149_v35 = vrot.slane %v963_v54, %v3264_v17 }
  0x45   :  { %10742 = vst [vmem:[#allocation4_spill] sm:$0xff] %v6118_v18  ;;  %v1101_v36 = vshra.s32 %v6118_v18, 4 }
  0x47   :  { %v6174_v61 = vand.u32 15, %v1101_v36 }
  0x49   :  { %10748 = vst [vmem:[#allocation10_spill] sm:$0xff] %v6174_v61 }
  0x4a   :  { %5696 = vmatmul.mubr.bf16.gmra.mxu0 %v5838_v19  ;;  %v6123_v19 = vld [vmem:[%s10564_s2] ss:$0 sm:$0xff] }
  0x4b   :  { %5699 = vmatprep.mubr.bf16.mxu0 %v5839_v20  ;;  %v6125_v20 = vadd.f32 %v2166_v5, %v1850_v4 }
  0x52   :  { %5700 = vmatmul.mubr.bf16.gmra.mxu0 %v5840_v21  ;;  %v2803_v21 = vmul.f32 0.0, %v6101_v6 }
  0x53   :  { %5703 = vmatprep.mubr.bf16.mxu0 %v5841_v22  ;;  %v6129_v22 = vadd.s32 64, %v6062_v49 }
  0x55   :  { %10743 = vst [vmem:[#allocation5_spill] sm:$0xff] %v6129_v22  ;;  %v1102_v39 = vshra.s32 %v6129_v22, 4 }
  0x57   :  { %v6177_v5 = vand.u32 15, %v1102_v39 }
  0x59   :  { %10749 = vst [vmem:[#allocation11_spill] sm:$0xff] %v6177_v5 }
  0x5a   :  { %5704 = vmatmul.mubr.bf16.gmra.mxu0 %v5842_v23  ;;  %v6132_v23 = vadd.s32 72, %v6062_v49 }
  0x5b   :  { %5707 = vmatprep.mubr.bf16.mxu0 %v5843_v24  ;;  %v6134_v24 = vand.u32 15, %v1095_v9 }
  0x5c   :  { %10744 = vst [vmem:[#allocation6_spill] sm:$0xff] %v6132_v23  ;;  %v1103_v40 = vshra.s32 %v6132_v23, 4 }
  0x5d   :  { %vm1471_vm8 = vcmp.ge.s32.totalorder %v6134_v24, 1 }
  0x5e   :  { %v6179_v9 = vand.u32 15, %v1103_v40 }
  0x60   :  { %10750 = vst [vmem:[#allocation12_spill] sm:$0xff] %v6179_v9 }
  0x62   :  { %5708 = vmatmul.mubr.bf16.gmra.mxu0 %v5844_v25  ;;  %v6136_v25 = vand.u32 15, %v1099_v10 }
  0x63   :  { %5711 = vmatprep.mubr.bf16.mxu0 %v5845_v26  ;;  %v3593_v26 = vsub.s32 5, %v6062_v49 }
  0x64   :  { %vm1475_vm6 = vcmp.ge.s32.totalorder %v6136_v25, 1 }
  0x6a   :  { %5712 = vmatmul.mubr.bf16.gmra.mxu0 %v5846_v27  ;;  %v4360_v27 = vsub.s32 7, %v6062_v49 }
  0x6b   :  { %5715 = vmatprep.mubr.bf16.mxu0 %v5847_v28 }
  0x72   :  { %5716 = vmatmul.mubr.bf16.gmra.mxu0 %v5848_v29 }
  0x73   :  { %5719 = vmatprep.mubr.bf16.mxu0 %v5849_v30  ;;  %v4042_v30 = vsub.s32 6, %v6062_v49 }
  0x75   :  { %v6167_v47 = vrot.slane %v963_v54, %v4042_v30  ;;  %v6185_v30 = vand.u32 15, %v1104_v53 }
  0x77   :  { %10751 = vst [vmem:[#allocation13_spill] sm:$0xff] %v6185_v30 }
  0x7a   :  { %5720 = vmatmul.mubr.bf16.gmra.mxu0 %v5850_v33 }
  0x7b   :  { %5723 = vmatprep.mubr.bf16.mxu0 %v5851_v34  ;;  %v6147_v34 = vrot.slane %v963_v54, %v3132_v16 }
  0x82   :  { %5724 = vmatmul.mubr.bf16.gmra.mxu0 %v5852_v37 }
  0x83   :  { %5727 = vmatprep.mubr.bf16.mxu0 %v5853_v38  ;;  %v6153_v38 = vadd.f32 %v2803_v21, %v6125_v20 }
  0x8a   :  { %5728 = vmatmul.mubr.bf16.gmra.mxu0 %v5854_v41  ;;  %v6158_v41 = vadd.s32 88, %v6062_v49 }
  0x8b   :  { %5731 = vmatprep.mubr.bf16.mxu0 %v5855_v42 }
  0x8c   :  { %10746 = vst [vmem:[#allocation8_spill] sm:$0xff] %v6158_v41 }
  0x92   :  { %5732 = vmatmul.mubr.bf16.gmra.mxu0 %v5856_v44  ;;  %v6162_v44 = vrot.slane %v963_v54, %v3593_v26 }
  0x93   :  { %5735 = vmatprep.mubr.bf16.mxu0 %v5857_v45  ;;  %v6164_v45 = vrot.slane %v963_v54, %v4360_v27  ;;  %v1105_v54 = vshra.s32 %v6158_v41, 4 }
  0x9a   :  { %5736 = vmatmul.mubr.bf16.gmra.mxu0 %v5858_v46 }
  0xe2   :  { %v5677_v28 = vpop.f32.mrf.mxu0 }
  0xe3   :  { %v397_v33 = vadd.f32 %v5677_v28, %v6123_v19 }
  0xe4   :  { %v388_v37 = vpop.f32.mrf.mxu0 }
  0xe5   :  { %v645_v42 = vadd.f32 3.0, %v397_v33  ;;  %v389_v43 = vadd.f32 %v6123_v19, %v388_v37 }
  0xe6   :  { %v5678_v46 = vpop.f32.mrf.mxu0 }
  0xe7   :  { %v709_v56 = vmax.f32 %v645_v42, 0.0  ;;  %v643_v57 = vadd.f32 3.0, %v389_v43  ;;  %v400_v59 = vadd.f32 %v5678_v46, %v6123_v19 }
  0xe8   :  { %v391_v62 = vpop.f32.mrf.mxu0 }
  0xe9   :  { %v773_v10 = vmin.f32 %v709_v56, 6.0  ;;  %v707_v16 = vmax.f32 %v643_v57, 0.0  ;;  %v646_v17 = vadd.f32 3.0, %v400_v59  ;;  %v392_v21 = vadd.f32 %v6123_v19, %v391_v62 }
  0xea   :  { %v5681_v26 = vpop.f32.mrf.mxu0  ;;  %v6194_v62 = vand.u32 15, %v1105_v54 }
  0xeb   :  { %v837_v36 = vmul.f32 %v773_v10, %v397_v33  ;;  %v771_v37 = vmin.f32 %v707_v16, 6.0  ;;  %v710_v39 = vmax.f32 %v646_v17, 0.0  ;;  %v644_v40 = vadd.f32 3.0, %v392_v21 }
  0xec   :  { %v413_v42 = vadd.f32 %v5681_v26, %v6123_v19  ;;  %v404_v46 = vpop.f32.mrf.mxu0  ;;  %10753 = vst [vmem:[#allocation15_spill] sm:$0xff] %v6194_v62  ;;  %v6200_v17 = vadd.s32 104, %v6062_v49 }
  0xed   :  { %v6196_v53 = vmul.f32 0.16666667, %v837_v36  ;;  %v835_v28 = vmul.f32 %v771_v37, %v389_v43  ;;  %v774_v27 = vmin.f32 %v710_v39, 6.0  ;;  %v708_v4 = vmax.f32 %v644_v40, 0.0 }
  0xee   :  { %v649_v33 = vadd.f32 3.0, %v413_v42  ;;  %v405_v10 = vadd.f32 %v6123_v19, %v404_v46  ;;  %v5682_v16 = vpop.f32.mrf.mxu0  ;;  %10755 = vst [vmem:[#allocation17_spill] sm:$0xff] %v6200_v17 }
  0xef   :  { %10754 = vst [vmem:[#allocation16_spill] sm:$0xff] %v6196_v53  ;;  %v6203_v48 = vmul.f32 0.16666667, %v835_v28  ;;  %v838_v56 = vmul.f32 %v774_v27, %v400_v59  ;;  %v772_v57 = vmin.f32 %v708_v4, 6.0  ;;  %v416_v54 = vadd.f32 %v5682_v16, %v6123_v19 }
  0xf0   :  { %v713_v36 = vmax.f32 %v649_v33, 0.0  ;;  %v647_v8 = vadd.f32 3.0, %v405_v10  ;;  %v407_v43 = vpop.f32.mrf.mxu0  ;;  %v6210_v39 = vsel %vm1474_vm0, %v6196_v53, 0.0 }
  0xf1   :  { %10756 = vst [vmem:[#allocation18_spill] sm:$0xff] %v6203_v48  ;;  %v1285_v40 = vrot.slane %v6203_v48, 7  ;;  %v2100_v28 = vsel %vm1472_vm1, %v6203_v48, 0.0  ;;  %v6217_v4 = vmul.f32 0.16666667, %v838_v56  ;;  %v836_v46 = vmul.f32 %v772_v57, %v392_v21 }
  0xf2   :  { %v6220_v27 = vmul.f32 %v6080_v58, %v2100_v28  ;;  %v777_v33 = vmin.f32 %v713_v36, 6.0  ;;  %v711_v16 = vmax.f32 %v647_v8, 0.0  ;;  %v5685_v26 = vpop.f32.mrf.mxu0  ;;  %v650_v29 = vadd.f32 3.0, %v416_v54 }
  0xf3   :  { %10757 = vst [vmem:[#allocation19_spill] sm:$0xff] %v6217_v4  ;;  %v408_v13 = vadd.f32 %v6123_v19, %v407_v43  ;;  %v429_v11 = vadd.f32 %v5685_v26, %v6123_v19  ;;  %v6225_v15 = vmul.f32 0.16666667, %v836_v46  ;;  %v6228_v17 = vsel %vm1284_vm2, 0.0, %v1285_v40 }
  0xf4   :  { %v841_v12 = vmul.f32 %v777_v33, %v413_v42  ;;  %v775_v59 = vmin.f32 %v711_v16, 6.0  ;;  %v420_v56 = vpop.f32.mrf.mxu0  ;;  %v714_v28 = vmax.f32 %v650_v29, 0.0 }
  0xf5   :  { %10758 = vst [vmem:[#allocation20_spill] sm:$0xff] %v6225_v15  ;;  %v648_v21 = vadd.f32 3.0, %v408_v13  ;;  %v653_v57 = vadd.f32 3.0, %v429_v11  ;;  %v421_v8 = vadd.f32 %v6123_v19, %v420_v56  ;;  %v1286_v36 = vrot.slane %v6225_v15, 7 }
  0xf6   :  { %v2101_v26 = vsel %vm1473_vm3, %v6225_v15, 0.0  ;;  %v6236_v46 = vmul.f32 0.16666667, %v841_v12  ;;  %v5686_v42 = vpop.f32.mrf.mxu0  ;;  %v839_v16 = vmul.f32 %v775_v59, %v405_v10  ;;  %v778_v29 = vmin.f32 %v714_v28, 6.0 }
  0xf7   :  { %v6239_v33 = vmul.f32 %v6080_v58, %v2101_v26  ;;  %v712_v37 = vmax.f32 %v648_v21, 0.0  ;;  %v717_v56 = vmax.f32 %v653_v57, 0.0  ;;  %v651_v41 = vadd.f32 3.0, %v421_v8 }
  0xf8   :  { %10759 = vst [vmem:[#allocation21_spill] sm:$0xff] %v6236_v46  ;;  %v432_v62 = vadd.f32 %v5686_v42, %v6123_v19  ;;  %v423_v30 = vpop.f32.mrf.mxu0  ;;  %v6243_v32 = vmul.f32 0.16666667, %v839_v16  ;;  %v842_v23 = vmul.f32 %v778_v29, %v416_v54  ;;  %v6247_v10 = vsel %vm1284_vm2, %v1285_v40, %v1286_v36 }
  0xf9   :  { %v776_v43 = vmin.f32 %v712_v37, 6.0  ;;  %v424_v12 = vadd.f32 %v6123_v19, %v423_v30  ;;  %v781_v9 = vmin.f32 %v717_v56, 6.0  ;;  %v715_v5 = vmax.f32 %v651_v41, 0.0 }
  0xfa   :  { %10760 = vst [vmem:[#allocation22_spill] sm:$0xff] %v6243_v32  ;;  %v654_v26 = vadd.f32 3.0, %v432_v62  ;;  %v5689_v22 = vpop.f32.mrf.mxu0  ;;  %v6250_v28 = vmul.f32 0.16666667, %v842_v23  ;;  %v10762_v30 = vand.u32 15, %v6065_v50 }
  0xfb   :  { %v840_v21 = vmul.f32 %v776_v43, %v408_v13  ;;  %v652_v57 = vadd.f32 3.0, %v424_v12  ;;  %v845_v42 = vmul.f32 %v781_v9, %v429_v11  ;;  %v779_v16 = vmin.f32 %v715_v5, 6.0 }
  0xfc   :  { %10761 = vst [vmem:[#allocation23_spill] sm:$0xff] %v6250_v28  ;;  %v718_v31 = vmax.f32 %v654_v26, 0.0  ;;  %v445_v54 = vadd.f32 %v5689_v22, %v6123_v19  ;;  %v436_v37 = vpop.f32.mrf.mxu0  ;;  %vm6255_vm4 = vcmp.ge.s32.totalorder %v10762_v30, 1 }
  0xfd   :  { %v6260_v29 = vmul.f32 0.16666667, %v840_v21  ;;  %v716_v23 = vmax.f32 %v652_v57, 0.0  ;;  %v437_v13 = vadd.f32 %v6123_v19, %v436_v37  ;;  %v6263_v43 = vmul.f32 0.16666667, %v845_v42  ;;  %vm6315_vm7 = vmand %vm1472_vm1, %vm6255_vm4 }
  0xfe   :  { %v843_v11 = vmul.f32 %v779_v16, %v421_v8  ;;  %v782_v5 = vmin.f32 %v718_v31, 6.0  ;;  %v657_v9 = vadd.f32 3.0, %v445_v54  ;;  %v5690_v22 = vpop.f32.mrf.mxu0  ;;  %v10768_v42 = vand.u32 15, %v6069_v52 }
  0xff   :  { %10765 = vst [vmem:[#allocation24_spill] sm:$0xff] %v6260_v29  ;;  %10766 = vst [vmem:[#allocation25_spill] sm:$0xff] %v6263_v43  ;;  %v780_v50 = vmin.f32 %v716_v23, 6.0  ;;  %v655_v26 = vadd.f32 3.0, %v437_v13  ;;  %v448_v30 = vadd.f32 %v5690_v22, %v6123_v19 }
 0x100   :  { %v6268_v40 = vmul.f32 0.16666667, %v843_v11  ;;  %v846_v21 = vmul.f32 %v782_v5, %v432_v62  ;;  %v721_v57 = vmax.f32 %v657_v9, 0.0  ;;  %v439_v18 = vpop.f32.mrf.mxu0  ;;  %vm6272_vm5 = vcmp.ge.s32.totalorder %v10768_v42, 1 }
 0x101   :  { %v844_v31 = vmul.f32 %v780_v50, %v424_v12  ;;  %v719_v16 = vmax.f32 %v655_v26, 0.0  ;;  %v658_v37 = vadd.f32 3.0, %v448_v30  ;;  %v440_v23 = vadd.f32 %v6123_v19, %v439_v18  ;;  %vm6349_vm10 = vmand %vm1474_vm0, %vm6272_vm5 }
 0x102   :  { %10767 = vst [vmem:[#allocation26_spill] sm:$0xff] %v6268_v40  ;;  %v6278_v56 = vmul.f32 0.16666667, %v846_v21  ;;  %v785_v11 = vmin.f32 %v721_v57, 6.0  ;;  %v5693_v59 = vpop.f32.mrf.mxu0  ;;  %v10772_v62 = vrot.slane %v6196_v53, 7  ;;  %v10774_v21 = vrot.slane %v6217_v4, 7 }
 0x103   :  { %v6285_v52 = vmul.f32 0.16666667, %v844_v31  ;;  %v783_v9 = vmin.f32 %v719_v16, 6.0  ;;  %v722_v42 = vmax.f32 %v658_v37, 0.0  ;;  %v656_v12 = vadd.f32 3.0, %v440_v23 }
 0x104   :  { %10771 = vst [vmem:[#allocation27_spill] sm:$0xff] %v6278_v56  ;;  %v6283_v5 = vsel %vm1284_vm2, %v1286_v36, %v10772_v62  ;;  %v849_v26 = vmul.f32 %v785_v11, %v445_v54  ;;  %v461_v18 = vadd.f32 %v5693_v59, %v6123_v19  ;;  %v452_v22 = vpop.f32.mrf.mxu0  ;;  %v10775_v57 = vmov %v10772_v62 }
 0x105   :  { %10773 = vst [vmem:[#allocation28_spill] sm:$0xff] %v6285_v52  ;;  %v6294_v43 = vsel %vm1284_vm2, %v10775_v57, %v10774_v21  ;;  %v847_v31 = vmul.f32 %v783_v9, %v437_v13  ;;  %v786_v62 = vmin.f32 %v722_v42, 6.0  ;;  %v720_v16 = vmax.f32 %v656_v12, 0.0 }
 0x106   :  { %v6297_v37 = vmul.f32 0.16666667, %v849_v26  ;;  %v661_v61 = vadd.f32 3.0, %v461_v18  ;;  %v453_v54 = vadd.f32 %v6123_v19, %v452_v22  ;;  %v5694_v11 = vpop.f32.mrf.mxu0  ;;  %v10777_v59 = vrot.slane %v6243_v32, 7 }
 0x107   :  { %v10778_v50 = vmov %v10774_v21  ;;  %v6308_v21 = vmul.f32 0.16666667, %v847_v31  ;;  %v850_v13 = vmul.f32 %v786_v62, %v448_v30  ;;  %v784_v9 = vmin.f32 %v720_v16, 6.0 }
 0x108   :  { %10776 = vst [vmem:[#allocation29_spill] sm:$0xff] %v6297_v37  ;;  %v6305_v56 = vsel %vm1284_vm2, %v10778_v50, %v10777_v59  ;;  %v464_v42 = vadd.f32 %v5694_v11, %v6123_v19  ;;  %v725_v50 = vmax.f32 %v661_v61, 0.0  ;;  %v659_v26 = vadd.f32 3.0, %v453_v54  ;;  %v455_v57 = vpop.f32.mrf.mxu0 }
 0x109   :  { %10779 = vst [vmem:[#allocation30_spill] sm:$0xff] %v6308_v21  ;;  %v10782_v31 = vrot.slane %v6260_v29, 7  ;;  %v10783_v30 = vmov %v10777_v59  ;;  %v6328_v11 = vmul.f32 0.16666667, %v850_v13  ;;  %v848_v59 = vmul.f32 %v784_v9, %v440_v23 }
 0x10a   :  { %v662_v36 = vadd.f32 3.0, %v464_v42  ;;  %v789_v52 = vmin.f32 %v725_v50, 6.0  ;;  %v723_v51 = vmax.f32 %v659_v26, 0.0  ;;  %v456_v12 = vadd.f32 %v6123_v19, %v455_v57  ;;  %v5697_v61 = vpop.f32.mrf.mxu0 }
 0x10b   :  { %v6325_v62 = vsel %vm1284_vm2, %v10783_v30, %v10782_v31  ;;  %10784 = vst [vmem:[#allocation31_spill] sm:$0xff] %v6328_v11  ;;  %v1784_v37 = vsel %vm6315_vm7, %v6228_v17, 0.0  ;;  %v10785_v31 = vand.u32 15, %v6088_v63  ;;  %v6342_v13 = vmul.f32 0.16666667, %v848_v59 }
 0x10c   :  { %v726_v9 = vmax.f32 %v662_v36, 0.0  ;;  %v477_v50 = vadd.f32 %v5697_v61, %v6123_v19  ;;  %v10791_v63 = vand.u32 15, %v6076_v55  ;;  %v853_v57 = vmul.f32 %v789_v52, %v461_v18  ;;  %v468_v36 = vpop.f32.mrf.mxu0 }
 0x10d   :  { %vm6337_vm9 = vcmp.le.s32.totalorder %v10785_v31, 14  ;;  %10788 = vst [vmem:[#allocation32_spill] sm:$0xff] %v6342_v13  ;;  %v787_v59 = vmin.f32 %v723_v51, 6.0  ;;  %v660_v31 = vadd.f32 3.0, %v456_v12  ;;  %v1785_v61 = vsel %vm1473_vm3, %v6247_v10, 0.0 }
 0x10e   :  { %vm6355_vm11 = vcmp.le.s32.totalorder %v10791_v63, 14  ;;  %v10794_v23 = vand.u32 15, %v6091_v0  ;;  %v790_v63 = vmin.f32 %v726_v9, 6.0  ;;  %v665_v11 = vadd.f32 3.0, %v477_v50  ;;  %vm6416_vm15 = vmand %vm1471_vm8, %vm6337_vm9 }
 0x10f   :  { %v469_v52 = vadd.f32 %v6123_v19, %v468_v36  ;;  %v10797_v51 = vand.u32 15, %v6062_v49  ;;  %v6376_v21 = vmul.f32 0.16666667, %v853_v57  ;;  %v851_v40 = vmul.f32 %v787_v59, %v453_v54  ;;  %vm6426_vm7 = vmand %vm1473_vm3, %vm6355_vm11 }
 0x110   :  { %vm6364_vm13 = vcmp.le.s32.totalorder %v10794_v23, 14  ;;  %v724_v0 = vmax.f32 %v660_v31, 0.0  ;;  %v1786_v23 = vsel %vm6349_vm10, %v6283_v5, 0.0  ;;  %v854_v28 = vmul.f32 %v790_v63, %v464_v42 }
 0x111   :  { %vm6372_vm14 = vcmp.ge.s32.totalorder %v10797_v51, 1  ;;  %10800 = vst [vmem:[#allocation33_spill] sm:$0xff] %v6376_v21  ;;  %v729_v55 = vmax.f32 %v665_v11, 0.0  ;;  %v663_v9 = vadd.f32 3.0, %v469_v52  ;;  %v1787_v36 = vsel %vm1475_vm6, %v6294_v43, 0.0  ;;  %vm6439_vm8 = vmand %vm1475_vm6, %vm6364_vm13 }
 0x112   :  { %v6385_v49 = vmul.f32 0.16666667, %v851_v40  ;;  %v788_v13 = vmin.f32 %v724_v0, 6.0  ;;  %v1851_v57 = vmul.f32 %v6083_v60, %v1784_v37  ;;  %v6388_v54 = vmul.f32 0.16666667, %v854_v28 }
 0x113   :  { %v793_v59 = vmin.f32 %v729_v55, 6.0  ;;  %v727_v31 = vmax.f32 %v663_v9, 0.0  ;;  %v1852_v22 = vmul.f32 %v6083_v60, %v1785_v61  ;;  %v1853_v63 = vmul.f32 %v6083_v60, %v1786_v23 }
 0x114   :  { %10801 = vst [vmem:[#allocation34_spill] sm:$0xff] %v6385_v49  ;;  %10802 = vst [vmem:[#allocation35_spill] sm:$0xff] %v6388_v54  ;;  %v852_v11 = vmul.f32 %v788_v13, %v456_v12  ;;  %v1854_v14 = vmul.f32 %v6083_v60, %v1787_v36  ;;  %v2103_v28 = vsel %vm1475_vm6, %v6217_v4, 0.0  ;;  %v2169_v61 = vmul.f32 %v6080_v58, %v6210_v39 }
 0x115   :  { %v857_v40 = vmul.f32 %v793_v59, %v477_v50  ;;  %v791_v21 = vmin.f32 %v727_v31, 6.0  ;;  %v2170_v55 = vmul.f32 %v6080_v58, %v2103_v28  ;;  %v2230_v12 = vadd.f32 %v6220_v27, %v1851_v57 }
 0x116   :  { %v6398_v37 = vmul.f32 0.16666667, %v852_v11  ;;  %v2231_v23 = vadd.f32 %v6239_v33, %v1852_v22  ;;  %v10805_v50 = vrot.slane %v6225_v15, 1  ;;  %v10806_v9 = vrot.slane %v6203_v48, 1 }
 0x117   :  { %v6404_v13 = vmul.f32 0.16666667, %v857_v40  ;;  %v855_v0 = vmul.f32 %v791_v21, %v469_v52  ;;  %v2232_v57 = vadd.f32 %v2169_v61, %v1853_v63  ;;  %v2233_v21 = vadd.f32 %v2170_v55, %v1854_v14 }
 0x118   :  { %10803 = vst [vmem:[#allocation36_spill] sm:$0xff] %v6398_v37  ;;  %v2296_v36 = vsel %vm2293_vm12, %v10806_v9, %v10805_v50  ;;  %v2297_v33 = vrot.slane %v6196_v53, 1  ;;  %v2299_v22 = vrot.slane %v6217_v4, 1  ;;  %v10605_v11 = vrot.slane %v6243_v32, 1 }
 0x119   :  { %10804 = vst [vmem:[#allocation37_spill] sm:$0xff] %v6404_v13  ;;  %v6431_v31 = vmul.f32 0.16666667, %v855_v0  ;;  %vm3725_vm3 = vcmp.le.s32.totalorder %v6095_v2, 14  ;;  %v10814_v63 = vmov %v10805_v50  ;;  %v10815_v28 = vmov %v10806_v9 }
 0x11a   :  { %v2298_v40 = vsel %vm2293_vm12, %v10814_v63, %v2297_v33  ;;  %v2482_v61 = vsel %vm2293_vm12, 0.0, %v10815_v28  ;;  %v2737_v55 = vsel %vm1472_vm1, %v2296_v36, 0.0  ;;  %v3066_v0 = vsel %vm6372_vm14, %v6228_v17, 0.0  ;;  %vm6508_vm6 = vmand %vm3725_vm3, %vm6372_vm14 }
 0x11b   :  { %10811 = vst [vmem:[#allocation38_spill] sm:$0xff] %v6431_v31  ;;  %v6457_v9 = vsel %vm2293_vm12, %v2297_v33, %v2299_v22  ;;  %v6462_v63 = vsel %vm2293_vm12, %v2299_v22, %v10605_v11  ;;  %v2736_v28 = vsel %vm6416_vm15, %v2482_v61, 0.0  ;;  %v2738_v59 = vsel %vm6426_vm7, %v2298_v40, 0.0 }
 0x11c   :  { %v2739_v17 = vsel %vm1474_vm0, %v6457_v9, 0.0  ;;  %v2740_v33 = vsel %vm6439_vm8, %v6462_v63, 0.0  ;;  %v2804_v50 = vmul.f32 %v6101_v6, %v2736_v28  ;;  %vm3726_vm1 = vcmp.le.s32.totalorder %v6134_v24, 14 }
 0x11d   :  { %v2805_v22 = vmul.f32 %v6101_v6, %v2737_v55  ;;  %v2806_v39 = vmul.f32 %v6101_v6, %v2738_v59  ;;  %v2807_v61 = vmul.f32 %v6101_v6, %v2739_v17  ;;  %v2808_v52 = vmul.f32 %v6101_v6, %v2740_v33  ;;  %vm6542_vm10 = vmand %vm3726_vm1, %vm6337_vm9 }
 0x11e   :  { %v2868_v51 = vadd.f32 %v2804_v50, %v6125_v20  ;;  %v3068_v27 = vsel %vm6255_vm4, %v6283_v5, 0.0  ;;  %v3070_v14 = vsel %vm6272_vm5, %v6305_v56, 0.0  ;;  %v3134_v28 = vmul.f32 %v6147_v34, %v3066_v0 }
 0x11f   :  { %v2869_v42 = vadd.f32 %v2805_v22, %v2230_v12  ;;  %v2870_v55 = vadd.f32 %v2806_v39, %v2231_v23  ;;  %v2871_v11 = vadd.f32 %v2807_v61, %v2232_v57  ;;  %v2872_v59 = vadd.f32 %v2808_v52, %v2233_v21 }
 0x120   :  { %v3135_v17 = vmul.f32 %v6147_v34, %v6247_v10  ;;  %v3136_v33 = vmul.f32 %v6147_v34, %v3068_v27  ;;  %v3137_v20 = vmul.f32 %v6147_v34, %v6294_v43  ;;  %v3138_v50 = vmul.f32 %v6147_v34, %v3070_v14 }
 0x121   :  { %vm3727_vm0 = vcmp.le.s32.totalorder %v6093_v1, 14  ;;  %v3139_v13 = vmul.f32 %v6147_v34, %v6325_v62  ;;  %v3198_v12 = vadd.f32 %v3134_v28, %v6153_v38  ;;  %v3266_v23 = vmul.f32 %v6149_v35, %v6203_v48 }
 0x122   :  { %v3267_v10 = vmul.f32 %v6149_v35, %v6225_v15  ;;  %v3199_v57 = vadd.f32 %v3135_v17, %v2868_v51  ;;  %v3200_v27 = vadd.f32 %v3136_v33, %v2869_v42  ;;  %v3201_v21 = vadd.f32 %v3137_v20, %v2870_v55  ;;  %v5698_v42 = vpop.f32.mrf.mxu0 }
 0x123   :  { %v6502_v0 = vadd.f32 %v3138_v50, %v2871_v11  ;;  %v6512_v38 = vadd.f32 %v3139_v13, %v2872_v59  ;;  %v3268_v39 = vmul.f32 %v6149_v35, %v6196_v53  ;;  %v3330_v61 = vadd.f32 %v3266_v23, %v3198_v12  ;;  %v6532_v59 = vld [vmem:[%s10563_s3 + $0x8] ss:$0 sm:$0xff] }
 0x124   :  { %v3528_v51 = vsel %vm6337_vm9, %v2298_v40, 0.0  ;;  %v3331_v11 = vadd.f32 %v3267_v10, %v3199_v57  ;;  %v3530_v18 = vsel %vm6355_vm11, %v6462_v63, 0.0  ;;  %v3595_v52 = vmul.f32 %v6162_v44, %v2296_v36  ;;  %v471_v30 = vpop.f32.mrf.mxu0  ;;  %vm6568_vm9 = vmand %vm3727_vm0, %vm6255_vm4 }
 0x125   :  { %v3596_v14 = vmul.f32 %v6162_v44, %v3528_v51  ;;  %v3332_v28 = vadd.f32 %v3268_v39, %v3200_v27  ;;  %v3597_v13 = vmul.f32 %v6162_v44, %v6457_v9  ;;  %v3598_v55 = vmul.f32 %v6162_v44, %v3530_v18 }
 0x126   :  { %v3977_v40 = vsel %vm6508_vm6, %v6283_v5, 0.0  ;;  %v3659_v17 = vadd.f32 %v3595_v52, %v3330_v61  ;;  %v3978_v36 = vsel %vm3726_vm1, %v6294_v43, 0.0  ;;  %vm3728_vm14 = vcmp.le.s32.totalorder %v6103_v7, 14 }
 0x127   :  { %v3660_v33 = vadd.f32 %v3596_v14, %v3331_v11  ;;  %v4044_v20 = vmul.f32 %v6167_v47, %v3977_v40  ;;  %v3661_v5 = vadd.f32 %v3597_v13, %v3332_v28  ;;  %v4045_v12 = vmul.f32 %v6167_v47, %v3978_v36  ;;  %vm6621_vm15 = vmand %vm3728_vm14, %vm6355_vm11 }
 0x128   :  { %v4296_v23 = vsel %vm3725_vm3, %v6196_v53, 0.0  ;;  %v4297_v43 = vsel %vm3726_vm1, %v6217_v4, 0.0  ;;  %v4675_v22 = vsel %vm3725_vm3, %v6457_v9, 0.0  ;;  %v4676_v61 = vsel %vm6542_vm10, %v6462_v63, 0.0 }
 0x129   :  { %v4108_v10 = vadd.f32 %v4044_v20, %v3659_v17  ;;  %v4362_v57 = vmul.f32 %v6164_v45, %v4296_v23  ;;  %v4363_v27 = vmul.f32 %v6164_v45, %v4297_v43  ;;  %v4109_v39 = vadd.f32 %v4045_v12, %v3660_v33 }
 0x12a   :  { %v4741_v51 = vmul.f32 %v6532_v59, %v4675_v22  ;;  %v480_v24 = vadd.f32 %v5698_v42, %v6123_v19  ;;  %v4742_v2 = vmul.f32 %v6532_v59, %v4676_v61  ;;  %v472_v9 = vadd.f32 %v6123_v19, %v471_v30  ;;  %v6578_v42 = vld [vmem:[%s10565_s4] ss:$0 sm:$0xff] }
 0x12b   :  { %v4425_v18 = vadd.f32 %v4362_v57, %v4108_v10  ;;  %v2303_v52 = vrot.slane %v6260_v29, 1  ;;  %v4426_v63 = vadd.f32 %v4363_v27, %v4109_v39  ;;  %v2305_v14 = vrot.slane %v6236_v46, 1 }
 0x12c   :  { %v666_v41 = vadd.f32 3.0, %v480_v24  ;;  %v3269_v28 = vmul.f32 %v6149_v35, %v6217_v4  ;;  %v664_v40 = vadd.f32 3.0, %v472_v9  ;;  %v10822_v17 = vrot.slane %v6243_v32, 1  ;;  %v10878_v4 = vld [vmem:[#allocation27_spill] sm:$0xff] }
 0x12d   :  { %v4804_v13 = vadd.f32 %v4741_v51, %v4425_v18  ;;  %v3979_v36 = vsel %vm6568_vm9, %v6305_v56, 0.0  ;;  %v4805_v20 = vadd.f32 %v4742_v2, %v4426_v63  ;;  %v6594_v12 = vsel %vm2293_vm12, %v2303_v52, %v2305_v14 }
 0x12e   :  { %v6586_v33 = vsel %vm2293_vm12, %v10822_v17, %v2303_v52  ;;  %v730_v50 = vmax.f32 %v666_v41, 0.0  ;;  %v3333_v23 = vadd.f32 %v3269_v28, %v3201_v21  ;;  %v728_v30 = vmax.f32 %v664_v40, 0.0  ;;  %v5701_v21 = vpop.f32.mrf.mxu0  ;;  %v10833_v28 = vld [vmem:[#allocation23_spill] sm:$0xff] }
 0x12f   :  { %v4875_v43 = vadd.f32 %v6578_v42, %v4804_v13  ;;  %v3532_v10 = vsel %vm6364_vm13, %v6594_v12, 0.0  ;;  %v6602_v57 = vmul.f32 %v6162_v44, %v6586_v33  ;;  %v4876_v27 = vadd.f32 %v6578_v42, %v4805_v20 }
 0x130   :  { %v794_v22 = vmin.f32 %v730_v50, 6.0  ;;  %v3662_v39 = vadd.f32 %v3598_v55, %v3333_v23  ;;  %v3980_v61 = vsel %vm3728_vm14, %v6325_v62, 0.0  ;;  %v792_v11 = vmin.f32 %v728_v30, 6.0  ;;  %v484_v23 = vpop.f32.mrf.mxu0 }
 0x131   :  { %v4939_v51 = vmax.f32 %v4875_v43, 0.0  ;;  %v4046_v18 = vmul.f32 %v6167_v47, %v3979_v36  ;;  %v4047_v2 = vmul.f32 %v6167_v47, %v3980_v61  ;;  %vm3729_vm4 = vcmp.le.s32.totalorder %v6097_v3, 14 }
 0x132   :  { %v4940_v52 = vmax.f32 %v4876_v27, 0.0  ;;  %v858_v63 = vmul.f32 %v794_v22, %v480_v24  ;;  %v4298_v41 = vsel %vm3727_vm0, %v6243_v32, 0.0  ;;  %v4299_v55 = vsel %vm3728_vm14, %v6260_v29, 0.0  ;;  %vm6684_vm3 = vmand %vm3729_vm4, %vm6272_vm5 }
 0x133   :  { %v856_v13 = vmul.f32 %v792_v11, %v472_v9  ;;  %v4110_v40 = vadd.f32 %v4046_v18, %v3661_v5  ;;  %v4111_v17 = vadd.f32 %v4047_v2, %v3662_v39  ;;  %v4364_v24 = vmul.f32 %v6164_v45, %v4298_v41  ;;  %v5702_v39 = vpop.f32.mrf.mxu0 }
 0x134   :  { %v5003_v36 = vpack.c.bf16 %v4940_v52, %v4939_v51  ;;  %v6626_v20 = vmul.f32 0.16666667, %v858_v63  ;;  %v4365_v50 = vmul.f32 %v6164_v45, %v4299_v55  ;;  %v4677_v26 = vsel %vm3727_vm0, %v6586_v33, 0.0  ;;  %v10829_v52 = vld [vmem:[#allocation3_spill] sm:$0xff] }
 0x135   :  { %v6632_v7 = vmul.f32 0.16666667, %v856_v13  ;;  %v4427_v43 = vadd.f32 %v4364_v24, %v4110_v40  ;;  %v4678_v5 = vsel %vm6621_vm15, %v6594_v12, 0.0  ;;  %v4743_v9 = vmul.f32 %v6532_v59, %v4677_v26  ;;  %v10836_v26 = vld [vmem:[#allocation26_spill] sm:$0xff] }
 0x136   :  { %10825 = vst [vmem:[#allocation39_spill] sm:$0xff] %v6626_v20  ;;  %vm3730_vm11 = vcmp.le.s32.totalorder %v6136_v25, 14  ;;  %5755 = vmatprep.mubr.bf16.mxu1 %v5003_v36  ;;  %v4428_v27 = vadd.f32 %v4365_v50, %v4111_v17  ;;  %v4744_v22 = vmul.f32 %v6532_v59, %v4678_v5  ;;  %v493_v1 = vadd.f32 %v5701_v21, %v6123_v19  ;;  %v10837_v5 = vld [vmem:[#allocation9_spill] sm:$0xff] }
 0x137   :  { %10826 = vst [vmem:[#allocation40_spill] sm:$0xff] %v6632_v7  ;;  %v4806_v61 = vadd.f32 %v4743_v9, %v4427_v43  ;;  %v485_v51 = vadd.f32 %v6123_v19, %v484_v23  ;;  %v10827_v11 = vrot.slane %v6236_v46, 7  ;;  %v10828_v18 = vrot.slane %v6260_v29, 7  ;;  %vm6722_vm0 = vmand %vm3730_vm11, %vm6364_vm13 }
 0x138   :  { %v10830_v63 = vand.u32 15, %v10829_v52  ;;  %v4807_v55 = vadd.f32 %v4744_v22, %v4428_v27  ;;  %v669_v21 = vadd.f32 3.0, %v493_v1  ;;  %v10834_v13 = vrot.slane %v10833_v28, 7 }
 0x139   :  { %v6649_v2 = vsel %vm1284_vm2, %v10828_v18, %v10827_v11  ;;  %v10835_v40 = vmov %v10827_v11  ;;  %v2307_v24 = vrot.slane %v10833_v28, 1  ;;  %v4877_v36 = vadd.f32 %v6578_v42, %v4806_v61 }
 0x13a   :  { %vm6653_vm7 = vcmp.ge.s32.totalorder %v10830_v63, 1  ;;  %v6662_v17 = vsel %vm1284_vm2, %v10835_v40, %v10834_v13  ;;  %v667_v50 = vadd.f32 3.0, %v485_v51  ;;  %v10608_v23 = vrot.slane %v10836_v26, 1  ;;  %v10840_v40 = vld [vmem:[#allocation10_spill] sm:$0xff] }
 0x13b   :  { %v6669_v43 = vmul.f32 %v6147_v34, %v6662_v17  ;;  %vm1476_vm8 = vcmp.ge.s32.totalorder %v10837_v5, 1  ;;  %v4878_v9 = vadd.f32 %v6578_v42, %v4807_v55  ;;  %v733_v27 = vmax.f32 %v669_v21, 0.0 }
 0x13c   :  { %v6676_v22 = vsel %vm2293_vm12, %v2305_v14, %v2307_v24  ;;  %v3270_v61 = vmul.f32 %v6149_v35, %v6243_v32  ;;  %v4941_v18 = vmax.f32 %v4877_v36, 0.0  ;;  %v731_v52 = vmax.f32 %v667_v50, 0.0  ;;  %vm6750_vm13 = vmand %vm1476_vm8, %vm6653_vm7 }
 0x13d   :  { %v6691_v63 = vsel %vm2293_vm12, %v2307_v24, %v10608_v23  ;;  %v3271_v14 = vmul.f32 %v6149_v35, %v6260_v29  ;;  %v4942_v55 = vmax.f32 %v4878_v9, 0.0  ;;  %v797_v21 = vmin.f32 %v733_v27, 6.0 }
 0x13e   :  { %v3334_v8 = vadd.f32 %v3270_v61, %v6502_v0  ;;  %v3600_v13 = vmul.f32 %v6162_v44, %v3532_v10  ;;  %vm1477_vm5 = vcmp.ge.s32.totalorder %v10840_v40, 1  ;;  %v795_v30 = vmin.f32 %v731_v52, 6.0  ;;  %v10841_v61 = vld [vmem:[#allocation4_spill] sm:$0xff] }
 0x13f   :  { %v3335_v36 = vadd.f32 %v3271_v14, %v6512_v38  ;;  %v6701_v50 = vmul.f32 %v6162_v44, %v6676_v22  ;;  %v3981_v24 = vsel %vm6684_vm3, %v6649_v2, 0.0  ;;  %v5004_v9 = vpack.c.bf16 %v4942_v55, %v4941_v18 }
 0x140   :  { %v861_v27 = vmul.f32 %v797_v21, %v493_v1  ;;  %v3663_v0 = vadd.f32 %v6602_v57, %v3334_v8  ;;  %v3982_v10 = vsel %vm3730_vm11, %v6662_v17, 0.0  ;;  %v10842_v52 = vand.u32 15, %v10841_v61  ;;  %v10853_v57 = vld [vmem:[#allocation28_spill] sm:$0xff] }
 0x141   :  { %v859_v14 = vmul.f32 %v795_v30, %v485_v51  ;;  %v3664_v23 = vadd.f32 %v3600_v13, %v3335_v36  ;;  %v4048_v11 = vmul.f32 %v6167_v47, %v3981_v24  ;;  %v4049_v15 = vmul.f32 %v6167_v47, %v3982_v10  ;;  %5756 = vmatmul.mubr.bf16.vlgmr.msra.gmra.mxu1 %v5004_v9  ;;  %v487_v13 = vpop.f32.mrf.mxu0 }
 0x142   :  { %vm6712_vm1 = vcmp.le.s32.totalorder %v10842_v52, 14  ;;  %v6726_v1 = vmul.f32 0.16666667, %v861_v27  ;;  %v4300_v30 = vsel %vm3729_vm4, %v6236_v46, 0.0  ;;  %v4301_v51 = vsel %vm3730_vm11, %v10833_v28, 0.0 }
 0x143   :  { %v4679_v16 = vsel %vm3729_vm4, %v6676_v22, 0.0  ;;  %v6737_v18 = vmul.f32 0.16666667, %v859_v14  ;;  %v4112_v55 = vadd.f32 %v4048_v11, %v3663_v0  ;;  %v4113_v21 = vadd.f32 %v4049_v15, %v3664_v23  ;;  %vm2553_vm9 = vmand %vm1477_vm5, %vm6712_vm1 }
 0x144   :  { %10847 = vst [vmem:[#allocation3_spill] sm:$0xff] %v6726_v1  ;;  %v4366_v8 = vmul.f32 %v6164_v45, %v4300_v30  ;;  %v4367_v24 = vmul.f32 %v6164_v45, %v4301_v51  ;;  %v4680_v25 = vsel %vm6722_vm0, %v6691_v63, 0.0  ;;  %v4745_v9 = vmul.f32 %v6532_v59, %v4679_v16 }
 0x145   :  { %10848 = vst [vmem:[#allocation9_spill] sm:$0xff] %v6737_v18  ;;  %v4746_v27 = vmul.f32 %v6532_v59, %v4680_v25  ;;  %v496_v0 = vadd.f32 %v5702_v39, %v6123_v19  ;;  %v488_v61 = vadd.f32 %v6123_v19, %v487_v13  ;;  %v10851_v52 = vrot.slane %v10836_v26, 7 }
 0x146   :  { %v4429_v23 = vadd.f32 %v4366_v8, %v4112_v55  ;;  %v4430_v10 = vadd.f32 %v4367_v24, %v4113_v21  ;;  %v10852_v14 = vrot.slane %v10833_v28, 7  ;;  %v10854_v30 = vrot.slane %v10853_v57, 7 }
 0x147   :  { %v10855_v51 = vmov %v10851_v52  ;;  %v670_v8 = vadd.f32 3.0, %v496_v0  ;;  %v1788_v19 = vsel %vm6750_vm13, %v6305_v56, 0.0  ;;  %v1789_v39 = vsel %vm1477_vm5, %v6325_v62, 0.0 }
 0x148   :  { %v6763_v11 = vsel %vm1284_vm2, %v10852_v14, %v10851_v52  ;;  %v6770_v16 = vsel %vm1284_vm2, %v10855_v51, %v10854_v30  ;;  %v4808_v55 = vadd.f32 %v4745_v9, %v4429_v23  ;;  %vm3731_vm6 = vcmp.le.s32.totalorder %v10837_v5, 14  ;;  %v10856_v14 = vld [vmem:[#allocation5_spill] sm:$0xff]  ;;  %v6906_v5 = vld [vmem:[%s10564_s2] ss:$0 sm:$0xff] }
 0x149   :  { %v4809_v21 = vadd.f32 %v4746_v27, %v4430_v10  ;;  %v668_v13 = vadd.f32 3.0, %v488_v61  ;;  %v1855_v24 = vmul.f32 %v6083_v60, %v1788_v19  ;;  %v1856_v25 = vmul.f32 %v6083_v60, %v1789_v39  ;;  %v10860_v39 = vld [vmem:[#allocation25_spill] sm:$0xff]  ;;  %vm6839_vm15 = vmand %vm3731_vm6, %vm6653_vm7 }
 0x14a   :  { %v4879_v52 = vadd.f32 %v6578_v42, %v4808_v55  ;;  %v734_v9 = vmax.f32 %v670_v8, 0.0  ;;  %v2104_v3 = vsel %vm1476_vm8, %v6243_v32, 0.0  ;;  %v2105_v56 = vsel %vm1477_vm5, %v6260_v29, 0.0 }
 0x14b   :  { %vm3732_vm10 = vcmp.le.s32.totalorder %v10840_v40, 14  ;;  %v4880_v62 = vadd.f32 %v6578_v42, %v4809_v21  ;;  %v732_v23 = vmax.f32 %v668_v13, 0.0  ;;  %v2171_v27 = vmul.f32 %v6080_v58, %v2104_v3 }
 0x14c   :  { %v2172_v10 = vmul.f32 %v6080_v58, %v2105_v56  ;;  %v10857_v30 = vand.u32 15, %v10856_v14  ;;  %v4943_v55 = vmax.f32 %v4879_v52, 0.0  ;;  %v798_v8 = vmin.f32 %v734_v9, 6.0  ;;  %v10861_v14 = vld [vmem:[#allocation11_spill] sm:$0xff] }
 0x14d   :  { %v2311_v19 = vrot.slane %v10853_v57, 1  ;;  %v10610_v36 = vrot.slane %v10860_v39, 1  ;;  %v4944_v21 = vmax.f32 %v4880_v62, 0.0  ;;  %v796_v13 = vmin.f32 %v732_v23, 6.0 }
 0x14e   :  { %vm6794_vm14 = vcmp.ge.s32.totalorder %v10857_v30, 1  ;;  %v2234_v3 = vadd.f32 %v2171_v27, %v1855_v24  ;;  %v2235_v56 = vadd.f32 %v2172_v10, %v1856_v25  ;;  %vm1478_vm4 = vcmp.ge.s32.totalorder %v10861_v14, 1 }
 0x14f   :  { %v862_v30 = vmul.f32 %v798_v8, %v496_v0  ;;  %v10862_v15 = vrot.slane %v10836_v26, 1  ;;  %v6813_v9 = vsel %vm2293_vm12, %v2311_v19, %v10610_v36  ;;  %v2741_v62 = vsel %vm1476_vm8, %v6586_v33, 0.0  ;;  %vm6876_vm8 = vmand %vm3732_vm10, %vm6712_vm1 }
 0x150   :  { %v5005_v23 = vpack.c.bf16 %v4944_v21, %v4943_v55  ;;  %v860_v24 = vmul.f32 %v796_v13, %v488_v61  ;;  %v2742_v25 = vsel %vm2553_vm9, %v6594_v12, 0.0  ;;  %v2809_v0 = vmul.f32 %v6101_v6, %v2741_v62  ;;  %v5705_v21 = vpop.f32.mrf.mxu0  ;;  %v10867_v13 = vld [vmem:[#allocation12_spill] sm:$0xff]  ;;  %vm6894_vm3 = vmand %vm1478_vm4, %vm6794_vm14 }
 0x151   :  { %v6808_v52 = vsel %vm2293_vm12, %v10862_v15, %v2311_v19  ;;  %v6820_v27 = vmul.f32 0.16666667, %v862_v30  ;;  %v2810_v15 = vmul.f32 %v6101_v6, %v2742_v25  ;;  %v3072_v10 = vsel %vm6653_vm7, %v6649_v2, 0.0 }
 0x152   :  { %v6828_v8 = vmul.f32 %v6147_v34, %v6770_v16  ;;  %5759 = vmatprep.mubr.bf16.mxu1 %v5005_v23  ;;  %v6830_v33 = vmul.f32 0.16666667, %v860_v24  ;;  %v2873_v61 = vadd.f32 %v2809_v0, %v2234_v3  ;;  %v3140_v12 = vmul.f32 %v6147_v34, %v3072_v10  ;;  %v10868_v10 = vld [vmem:[#allocation6_spill] sm:$0xff] }
 0x153   :  { %10863 = vst [vmem:[#allocation10_spill] sm:$0xff] %v6820_v27  ;;  %v3272_v55 = vmul.f32 %v6149_v35, %v6236_v46  ;;  %vm1479_vm11 = vcmp.ge.s32.totalorder %v10867_v13, 1  ;;  %v2874_v62 = vadd.f32 %v2810_v15, %v2235_v56  ;;  %v3273_v3 = vmul.f32 %v6149_v35, %v10833_v28  ;;  %v10908_v27 = vld [vmem:[#allocation29_spill] sm:$0xff] }
 0x154   :  { %10864 = vst [vmem:[#allocation4_spill] sm:$0xff] %v6830_v33  ;;  %v3534_v23 = vsel %vm6712_vm1, %v6691_v63, 0.0  ;;  %v3204_v24 = vadd.f32 %v3140_v12, %v2873_v61  ;;  %v6854_v0 = vmul.f32 %v6162_v44, %v6808_v52  ;;  %v10869_v36 = vand.u32 15, %v10868_v10  ;;  %v500_v10 = vpop.f32.mrf.mxu0 }
 0x155   :  { %v3602_v25 = vmul.f32 %v6162_v44, %v3534_v23  ;;  %v3205_v15 = vadd.f32 %v6669_v43, %v2874_v62  ;;  %v3983_v30 = vsel %vm6839_vm15, %v6763_v11, 0.0  ;;  %v3984_v61 = vsel %vm3732_vm10, %v6770_v16, 0.0 }
 0x156   :  { %vm6858_vm7 = vcmp.le.s32.totalorder %v10869_v36, 14  ;;  %v4302_v12 = vsel %vm3731_vm6, %v10836_v26, 0.0  ;;  %v3336_v43 = vadd.f32 %v3272_v55, %v3204_v24  ;;  %v4050_v19 = vmul.f32 %v6167_v47, %v3983_v30 }
 0x157   :  { %v4051_v62 = vmul.f32 %v6167_v47, %v3984_v61  ;;  %v4303_v23 = vsel %vm3732_vm10, %v10853_v57, 0.0  ;;  %v3337_v41 = vadd.f32 %v3273_v3, %v3205_v15  ;;  %v4368_v29 = vmul.f32 %v6164_v45, %v4302_v12  ;;  %vm6955_vm13 = vmand %vm1479_vm11, %vm6858_vm7 }
 0x158   :  { %v4369_v38 = vmul.f32 %v6164_v45, %v4303_v23  ;;  %v4681_v32 = vsel %vm3731_vm6, %v6808_v52, 0.0  ;;  %v3665_v40 = vadd.f32 %v6701_v50, %v3336_v43  ;;  %v4682_v30 = vsel %vm6876_vm8, %v6813_v9, 0.0 }
 0x159   :  { %v4747_v3 = vmul.f32 %v6532_v59, %v4681_v32  ;;  %v509_v24 = vadd.f32 %v6906_v5, %v5705_v21  ;;  %v3666_v15 = vadd.f32 %v3602_v25, %v3337_v41  ;;  %v4748_v61 = vmul.f32 %v6532_v59, %v4682_v30 }
 0x15a   :  { %v501_v12 = vadd.f32 %v6906_v5, %v500_v10  ;;  %v10876_v50 = vrot.slane %v10860_v39, 7  ;;  %v10877_v43 = vrot.slane %v10853_v57, 7  ;;  %v4114_v32 = vadd.f32 %v4050_v19, %v3665_v40 }
 0x15b   :  { %v673_v23 = vadd.f32 3.0, %v509_v24  ;;  %v10879_v48 = vrot.slane %v10878_v4, 7  ;;  %v1790_v41 = vsel %vm6894_vm3, %v6649_v2, 0.0  ;;  %v4115_v25 = vadd.f32 %v4051_v62, %v3666_v15 }
 0x15c   :  { %v6916_v36 = vsel %vm1284_vm2, %v10877_v43, %v10876_v50  ;;  %v10880_v53 = vmov %v10876_v50  ;;  %v671_v10 = vadd.f32 3.0, %v501_v12  ;;  %v1791_v30 = vsel %vm1479_vm11, %v6662_v17, 0.0 }
 0x15d   :  { %v6923_v21 = vsel %vm1284_vm2, %v10880_v53, %v10879_v48  ;;  %v1857_v19 = vmul.f32 %v6083_v60, %v1790_v41  ;;  %vm3733_vm5 = vcmp.le.s32.totalorder %v10861_v14, 14  ;;  %v4431_v40 = vadd.f32 %v4368_v29, %v4114_v32  ;;  %v10881_v32 = vld [vmem:[#allocation7_spill] sm:$0xff] }
 0x15e   :  { %v737_v50 = vmax.f32 %v673_v23, 0.0  ;;  %v1858_v43 = vmul.f32 %v6083_v60, %v1791_v30  ;;  %v2106_v48 = vsel %vm1478_vm4, %v6236_v46, 0.0  ;;  %v4432_v53 = vadd.f32 %v4369_v38, %v4115_v25  ;;  %vm6997_vm10 = vmand %vm3733_vm5, %vm6794_vm14 }
 0x15f   :  { %v735_v2 = vmax.f32 %v671_v10, 0.0  ;;  %v2107_v62 = vsel %vm1479_vm11, %v10833_v28, 0.0  ;;  %v2173_v17 = vmul.f32 %v6080_v58, %v2106_v48  ;;  %v4810_v55 = vadd.f32 %v4747_v3, %v4431_v40  ;;  %v10885_v28 = vld [vmem:[#allocation30_spill] sm:$0xff] }
 0x160   :  { %v801_v15 = vmin.f32 %v737_v50, 6.0  ;;  %v2174_v41 = vmul.f32 %v6080_v58, %v2107_v62  ;;  %v2315_v29 = vrot.slane %v10878_v4, 1  ;;  %vm3734_vm1 = vcmp.le.s32.totalorder %v10867_v13, 14 }
 0x161   :  { %v10882_v23 = vand.u32 15, %v10881_v32  ;;  %v4811_v38 = vadd.f32 %v4748_v61, %v4432_v53  ;;  %v799_v25 = vmin.f32 %v735_v2, 6.0  ;;  %v2236_v10 = vadd.f32 %v2173_v17, %v1857_v19  ;;  %v10889_v19 = vld [vmem:[#allocation13_spill] sm:$0xff] }
 0x162   :  { %v10618_v46 = vrot.slane %v10885_v28, 1  ;;  %v4881_v40 = vadd.f32 %v6578_v42, %v4810_v55  ;;  %v865_v50 = vmul.f32 %v801_v15, %v509_v24  ;;  %v2237_v48 = vadd.f32 %v2174_v41, %v1858_v43 }
 0x163   :  { %vm6946_vm0 = vcmp.ge.s32.totalorder %v10882_v23, 1  ;;  %v10888_v62 = vrot.slane %v10860_v39, 1  ;;  %vm1480_vm6 = vcmp.ge.s32.totalorder %v10889_v19, 1  ;;  %v4882_v53 = vadd.f32 %v6578_v42, %v4811_v38 }
 0x164   :  { %v863_v2 = vmul.f32 %v799_v25, %v501_v12  ;;  %v6970_v17 = vsel %vm2293_vm12, %v2315_v29, %v10618_v46  ;;  %v2743_v24 = vsel %vm1478_vm4, %v6676_v22, 0.0  ;;  %v4945_v43 = vmax.f32 %v4881_v40, 0.0  ;;  %v5706_v40 = vpop.f32.mrf.mxu0  ;;  %vm7032_vm4 = vmand %vm3734_vm1, %vm6858_vm7 }
 0x165   :  { %v6963_v61 = vsel %vm2293_vm12, %v10888_v62, %v2315_v29  ;;  %v6975_v55 = vmul.f32 0.16666667, %v865_v50  ;;  %v2744_v15 = vsel %vm6955_vm13, %v6691_v63, 0.0  ;;  %v2811_v41 = vmul.f32 %v6101_v6, %v2743_v24  ;;  %v10894_v50 = vld [vmem:[#allocation15_spill] sm:$0xff]  ;;  %vm7052_vm15 = vmand %vm1480_vm6, %vm6946_vm0 }
 0x166   :  { %v4946_v32 = vmax.f32 %v4882_v53, 0.0  ;;  %v6981_v12 = vmul.f32 0.16666667, %v863_v2  ;;  %v2812_v23 = vmul.f32 %v6101_v6, %v2744_v15  ;;  %v3074_v29 = vsel %vm6794_vm14, %v6763_v11, 0.0 }
 0x167   :  { %10890 = vst [vmem:[#allocation5_spill] sm:$0xff] %v6975_v55  ;;  %v2875_v38 = vadd.f32 %v2811_v41, %v2236_v10  ;;  %v3142_v25 = vmul.f32 %v6147_v34, %v3074_v29  ;;  %v6991_v3 = vmul.f32 %v6147_v34, %v6923_v21  ;;  %vm1481_vm9 = vcmp.ge.s32.totalorder %v10894_v50, 1  ;;  %v10895_v29 = vld [vmem:[#allocation8_spill] sm:$0xff] }
 0x168   :  { %10891 = vst [vmem:[#allocation11_spill] sm:$0xff] %v6981_v12  ;;  %v5006_v62 = vpack.c.bf16 %v4946_v32, %v4945_v43  ;;  %v2876_v53 = vadd.f32 %v2812_v23, %v2237_v48  ;;  %v3274_v2 = vmul.f32 %v6149_v35, %v10836_v26  ;;  %v3275_v51 = vmul.f32 %v6149_v35, %v10853_v57 }
 0x169   :  { %v3206_v24 = vadd.f32 %v3142_v25, %v2875_v38  ;;  %v3536_v15 = vsel %vm6858_vm7, %v6813_v9, 0.0  ;;  %v7012_v41 = vmul.f32 %v6162_v44, %v6963_v61  ;;  %v10896_v43 = vand.u32 15, %v10895_v29 }
 0x16a   :  { %5760 = vmatmul.mubr.bf16.gmra.mxu1 %v5006_v62  ;;  %v3207_v48 = vadd.f32 %v6828_v8, %v2876_v53  ;;  %v3604_v23 = vmul.f32 %v6162_v44, %v3536_v15  ;;  %v3985_v38 = vsel %vm6997_vm10, %v6916_v36, 0.0  ;;  %v3986_v25 = vsel %vm3734_vm1, %v6923_v21, 0.0  ;;  %v503_v15 = vpop.f32.mrf.mxu0 }
 0x16b   :  { %vm7016_vm14 = vcmp.le.s32.totalorder %v10896_v43, 14  ;;  %v3338_v62 = vadd.f32 %v3274_v2, %v3206_v24  ;;  %v4052_v8 = vmul.f32 %v6167_v47, %v3985_v38  ;;  %v4053_v53 = vmul.f32 %v6167_v47, %v3986_v25 }
 0x16c   :  { %v4304_v63 = vsel %vm3733_vm5, %v10860_v39, 0.0  ;;  %v3339_v43 = vadd.f32 %v3275_v51, %v3207_v48  ;;  %v4305_v56 = vsel %vm3734_vm1, %v10878_v4, 0.0  ;;  %v4683_v2 = vsel %vm3733_vm5, %v6963_v61, 0.0  ;;  %vm7101_vm11 = vmand %vm1481_vm9, %vm7016_vm14 }
 0x16d   :  { %v4370_v22 = vmul.f32 %v6164_v45, %v4304_v63  ;;  %v3667_v51 = vadd.f32 %v6854_v0, %v3338_v62  ;;  %v4371_v48 = vmul.f32 %v6164_v45, %v4305_v56  ;;  %v4684_v13 = vsel %vm7032_vm4, %v6970_v17, 0.0  ;;  %v10905_v56 = vld [vmem:[#allocation32_spill] sm:$0xff] }
 0x16e   :  { %v4749_v38 = vmul.f32 %v6532_v59, %v4683_v2  ;;  %v3668_v14 = vadd.f32 %v3604_v23, %v3339_v43  ;;  %v4750_v25 = vmul.f32 %v6532_v59, %v4684_v13  ;;  %v512_v63 = vadd.f32 %v6906_v5, %v5706_v40 }
 0x16f   :  { %v504_v10 = vadd.f32 %v6906_v5, %v503_v15  ;;  %v4116_v46 = vadd.f32 %v4052_v8, %v3667_v51  ;;  %v10903_v55 = vrot.slane %v10885_v28, 7  ;;  %v10904_v0 = vrot.slane %v10878_v4, 7 }
 0x170   :  { %v10906_v29 = vrot.slane %v10905_v56, 7  ;;  %v1792_v40 = vsel %vm7052_vm15, %v6763_v11, 0.0  ;;  %v4117_v15 = vadd.f32 %v4053_v53, %v3668_v14  ;;  %v674_v8 = vadd.f32 3.0, %v512_v63 }
 0x171   :  { %v7070_v62 = vsel %vm1284_vm2, %v10904_v0, %v10903_v55  ;;  %v10907_v12 = vmov %v10903_v55  ;;  %v672_v43 = vadd.f32 3.0, %v504_v10  ;;  %v1793_v2 = vsel %vm1481_vm9, %v6770_v16, 0.0 }
 0x172   :  { %v7077_v23 = vsel %vm1284_vm2, %v10907_v12, %v10906_v29  ;;  %v4433_v55 = vadd.f32 %v4370_v22, %v4116_v46  ;;  %v1859_v51 = vmul.f32 %v6083_v60, %v1792_v40  ;;  %v1860_v13 = vmul.f32 %v6083_v60, %v1793_v2 }
 0x173   :  { %v2108_v12 = vsel %vm1480_vm6, %v10836_v26, 0.0  ;;  %v4434_v0 = vadd.f32 %v4371_v48, %v4117_v15  ;;  %v738_v29 = vmax.f32 %v674_v8, 0.0  ;;  %v736_v24 = vmax.f32 %v672_v43, 0.0 }
 0x174   :  { %v2109_v11 = vsel %vm1481_vm9, %v10853_v57, 0.0  ;;  %v4812_v53 = vadd.f32 %v4749_v38, %v4433_v55  ;;  %v2175_v14 = vmul.f32 %v6080_v58, %v2108_v12  ;;  %v2319_v16 = vrot.slane %v10905_v56, 1 }
 0x175   :  { %v2176_v46 = vmul.f32 %v6080_v58, %v2109_v11  ;;  %v4813_v22 = vadd.f32 %v4750_v25, %v4434_v0  ;;  %v802_v40 = vmin.f32 %v738_v29, 6.0  ;;  %v800_v2 = vmin.f32 %v736_v24, 6.0 }
 0x176   :  { %v10627_v1 = vrot.slane %v10908_v27, 1  ;;  %v4883_v38 = vadd.f32 %v6578_v42, %v4812_v53  ;;  %v2238_v15 = vadd.f32 %v2175_v14, %v1859_v51  ;;  %v10911_v43 = vrot.slane %v10885_v28, 1 }
 0x177   :  { %v2239_v8 = vadd.f32 %v2176_v46, %v1860_v13  ;;  %v4884_v55 = vadd.f32 %v6578_v42, %v4813_v22  ;;  %v866_v12 = vmul.f32 %v802_v40, %v512_v63  ;;  %v864_v0 = vmul.f32 %v800_v2, %v504_v10  ;;  %v10915_v40 = vld [vmem:[#allocation17_spill] sm:$0xff] }
 0x178   :  { %v7109_v25 = vsel %vm2293_vm12, %v10911_v43, %v2319_v16  ;;  %v7115_v29 = vsel %vm2293_vm12, %v2319_v16, %v10627_v1  ;;  %v4947_v24 = vmax.f32 %v4883_v38, 0.0  ;;  %v2745_v51 = vsel %vm1480_vm6, %v6808_v52, 0.0  ;;  %v5709_v38 = vpop.f32.mrf.mxu0 }
 0x179   :  { %v2746_v13 = vsel %vm7101_vm11, %v6813_v9, 0.0  ;;  %v3076_v11 = vsel %vm6946_vm0, %v6916_v36, 0.0  ;;  %v4948_v63 = vmax.f32 %v4884_v55, 0.0  ;;  %v7126_v10 = vmul.f32 0.16666667, %v866_v12 }
 0x17a   :  { %v7128_v53 = vmul.f32 0.16666667, %v864_v0  ;;  %v2813_v14 = vmul.f32 %v6101_v6, %v2745_v51  ;;  %v2814_v46 = vmul.f32 %v6101_v6, %v2746_v13  ;;  %v3144_v16 = vmul.f32 %v6147_v34, %v3076_v11  ;;  %v516_v30 = vpop.f32.mrf.mxu0 }
 0x17b   :  { %10912 = vst [vmem:[#allocation12_spill] sm:$0xff] %v7126_v10  ;;  %v7135_v52 = vmul.f32 %v6147_v34, %v7077_v23  ;;  %v3276_v9 = vmul.f32 %v6149_v35, %v10860_v39  ;;  %v5007_v22 = vpack.c.bf16 %v4948_v63, %v4947_v24  ;;  %v3277_v55 = vmul.f32 %v6149_v35, %v10878_v4 }
 0x17c   :  { %10913 = vst [vmem:[#allocation6_spill] sm:$0xff] %v7128_v53  ;;  %v2877_v48 = vadd.f32 %v2813_v14, %v2238_v15  ;;  %v2878_v43 = vadd.f32 %v2814_v46, %v2239_v8  ;;  %v3538_v12 = vsel %vm7016_vm14, %v6970_v17, 0.0  ;;  %v7148_v0 = vmul.f32 %v6162_v44, %v7109_v25 }
 0x17d   :  { %5763 = vmatprep.mubr.bf16.mxu1 %v5007_v22  ;;  %v3606_v51 = vmul.f32 %v6162_v44, %v3538_v12  ;;  %vm3735_vm7 = vcmp.le.s32.totalorder %v10889_v19, 14  ;;  %vm3736_vm8 = vcmp.le.s32.totalorder %v10894_v50, 14  ;;  %v1043_v19 = vand.u32 15, %v10915_v40 }
 0x17e   :  { %v3208_v24 = vadd.f32 %v3144_v16, %v2877_v48  ;;  %v3209_v15 = vadd.f32 %v6991_v3, %v2878_v43  ;;  %vm3798_vm3 = vmand %vm3735_vm7, %vm6946_vm0  ;;  %v3988_v8 = vsel %vm3736_vm8, %v7077_v23, 0.0  ;;  %v4306_v13 = vsel %vm3735_vm7, %v10885_v28, 0.0 }
 0x17f   :  { %v4307_v11 = vsel %vm3736_vm8, %v10905_v56, 0.0  ;;  %v3987_v14 = vsel %vm3798_vm3, %v7070_v62, 0.0  ;;  %v4055_v50 = vmul.f32 %v6167_v47, %v3988_v8  ;;  %v4372_v3 = vmul.f32 %v6164_v45, %v4306_v13  ;;  %vm4500_vm5 = vmand %vm3736_vm8, %vm7016_vm14 }
 0x180   :  { %v3340_v63 = vadd.f32 %v3276_v9, %v3208_v24  ;;  %v3341_v46 = vadd.f32 %v3277_v55, %v3209_v15  ;;  %v4054_v16 = vmul.f32 %v6167_v47, %v3987_v14  ;;  %v4373_v22 = vmul.f32 %v6164_v45, %v4307_v11  ;;  %v10914_v15 = vld [vmem:[#allocation14_spill] sm:$0xff] }
 0x181   :  { %v4685_v48 = vsel %vm3735_vm7, %v7109_v25, 0.0  ;;  %v4686_v43 = vsel %vm4500_vm5, %v7115_v29, 0.0  ;;  %v525_v24 = vadd.f32 %v6906_v5, %v5709_v38  ;;  %v517_v55 = vadd.f32 %v6906_v5, %v516_v30 }
 0x182   :  { %v3669_v9 = vadd.f32 %v7012_v41, %v3340_v63  ;;  %v4751_v12 = vmul.f32 %v6532_v59, %v4685_v48  ;;  %v3670_v32 = vadd.f32 %v3606_v51, %v3341_v46  ;;  %v4752_v8 = vmul.f32 %v6532_v59, %v4686_v43  ;;  %v10919_v43 = vld [vmem:[#allocation31_spill] sm:$0xff] }
 0x183   :  { %v1042_v13 = vand.u32 15, %v10914_v15  ;;  %v677_v14 = vadd.f32 3.0, %v525_v24  ;;  %v1107_v2 = vshra.s32 %v10915_v40, 4  ;;  %v675_v63 = vadd.f32 3.0, %v517_v55 }
 0x184   :  { %v4118_v11 = vadd.f32 %v4054_v16, %v3669_v9  ;;  %v4119_v41 = vadd.f32 %v4055_v50, %v3670_v32  ;;  %v10916_v1 = vshra.s32 %v10914_v15, 4  ;;  %v10917_v38 = vrot.slane %v10908_v27, 7 }
 0x185   :  { %v10918_v51 = vrot.slane %v10905_v56, 7  ;;  %v741_v16 = vmax.f32 %v677_v14, 0.0  ;;  %v7193_v9 = vand.u32 15, %v1107_v2  ;;  %v10920_v57 = vrot.slane %v10919_v43, 7 }
 0x186   :  { %v7184_v48 = vand.u32 15, %v10916_v1  ;;  %v4435_v46 = vadd.f32 %v4372_v3, %v4118_v11  ;;  %v10921_v40 = vmov %v10917_v38  ;;  %v4436_v1 = vadd.f32 %v4373_v22, %v4119_v41 }
 0x187   :  { %v7191_v30 = vsel %vm1284_vm2, %v10918_v51, %v10917_v38  ;;  %v7200_v50 = vsel %vm1284_vm2, %v10921_v40, %v10920_v57  ;;  %v739_v32 = vmax.f32 %v675_v63, 0.0  ;;  %vm7203_vm0 = vcmp.ge.s32.totalorder %v1042_v13, 1 }
 0x188   :  { %vm1482_vm1 = vcmp.ge.s32.totalorder %v7184_v48, 1  ;;  %v4814_v38 = vadd.f32 %v4751_v12, %v4435_v46  ;;  %v805_v3 = vmin.f32 %v741_v16, 6.0  ;;  %vm1483_vm13 = vcmp.ge.s32.totalorder %v7193_v9, 1 }
 0x189   :  { %vm1608_vm6 = vmand %vm1482_vm1, %vm7203_vm0  ;;  %v2110_v57 = vsel %vm1482_vm1, %v10860_v39, 0.0  ;;  %v4815_v2 = vadd.f32 %v4752_v8, %v4436_v1  ;;  %v803_v22 = vmin.f32 %v739_v32, 6.0  ;;  %v1795_v12 = vsel %vm1483_vm13, %v6923_v21, 0.0 }
 0x18a   :  { %v1794_v13 = vsel %vm1608_vm6, %v6916_v36, 0.0  ;;  %v4885_v11 = vadd.f32 %v6578_v42, %v4814_v38  ;;  %v869_v14 = vmul.f32 %v805_v3, %v525_v24  ;;  %v1862_v63 = vmul.f32 %v6083_v60, %v1795_v12 }
 0x18b   :  { %v1861_v41 = vmul.f32 %v6083_v60, %v1794_v13  ;;  %v4886_v51 = vadd.f32 %v6578_v42, %v4815_v2  ;;  %v867_v46 = vmul.f32 %v803_v22, %v517_v55  ;;  %v2111_v8 = vsel %vm1483_vm13, %v10878_v4, 0.0 }
 0x18c   :  { %v2177_v36 = vmul.f32 %v6080_v58, %v2110_v57  ;;  %v4949_v16 = vmax.f32 %v4885_v11, 0.0  ;;  %v7227_v40 = vmul.f32 0.16666667, %v869_v14  ;;  %v2178_v21 = vmul.f32 %v6080_v58, %v2111_v8 }
 0x18d   :  { %v2323_v24 = vrot.slane %v10919_v43, 1  ;;  %v4950_v1 = vmax.f32 %v4886_v51, 0.0  ;;  %v7231_v32 = vmul.f32 0.16666667, %v867_v46  ;;  %v10629_v3 = vrot.slane %v6385_v49, 1 }
 0x18e   :  { %10924 = vst [vmem:[#allocation7_spill] sm:$0xff] %v7227_v40  ;;  %v2240_v38 = vadd.f32 %v2177_v36, %v1861_v41  ;;  %v2241_v2 = vadd.f32 %v2178_v21, %v1862_v63  ;;  %v10926_v22 = vrot.slane %v10908_v27, 1  ;;  %vm7240_vm10 = vcmp.le.s32.totalorder %v1043_v19, 14 }
 0x18f   :  { %10925 = vst [vmem:[#allocation13_spill] sm:$0xff] %v7231_v32  ;;  %v5008_v12 = vpack.c.bf16 %v4950_v1, %v4949_v16  ;;  %v7248_v14 = vsel %vm2293_vm12, %v2323_v24, %v10629_v3  ;;  %vm2559_vm9 = vmand %vm1483_vm13, %vm7240_vm10  ;;  %v2747_v19 = vsel %vm1482_vm1, %v6963_v61, 0.0  ;;  %v3078_v51 = vsel %vm7203_vm0, %v7070_v62, 0.0  ;;  %v5710_v16 = vpop.f32.mrf.mxu0 }
 0x190   :  { %v7238_v57 = vsel %vm2293_vm12, %v10926_v22, %v2323_v24  ;;  %v2748_v41 = vsel %vm2559_vm9, %v6970_v17, 0.0  ;;  %v2815_v63 = vmul.f32 %v6101_v6, %v2747_v19  ;;  %v7264_v46 = vmul.f32 %v6147_v34, %v7200_v50 }
 0x191   :  { %5764 = vmatmul.mubr.bf16.gmra.mxu1 %v5008_v12  ;;  %v2816_v8 = vmul.f32 %v6101_v6, %v2748_v41  ;;  %v3146_v36 = vmul.f32 %v6147_v34, %v3078_v51  ;;  %v3278_v61 = vmul.f32 %v6149_v35, %v10885_v28  ;;  %v3279_v17 = vmul.f32 %v6149_v35, %v10905_v56 }
 0x192   :  { %v2879_v21 = vadd.f32 %v2815_v63, %v2240_v38  ;;  %v3540_v24 = vsel %vm7240_vm10, %v7115_v29, 0.0  ;;  %v7277_v1 = vmul.f32 %v6162_v44, %v7238_v57  ;;  %vm3737_vm14 = vcmp.le.s32.totalorder %v7184_v48, 14 }
 0x193   :  { %v2880_v22 = vadd.f32 %v2816_v8, %v2241_v2  ;;  %v3608_v12 = vmul.f32 %v6162_v44, %v3540_v24  ;;  %vm3738_vm4 = vcmp.le.s32.totalorder %v7193_v9, 14  ;;  %vm3800_vm15 = vmand %vm3737_vm14, %vm7203_vm0  ;;  %v4308_v38 = vsel %vm3737_vm14, %v10908_v27, 0.0  ;;  %v519_v24 = vpop.f32.mrf.mxu0 }
 0x194   :  { %v3210_v19 = vadd.f32 %v3146_v36, %v2879_v21  ;;  %v3989_v41 = vsel %vm3800_vm15, %v7191_v30, 0.0  ;;  %v3990_v63 = vsel %vm3738_vm4, %v7200_v50, 0.0  ;;  %v4309_v2 = vsel %vm3738_vm4, %v10919_v43, 0.0  ;;  %vm4502_vm11 = vmand %vm3738_vm4, %vm7240_vm10 }
 0x195   :  { %v3211_v9 = vadd.f32 %v7135_v52, %v2880_v22  ;;  %v4056_v15 = vmul.f32 %v6167_v47, %v3989_v41  ;;  %v4057_v51 = vmul.f32 %v6167_v47, %v3990_v63  ;;  %v4374_v8 = vmul.f32 %v6164_v45, %v4308_v38 }
 0x196   :  { %v3342_v55 = vadd.f32 %v3278_v61, %v3210_v19  ;;  %v4375_v36 = vmul.f32 %v6164_v45, %v4309_v2  ;;  %v4687_v21 = vsel %vm3737_vm14, %v7238_v57, 0.0  ;;  %v4688_v11 = vsel %vm4502_vm11, %v7248_v14, 0.0  ;;  %v10929_v61 = vld [vmem:[#allocation2_spill] sm:$0xff] }
 0x197   :  { %v3343_v13 = vadd.f32 %v3279_v17, %v3211_v9  ;;  %v4753_v3 = vmul.f32 %v6532_v59, %v4687_v21  ;;  %v4754_v52 = vmul.f32 %v6532_v59, %v4688_v11  ;;  %v528_v22 = vadd.f32 %v6906_v5, %v5710_v16 }
 0x198   :  { %v3671_v41 = vadd.f32 %v7148_v0, %v3342_v55  ;;  %v520_v38 = vadd.f32 %v6906_v5, %v519_v24  ;;  %v980_v19 = vadd.s32 112, %v10929_v61  ;;  %v981_v63 = vadd.s32 120, %v10929_v61 }
 0x199   :  { %v3672_v2 = vadd.f32 %v3608_v12, %v3343_v13  ;;  %v678_v48 = vadd.f32 3.0, %v528_v22  ;;  %v10930_v4 = vrot.slane %v6385_v49, 7  ;;  %v10931_v17 = vrot.slane %v10919_v43, 7 }
 0x19a   :  { %v10932_v59 = vrot.slane %v6398_v37, 7  ;;  %v4120_v55 = vadd.f32 %v4056_v15, %v3671_v41  ;;  %v676_v16 = vadd.f32 3.0, %v520_v38  ;;  %v1044_v24 = vand.u32 15, %v980_v19 }
 0x19b   :  { %v7315_v9 = vsel %vm1284_vm2, %v10931_v17, %v10930_v4  ;;  %v10933_v11 = vmov %v10930_v4  ;;  %v1045_v21 = vand.u32 15, %v981_v63  ;;  %v4121_v12 = vadd.f32 %v4057_v51, %v3672_v2 }
 0x19c   :  { %v7322_v0 = vsel %vm1284_vm2, %v10933_v11, %v10932_v59  ;;  %v742_v13 = vmax.f32 %v678_v48, 0.0  ;;  %v1108_v26 = vshra.s32 %v980_v19, 4  ;;  %v1109_v39 = vshra.s32 %v981_v63, 4 }
 0x19d   :  { %v4437_v40 = vadd.f32 %v4374_v8, %v4120_v55  ;;  %v740_v32 = vmax.f32 %v676_v16, 0.0  ;;  %vm7324_vm7 = vcmp.ge.s32.totalorder %v1044_v24, 1  ;;  %v2327_v17 = vrot.slane %v6398_v37, 1  ;;  %v10937_v8 = vld [vmem:[#allocation33_spill] sm:$0xff] }
 0x19e   :  { %v4438_v10 = vadd.f32 %v4375_v36, %v4121_v12  ;;  %v806_v53 = vmin.f32 %v742_v13, 6.0  ;;  %v7329_v59 = vand.u32 15, %v1108_v26  ;;  %v1173_v15 = vand.u32 15, %v1109_v39 }
 0x19f   :  { %v4816_v41 = vadd.f32 %v4753_v3, %v4437_v40  ;;  %v804_v11 = vmin.f32 %v740_v32, 6.0  ;;  %v10936_v51 = vrot.slane %v6385_v49, 1  ;;  %v10641_v63 = vrot.slane %v10937_v8, 1 }
 0x1a0   :  { %v4817_v2 = vadd.f32 %v4754_v52, %v4438_v10  ;;  %v870_v48 = vmul.f32 %v806_v53, %v528_v22  ;;  %vm1484_vm8 = vcmp.ge.s32.totalorder %v7329_v59, 1  ;;  %vm1485_vm3 = vcmp.ge.s32.totalorder %v1173_v15, 1 }
 0x1a1   :  { %v7334_v19 = vsel %vm2293_vm12, %v10936_v51, %v2327_v17  ;;  %v4887_v36 = vadd.f32 %v6578_v42, %v4816_v41  ;;  %v868_v55 = vmul.f32 %v804_v11, %v520_v38  ;;  %vm1610_vm5 = vmand %vm1484_vm8, %vm7324_vm7  ;;  %v1797_v26 = vsel %vm1485_vm3, %v7077_v23, 0.0 }
 0x1a2   :  { %v2112_v39 = vsel %vm1484_vm8, %v10885_v28, 0.0  ;;  %v4888_v10 = vadd.f32 %v6578_v42, %v4817_v2  ;;  %v7349_v53 = vmul.f32 0.16666667, %v870_v48  ;;  %v1796_v40 = vsel %vm1610_vm5, %v7070_v62, 0.0 }
 0x1a3   :  { %v1864_v32 = vmul.f32 %v6083_v60, %v1797_v26  ;;  %v4951_v3 = vmax.f32 %v4887_v36, 0.0  ;;  %v7353_v52 = vmul.f32 0.16666667, %v868_v55  ;;  %v1863_v22 = vmul.f32 %v6083_v60, %v1796_v40 }
 0x1a4   :  { %10938 = vst [vmem:[#allocation15_spill] sm:$0xff] %v7349_v53  ;;  %v2113_v23 = vsel %vm1485_vm3, %v10905_v56, 0.0  ;;  %v4952_v38 = vmax.f32 %v4888_v10, 0.0  ;;  %v2179_v24 = vmul.f32 %v6080_v58, %v2112_v39  ;;  %v7365_v62 = vsel %vm2293_vm12, %v2327_v17, %v10641_v63  ;;  %v5713_v10 = vpop.f32.mrf.mxu0 }
 0x1a5   :  { %10939 = vst [vmem:[#allocation8_spill] sm:$0xff] %v7353_v52  ;;  %v2180_v42 = vmul.f32 %v6080_v58, %v2113_v23  ;;  %vm7367_vm1 = vcmp.le.s32.totalorder %v1045_v21, 14  ;;  %v2749_v41 = vsel %vm1484_vm8, %v7109_v25, 0.0  ;;  %v3080_v21 = vsel %vm7324_vm7, %v7191_v30, 0.0 }
 0x1a6   :  { %v5009_v11 = vpack.c.bf16 %v4952_v38, %v4951_v3  ;;  %v2242_v51 = vadd.f32 %v2179_v24, %v1863_v22  ;;  %vm2561_vm0 = vmand %vm1485_vm3, %vm7367_vm1  ;;  %v2817_v48 = vmul.f32 %v6101_v6, %v2749_v41  ;;  %v7384_v36 = vmul.f32 %v6147_v34, %v7322_v0 }
 0x1a7   :  { %v2243_v2 = vadd.f32 %v2180_v42, %v1864_v32  ;;  %v2750_v17 = vsel %vm2561_vm0, %v7115_v29, 0.0  ;;  %v3280_v25 = vmul.f32 %v6149_v35, %v10908_v27  ;;  %v3148_v39 = vmul.f32 %v6147_v34, %v3080_v21 }
 0x1a8   :  { %5767 = vmatprep.mubr.bf16.mxu1 %v5009_v11  ;;  %v2818_v55 = vmul.f32 %v6101_v6, %v2750_v17  ;;  %v2881_v26 = vadd.f32 %v2817_v48, %v2242_v51  ;;  %v3281_v29 = vmul.f32 %v6149_v35, %v10919_v43  ;;  %v3542_v40 = vsel %vm7367_vm1, %v7248_v14, 0.0  ;;  %v532_v48 = vpop.f32.mrf.mxu0 }
 0x1a9   :  { %v7397_v32 = vmul.f32 %v6162_v44, %v7334_v19  ;;  %vm3739_vm13 = vcmp.le.s32.totalorder %v7329_v59, 14  ;;  %vm3740_vm6 = vcmp.le.s32.totalorder %v1173_v15, 14  ;;  %v3610_v23 = vmul.f32 %v6162_v44, %v3542_v40 }
 0x1aa   :  { %v2882_v3 = vadd.f32 %v2818_v55, %v2243_v2  ;;  %v3212_v22 = vadd.f32 %v3148_v39, %v2881_v26  ;;  %vm3802_vm10 = vmand %vm3739_vm13, %vm7324_vm7  ;;  %v3992_v38 = vsel %vm3740_vm6, %v7322_v0, 0.0  ;;  %v4310_v41 = vsel %vm3739_vm13, %v6385_v49, 0.0 }
 0x1ab   :  { %v3991_v24 = vsel %vm3802_vm10, %v7315_v9, 0.0  ;;  %v4059_v42 = vmul.f32 %v6167_v47, %v3992_v38  ;;  %v4311_v15 = vsel %vm3740_vm6, %v6398_v37, 0.0  ;;  %vm4504_vm9 = vmand %vm3740_vm6, %vm7367_vm1  ;;  %v4376_v2 = vmul.f32 %v6164_v45, %v4310_v41 }
 0x1ac   :  { %v3213_v4 = vadd.f32 %v7264_v46, %v2882_v3  ;;  %v3344_v11 = vadd.f32 %v3280_v25, %v3212_v22  ;;  %v4058_v51 = vmul.f32 %v6167_v47, %v3991_v24  ;;  %v4377_v17 = vmul.f32 %v6164_v45, %v4311_v15  ;;  %v7427_v46 = vld [vmem:[%s10563_s3 + $0x8] ss:$0 sm:$0xff] }
 0x1ad   :  { %v4689_v21 = vsel %vm3739_vm13, %v7334_v19, 0.0  ;;  %v4690_v55 = vsel %vm4504_vm9, %v7365_v62, 0.0  ;;  %v541_v26 = vadd.f32 %v6906_v5, %v5713_v10  ;;  %v533_v59 = vadd.f32 %v6906_v5, %v532_v48 }
 0x1ae   :  { %v3345_v13 = vadd.f32 %v3281_v29, %v3213_v4  ;;  %v3673_v39 = vadd.f32 %v7277_v1, %v3344_v11  ;;  %v4755_v25 = vmul.f32 %v7427_v46, %v4689_v21  ;;  %v4756_v40 = vmul.f32 %v7427_v46, %v4690_v55 }
 0x1af   :  { %v681_v3 = vadd.f32 3.0, %v541_v26  ;;  %v982_v22 = vadd.s32 128, %v10929_v61  ;;  %v983_v38 = vadd.s32 136, %v10929_v61  ;;  %v10942_v1 = vrot.slane %v10937_v8, 7 }
 0x1b0   :  { %v3674_v10 = vadd.f32 %v3610_v23, %v3345_v13  ;;  %v4122_v29 = vadd.f32 %v4058_v51, %v3673_v39  ;;  %v10943_v24 = vrot.slane %v6398_v37, 7  ;;  %v10944_v15 = vrot.slane %v6388_v54, 7 }
 0x1b1   :  { %v10945_v4 = vmov %v10942_v1  ;;  %v745_v48 = vmax.f32 %v681_v3, 0.0  ;;  %v679_v21 = vadd.f32 3.0, %v533_v59  ;;  %v1046_v55 = vand.u32 15, %v982_v22 }
 0x1b2   :  { %v7439_v41 = vsel %vm1284_vm2, %v10943_v24, %v10942_v1  ;;  %v7446_v11 = vsel %vm1284_vm2, %v10945_v4, %v10944_v15  ;;  %v1047_v16 = vand.u32 15, %v983_v38  ;;  %v4123_v23 = vadd.f32 %v4059_v42, %v3674_v10  ;;  %v7464_v10 = vld [vmem:[%s10565_s4] ss:$0 sm:$0xff] }
 0x1b3   :  { %v4439_v51 = vadd.f32 %v4376_v2, %v4122_v29  ;;  %v1110_v13 = vshra.s32 %v982_v22, 4  ;;  %v1111_v39 = vshra.s32 %v983_v38, 4  ;;  %v809_v12 = vmin.f32 %v745_v48, 6.0 }
 0x1b4   :  { %v743_v63 = vmax.f32 %v679_v21, 0.0  ;;  %vm7448_vm14 = vcmp.ge.s32.totalorder %v1046_v55, 1  ;;  %v2331_v24 = vrot.slane %v6388_v54, 1  ;;  %v4440_v56 = vadd.f32 %v4377_v17, %v4123_v23 }
 0x1b5   :  { %v4818_v28 = vadd.f32 %v4755_v25, %v4439_v51  ;;  %v7453_v15 = vand.u32 15, %v1110_v13  ;;  %v1175_v3 = vand.u32 15, %v1111_v39  ;;  %v873_v4 = vmul.f32 %v809_v12, %v541_v26 }
 0x1b6   :  { %v807_v53 = vmin.f32 %v743_v63, 6.0  ;;  %v10948_v42 = vrot.slane %v10937_v8, 1  ;;  %v10646_v22 = vrot.slane %v6431_v31, 1  ;;  %v4819_v38 = vadd.f32 %v4756_v40, %v4440_v56 }
 0x1b7   :  { %v4889_v17 = vadd.f32 %v7464_v10, %v4818_v28  ;;  %vm1486_vm4 = vcmp.ge.s32.totalorder %v7453_v15, 1  ;;  %vm1487_vm15 = vcmp.ge.s32.totalorder %v1175_v3, 1  ;;  %v7468_v12 = vmul.f32 0.16666667, %v873_v4 }
 0x1b8   :  { %v7458_v2 = vsel %vm2293_vm12, %v10948_v42, %v2331_v24  ;;  %v871_v63 = vmul.f32 %v807_v53, %v533_v59  ;;  %vm1612_vm11 = vmand %vm1486_vm4, %vm7448_vm14  ;;  %v1799_v56 = vsel %vm1487_vm15, %v7200_v50, 0.0  ;;  %v2114_v26 = vsel %vm1486_vm4, %v10908_v27, 0.0 }
 0x1b9   :  { %10949 = vst [vmem:[#allocation14_spill] sm:$0xff] %v7468_v12  ;;  %v4890_v28 = vadd.f32 %v7464_v10, %v4819_v38  ;;  %v4953_v25 = vmax.f32 %v4889_v17, 0.0  ;;  %v1798_v40 = vsel %vm1612_vm11, %v7191_v30, 0.0  ;;  %v1866_v29 = vmul.f32 %v6083_v60, %v1799_v56 }
 0x1ba   :  { %v7483_v59 = vmul.f32 0.16666667, %v871_v63  ;;  %v1865_v48 = vmul.f32 %v6083_v60, %v1798_v40  ;;  %v2115_v50 = vsel %vm1487_vm15, %v10919_v43, 0.0  ;;  %v2181_v55 = vmul.f32 %v6080_v58, %v2114_v26 }
 0x1bb   :  { %v4954_v21 = vmax.f32 %v4890_v28, 0.0  ;;  %v2182_v23 = vmul.f32 %v6080_v58, %v2115_v50  ;;  %v7493_v30 = vsel %vm2293_vm12, %v2331_v24, %v10646_v22  ;;  %vm7496_vm7 = vcmp.le.s32.totalorder %v1047_v16, 14  ;;  %v5714_v24 = vpop.f32.mrf.mxu0 }
 0x1bc   :  { %10950 = vst [vmem:[#allocation17_spill] sm:$0xff] %v7483_v59  ;;  %v2751_v39 = vsel %vm1486_vm4, %v7238_v57, 0.0  ;;  %v3082_v4 = vsel %vm7448_vm14, %v7315_v9, 0.0  ;;  %v2244_v38 = vadd.f32 %v2181_v55, %v1865_v48  ;;  %vm2563_vm8 = vmand %vm1487_vm15, %vm7496_vm7  ;;  %v7514_v57 = vmul.f32 %v6147_v34, %v7446_v11 }
 0x1bd   :  { %v5010_v42 = vpack.c.bf16 %v4954_v21, %v4953_v25  ;;  %v2245_v17 = vadd.f32 %v2182_v23, %v1866_v29  ;;  %v2819_v16 = vmul.f32 %v6101_v6, %v2751_v39  ;;  %v2752_v63 = vsel %vm2563_vm8, %v7248_v14, 0.0  ;;  %v535_v39 = vpop.f32.mrf.mxu0 }
 0x1be   :  { %v3150_v56 = vmul.f32 %v6147_v34, %v3082_v4  ;;  %v3282_v26 = vmul.f32 %v6149_v35, %v6385_v49  ;;  %v2820_v28 = vmul.f32 %v6101_v6, %v2752_v63  ;;  %v3283_v40 = vmul.f32 %v6149_v35, %v6398_v37 }
 0x1bf   :  { %5768 = vmatmul.mubr.bf16.gmra.mxu1 %v5010_v42  ;;  %v2883_v25 = vadd.f32 %v2819_v16, %v2244_v38  ;;  %v3544_v14 = vsel %vm7496_vm7, %v7365_v62, 0.0  ;;  %v7527_v48 = vmul.f32 %v6162_v44, %v7458_v2  ;;  %vm3741_vm3 = vcmp.le.s32.totalorder %v7453_v15, 14 }
 0x1c0   :  { %v3612_v29 = vmul.f32 %v6162_v44, %v3544_v14  ;;  %vm3742_vm5 = vcmp.le.s32.totalorder %v1175_v3, 14  ;;  %v2884_v50 = vadd.f32 %v2820_v28, %v2245_v17  ;;  %vm3804_vm1 = vmand %vm3741_vm3, %vm7448_vm14  ;;  %v4312_v23 = vsel %vm3741_vm3, %v10937_v8, 0.0 }
 0x1c1   :  { %v3214_v21 = vadd.f32 %v3150_v56, %v2883_v25  ;;  %v3994_v55 = vsel %vm3742_vm5, %v7446_v11, 0.0  ;;  %v3993_v4 = vsel %vm3804_vm1, %v7439_v41, 0.0  ;;  %v4313_v3 = vsel %vm3742_vm5, %v6388_v54, 0.0  ;;  %vm4506_vm0 = vmand %vm3742_vm5, %vm7496_vm7 }
 0x1c2   :  { %v4061_v42 = vmul.f32 %v6167_v47, %v3994_v55  ;;  %v4378_v38 = vmul.f32 %v6164_v45, %v4312_v23  ;;  %v3215_v1 = vadd.f32 %v7384_v36, %v2884_v50  ;;  %v4060_v16 = vmul.f32 %v6167_v47, %v3993_v4 }
 0x1c3   :  { %v3346_v17 = vadd.f32 %v3282_v26, %v3214_v21  ;;  %v4379_v63 = vmul.f32 %v6164_v45, %v4313_v3  ;;  %v4691_v56 = vsel %vm3741_vm3, %v7458_v2, 0.0  ;;  %v4692_v28 = vsel %vm4506_vm0, %v7493_v30, 0.0 }
 0x1c4   :  { %v544_v25 = vadd.f32 %v6906_v5, %v5714_v24  ;;  %v536_v14 = vadd.f32 %v6906_v5, %v535_v39  ;;  %v3347_v55 = vadd.f32 %v3283_v40, %v3215_v1  ;;  %v4757_v36 = vmul.f32 %v7427_v46, %v4691_v56 }
 0x1c5   :  { %v3675_v13 = vadd.f32 %v7397_v32, %v3346_v17  ;;  %v4758_v26 = vmul.f32 %v7427_v46, %v4692_v28  ;;  %v984_v23 = vadd.s32 144, %v10929_v61  ;;  %v985_v15 = vadd.s32 152, %v10929_v61 }
 0x1c6   :  { %v682_v50 = vadd.f32 3.0, %v544_v25  ;;  %v680_v21 = vadd.f32 3.0, %v536_v14  ;;  %v3676_v4 = vadd.f32 %v3612_v29, %v3347_v55  ;;  %v10953_v53 = vrot.slane %v6431_v31, 7 }
 0x1c7   :  { %v4124_v3 = vadd.f32 %v4060_v16, %v3675_v13  ;;  %v10954_v24 = vrot.slane %v6388_v54, 7  ;;  %v10955_v32 = vrot.slane %v6632_v7, 7  ;;  %v1048_v56 = vand.u32 15, %v984_v23 }
 0x1c8   :  { %v10956_v40 = vmov %v10953_v53  ;;  %v746_v1 = vmax.f32 %v682_v50, 0.0  ;;  %v744_v17 = vmax.f32 %v680_v21, 0.0  ;;  %v1049_v28 = vand.u32 15, %v985_v15 }
 0x1c9   :  { %v7563_v5 = vsel %vm1284_vm2, %v10954_v24, %v10953_v53  ;;  %v7570_v39 = vsel %vm1284_vm2, %v10956_v40, %v10955_v32  ;;  %v4125_v29 = vadd.f32 %v4061_v42, %v3676_v4  ;;  %v4441_v16 = vadd.f32 %v4378_v38, %v4124_v3 }
 0x1ca   :  { %v1112_v55 = vshra.s32 %v984_v23, 4  ;;  %v1113_v13 = vshra.s32 %v985_v15, 4  ;;  %v810_v51 = vmin.f32 %v746_v1, 6.0  ;;  %v808_v22 = vmin.f32 %v744_v17, 6.0  ;;  %v10960_v23 = vld [vmem:[#allocation37_spill] sm:$0xff] }
 0x1cb   :  { %vm7572_vm13 = vcmp.ge.s32.totalorder %v1048_v56, 1  ;;  %v2335_v24 = vrot.slane %v6632_v7, 1  ;;  %v4442_v43 = vadd.f32 %v4379_v63, %v4125_v29  ;;  %v4820_v27 = vadd.f32 %v4757_v36, %v4441_v16 }
 0x1cc   :  { %v7577_v32 = vand.u32 15, %v1112_v55  ;;  %v1177_v50 = vand.u32 15, %v1113_v13  ;;  %v874_v21 = vmul.f32 %v810_v51, %v544_v25  ;;  %v872_v40 = vmul.f32 %v808_v22, %v536_v14 }
 0x1cd   :  { %v10959_v42 = vrot.slane %v6431_v31, 1  ;;  %v10649_v15 = vrot.slane %v10960_v23, 1  ;;  %v4821_v4 = vadd.f32 %v4758_v26, %v4442_v43  ;;  %v4891_v3 = vadd.f32 %v7464_v10, %v4820_v27 }
 0x1ce   :  { %vm1488_vm6 = vcmp.ge.s32.totalorder %v7577_v32, 1  ;;  %vm1489_vm10 = vcmp.ge.s32.totalorder %v1177_v50, 1  ;;  %v7587_v63 = vmul.f32 0.16666667, %v874_v21  ;;  %v7589_v36 = vmul.f32 0.16666667, %v872_v40 }
 0x1cf   :  { %v7582_v38 = vsel %vm2293_vm12, %v10959_v42, %v2335_v24  ;;  %vm1614_vm9 = vmand %vm1488_vm6, %vm7572_vm13  ;;  %v1801_v22 = vsel %vm1489_vm10, %v7322_v0, 0.0  ;;  %v2116_v43 = vsel %vm1488_vm6, %v6385_v49, 0.0  ;;  %v4892_v27 = vadd.f32 %v7464_v10, %v4821_v4 }
 0x1d0   :  { %10961 = vst [vmem:[#allocation2_spill] sm:$0xff] %v7587_v63  ;;  %10962 = vst [vmem:[#allocation41_spill] sm:$0xff] %v7589_v36  ;;  %v4955_v51 = vmax.f32 %v4891_v3, 0.0  ;;  %v1800_v25 = vsel %vm1614_vm9, %v7315_v9, 0.0  ;;  %v1868_v14 = vmul.f32 %v6083_v60, %v1801_v22  ;;  %v2117_v0 = vsel %vm1489_vm10, %v6398_v37, 0.0  ;;  %v5717_v3 = vpop.f32.mrf.mxu0 }
 0x1d1   :  { %v1867_v17 = vmul.f32 %v6083_v60, %v1800_v25  ;;  %v4956_v56 = vmax.f32 %v4892_v27, 0.0  ;;  %v2183_v29 = vmul.f32 %v6080_v58, %v2116_v43  ;;  %v2184_v16 = vmul.f32 %v6080_v58, %v2117_v0  ;;  %v7652_v0 = vld [vmem:[%s10564_s2] ss:$0 sm:$0xff] }
 0x1d2   :  { %v7613_v9 = vsel %vm2293_vm12, %v2335_v24, %v10649_v15  ;;  %vm7615_vm14 = vcmp.le.s32.totalorder %v1049_v28, 14  ;;  %v2753_v13 = vsel %vm1488_vm6, %v7334_v19, 0.0  ;;  %v3084_v21 = vsel %vm7572_vm13, %v7439_v41, 0.0 }
 0x1d3   :  { %v7627_v40 = vmul.f32 %v6147_v34, %v7570_v39  ;;  %v5011_v42 = vpack.c.bf16 %v4956_v56, %v4955_v51  ;;  %v2246_v4 = vadd.f32 %v2183_v29, %v1867_v17  ;;  %v2247_v24 = vadd.f32 %v2184_v16, %v1868_v14  ;;  %vm2565_vm4 = vmand %vm1489_vm10, %vm7615_vm14 }
 0x1d4   :  { %v2821_v28 = vmul.f32 %v6101_v6, %v2753_v13  ;;  %v2754_v19 = vsel %vm2565_vm4, %v7365_v62, 0.0  ;;  %v3152_v22 = vmul.f32 %v6147_v34, %v3084_v21  ;;  %v3284_v43 = vmul.f32 %v6149_v35, %v10937_v8  ;;  %v548_v21 = vpop.f32.mrf.mxu0 }
 0x1d5   :  { %v3285_v27 = vmul.f32 %v6149_v35, %v6388_v54  ;;  %5771 = vmatprep.mubr.bf16.mxu1 %v5011_v42  ;;  %v2822_v51 = vmul.f32 %v6101_v6, %v2754_v19  ;;  %v3546_v14 = vsel %vm7615_vm14, %v7493_v30, 0.0  ;;  %v7645_v17 = vmul.f32 %v6162_v44, %v7582_v38 }
 0x1d6   :  { %v2885_v25 = vadd.f32 %v2821_v28, %v2246_v4  ;;  %v3614_v62 = vmul.f32 %v6162_v44, %v3546_v14  ;;  %vm3743_vm15 = vcmp.le.s32.totalorder %v7577_v32, 14  ;;  %vm3744_vm11 = vcmp.le.s32.totalorder %v1177_v50, 14 }
 0x1d7   :  { %v557_v56 = vadd.f32 %v7652_v0, %v5717_v3  ;;  %v2886_v29 = vadd.f32 %v2822_v51, %v2247_v24  ;;  %vm3806_vm7 = vmand %vm3743_vm15, %vm7572_vm13  ;;  %v3996_v13 = vsel %vm3744_vm11, %v7570_v39, 0.0  ;;  %v4314_v50 = vsel %vm3743_vm15, %v6431_v31, 0.0 }
 0x1d8   :  { %v3216_v16 = vadd.f32 %v3152_v22, %v2885_v25  ;;  %v3995_v42 = vsel %vm3806_vm7, %v7563_v5, 0.0  ;;  %v4063_v4 = vmul.f32 %v6167_v47, %v3996_v13  ;;  %v4315_v28 = vsel %vm3744_vm11, %v6632_v7, 0.0  ;;  %vm4508_vm8 = vmand %vm3744_vm11, %vm7615_vm14 }
 0x1d9   :  { %v4380_v24 = vmul.f32 %v6164_v45, %v4314_v50  ;;  %v3217_v53 = vadd.f32 %v7514_v57, %v2886_v29  ;;  %v4062_v19 = vmul.f32 %v6167_v47, %v3995_v42  ;;  %v4381_v22 = vmul.f32 %v6164_v45, %v4315_v28 }
 0x1da   :  { %v3348_v3 = vadd.f32 %v3284_v43, %v3216_v16  ;;  %v4693_v51 = vsel %vm3743_vm15, %v7582_v38, 0.0  ;;  %v4694_v25 = vsel %vm4508_vm8, %v7613_v9, 0.0  ;;  %v685_v14 = vadd.f32 3.0, %v557_v56 }
 0x1db   :  { %v549_v13 = vadd.f32 %v7652_v0, %v548_v21  ;;  %v3349_v50 = vadd.f32 %v3285_v27, %v3217_v53  ;;  %v4759_v26 = vmul.f32 %v7427_v46, %v4693_v51  ;;  %v4760_v57 = vmul.f32 %v7427_v46, %v4694_v25 }
 0x1dc   :  { %v3677_v55 = vadd.f32 %v7527_v48, %v3348_v3  ;;  %v749_v43 = vmax.f32 %v685_v14, 0.0  ;;  %v986_v16 = vadd.s32 160, %v10929_v61  ;;  %v987_v42 = vadd.s32 168, %v10929_v61 }
 0x1dd   :  { %v683_v29 = vadd.f32 3.0, %v549_v13  ;;  %v3678_v32 = vadd.f32 %v3614_v62, %v3349_v50  ;;  %v10965_v1 = vrot.slane %v10960_v23, 7  ;;  %v10966_v15 = vrot.slane %v6632_v7, 7 }
 0x1de   :  { %v4126_v28 = vadd.f32 %v4062_v19, %v3677_v55  ;;  %v10967_v48 = vrot.slane %v6626_v20, 7  ;;  %v813_v3 = vmin.f32 %v749_v43, 6.0  ;;  %v1050_v25 = vand.u32 15, %v986_v16 }
 0x1df   :  { %v7687_v27 = vsel %vm1284_vm2, %v10966_v15, %v10965_v1  ;;  %v10968_v21 = vmov %v10965_v1  ;;  %v747_v51 = vmax.f32 %v683_v29, 0.0  ;;  %v1051_v14 = vand.u32 15, %v987_v42 }
 0x1e0   :  { %v7694_v53 = vsel %vm1284_vm2, %v10968_v21, %v10967_v48  ;;  %v4127_v62 = vadd.f32 %v4063_v4, %v3678_v32  ;;  %v4443_v19 = vadd.f32 %v4380_v24, %v4126_v28  ;;  %v1114_v50 = vshra.s32 %v986_v16, 4 }
 0x1e1   :  { %v1115_v55 = vshra.s32 %v987_v42, 4  ;;  %v877_v37 = vmul.f32 %v813_v3, %v557_v56  ;;  %v811_v49 = vmin.f32 %v747_v51, 6.0  ;;  %vm7696_vm3 = vcmp.ge.s32.totalorder %v1050_v25, 1 }
 0x1e2   :  { %v2339_v1 = vrot.slane %v6626_v20, 1  ;;  %v4444_v63 = vadd.f32 %v4381_v22, %v4127_v62  ;;  %v4822_v12 = vadd.f32 %v4759_v26, %v4443_v19  ;;  %v7701_v48 = vand.u32 15, %v1114_v50 }
 0x1e3   :  { %v1179_v43 = vand.u32 15, %v1115_v55  ;;  %v7703_v29 = vmul.f32 0.16666667, %v877_v37  ;;  %v875_v21 = vmul.f32 %v811_v49, %v549_v13  ;;  %v10972_v4 = vrot.slane %v10960_v23, 1 }
 0x1e4   :  { %v10656_v56 = vrot.slane %v6737_v18, 1  ;;  %v4823_v16 = vadd.f32 %v4760_v57, %v4444_v63  ;;  %v4893_v42 = vadd.f32 %v7464_v10, %v4822_v12  ;;  %vm1490_vm5 = vcmp.ge.s32.totalorder %v7701_v48, 1 }
 0x1e5   :  { %10971 = vst [vmem:[#allocation42_spill] sm:$0xff] %v7703_v29  ;;  %v7708_v24 = vsel %vm2293_vm12, %v10972_v4, %v2339_v1  ;;  %vm1491_vm1 = vcmp.ge.s32.totalorder %v1179_v43, 1  ;;  %v7714_v22 = vmul.f32 0.16666667, %v875_v21  ;;  %vm1616_vm0 = vmand %vm1490_vm5, %vm7696_vm3  ;;  %v2118_v37 = vsel %vm1490_vm5, %v10937_v8, 0.0 }
 0x1e6   :  { %v1803_v49 = vsel %vm1491_vm1, %v7446_v11, 0.0  ;;  %v4894_v12 = vadd.f32 %v7464_v10, %v4823_v16  ;;  %v4957_v63 = vmax.f32 %v4893_v42, 0.0  ;;  %v1802_v13 = vsel %vm1616_vm0, %v7439_v41, 0.0 }
 0x1e7   :  { %10973 = vst [vmem:[#allocation43_spill] sm:$0xff] %v7714_v22  ;;  %v1870_v57 = vmul.f32 %v6083_v60, %v1803_v49  ;;  %v1869_v28 = vmul.f32 %v6083_v60, %v1802_v13  ;;  %v2119_v3 = vsel %vm1491_vm1, %v6388_v54, 0.0  ;;  %v2185_v11 = vmul.f32 %v6080_v58, %v2118_v37 }
 0x1e8   :  { %v4958_v51 = vmax.f32 %v4894_v12, 0.0  ;;  %v2186_v25 = vmul.f32 %v6080_v58, %v2119_v3  ;;  %v7737_v62 = vsel %vm2293_vm12, %v2339_v1, %v10656_v56  ;;  %vm7739_vm13 = vcmp.le.s32.totalorder %v1051_v14, 14  ;;  %v5718_v12 = vpop.f32.mrf.mxu0 }
 0x1e9   :  { %v2248_v19 = vadd.f32 %v2185_v11, %v1869_v28  ;;  %vm2567_vm6 = vmand %vm1491_vm1, %vm7739_vm13  ;;  %v2755_v50 = vsel %vm1490_vm5, %v7458_v2, 0.0  ;;  %v3086_v55 = vsel %vm7696_vm3, %v7563_v5, 0.0  ;;  %v7754_v1 = vmul.f32 %v6147_v34, %v7694_v53 }
 0x1ea   :  { %v5012_v14 = vpack.c.bf16 %v4958_v51, %v4957_v63  ;;  %v2249_v21 = vadd.f32 %v2186_v25, %v1870_v57  ;;  %v2756_v4 = vsel %vm2567_vm6, %v7493_v30, 0.0  ;;  %v2823_v16 = vmul.f32 %v6101_v6, %v2755_v50 }
 0x1eb   :  { %v2824_v42 = vmul.f32 %v6101_v6, %v2756_v4  ;;  %v3154_v49 = vmul.f32 %v6147_v34, %v3086_v55  ;;  %v3286_v2 = vmul.f32 %v6149_v35, %v6431_v31  ;;  %v3287_v37 = vmul.f32 %v6149_v35, %v6632_v7 }
 0x1ec   :  { %5772 = vmatmul.mubr.bf16.gmra.mxu1 %v5012_v14  ;;  %v2887_v13 = vadd.f32 %v2823_v16, %v2248_v19  ;;  %v3548_v63 = vsel %vm7739_vm13, %v7613_v9, 0.0  ;;  %v7769_v30 = vmul.f32 %v6162_v44, %v7708_v24  ;;  %vm3745_vm10 = vcmp.le.s32.totalorder %v7701_v48, 14  ;;  %v551_v14 = vpop.f32.mrf.mxu0 }
 0x1ed   :  { %v2888_v57 = vadd.f32 %v2824_v42, %v2249_v21  ;;  %v3616_v28 = vmul.f32 %v6162_v44, %v3548_v63  ;;  %vm3746_vm9 = vcmp.le.s32.totalorder %v1179_v43, 14  ;;  %vm3808_vm14 = vmand %vm3745_vm10, %vm7696_vm3  ;;  %v4316_v3 = vsel %vm3745_vm10, %v10960_v23, 0.0 }
 0x1ee   :  { %v3218_v11 = vadd.f32 %v3154_v49, %v2887_v13  ;;  %v3997_v51 = vsel %vm3808_vm14, %v7687_v27, 0.0  ;;  %v3998_v25 = vsel %vm3746_vm9, %v7694_v53, 0.0  ;;  %v4317_v19 = vsel %vm3746_vm9, %v6626_v20, 0.0  ;;  %vm4510_vm4 = vmand %vm3746_vm9, %vm7739_vm13 }
 0x1ef   :  { %v3219_v43 = vadd.f32 %v7627_v40, %v2888_v57  ;;  %v4064_v15 = vmul.f32 %v6167_v47, %v3997_v51  ;;  %v4065_v50 = vmul.f32 %v6167_v47, %v3998_v25  ;;  %v4382_v55 = vmul.f32 %v6164_v45, %v4316_v3 }
 0x1f0   :  { %v3350_v21 = vadd.f32 %v3286_v2, %v3218_v11  ;;  %v4383_v4 = vmul.f32 %v6164_v45, %v4317_v19  ;;  %v4695_v16 = vsel %vm3745_vm10, %v7708_v24, 0.0  ;;  %v4696_v42 = vsel %vm4510_vm4, %v7737_v62, 0.0 }
 0x1f1   :  { %v3351_v41 = vadd.f32 %v3287_v37, %v3219_v43  ;;  %v4761_v49 = vmul.f32 %v7427_v46, %v4695_v16  ;;  %v4762_v40 = vmul.f32 %v7427_v46, %v4696_v42  ;;  %v560_v13 = vadd.f32 %v7652_v0, %v5718_v12 }
 0x1f2   :  { %v3679_v63 = vadd.f32 %v7645_v17, %v3350_v21  ;;  %v552_v57 = vadd.f32 %v7652_v0, %v551_v14  ;;  %v988_v2 = vadd.s32 176, %v10929_v61  ;;  %v989_v3 = vadd.s32 184, %v10929_v61 }
 0x1f3   :  { %v3680_v11 = vadd.f32 %v3616_v28, %v3351_v41  ;;  %v686_v48 = vadd.f32 3.0, %v560_v13  ;;  %v10976_v51 = vrot.slane %v6737_v18, 7  ;;  %v10977_v37 = vrot.slane %v6626_v20, 7 }
 0x1f4   :  { %v10978_v19 = vrot.slane %v6830_v33, 7  ;;  %v4128_v43 = vadd.f32 %v4064_v15, %v3679_v63  ;;  %v684_v14 = vadd.f32 3.0, %v552_v57  ;;  %v1052_v21 = vand.u32 15, %v988_v2 }
 0x1f5   :  { %v7806_v25 = vsel %vm1284_vm2, %v10977_v37, %v10976_v51  ;;  %v10979_v12 = vmov %v10976_v51  ;;  %v1053_v16 = vand.u32 15, %v989_v3  ;;  %v4129_v28 = vadd.f32 %v4065_v50, %v3680_v11 }
 0x1f6   :  { %v7813_v17 = vsel %vm1284_vm2, %v10979_v12, %v10978_v19  ;;  %v750_v42 = vmax.f32 %v686_v48, 0.0  ;;  %v1116_v41 = vshra.s32 %v988_v2, 4  ;;  %v1117_v26 = vshra.s32 %v989_v3, 4 }
 0x1f7   :  { %v4445_v32 = vadd.f32 %v4382_v55, %v4128_v43  ;;  %v748_v56 = vmax.f32 %v684_v14, 0.0  ;;  %vm7815_vm15 = vcmp.ge.s32.totalorder %v1052_v21, 1  ;;  %v2343_v37 = vrot.slane %v6830_v33, 1  ;;  %v10983_v55 = vld [vmem:[#allocation3_spill] sm:$0xff] }
 0x1f8   :  { %v4446_v54 = vadd.f32 %v4383_v4, %v4129_v28  ;;  %v814_v8 = vmin.f32 %v750_v42, 6.0  ;;  %v7820_v19 = vand.u32 15, %v1116_v41  ;;  %v1181_v15 = vand.u32 15, %v1117_v26 }
 0x1f9   :  { %v4824_v63 = vadd.f32 %v4761_v49, %v4445_v32  ;;  %v812_v12 = vmin.f32 %v748_v56, 6.0  ;;  %v10982_v50 = vrot.slane %v6737_v18, 1  ;;  %v10659_v3 = vrot.slane %v10983_v55, 1 }
 0x1fa   :  { %v4825_v11 = vadd.f32 %v4762_v40, %v4446_v54  ;;  %v878_v48 = vmul.f32 %v814_v8, %v560_v13  ;;  %vm1492_vm11 = vcmp.ge.s32.totalorder %v7820_v19, 1  ;;  %vm1493_vm7 = vcmp.ge.s32.totalorder %v1181_v15, 1 }
 0x1fb   :  { %v7825_v2 = vsel %vm2293_vm12, %v10982_v50, %v2343_v37  ;;  %v4895_v4 = vadd.f32 %v7464_v10, %v4824_v63  ;;  %v876_v43 = vmul.f32 %v812_v12, %v552_v57  ;;  %vm1618_vm8 = vmand %vm1492_vm11, %vm7815_vm15  ;;  %v1805_v56 = vsel %vm1493_vm7, %v7570_v39, 0.0 }
 0x1fc   :  { %v2120_v26 = vsel %vm1492_vm11, %v6431_v31, 0.0  ;;  %v4896_v54 = vadd.f32 %v7464_v10, %v4825_v11  ;;  %v7840_v8 = vmul.f32 0.16666667, %v878_v48  ;;  %v1804_v32 = vsel %vm1618_vm8, %v7563_v5, 0.0 }
 0x1fd   :  { %v1872_v49 = vmul.f32 %v6083_v60, %v1805_v56  ;;  %v4959_v40 = vmax.f32 %v4895_v4, 0.0  ;;  %v7844_v13 = vmul.f32 0.16666667, %v876_v43  ;;  %v1871_v57 = vmul.f32 %v6083_v60, %v1804_v32  ;;  %v5721_v32 = vpop.f32.mrf.mxu0 }
 0x1fe   :  { %10984 = vst [vmem:[#allocation44_spill] sm:$0xff] %v7840_v8  ;;  %v2121_v39 = vsel %vm1493_vm7, %v6632_v7, 0.0  ;;  %v4960_v14 = vmax.f32 %v4896_v54, 0.0  ;;  %v2187_v28 = vmul.f32 %v6080_v58, %v2120_v26  ;;  %v7856_v5 = vsel %vm2293_vm12, %v2343_v37, %v10659_v3 }
 0x1ff   :  { %10985 = vst [vmem:[#allocation45_spill] sm:$0xff] %v7844_v13  ;;  %v2188_v42 = vmul.f32 %v6080_v58, %v2121_v39  ;;  %vm7858_vm3 = vcmp.le.s32.totalorder %v1053_v16, 14  ;;  %v2757_v12 = vsel %vm1492_vm11, %v7582_v38, 0.0  ;;  %v3088_v16 = vsel %vm7815_vm15, %v7687_v27, 0.0 }
 0x200   :  { %v5013_v50 = vpack.c.bf16 %v4960_v14, %v4959_v40  ;;  %v2250_v11 = vadd.f32 %v2187_v28, %v1871_v57  ;;  %vm2569_vm5 = vmand %vm1493_vm7, %vm7858_vm3  ;;  %v2825_v4 = vmul.f32 %v6101_v6, %v2757_v12  ;;  %v7875_v43 = vmul.f32 %v6147_v34, %v7813_v17 }
 0x201   :  { %v2251_v48 = vadd.f32 %v2188_v42, %v1872_v49  ;;  %v2758_v37 = vsel %vm2569_vm5, %v7613_v9, 0.0  ;;  %v3288_v38 = vmul.f32 %v6149_v35, %v10960_v23  ;;  %v3156_v54 = vmul.f32 %v6147_v34, %v3088_v16 }
 0x202   :  { %5775 = vmatprep.mubr.bf16.mxu1 %v5013_v50  ;;  %v2826_v56 = vmul.f32 %v6101_v6, %v2758_v37  ;;  %v2889_v26 = vadd.f32 %v2825_v4, %v2250_v11  ;;  %v3289_v9 = vmul.f32 %v6149_v35, %v6626_v20  ;;  %v3550_v49 = vsel %vm7858_vm3, %v7737_v62, 0.0  ;;  %v564_v37 = vpop.f32.mrf.mxu0 }
 0x203   :  { %v7888_v40 = vmul.f32 %v6162_v44, %v7825_v2  ;;  %vm3747_vm1 = vcmp.le.s32.totalorder %v7820_v19, 14  ;;  %vm3748_vm0 = vcmp.le.s32.totalorder %v1181_v15, 14  ;;  %v3618_v14 = vmul.f32 %v6162_v44, %v3550_v49 }
 0x204   :  { %v2890_v57 = vadd.f32 %v2826_v56, %v2251_v48  ;;  %v3220_v39 = vadd.f32 %v3156_v54, %v2889_v26  ;;  %vm3810_vm13 = vmand %vm3747_vm1, %vm7815_vm15  ;;  %v4000_v28 = vsel %vm3748_vm0, %v7813_v17, 0.0  ;;  %v4318_v50 = vsel %vm3747_vm1, %v6737_v18, 0.0 }
 0x205   :  { %v3999_v42 = vsel %vm3810_vm13, %v7806_v25, 0.0  ;;  %v4067_v12 = vmul.f32 %v6167_v47, %v4000_v28  ;;  %v4319_v15 = vsel %vm3748_vm0, %v6830_v33, 0.0  ;;  %vm4512_vm6 = vmand %vm3748_vm0, %vm7858_vm3  ;;  %v4384_v4 = vmul.f32 %v6164_v45, %v4318_v50 }
 0x206   :  { %v3221_v51 = vadd.f32 %v7754_v1, %v2890_v57  ;;  %v3352_v11 = vadd.f32 %v3288_v38, %v3220_v39  ;;  %v4066_v48 = vmul.f32 %v6167_v47, %v3999_v42  ;;  %v4385_v16 = vmul.f32 %v6164_v45, %v4319_v15 }
 0x207   :  { %v4697_v56 = vsel %vm3747_vm1, %v7825_v2, 0.0  ;;  %v4698_v26 = vsel %vm4512_vm6, %v7856_v5, 0.0  ;;  %v573_v54 = vadd.f32 %v7652_v0, %v5721_v32  ;;  %v565_v39 = vadd.f32 %v7652_v0, %v564_v37 }
 0x208   :  { %v3353_v63 = vadd.f32 %v3289_v9, %v3221_v51  ;;  %v3681_v49 = vadd.f32 %v7769_v30, %v3352_v11  ;;  %v4763_v1 = vmul.f32 %v7427_v46, %v4697_v56  ;;  %v4764_v38 = vmul.f32 %v7427_v46, %v4698_v26  ;;  %v10990_v30 = vld [vmem:[#allocation10_spill] sm:$0xff] }
 0x209   :  { %v689_v57 = vadd.f32 3.0, %v573_v54  ;;  %v990_v28 = vadd.s32 192, %v10929_v61  ;;  %v991_v42 = vadd.s32 200, %v10929_v61  ;;  %v10988_v15 = vrot.slane %v10983_v55, 7 }
 0x20a   :  { %v3682_v19 = vadd.f32 %v3618_v14, %v3353_v63  ;;  %v4130_v50 = vadd.f32 %v4066_v48, %v3681_v49  ;;  %v10989_v32 = vrot.slane %v6830_v33, 7  ;;  %v10991_v51 = vrot.slane %v10990_v30, 7 }
 0x20b   :  { %v10992_v11 = vmov %v10988_v15  ;;  %v753_v37 = vmax.f32 %v689_v57, 0.0  ;;  %v687_v26 = vadd.f32 3.0, %v565_v39  ;;  %v1054_v21 = vand.u32 15, %v990_v28 }
 0x20c   :  { %v7925_v9 = vsel %vm1284_vm2, %v10989_v32, %v10988_v15  ;;  %v7932_v56 = vsel %vm1284_vm2, %v10992_v11, %v10991_v51  ;;  %v1055_v41 = vand.u32 15, %v991_v42  ;;  %v4131_v14 = vadd.f32 %v4067_v12, %v3682_v19 }
 0x20d   :  { %v4447_v48 = vadd.f32 %v4384_v4, %v4130_v50  ;;  %v1118_v63 = vshra.s32 %v990_v28, 4  ;;  %v1119_v49 = vshra.s32 %v991_v42, 4  ;;  %v817_v3 = vmin.f32 %v753_v37, 6.0  ;;  %v10996_v28 = vld [vmem:[#allocation11_spill] sm:$0xff] }
 0x20e   :  { %v751_v7 = vmax.f32 %v687_v26, 0.0  ;;  %vm7934_vm10 = vcmp.ge.s32.totalorder %v1054_v21, 1  ;;  %v2347_v32 = vrot.slane %v10990_v30, 1  ;;  %v4448_v31 = vadd.f32 %v4385_v16, %v4131_v14 }
 0x20f   :  { %v4826_v8 = vadd.f32 %v4763_v1, %v4447_v48  ;;  %v7939_v51 = vand.u32 15, %v1118_v63  ;;  %v1183_v57 = vand.u32 15, %v1119_v49  ;;  %v881_v11 = vmul.f32 %v817_v3, %v573_v54 }
 0x210   :  { %v815_v29 = vmin.f32 %v751_v7, 6.0  ;;  %v10995_v12 = vrot.slane %v10983_v55, 1  ;;  %v10666_v42 = vrot.slane %v10996_v28, 1  ;;  %v4827_v21 = vadd.f32 %v4764_v38, %v4448_v31 }
 0x211   :  { %v4897_v19 = vadd.f32 %v7464_v10, %v4826_v8  ;;  %vm1494_vm9 = vcmp.ge.s32.totalorder %v7939_v51, 1  ;;  %vm1495_vm14 = vcmp.ge.s32.totalorder %v1183_v57, 1  ;;  %v7949_v16 = vmul.f32 0.16666667, %v881_v11 }
 0x212   :  { %v7944_v4 = vsel %vm2293_vm12, %v10995_v12, %v2347_v32  ;;  %v879_v1 = vmul.f32 %v815_v29, %v565_v39  ;;  %vm1620_vm4 = vmand %vm1494_vm9, %vm7934_vm10  ;;  %v1807_v7 = vsel %vm1495_vm14, %v7694_v53, 0.0  ;;  %v2122_v31 = vsel %vm1494_vm9, %v10960_v23, 0.0 }
 0x213   :  { %10997 = vst [vmem:[#allocation46_spill] sm:$0xff] %v7949_v16  ;;  %v4898_v3 = vadd.f32 %v7464_v10, %v4827_v21  ;;  %v4961_v8 = vmax.f32 %v4897_v19, 0.0  ;;  %v1806_v54 = vsel %vm1620_vm4, %v7687_v27, 0.0  ;;  %v1874_v38 = vmul.f32 %v6083_v60, %v1807_v7 }
 0x214   :  { %v7964_v39 = vmul.f32 0.16666667, %v879_v1  ;;  %v1873_v50 = vmul.f32 %v6083_v60, %v1806_v54  ;;  %v2123_v53 = vsel %vm1495_vm14, %v6626_v20, 0.0  ;;  %v2189_v26 = vmul.f32 %v6080_v58, %v2122_v31 }
 0x215   :  { %v4962_v37 = vmax.f32 %v4898_v3, 0.0  ;;  %v2190_v14 = vmul.f32 %v6080_v58, %v2123_v53  ;;  %v7974_v27 = vsel %vm2293_vm12, %v2347_v32, %v10666_v42  ;;  %vm7977_vm15 = vcmp.le.s32.totalorder %v1055_v41, 14  ;;  %v5722_v32 = vpop.f32.mrf.mxu0 }
 0x216   :  { %10998 = vst [vmem:[#allocation47_spill] sm:$0xff] %v7964_v39  ;;  %v2759_v49 = vsel %vm1494_vm9, %v7708_v24, 0.0  ;;  %v3090_v11 = vsel %vm7934_vm10, %v7806_v25, 0.0  ;;  %v2252_v21 = vadd.f32 %v2189_v26, %v1873_v50  ;;  %vm2571_vm11 = vmand %vm1495_vm14, %vm7977_vm15  ;;  %v7995_v24 = vmul.f32 %v6147_v34, %v7932_v56 }
 0x217   :  { %v5014_v12 = vpack.c.bf16 %v4962_v37, %v4961_v8  ;;  %v2253_v19 = vadd.f32 %v2190_v14, %v1874_v38  ;;  %v2827_v41 = vmul.f32 %v6101_v6, %v2759_v49  ;;  %v2760_v1 = vsel %vm2571_vm11, %v7737_v62, 0.0  ;;  %v567_v49 = vpop.f32.mrf.mxu0 }
 0x218   :  { %v3158_v7 = vmul.f32 %v6147_v34, %v3090_v11  ;;  %v3290_v31 = vmul.f32 %v6149_v35, %v6737_v18  ;;  %v2828_v3 = vmul.f32 %v6101_v6, %v2760_v1  ;;  %v3291_v54 = vmul.f32 %v6149_v35, %v6830_v33 }
 0x219   :  { %5776 = vmatmul.mubr.bf16.gmra.mxu1 %v5014_v12  ;;  %v2891_v8 = vadd.f32 %v2827_v41, %v2252_v21  ;;  %v3552_v62 = vsel %vm7977_vm15, %v7856_v5, 0.0  ;;  %v8008_v50 = vmul.f32 %v6162_v44, %v7944_v4  ;;  %vm3749_vm7 = vcmp.le.s32.totalorder %v7939_v51, 14 }
 0x21a   :  { %v3620_v38 = vmul.f32 %v6162_v44, %v3552_v62  ;;  %vm3750_vm8 = vcmp.le.s32.totalorder %v1183_v57, 14  ;;  %v2892_v53 = vadd.f32 %v2828_v3, %v2253_v19  ;;  %vm3812_vm3 = vmand %vm3749_vm7, %vm7934_vm10  ;;  %v4320_v14 = vsel %vm3749_vm7, %v10983_v55, 0.0 }
 0x21b   :  { %v3222_v37 = vadd.f32 %v3158_v7, %v2891_v8  ;;  %v4002_v26 = vsel %vm3750_vm8, %v7932_v56, 0.0  ;;  %v4001_v11 = vsel %vm3812_vm3, %v7925_v9, 0.0  ;;  %v4321_v57 = vsel %vm3750_vm8, %v10990_v30, 0.0  ;;  %vm4514_vm5 = vmand %vm3750_vm8, %vm7977_vm15 }
 0x21c   :  { %v4069_v12 = vmul.f32 %v6167_v47, %v4002_v26  ;;  %v4386_v21 = vmul.f32 %v6164_v45, %v4320_v14  ;;  %v3223_v15 = vadd.f32 %v7875_v43, %v2892_v53  ;;  %v4068_v41 = vmul.f32 %v6167_v47, %v4001_v11 }
 0x21d   :  { %v3354_v19 = vadd.f32 %v3290_v31, %v3222_v37  ;;  %v4387_v1 = vmul.f32 %v6164_v45, %v4321_v57  ;;  %v4699_v7 = vsel %vm3749_vm7, %v7944_v4, 0.0  ;;  %v4700_v3 = vsel %vm4514_vm5, %v7974_v27, 0.0 }
 0x21e   :  { %v576_v8 = vadd.f32 %v7652_v0, %v5722_v32  ;;  %v568_v62 = vadd.f32 %v7652_v0, %v567_v49  ;;  %v3355_v26 = vadd.f32 %v3291_v54, %v3223_v15  ;;  %v4765_v43 = vmul.f32 %v7427_v46, %v4699_v7 }
 0x21f   :  { %v3683_v63 = vadd.f32 %v7888_v40, %v3354_v19  ;;  %v4766_v31 = vmul.f32 %v7427_v46, %v4700_v3  ;;  %v992_v14 = vadd.s32 208, %v10929_v61  ;;  %v993_v51 = vadd.s32 216, %v10929_v61  ;;  %v11003_v40 = vld [vmem:[#allocation6_spill] sm:$0xff] }
 0x220   :  { %v690_v53 = vadd.f32 3.0, %v576_v8  ;;  %v688_v37 = vadd.f32 3.0, %v568_v62  ;;  %v3684_v11 = vadd.f32 %v3620_v38, %v3355_v26  ;;  %v11001_v29 = vrot.slane %v10996_v28, 7 }
 0x221   :  { %v4132_v57 = vadd.f32 %v4068_v41, %v3683_v63  ;;  %v11002_v32 = vrot.slane %v10990_v30, 7  ;;  %v11004_v49 = vrot.slane %v11003_v40, 7  ;;  %v1056_v3 = vand.u32 15, %v992_v14 }
 0x222   :  { %v11005_v15 = vmov %v11001_v29  ;;  %v754_v19 = vmax.f32 %v690_v53, 0.0  ;;  %v752_v7 = vmax.f32 %v688_v37, 0.0  ;;  %v1057_v48 = vand.u32 15, %v993_v51 }
 0x223   :  { %v8044_v54 = vsel %vm1284_vm2, %v11002_v32, %v11001_v29  ;;  %v8051_v46 = vsel %vm1284_vm2, %v11005_v15, %v11004_v49  ;;  %v4133_v38 = vadd.f32 %v4069_v12, %v3684_v11  ;;  %v4449_v41 = vadd.f32 %v4386_v21, %v4132_v57 }
 0x224   :  { %v1120_v26 = vshra.s32 %v992_v14, 4  ;;  %v1121_v63 = vshra.s32 %v993_v51, 4  ;;  %v818_v42 = vmin.f32 %v754_v19, 6.0  ;;  %v816_v20 = vmin.f32 %v752_v7, 6.0  ;;  %v11009_v14 = vld [vmem:[#allocation5_spill] sm:$0xff] }
 0x225   :  { %vm8053_vm1 = vcmp.ge.s32.totalorder %v1056_v3, 1  ;;  %v2351_v32 = vrot.slane %v11003_v40, 1  ;;  %v4450_v23 = vadd.f32 %v4387_v1, %v4133_v38  ;;  %v4828_v16 = vadd.f32 %v4765_v43, %v4449_v41 }
 0x226   :  { %v8058_v49 = vand.u32 15, %v1120_v26  ;;  %v1185_v53 = vand.u32 15, %v1121_v63  ;;  %v882_v37 = vmul.f32 %v818_v42, %v576_v8  ;;  %v880_v15 = vmul.f32 %v816_v20, %v568_v62 }
 0x227   :  { %v11008_v12 = vrot.slane %v10996_v28, 1  ;;  %v10671_v51 = vrot.slane %v11009_v14, 1  ;;  %v4829_v11 = vadd.f32 %v4766_v31, %v4450_v23  ;;  %v4899_v57 = vadd.f32 %v7464_v10, %v4828_v16 }
 0x228   :  { %vm1496_vm0 = vcmp.ge.s32.totalorder %v8058_v49, 1  ;;  %vm1497_vm13 = vcmp.ge.s32.totalorder %v1185_v53, 1  ;;  %v8068_v1 = vmul.f32 0.16666667, %v882_v37  ;;  %v8070_v43 = vmul.f32 0.16666667, %v880_v15 }
 0x229   :  { %v8063_v21 = vsel %vm2293_vm12, %v11008_v12, %v2351_v32  ;;  %vm1622_vm6 = vmand %vm1496_vm0, %vm8053_vm1  ;;  %v1809_v20 = vsel %vm1497_vm13, %v7813_v17, 0.0  ;;  %v2124_v23 = vsel %vm1496_vm0, %v6737_v18, 0.0  ;;  %v4900_v42 = vadd.f32 %v7464_v10, %v4829_v11  ;;  %v5725_v11 = vpop.f32.mrf.mxu0 }
 0x22a   :  { %11010 = vst [vmem:[#allocation48_spill] sm:$0xff] %v8068_v1  ;;  %11011 = vst [vmem:[#allocation49_spill] sm:$0xff] %v8070_v43  ;;  %v4963_v16 = vmax.f32 %v4899_v57, 0.0  ;;  %v1808_v8 = vsel %vm1622_vm6, %v7806_v25, 0.0  ;;  %v1876_v62 = vmul.f32 %v6083_v60, %v1809_v20  ;;  %v2125_v17 = vsel %vm1497_vm13, %v6830_v33, 0.0 }
 0x22b   :  { %v1875_v7 = vmul.f32 %v6083_v60, %v1808_v8  ;;  %v4964_v3 = vmax.f32 %v4900_v42, 0.0  ;;  %v2191_v38 = vmul.f32 %v6080_v58, %v2124_v23  ;;  %v2192_v41 = vmul.f32 %v6080_v58, %v2125_v17 }
 0x22c   :  { %v8094_v10 = vsel %vm2293_vm12, %v2351_v32, %v10671_v51  ;;  %vm8096_vm10 = vcmp.le.s32.totalorder %v1057_v48, 14  ;;  %v2761_v26 = vsel %vm1496_vm0, %v7825_v2, 0.0  ;;  %v3092_v63 = vsel %vm8053_vm1, %v7925_v9, 0.0 }
 0x22d   :  { %v8108_v37 = vmul.f32 %v6147_v34, %v8051_v46  ;;  %v5015_v15 = vpack.c.bf16 %v4964_v3, %v4963_v16  ;;  %v2254_v12 = vadd.f32 %v2191_v38, %v1875_v7  ;;  %v2255_v32 = vadd.f32 %v2192_v41, %v1876_v62  ;;  %vm2573_vm9 = vmand %vm1497_vm13, %vm8096_vm10 }
 0x22e   :  { %v2829_v48 = vmul.f32 %v6101_v6, %v2761_v26  ;;  %v2762_v2 = vsel %vm2573_vm9, %v7856_v5, 0.0  ;;  %v3160_v57 = vmul.f32 %v6147_v34, %v3092_v63  ;;  %v3292_v20 = vmul.f32 %v6149_v35, %v10983_v55  ;;  %v580_v26 = vpop.f32.mrf.mxu0 }
 0x22f   :  { %v3293_v23 = vmul.f32 %v6149_v35, %v10990_v30  ;;  %5779 = vmatprep.mubr.bf16.mxu1 %v5015_v15  ;;  %v2830_v42 = vmul.f32 %v6101_v6, %v2762_v2  ;;  %v3554_v8 = vsel %vm8096_vm10, %v7974_v27, 0.0  ;;  %v8126_v62 = vmul.f32 %v6162_v44, %v8063_v21 }
 0x230   :  { %v2893_v16 = vadd.f32 %v2829_v48, %v2254_v12  ;;  %v3622_v5 = vmul.f32 %v6162_v44, %v3554_v8  ;;  %vm3751_vm14 = vcmp.le.s32.totalorder %v8058_v49, 14  ;;  %vm3752_vm4 = vcmp.le.s32.totalorder %v1185_v53, 14 }
 0x231   :  { %v589_v7 = vadd.f32 %v7652_v0, %v5725_v11  ;;  %v2894_v17 = vadd.f32 %v2830_v42, %v2255_v32  ;;  %vm3814_vm15 = vmand %vm3751_vm14, %vm8053_vm1  ;;  %v4004_v38 = vsel %vm3752_vm4, %v8051_v46, 0.0  ;;  %v4322_v41 = vsel %vm3751_vm14, %v10996_v28, 0.0 }
 0x232   :  { %v3224_v3 = vadd.f32 %v3160_v57, %v2893_v16  ;;  %v4003_v63 = vsel %vm3814_vm15, %v8044_v54, 0.0  ;;  %v4071_v53 = vmul.f32 %v6167_v47, %v4004_v38  ;;  %v4323_v15 = vsel %vm3752_vm4, %v11003_v40, 0.0  ;;  %vm4516_vm11 = vmand %vm3752_vm4, %vm8096_vm10 }
 0x233   :  { %v4388_v12 = vmul.f32 %v6164_v45, %v4322_v41  ;;  %v3225_v29 = vadd.f32 %v7995_v24, %v2894_v17  ;;  %v4070_v48 = vmul.f32 %v6167_v47, %v4003_v63  ;;  %v4389_v11 = vmul.f32 %v6164_v45, %v4323_v15  ;;  %v8157_v24 = vld [vmem:[%s10563_s3 + $0x8] ss:$0 sm:$0xff] }
 0x234   :  { %v3356_v32 = vadd.f32 %v3292_v20, %v3224_v3  ;;  %v4701_v2 = vsel %vm3751_vm14, %v8063_v21, 0.0  ;;  %v4702_v57 = vsel %vm4516_vm11, %v8094_v10, 0.0  ;;  %v693_v42 = vadd.f32 3.0, %v589_v7 }
 0x235   :  { %v581_v16 = vadd.f32 %v7652_v0, %v580_v26  ;;  %v3357_v8 = vadd.f32 %v3293_v23, %v3225_v29  ;;  %v4767_v20 = vmul.f32 %v8157_v24, %v4701_v2  ;;  %v4768_v17 = vmul.f32 %v8157_v24, %v4702_v57  ;;  %v11016_v29 = vld [vmem:[#allocation12_spill] sm:$0xff] }
 0x236   :  { %v3685_v25 = vadd.f32 %v8008_v50, %v3356_v32  ;;  %v757_v3 = vmax.f32 %v693_v42, 0.0  ;;  %v994_v38 = vadd.s32 224, %v10929_v61  ;;  %v995_v41 = vadd.s32 232, %v10929_v61 }
 0x237   :  { %v691_v49 = vadd.f32 3.0, %v581_v16  ;;  %v3686_v63 = vadd.f32 %v3622_v5, %v3357_v8  ;;  %v11014_v23 = vrot.slane %v11009_v14, 7  ;;  %v11015_v50 = vrot.slane %v11003_v40, 7 }
 0x238   :  { %v4134_v26 = vadd.f32 %v4070_v48, %v3685_v25  ;;  %v11017_v32 = vrot.slane %v11016_v29, 7  ;;  %v821_v42 = vmin.f32 %v757_v3, 6.0  ;;  %v1058_v19 = vand.u32 15, %v994_v38 }
 0x239   :  { %v8168_v15 = vsel %vm1284_vm2, %v11015_v50, %v11014_v23  ;;  %v11018_v2 = vmov %v11014_v23  ;;  %v755_v31 = vmax.f32 %v691_v49, 0.0  ;;  %v1059_v51 = vand.u32 15, %v995_v41 }
 0x23a   :  { %v8175_v57 = vsel %vm1284_vm2, %v11018_v2, %v11017_v32  ;;  %v4135_v5 = vadd.f32 %v4071_v53, %v3686_v63  ;;  %v4451_v48 = vadd.f32 %v4388_v12, %v4134_v26  ;;  %v1122_v8 = vshra.s32 %v994_v38, 4  ;;  %v8195_v38 = vld [vmem:[%s10565_s4] ss:$0 sm:$0xff] }
 0x23b   :  { %v1123_v25 = vshra.s32 %v995_v41, 4  ;;  %v885_v33 = vmul.f32 %v821_v42, %v589_v7  ;;  %v819_v18 = vmin.f32 %v755_v31, 6.0  ;;  %vm8177_vm7 = vcmp.ge.s32.totalorder %v1058_v19, 1  ;;  %v11023_v31 = vld [vmem:[#allocation13_spill] sm:$0xff] }
 0x23c   :  { %v2355_v50 = vrot.slane %v11016_v29, 1  ;;  %v4452_v1 = vadd.f32 %v4389_v11, %v4135_v5  ;;  %v4830_v43 = vadd.f32 %v4767_v20, %v4451_v48  ;;  %v8182_v32 = vand.u32 15, %v1122_v8 }
 0x23d   :  { %v1187_v3 = vand.u32 15, %v1123_v25  ;;  %v8184_v49 = vmul.f32 0.16666667, %v885_v33  ;;  %v883_v2 = vmul.f32 %v819_v18, %v581_v16  ;;  %v11022_v53 = vrot.slane %v11009_v14, 1 }
 0x23e   :  { %v10678_v19 = vrot.slane %v11023_v31, 1  ;;  %v4831_v7 = vadd.f32 %v4768_v17, %v4452_v1  ;;  %v4901_v11 = vadd.f32 %v8195_v38, %v4830_v43  ;;  %vm1498_vm8 = vcmp.ge.s32.totalorder %v8182_v32, 1 }
 0x23f   :  { %11021 = vst [vmem:[#allocation50_spill] sm:$0xff] %v8184_v49  ;;  %v8189_v12 = vsel %vm2293_vm12, %v11022_v53, %v2355_v50  ;;  %vm1499_vm3 = vcmp.ge.s32.totalorder %v1187_v3, 1  ;;  %v8200_v33 = vmul.f32 0.16666667, %v883_v2  ;;  %vm1624_vm5 = vmand %vm1498_vm8, %vm8177_vm7  ;;  %v2126_v16 = vsel %vm1498_vm8, %v10983_v55, 0.0 }
 0x240   :  { %v1811_v1 = vsel %vm1499_vm3, %v7932_v56, 0.0  ;;  %v4902_v43 = vadd.f32 %v8195_v38, %v4831_v7  ;;  %v4965_v20 = vmax.f32 %v4901_v11, 0.0  ;;  %v1810_v17 = vsel %vm1624_vm5, %v7925_v9, 0.0 }
 0x241   :  { %11024 = vst [vmem:[#allocation51_spill] sm:$0xff] %v8200_v33  ;;  %v1878_v41 = vmul.f32 %v6083_v60, %v1811_v1  ;;  %v1877_v26 = vmul.f32 %v6083_v60, %v1810_v17  ;;  %v2127_v42 = vsel %vm1499_vm3, %v10990_v30, 0.0  ;;  %v2193_v56 = vmul.f32 %v6080_v58, %v2126_v16 }
 0x242   :  { %v4966_v5 = vmax.f32 %v4902_v43, 0.0  ;;  %v2194_v48 = vmul.f32 %v6080_v58, %v2127_v42  ;;  %v8223_v8 = vsel %vm2293_vm12, %v2355_v50, %v10678_v19  ;;  %vm8225_vm1 = vcmp.le.s32.totalorder %v1059_v51, 14 }
 0x243   :  { %v2256_v25 = vadd.f32 %v2193_v56, %v1877_v26  ;;  %vm2575_vm0 = vmand %vm1499_vm3, %vm8225_vm1  ;;  %v2763_v2 = vsel %vm1498_vm8, %v7944_v4, 0.0  ;;  %v3094_v53 = vsel %vm8177_vm7, %v8044_v54, 0.0  ;;  %v8240_v50 = vmul.f32 %v6147_v34, %v8175_v57  ;;  %v5726_v26 = vpop.f32.mrf.mxu0 }
 0x244   :  { %v5016_v51 = vpack.c.bf16 %v4966_v5, %v4965_v20  ;;  %v2257_v7 = vadd.f32 %v2194_v48, %v1878_v41  ;;  %v2764_v11 = vsel %vm2575_vm0, %v7974_v27, 0.0  ;;  %v2831_v1 = vmul.f32 %v6101_v6, %v2763_v2 }
 0x245   :  { %v2832_v16 = vmul.f32 %v6101_v6, %v2764_v11  ;;  %v3162_v43 = vmul.f32 %v6147_v34, %v3094_v53  ;;  %v3294_v4 = vmul.f32 %v6149_v35, %v10996_v28  ;;  %v3295_v17 = vmul.f32 %v6149_v35, %v11003_v40  ;;  %v583_v11 = vpop.f32.mrf.mxu0 }
 0x246   :  { %5780 = vmatmul.mubr.bf16.gmra.mxu1 %v5016_v51  ;;  %v2895_v42 = vadd.f32 %v2831_v1, %v2256_v25  ;;  %v3556_v20 = vsel %vm8225_vm1, %v8094_v10, 0.0  ;;  %v8255_v27 = vmul.f32 %v6162_v44, %v8189_v12  ;;  %vm3753_vm13 = vcmp.le.s32.totalorder %v8182_v32, 14 }
 0x247   :  { %v2896_v41 = vadd.f32 %v2832_v16, %v2257_v7  ;;  %v3624_v56 = vmul.f32 %v6162_v44, %v3556_v20  ;;  %vm3754_vm6 = vcmp.le.s32.totalorder %v1187_v3, 14  ;;  %vm3816_vm10 = vmand %vm3753_vm13, %vm8177_vm7  ;;  %v4324_v5 = vsel %vm3753_vm13, %v11009_v14, 0.0 }
 0x248   :  { %v3226_v48 = vadd.f32 %v3162_v43, %v2895_v42  ;;  %v4005_v25 = vsel %vm3816_vm10, %v8168_v15, 0.0  ;;  %v4006_v2 = vsel %vm3754_vm6, %v8175_v57, 0.0  ;;  %v4325_v53 = vsel %vm3754_vm6, %v11016_v29, 0.0  ;;  %vm4518_vm9 = vmand %vm3754_vm6, %vm8225_vm1 }
 0x249   :  { %v3227_v3 = vadd.f32 %v8108_v37, %v2896_v41  ;;  %v4072_v23 = vmul.f32 %v6167_v47, %v4005_v25  ;;  %v4073_v51 = vmul.f32 %v6167_v47, %v4006_v2  ;;  %v4390_v7 = vmul.f32 %v6164_v45, %v4324_v5 }
 0x24a   :  { %v3358_v1 = vadd.f32 %v3294_v4, %v3226_v48  ;;  %v4391_v16 = vmul.f32 %v6164_v45, %v4325_v53  ;;  %v4703_v43 = vsel %vm3753_vm13, %v8189_v12, 0.0  ;;  %v4704_v42 = vsel %vm4518_vm9, %v8223_v8, 0.0 }
 0x24b   :  { %v3359_v9 = vadd.f32 %v3295_v17, %v3227_v3  ;;  %v4769_v20 = vmul.f32 %v8157_v24, %v4703_v43  ;;  %v4770_v37 = vmul.f32 %v8157_v24, %v4704_v42  ;;  %v592_v41 = vadd.f32 %v7652_v0, %v5726_v26 }
 0x24c   :  { %v3687_v25 = vadd.f32 %v8126_v62, %v3358_v1  ;;  %v584_v5 = vadd.f32 %v7652_v0, %v583_v11  ;;  %v996_v4 = vadd.s32 240, %v10929_v61  ;;  %v997_v48 = vadd.s32 248, %v10929_v61 }
 0x24d   :  { %v3688_v2 = vadd.f32 %v3624_v56, %v3359_v9  ;;  %v694_v32 = vadd.f32 3.0, %v592_v41  ;;  %v11027_v53 = vrot.slane %v11023_v31, 7  ;;  %v11028_v17 = vrot.slane %v11016_v29, 7 }
 0x24e   :  { %v11029_v43 = vrot.slane %v7353_v52, 7  ;;  %v4136_v0 = vadd.f32 %v4072_v23, %v3687_v25  ;;  %v692_v11 = vadd.f32 3.0, %v584_v5  ;;  %v1060_v1 = vand.u32 15, %v996_v4 }
 0x24f   :  { %v8292_v3 = vsel %vm1284_vm2, %v11028_v17, %v11027_v53  ;;  %v11030_v26 = vmov %v11027_v53  ;;  %v1061_v42 = vand.u32 15, %v997_v48  ;;  %v4137_v56 = vadd.f32 %v4073_v51, %v3688_v2 }
 0x250   :  { %v8299_v62 = vsel %vm1284_vm2, %v11030_v26, %v11029_v43  ;;  %v758_v9 = vmax.f32 %v694_v32, 0.0  ;;  %v1124_v18 = vshra.s32 %v996_v4, 4  ;;  %v1125_v63 = vshra.s32 %v997_v48, 4 }
 0x251   :  { %v4453_v19 = vadd.f32 %v4390_v7, %v4136_v0  ;;  %v756_v30 = vmax.f32 %v692_v11, 0.0  ;;  %vm8301_vm14 = vcmp.ge.s32.totalorder %v1060_v1, 1  ;;  %v2359_v17 = vrot.slane %v7353_v52, 1  ;;  %v11034_v7 = vld [vmem:[#allocation7_spill] sm:$0xff] }
 0x252   :  { %v4454_v55 = vadd.f32 %v4391_v16, %v4137_v56  ;;  %v822_v49 = vmin.f32 %v758_v9, 6.0  ;;  %v8306_v43 = vand.u32 15, %v1124_v18  ;;  %v1189_v23 = vand.u32 15, %v1125_v63 }
 0x253   :  { %v4832_v25 = vadd.f32 %v4769_v20, %v4453_v19  ;;  %v820_v26 = vmin.f32 %v756_v30, 6.0  ;;  %v11033_v51 = vrot.slane %v11023_v31, 1  ;;  %v10683_v48 = vrot.slane %v11034_v7, 1 }
 0x254   :  { %v4833_v2 = vadd.f32 %v4770_v37, %v4454_v55  ;;  %v886_v32 = vmul.f32 %v822_v49, %v592_v41  ;;  %vm1500_vm4 = vcmp.ge.s32.totalorder %v8306_v43, 1  ;;  %vm1501_vm15 = vcmp.ge.s32.totalorder %v1189_v23, 1 }
 0x255   :  { %v8311_v4 = vsel %vm2293_vm12, %v11033_v51, %v2359_v17  ;;  %v4903_v16 = vadd.f32 %v8195_v38, %v4832_v25  ;;  %v884_v0 = vmul.f32 %v820_v26, %v584_v5  ;;  %vm1626_vm11 = vmand %vm1500_vm4, %vm8301_vm14  ;;  %v1813_v30 = vsel %vm1501_vm15, %v8051_v46, 0.0  ;;  %v8402_v25 = vld [vmem:[%s10564_s2] ss:$0 sm:$0xff] }
 0x256   :  { %v2128_v19 = vsel %vm1500_vm4, %v10996_v28, 0.0  ;;  %v4904_v55 = vadd.f32 %v8195_v38, %v4833_v2  ;;  %v8326_v49 = vmul.f32 0.16666667, %v886_v32  ;;  %v1812_v18 = vsel %vm1626_vm11, %v8044_v54, 0.0 }
 0x257   :  { %v1880_v63 = vmul.f32 %v6083_v60, %v1813_v30  ;;  %v4967_v20 = vmax.f32 %v4903_v16, 0.0  ;;  %v8330_v37 = vmul.f32 0.16666667, %v884_v0  ;;  %v1879_v41 = vmul.f32 %v6083_v60, %v1812_v18  ;;  %v5729_v18 = vpop.f32.mrf.mxu0 }
 0x258   :  { %11035 = vst [vmem:[#allocation52_spill] sm:$0xff] %v8326_v49  ;;  %v2129_v46 = vsel %vm1501_vm15, %v11003_v40, 0.0  ;;  %v4968_v5 = vmax.f32 %v4904_v55, 0.0  ;;  %v2195_v1 = vmul.f32 %v6080_v58, %v2128_v19  ;;  %v8342_v54 = vsel %vm2293_vm12, %v2359_v17, %v10683_v48 }
 0x259   :  { %11036 = vst [vmem:[#allocation53_spill] sm:$0xff] %v8330_v37  ;;  %v2196_v56 = vmul.f32 %v6080_v58, %v2129_v46  ;;  %vm8344_vm7 = vcmp.le.s32.totalorder %v1061_v42, 14  ;;  %v2765_v26 = vsel %vm1500_vm4, %v8063_v21, 0.0  ;;  %v3096_v42 = vsel %vm8301_vm14, %v8168_v15, 0.0 }
 0x25a   :  { %v5017_v51 = vpack.c.bf16 %v4968_v5, %v4967_v20  ;;  %v2258_v2 = vadd.f32 %v2195_v1, %v1879_v41  ;;  %vm2577_vm8 = vmand %vm1501_vm15, %vm8344_vm7  ;;  %v2833_v16 = vmul.f32 %v6101_v6, %v2765_v26  ;;  %v8361_v0 = vmul.f32 %v6147_v34, %v8299_v62 }
 0x25b   :  { %v2259_v32 = vadd.f32 %v2196_v56, %v1880_v63  ;;  %v2766_v17 = vsel %vm2577_vm8, %v8094_v10, 0.0  ;;  %v3296_v21 = vmul.f32 %v6149_v35, %v11009_v14  ;;  %v3164_v55 = vmul.f32 %v6147_v34, %v3096_v42 }
 0x25c   :  { %5783 = vmatprep.mubr.bf16.mxu1 %v5017_v51  ;;  %v2834_v30 = vmul.f32 %v6101_v6, %v2766_v17  ;;  %v2897_v19 = vadd.f32 %v2833_v16, %v2258_v2  ;;  %v3297_v10 = vmul.f32 %v6149_v35, %v11016_v29  ;;  %v3558_v63 = vsel %vm8344_vm7, %v8223_v8, 0.0  ;;  %v596_v17 = vpop.f32.mrf.mxu0 }
 0x25d   :  { %v8374_v20 = vmul.f32 %v6162_v44, %v8311_v4  ;;  %vm3755_vm3 = vcmp.le.s32.totalorder %v8306_v43, 14  ;;  %vm3756_vm5 = vcmp.le.s32.totalorder %v1189_v23, 14  ;;  %v3626_v5 = vmul.f32 %v6162_v44, %v3558_v63 }
 0x25e   :  { %v2898_v41 = vadd.f32 %v2834_v30, %v2259_v32  ;;  %v3228_v46 = vadd.f32 %v3164_v55, %v2897_v19  ;;  %vm3818_vm1 = vmand %vm3755_vm3, %vm8301_vm14  ;;  %v4008_v1 = vsel %vm3756_vm5, %v8299_v62, 0.0  ;;  %v4326_v51 = vsel %vm3755_vm3, %v11023_v31, 0.0 }
 0x25f   :  { %v4007_v56 = vsel %vm3818_vm1, %v8292_v3, 0.0  ;;  %v4075_v26 = vmul.f32 %v6167_v47, %v4008_v1  ;;  %v4327_v23 = vsel %vm3756_vm5, %v7353_v52, 0.0  ;;  %vm4520_vm0 = vmand %vm3756_vm5, %vm8344_vm7  ;;  %v4392_v16 = vmul.f32 %v6164_v45, %v4326_v51 }
 0x260   :  { %v3229_v53 = vadd.f32 %v8240_v50, %v2898_v41  ;;  %v3360_v2 = vadd.f32 %v3296_v21, %v3228_v46  ;;  %v4074_v32 = vmul.f32 %v6167_v47, %v4007_v56  ;;  %v4393_v42 = vmul.f32 %v6164_v45, %v4327_v23 }
 0x261   :  { %v4705_v30 = vsel %vm3755_vm3, %v8311_v4, 0.0  ;;  %v4706_v19 = vsel %vm4520_vm0, %v8342_v54, 0.0  ;;  %v605_v50 = vadd.f32 %v8402_v25, %v5729_v18  ;;  %v597_v43 = vadd.f32 %v8402_v25, %v596_v17 }
 0x262   :  { %v3361_v21 = vadd.f32 %v3297_v10, %v3229_v53  ;;  %v3689_v55 = vadd.f32 %v8255_v27, %v3360_v2  ;;  %v4771_v63 = vmul.f32 %v8157_v24, %v4705_v30  ;;  %v4772_v41 = vmul.f32 %v8157_v24, %v4706_v19  ;;  %v11041_v27 = vld [vmem:[#allocation15_spill] sm:$0xff] }
 0x263   :  { %v697_v46 = vadd.f32 3.0, %v605_v50  ;;  %v998_v1 = vadd.s32 256, %v10929_v61  ;;  %v999_v56 = vadd.s32 264, %v10929_v61  ;;  %v11039_v11 = vrot.slane %v11034_v7, 7 }
 0x264   :  { %v3690_v51 = vadd.f32 %v3626_v5, %v3361_v21  ;;  %v4138_v23 = vadd.f32 %v4074_v32, %v3689_v55  ;;  %v11040_v18 = vrot.slane %v7353_v52, 7  ;;  %v11042_v53 = vrot.slane %v11041_v27, 7 }
 0x265   :  { %v11043_v2 = vmov %v11039_v11  ;;  %v761_v17 = vmax.f32 %v697_v46, 0.0  ;;  %v695_v19 = vadd.f32 3.0, %v597_v43  ;;  %v1062_v9 = vand.u32 15, %v998_v1 }
 0x266   :  { %v8416_v10 = vsel %vm1284_vm2, %v11040_v18, %v11039_v11  ;;  %v8423_v30 = vsel %vm1284_vm2, %v11043_v2, %v11042_v53  ;;  %v1063_v48 = vand.u32 15, %v999_v56  ;;  %v4139_v5 = vadd.f32 %v4075_v26, %v3690_v51 }
 0x267   :  { %v4455_v32 = vadd.f32 %v4392_v16, %v4138_v23  ;;  %v1126_v21 = vshra.s32 %v998_v1, 4  ;;  %v1127_v55 = vshra.s32 %v999_v56, 4  ;;  %v825_v40 = vmin.f32 %v761_v17, 6.0 }
 0x268   :  { %v759_v28 = vmax.f32 %v695_v19, 0.0  ;;  %vm8425_vm13 = vcmp.ge.s32.totalorder %v1062_v9, 1  ;;  %v2363_v18 = vrot.slane %v11041_v27, 1  ;;  %v4456_v49 = vadd.f32 %v4393_v42, %v4139_v5 }
 0x269   :  { %v4834_v37 = vadd.f32 %v4771_v63, %v4455_v32  ;;  %v8430_v53 = vand.u32 15, %v1126_v21  ;;  %v1191_v46 = vand.u32 15, %v1127_v55  ;;  %v889_v2 = vmul.f32 %v825_v40, %v605_v50 }
 0x26a   :  { %v823_v33 = vmin.f32 %v759_v28, 6.0  ;;  %v11046_v26 = vrot.slane %v11034_v7, 1  ;;  %v10692_v1 = vrot.slane %v7483_v59, 1  ;;  %v4835_v9 = vadd.f32 %v4772_v41, %v4456_v49 }
 0x26b   :  { %v4905_v56 = vadd.f32 %v8195_v38, %v4834_v37  ;;  %vm1502_vm6 = vcmp.ge.s32.totalorder %v8430_v53, 1  ;;  %vm1503_vm10 = vcmp.ge.s32.totalorder %v1191_v46, 1  ;;  %v8440_v42 = vmul.f32 0.16666667, %v889_v2 }
 0x26c   :  { %v8435_v16 = vsel %vm2293_vm12, %v11046_v26, %v2363_v18  ;;  %v887_v63 = vmul.f32 %v823_v33, %v597_v43  ;;  %vm1628_vm9 = vmand %vm1502_vm6, %vm8425_vm13  ;;  %v1815_v28 = vsel %vm1503_vm10, %v8175_v57, 0.0  ;;  %v2130_v40 = vsel %vm1502_vm6, %v11009_v14, 0.0 }
 0x26d   :  { %11047 = vst [vmem:[#allocation54_spill] sm:$0xff] %v8440_v42  ;;  %v4906_v49 = vadd.f32 %v8195_v38, %v4835_v9  ;;  %v4969_v37 = vmax.f32 %v4905_v56, 0.0  ;;  %v1814_v50 = vsel %vm1628_vm9, %v8168_v15, 0.0  ;;  %v1882_v41 = vmul.f32 %v6083_v60, %v1815_v28 }
 0x26e   :  { %v8455_v43 = vmul.f32 0.16666667, %v887_v63  ;;  %v1881_v51 = vmul.f32 %v6083_v60, %v1814_v50  ;;  %v2131_v57 = vsel %vm1503_vm10, %v11016_v29, 0.0  ;;  %v2197_v17 = vmul.f32 %v6080_v58, %v2130_v40 }
 0x26f   :  { %v4970_v23 = vmax.f32 %v4906_v49, 0.0  ;;  %v2198_v19 = vmul.f32 %v6080_v58, %v2131_v57  ;;  %v8465_v15 = vsel %vm2293_vm12, %v2363_v18, %v10692_v1  ;;  %vm8468_vm14 = vcmp.le.s32.totalorder %v1063_v48, 14  ;;  %v5730_v18 = vpop.f32.mrf.mxu0 }
 0x270   :  { %11048 = vst [vmem:[#allocation55_spill] sm:$0xff] %v8455_v43  ;;  %v2767_v21 = vsel %vm1502_vm6, %v8189_v12, 0.0  ;;  %v3098_v55 = vsel %vm8425_vm13, %v8292_v3, 0.0  ;;  %v2260_v26 = vadd.f32 %v2197_v17, %v1881_v51  ;;  %vm2579_vm4 = vmand %vm1503_vm10, %vm8468_vm14  ;;  %v8486_v12 = vmul.f32 %v6147_v34, %v8423_v30 }
 0x271   :  { %v5018_v2 = vpack.c.bf16 %v4970_v23, %v4969_v37  ;;  %v2261_v9 = vadd.f32 %v2198_v19, %v1882_v41  ;;  %v2835_v48 = vmul.f32 %v6101_v6, %v2767_v21  ;;  %v2768_v56 = vsel %vm2579_vm4, %v8223_v8, 0.0  ;;  %v599_v19 = vpop.f32.mrf.mxu0 }
 0x272   :  { %v3166_v63 = vmul.f32 %v6147_v34, %v3098_v55  ;;  %v3298_v28 = vmul.f32 %v6149_v35, %v11023_v31  ;;  %v2836_v40 = vmul.f32 %v6101_v6, %v2768_v56  ;;  %v3299_v37 = vmul.f32 %v6149_v35, %v7353_v52 }
 0x273   :  { %5784 = vmatmul.mubr.bf16.gmra.mxu1 %v5018_v2  ;;  %v2899_v49 = vadd.f32 %v2835_v48, %v2260_v26  ;;  %v3560_v8 = vsel %vm8468_vm14, %v8342_v54, 0.0  ;;  %v8499_v41 = vmul.f32 %v6162_v44, %v8435_v16  ;;  %vm3757_vm15 = vcmp.le.s32.totalorder %v8430_v53, 14 }
 0x274   :  { %v3628_v50 = vmul.f32 %v6162_v44, %v3560_v8  ;;  %vm3758_vm11 = vcmp.le.s32.totalorder %v1191_v46, 14  ;;  %v2900_v51 = vadd.f32 %v2836_v40, %v2261_v9  ;;  %vm3820_vm7 = vmand %vm3757_vm15, %vm8425_vm13  ;;  %v4328_v17 = vsel %vm3757_vm15, %v11034_v7, 0.0 }
 0x275   :  { %v3230_v57 = vadd.f32 %v3166_v63, %v2899_v49  ;;  %v4010_v23 = vsel %vm3758_vm11, %v8423_v30, 0.0  ;;  %v4009_v21 = vsel %vm3820_vm7, %v8416_v10, 0.0  ;;  %v4329_v46 = vsel %vm3758_vm11, %v11041_v27, 0.0  ;;  %vm4522_vm8 = vmand %vm3758_vm11, %vm8468_vm14 }
 0x276   :  { %v4077_v55 = vmul.f32 %v6167_v47, %v4010_v23  ;;  %v4394_v2 = vmul.f32 %v6164_v45, %v4328_v17  ;;  %v3231_v11 = vadd.f32 %v8361_v0, %v2900_v51  ;;  %v4076_v9 = vmul.f32 %v6167_v47, %v4009_v21 }
 0x277   :  { %v3362_v26 = vadd.f32 %v3298_v28, %v3230_v57  ;;  %v4395_v48 = vmul.f32 %v6164_v45, %v4329_v46  ;;  %v4707_v56 = vsel %vm3757_vm15, %v8435_v16, 0.0  ;;  %v4708_v63 = vsel %vm4522_vm8, %v8465_v15, 0.0 }
 0x278   :  { %v608_v40 = vadd.f32 %v8402_v25, %v5730_v18  ;;  %v600_v49 = vadd.f32 %v8402_v25, %v599_v19  ;;  %v3363_v8 = vadd.f32 %v3299_v37, %v3231_v11  ;;  %v4773_v0 = vmul.f32 %v8157_v24, %v4707_v56 }
 0x279   :  { %v3691_v32 = vadd.f32 %v8374_v20, %v3362_v26  ;;  %v4774_v28 = vmul.f32 %v8157_v24, %v4708_v63  ;;  %v1000_v23 = vadd.s32 272, %v10929_v61  ;;  %v1001_v53 = vadd.s32 280, %v10929_v61 }
 0x27a   :  { %v698_v51 = vadd.f32 3.0, %v608_v40  ;;  %v696_v57 = vadd.f32 3.0, %v600_v49  ;;  %v3692_v17 = vadd.f32 %v3628_v50, %v3363_v8  ;;  %v11051_v46 = vrot.slane %v7483_v59, 7 }
 0x27b   :  { %v4140_v21 = vadd.f32 %v4076_v9, %v3691_v32  ;;  %v11052_v18 = vrot.slane %v11041_v27, 7  ;;  %v11053_v20 = vrot.slane %v7589_v36, 7  ;;  %v1064_v63 = vand.u32 15, %v1000_v23 }
 0x27c   :  { %v11054_v19 = vmov %v11051_v46  ;;  %v762_v26 = vmax.f32 %v698_v51, 0.0  ;;  %v760_v56 = vmax.f32 %v696_v57, 0.0  ;;  %v1065_v33 = vand.u32 15, %v1001_v53 }
 0x27d   :  { %v8535_v37 = vsel %vm1284_vm2, %v11052_v18, %v11051_v46  ;;  %v8542_v11 = vsel %vm1284_vm2, %v11054_v19, %v11053_v20  ;;  %v4141_v50 = vadd.f32 %v4077_v55, %v3692_v17  ;;  %v4457_v9 = vadd.f32 %v4394_v2, %v4140_v21 }
 0x27e   :  { %v1128_v8 = vshra.s32 %v1000_v23, 4  ;;  %v1129_v32 = vshra.s32 %v1001_v53, 4  ;;  %v826_v5 = vmin.f32 %v762_v26, 6.0  ;;  %v824_v1 = vmin.f32 %v760_v56, 6.0  ;;  %v11058_v23 = vld [vmem:[#allocation14_spill] sm:$0xff] }
 0x27f   :  { %vm8544_vm3 = vcmp.ge.s32.totalorder %v1064_v63, 1  ;;  %v2367_v18 = vrot.slane %v7589_v36, 1  ;;  %v4458_v29 = vadd.f32 %v4395_v48, %v4141_v50  ;;  %v4836_v14 = vadd.f32 %v4773_v0, %v4457_v9 }
 0x280   :  { %v8549_v20 = vand.u32 15, %v1128_v8  ;;  %v1193_v51 = vand.u32 15, %v1129_v32  ;;  %v890_v57 = vmul.f32 %v826_v5, %v608_v40  ;;  %v888_v19 = vmul.f32 %v824_v1, %v600_v49 }
 0x281   :  { %v11057_v55 = vrot.slane %v7483_v59, 1  ;;  %v10695_v53 = vrot.slane %v11058_v23, 1  ;;  %v4837_v17 = vadd.f32 %v4774_v28, %v4458_v29  ;;  %v4907_v21 = vadd.f32 %v8195_v38, %v4836_v14 }
 0x282   :  { %vm1504_vm5 = vcmp.ge.s32.totalorder %v8549_v20, 1  ;;  %vm1505_vm1 = vcmp.ge.s32.totalorder %v1193_v51, 1  ;;  %v8559_v48 = vmul.f32 0.16666667, %v890_v57  ;;  %v8561_v0 = vmul.f32 0.16666667, %v888_v19 }
 0x283   :  { %v8554_v2 = vsel %vm2293_vm12, %v11057_v55, %v2367_v18  ;;  %vm1630_vm0 = vmand %vm1504_vm5, %vm8544_vm3  ;;  %v1817_v1 = vsel %vm1505_vm1, %v8299_v62, 0.0  ;;  %v2132_v29 = vsel %vm1504_vm5, %v11023_v31, 0.0  ;;  %v4908_v14 = vadd.f32 %v8195_v38, %v4837_v17 }
 0x284   :  { %11059 = vst [vmem:[#allocation56_spill] sm:$0xff] %v8559_v48  ;;  %11060 = vst [vmem:[#allocation57_spill] sm:$0xff] %v8561_v0  ;;  %v4971_v5 = vmax.f32 %v4907_v21, 0.0  ;;  %v1816_v40 = vsel %vm1630_vm0, %v8292_v3, 0.0  ;;  %v1884_v49 = vmul.f32 %v6083_v60, %v1817_v1  ;;  %v2133_v62 = vsel %vm1505_vm1, %v7353_v52, 0.0  ;;  %v5733_v21 = vpop.f32.mrf.mxu0 }
 0x285   :  { %v1883_v56 = vmul.f32 %v6083_v60, %v1816_v40  ;;  %v4972_v63 = vmax.f32 %v4908_v14, 0.0  ;;  %v2199_v50 = vmul.f32 %v6080_v58, %v2132_v29  ;;  %v2200_v9 = vmul.f32 %v6080_v58, %v2133_v62 }
 0x286   :  { %v8585_v3 = vsel %vm2293_vm12, %v2367_v18, %v10695_v53  ;;  %vm8587_vm13 = vcmp.le.s32.totalorder %v1065_v33, 14  ;;  %v2769_v32 = vsel %vm1504_vm5, %v8311_v4, 0.0  ;;  %v3100_v57 = vsel %vm8544_vm3, %v8416_v10, 0.0 }
 0x287   :  { %v8599_v19 = vmul.f32 %v6147_v34, %v8542_v11  ;;  %v5019_v55 = vpack.c.bf16 %v4972_v63, %v4971_v5  ;;  %v2262_v17 = vadd.f32 %v2199_v50, %v1883_v56  ;;  %v2263_v18 = vadd.f32 %v2200_v9, %v1884_v49  ;;  %vm2581_vm6 = vmand %vm1505_vm1, %vm8587_vm13 }
 0x288   :  { %v2837_v33 = vmul.f32 %v6101_v6, %v2769_v32  ;;  %v2770_v4 = vsel %vm2581_vm6, %v8342_v54, 0.0  ;;  %v3168_v1 = vmul.f32 %v6147_v34, %v3100_v57  ;;  %v3300_v29 = vmul.f32 %v6149_v35, %v11034_v7  ;;  %v612_v57 = vpop.f32.mrf.mxu0 }
 0x289   :  { %v3301_v14 = vmul.f32 %v6149_v35, %v11041_v27  ;;  %5787 = vmatprep.mubr.bf16.mxu1 %v5019_v55  ;;  %v2838_v5 = vmul.f32 %v6101_v6, %v2770_v4  ;;  %v3562_v49 = vsel %vm8587_vm13, %v8465_v15, 0.0  ;;  %v8617_v56 = vmul.f32 %v6162_v44, %v8554_v2 }
 0x28a   :  { %v2901_v40 = vadd.f32 %v2837_v33, %v2262_v17  ;;  %v3630_v54 = vmul.f32 %v6162_v44, %v3562_v49  ;;  %vm3759_vm10 = vcmp.le.s32.totalorder %v8549_v20, 14  ;;  %vm3760_vm9 = vcmp.le.s32.totalorder %v1193_v51, 14 }
 0x28b   :  { %v621_v62 = vadd.f32 %v8402_v25, %v5733_v21  ;;  %v2902_v63 = vadd.f32 %v2838_v5, %v2263_v18  ;;  %vm3822_vm14 = vmand %vm3759_vm10, %vm8544_vm3  ;;  %v4012_v9 = vsel %vm3760_vm9, %v8542_v11, 0.0  ;;  %v4330_v32 = vsel %vm3759_vm10, %v7483_v59, 0.0 }
 0x28c   :  { %v3232_v50 = vadd.f32 %v3168_v1, %v2901_v40  ;;  %v4011_v55 = vsel %vm3822_vm14, %v8535_v37, 0.0  ;;  %v4079_v51 = vmul.f32 %v6167_v47, %v4012_v9  ;;  %v4331_v17 = vsel %vm3760_vm9, %v7589_v36, 0.0  ;;  %vm4524_vm4 = vmand %vm3760_vm9, %vm8587_vm13 }
 0x28d   :  { %v4396_v18 = vmul.f32 %v6164_v45, %v4330_v32  ;;  %v3233_v46 = vadd.f32 %v8486_v12, %v2902_v63  ;;  %v4078_v21 = vmul.f32 %v6167_v47, %v4011_v55  ;;  %v4397_v4 = vmul.f32 %v6164_v45, %v4331_v17 }
 0x28e   :  { %v3364_v33 = vadd.f32 %v3300_v29, %v3232_v50  ;;  %v4709_v1 = vsel %vm3759_vm10, %v8554_v2, 0.0  ;;  %v4710_v5 = vsel %vm4524_vm4, %v8585_v3, 0.0  ;;  %v701_v40 = vadd.f32 3.0, %v621_v62 }
 0x28f   :  { %v613_v49 = vadd.f32 %v8402_v25, %v612_v57  ;;  %v3365_v9 = vadd.f32 %v3301_v14, %v3233_v46  ;;  %v4775_v32 = vmul.f32 %v8157_v24, %v4709_v1  ;;  %v4776_v12 = vmul.f32 %v8157_v24, %v4710_v5 }
 0x290   :  { %v3693_v8 = vadd.f32 %v8499_v41, %v3364_v33  ;;  %v765_v29 = vmax.f32 %v701_v40, 0.0  ;;  %v1002_v50 = vadd.s32 288, %v10929_v61  ;;  %v1003_v55 = vadd.s32 296, %v10929_v61  ;;  %v11065_v41 = vld [vmem:[#allocation2_spill] sm:$0xff] }
 0x291   :  { %v699_v63 = vadd.f32 3.0, %v613_v49  ;;  %v3694_v20 = vadd.f32 %v3630_v54, %v3365_v9  ;;  %v11063_v28 = vrot.slane %v11058_v23, 7  ;;  %v11064_v26 = vrot.slane %v7589_v36, 7 }
 0x292   :  { %v4142_v17 = vadd.f32 %v4078_v21, %v3693_v8  ;;  %v11066_v57 = vrot.slane %v11065_v41, 7  ;;  %v829_v1 = vmin.f32 %v765_v29, 6.0  ;;  %v1066_v40 = vand.u32 15, %v1002_v50 }
 0x293   :  { %v8654_v14 = vsel %vm1284_vm2, %v11064_v26, %v11063_v28  ;;  %v11067_v46 = vmov %v11063_v28  ;;  %v763_v5 = vmax.f32 %v699_v63, 0.0  ;;  %v1067_v53 = vand.u32 15, %v1003_v55 }
 0x294   :  { %v8661_v33 = vsel %vm1284_vm2, %v11067_v46, %v11066_v57  ;;  %v4143_v54 = vadd.f32 %v4079_v51, %v3694_v20  ;;  %v4459_v21 = vadd.f32 %v4396_v18, %v4142_v17  ;;  %v1130_v9 = vshra.s32 %v1002_v50, 4 }
 0x295   :  { %v1131_v8 = vshra.s32 %v1003_v55, 4  ;;  %v893_v52 = vmul.f32 %v829_v1, %v621_v62  ;;  %v827_v31 = vmin.f32 %v763_v5, 6.0  ;;  %vm8663_vm15 = vcmp.ge.s32.totalorder %v1066_v40, 1 }
 0x296   :  { %v2371_v26 = vrot.slane %v11065_v41, 1  ;;  %v4460_v48 = vadd.f32 %v4397_v4, %v4143_v54  ;;  %v4838_v42 = vadd.f32 %v4775_v32, %v4459_v21  ;;  %v8668_v57 = vand.u32 15, %v1130_v9 }
 0x297   :  { %v1195_v29 = vand.u32 15, %v1131_v8  ;;  %v8670_v63 = vmul.f32 0.16666667, %v893_v52  ;;  %v891_v46 = vmul.f32 %v827_v31, %v613_v49  ;;  %v11070_v51 = vrot.slane %v11058_v23, 1 }
 0x298   :  { %v10702_v62 = vrot.slane %v7714_v22, 1  ;;  %v4839_v50 = vadd.f32 %v4776_v12, %v4460_v48  ;;  %v4909_v55 = vadd.f32 %v8195_v38, %v4838_v42  ;;  %vm1506_vm11 = vcmp.ge.s32.totalorder %v8668_v57, 1 }
 0x299   :  { %v8675_v18 = vsel %vm2293_vm12, %v11070_v51, %v2371_v26  ;;  %vm1507_vm7 = vcmp.ge.s32.totalorder %v1195_v29, 1  ;;  %v8681_v32 = vmul.f32 0.16666667, %v891_v46  ;;  %vm1632_vm8 = vmand %vm1506_vm11, %vm8663_vm15  ;;  %v2134_v31 = vsel %vm1506_vm11, %v11034_v7, 0.0 }
 0x29a   :  { %v1819_v52 = vsel %vm1507_vm7, %v8423_v30, 0.0  ;;  %v4910_v42 = vadd.f32 %v8195_v38, %v4839_v50  ;;  %v4973_v48 = vmax.f32 %v4909_v55, 0.0  ;;  %v1818_v49 = vsel %vm1632_vm8, %v8416_v10, 0.0 }
 0x29b   :  { %11071 = vst [vmem:[#allocation58_spill] sm:$0xff] %v8681_v32  ;;  %v1886_v12 = vmul.f32 %v6083_v60, %v1819_v52  ;;  %v1885_v17 = vmul.f32 %v6083_v60, %v1818_v49  ;;  %v2135_v1 = vsel %vm1507_vm7, %v11041_v27, 0.0  ;;  %v2201_v30 = vmul.f32 %v6080_v58, %v2134_v31 }
 0x29c   :  { %v4974_v5 = vmax.f32 %v4910_v42, 0.0  ;;  %v2202_v40 = vmul.f32 %v6080_v58, %v2135_v1  ;;  %v8704_v54 = vsel %vm2293_vm12, %v2371_v26, %v10702_v62  ;;  %vm8706_vm3 = vcmp.le.s32.totalorder %v1067_v53, 14  ;;  %v5734_v42 = vpop.f32.mrf.mxu0 }
 0x29d   :  { %v2264_v21 = vadd.f32 %v2201_v30, %v1885_v17  ;;  %vm2583_vm5 = vmand %vm1507_vm7, %vm8706_vm3  ;;  %v2771_v9 = vsel %vm1506_vm11, %v8435_v16, 0.0  ;;  %v3102_v8 = vsel %vm8663_vm15, %v8535_v37, 0.0  ;;  %v8721_v26 = vmul.f32 %v6147_v34, %v8661_v33 }
 0x29e   :  { %v5020_v53 = vpack.c.bf16 %v4974_v5, %v4973_v48  ;;  %v2265_v46 = vadd.f32 %v2202_v40, %v1886_v12  ;;  %v2772_v51 = vsel %vm2583_vm5, %v8465_v15, 0.0  ;;  %v2839_v50 = vmul.f32 %v6101_v6, %v2771_v9 }
 0x29f   :  { %v2840_v55 = vmul.f32 %v6101_v6, %v2772_v51  ;;  %v3170_v52 = vmul.f32 %v6147_v34, %v3102_v8  ;;  %v3302_v16 = vmul.f32 %v6149_v35, %v7483_v59  ;;  %v3303_v31 = vmul.f32 %v6149_v35, %v7589_v36 }
 0x2a0   :  { %5788 = vmatmul.mubr.bf16.gmra.mxu1 %v5020_v53  ;;  %v2903_v49 = vadd.f32 %v2839_v50, %v2264_v21  ;;  %v3564_v48 = vsel %vm8706_vm3, %v8585_v3, 0.0  ;;  %v8736_v15 = vmul.f32 %v6162_v44, %v8675_v18  ;;  %vm3761_vm1 = vcmp.le.s32.totalorder %v8668_v57, 14  ;;  %v615_v53 = vpop.f32.mrf.mxu0 }
 0x2a1   :  { %v2904_v12 = vadd.f32 %v2840_v55, %v2265_v46  ;;  %v3632_v17 = vmul.f32 %v6162_v44, %v3564_v48  ;;  %vm3762_vm0 = vcmp.le.s32.totalorder %v1195_v29, 14  ;;  %vm3824_vm13 = vmand %vm3761_vm1, %vm8663_vm15  ;;  %v4332_v1 = vsel %vm3761_vm1, %v11058_v23, 0.0 }
 0x2a2   :  { %v3234_v30 = vadd.f32 %v3170_v52, %v2903_v49  ;;  %v4013_v5 = vsel %vm3824_vm13, %v8654_v14, 0.0  ;;  %v4014_v40 = vsel %vm3762_vm0, %v8661_v33, 0.0  ;;  %v4333_v21 = vsel %vm3762_vm0, %v11065_v41, 0.0  ;;  %vm4526_vm6 = vmand %vm3762_vm0, %vm8706_vm3 }
 0x2a3   :  { %v3235_v29 = vadd.f32 %v8599_v19, %v2904_v12  ;;  %v4080_v28 = vmul.f32 %v6167_v47, %v4013_v5  ;;  %v4081_v9 = vmul.f32 %v6167_v47, %v4014_v40  ;;  %v4398_v8 = vmul.f32 %v6164_v45, %v4332_v1 }
 0x2a4   :  { %v3366_v46 = vadd.f32 %v3302_v16, %v3234_v30  ;;  %v4399_v51 = vmul.f32 %v6164_v45, %v4333_v21  ;;  %v4711_v50 = vsel %vm3761_vm1, %v8675_v18, 0.0  ;;  %v4712_v55 = vsel %vm4526_vm6, %v8704_v54, 0.0 }
 0x2a5   :  { %v3367_v10 = vadd.f32 %v3303_v31, %v3235_v29  ;;  %v4777_v52 = vmul.f32 %v8157_v24, %v4711_v50  ;;  %v4778_v19 = vmul.f32 %v8157_v24, %v4712_v55  ;;  %v624_v49 = vadd.f32 %v8402_v25, %v5734_v42 }
 0x2a6   :  { %v3695_v48 = vadd.f32 %v8617_v56, %v3366_v46  ;;  %v616_v12 = vadd.f32 %v8402_v25, %v615_v53  ;;  %v1004_v16 = vadd.s32 304, %v10929_v61  ;;  %v1005_v1 = vadd.s32 312, %v10929_v61 }
 0x2a7   :  { %v3696_v30 = vadd.f32 %v3632_v17, %v3367_v10  ;;  %v702_v57 = vadd.f32 3.0, %v624_v49  ;;  %v11074_v5 = vrot.slane %v7714_v22, 7  ;;  %v11075_v31 = vrot.slane %v11065_v41, 7 }
 0x2a8   :  { %v11076_v24 = vrot.slane %v7844_v13, 7  ;;  %v4144_v21 = vadd.f32 %v4080_v28, %v3695_v48  ;;  %v700_v29 = vadd.f32 3.0, %v616_v12  ;;  %v1068_v53 = vand.u32 15, %v1004_v16 }
 0x2a9   :  { %v8773_v40 = vsel %vm1284_vm2, %v11075_v31, %v11074_v5  ;;  %v11077_v42 = vmov %v11074_v5  ;;  %v1069_v46 = vand.u32 15, %v1005_v1  ;;  %v4145_v17 = vadd.f32 %v4081_v9, %v3696_v30 }
 0x2aa   :  { %v8780_v56 = vsel %vm1284_vm2, %v11077_v42, %v11076_v24  ;;  %v766_v50 = vmax.f32 %v702_v57, 0.0  ;;  %v1132_v55 = vshra.s32 %v1004_v16, 4  ;;  %v1133_v10 = vshra.s32 %v1005_v1, 4 }
 0x2ab   :  { %v4461_v4 = vadd.f32 %v4398_v8, %v4144_v21  ;;  %v764_v20 = vmax.f32 %v700_v29, 0.0  ;;  %vm8782_vm10 = vcmp.ge.s32.totalorder %v1068_v53, 1  ;;  %v2375_v31 = vrot.slane %v7844_v13, 1  ;;  %v11081_v8 = vld [vmem:[#allocation42_spill] sm:$0xff] }
 0x2ac   :  { %v4462_v62 = vadd.f32 %v4399_v51, %v4145_v17  ;;  %v830_v27 = vmin.f32 %v766_v50, 6.0  ;;  %v8787_v24 = vand.u32 15, %v1132_v55  ;;  %v1197_v28 = vand.u32 15, %v1133_v10 }
 0x2ad   :  { %v4840_v48 = vadd.f32 %v4777_v52, %v4461_v4  ;;  %v828_v42 = vmin.f32 %v764_v20, 6.0  ;;  %v11080_v9 = vrot.slane %v7714_v22, 1  ;;  %v10704_v1 = vrot.slane %v11081_v8, 1 }
 0x2ae   :  { %v4841_v30 = vadd.f32 %v4778_v19, %v4462_v62  ;;  %v894_v57 = vmul.f32 %v830_v27, %v624_v49  ;;  %vm1508_vm9 = vcmp.ge.s32.totalorder %v8787_v24, 1  ;;  %vm1509_vm14 = vcmp.ge.s32.totalorder %v1197_v28, 1 }
 0x2af   :  { %v8792_v16 = vsel %vm2293_vm12, %v11080_v9, %v2375_v31  ;;  %v4911_v51 = vadd.f32 %v8195_v38, %v4840_v48  ;;  %v892_v21 = vmul.f32 %v828_v42, %v616_v12  ;;  %vm1634_vm4 = vmand %vm1508_vm9, %vm8782_vm10  ;;  %v1821_v4 = vsel %vm1509_vm14, %v8542_v11, 0.0 }
 0x2b0   :  { %v2136_v20 = vsel %vm1508_vm9, %v7483_v59, 0.0  ;;  %v4912_v27 = vadd.f32 %v8195_v38, %v4841_v30  ;;  %v8807_v62 = vmul.f32 0.16666667, %v894_v57  ;;  %v1820_v52 = vsel %vm1634_vm4, %v8535_v37, 0.0 }
 0x2b1   :  { %v1888_v19 = vmul.f32 %v6083_v60, %v1821_v4  ;;  %v4975_v49 = vmax.f32 %v4911_v51, 0.0  ;;  %v8811_v12 = vmul.f32 0.16666667, %v892_v21  ;;  %v1887_v29 = vmul.f32 %v6083_v60, %v1820_v52 }
 0x2b2   :  { %11082 = vst [vmem:[#allocation59_spill] sm:$0xff] %v8807_v62  ;;  %v2137_v11 = vsel %vm1509_vm14, %v7589_v36, 0.0  ;;  %v4976_v53 = vmax.f32 %v4912_v27, 0.0  ;;  %v2203_v50 = vmul.f32 %v6080_v58, %v2136_v20  ;;  %v8823_v37 = vsel %vm2293_vm12, %v2375_v31, %v10704_v1  ;;  %v5737_v27 = vpop.f32.mrf.mxu0 }
 0x2b3   :  { %11083 = vst [vmem:[#allocation60_spill] sm:$0xff] %v8811_v12  ;;  %v2204_v38 = vmul.f32 %v6080_v58, %v2137_v11  ;;  %vm8825_vm15 = vcmp.le.s32.totalorder %v1069_v46, 14  ;;  %v2773_v48 = vsel %vm1508_vm9, %v8554_v2, 0.0  ;;  %v3104_v46 = vsel %vm8782_vm10, %v8654_v14, 0.0 }
 0x2b4   :  { %v5021_v42 = vpack.c.bf16 %v4976_v53, %v4975_v49  ;;  %v2266_v9 = vadd.f32 %v2203_v50, %v1887_v29  ;;  %vm2585_vm11 = vmand %vm1509_vm14, %vm8825_vm15  ;;  %v2841_v57 = vmul.f32 %v6101_v6, %v2773_v48  ;;  %v8842_v51 = vmul.f32 %v6147_v34, %v8780_v56 }
 0x2b5   :  { %v2267_v30 = vadd.f32 %v2204_v38, %v1888_v19  ;;  %v2774_v31 = vsel %vm2585_vm11, %v8585_v3, 0.0  ;;  %v3304_v2 = vmul.f32 %v6149_v35, %v11058_v23  ;;  %v3172_v20 = vmul.f32 %v6147_v34, %v3104_v46 }
 0x2b6   :  { %5791 = vmatprep.mubr.bf16.mxu1 %v5021_v42  ;;  %v2842_v21 = vmul.f32 %v6101_v6, %v2774_v31  ;;  %v2905_v4 = vadd.f32 %v2841_v57, %v2266_v9  ;;  %v3305_v3 = vmul.f32 %v6149_v35, %v11065_v41  ;;  %v3566_v52 = vsel %vm8825_vm15, %v8704_v54, 0.0  ;;  %v628_v57 = vpop.f32.mrf.mxu0 }
 0x2b7   :  { %v8855_v19 = vmul.f32 %v6162_v44, %v8792_v16  ;;  %vm3763_vm7 = vcmp.le.s32.totalorder %v8787_v24, 14  ;;  %vm3764_vm8 = vcmp.le.s32.totalorder %v1197_v28, 14  ;;  %v3634_v11 = vmul.f32 %v6162_v44, %v3566_v52 }
 0x2b8   :  { %v2906_v49 = vadd.f32 %v2842_v21, %v2267_v30  ;;  %v3236_v29 = vadd.f32 %v3172_v20, %v2905_v4  ;;  %vm3826_vm3 = vmand %vm3763_vm7, %vm8782_vm10  ;;  %v4016_v53 = vsel %vm3764_vm8, %v8780_v56, 0.0  ;;  %v4334_v48 = vsel %vm3763_vm7, %v7714_v22, 0.0 }
 0x2b9   :  { %v4015_v50 = vsel %vm3826_vm3, %v8773_v40, 0.0  ;;  %v4083_v38 = vmul.f32 %v6167_v47, %v4016_v53  ;;  %v4335_v28 = vsel %vm3764_vm8, %v7844_v13, 0.0  ;;  %vm4528_vm5 = vmand %vm3764_vm8, %vm8825_vm15  ;;  %v4400_v30 = vmul.f32 %v6164_v45, %v4334_v48 }
 0x2ba   :  { %v3237_v5 = vadd.f32 %v8721_v26, %v2906_v49  ;;  %v3368_v42 = vadd.f32 %v3304_v2, %v3236_v29  ;;  %v4082_v9 = vmul.f32 %v6167_v47, %v4015_v50  ;;  %v4401_v31 = vmul.f32 %v6164_v45, %v4335_v28  ;;  %v8885_v26 = vld [vmem:[%s10563_s3 + $0x8] ss:$0 sm:$0xff]  ;;  %v11088_v28 = vld [vmem:[#allocation44_spill] sm:$0xff] }
 0x2bb   :  { %v4713_v46 = vsel %vm3763_vm7, %v8792_v16, 0.0  ;;  %v4714_v21 = vsel %vm4528_vm5, %v8823_v37, 0.0  ;;  %v637_v4 = vadd.f32 %v8402_v25, %v5737_v27  ;;  %v629_v24 = vadd.f32 %v8402_v25, %v628_v57 }
 0x2bc   :  { %v3369_v10 = vadd.f32 %v3305_v3, %v3237_v5  ;;  %v3697_v20 = vadd.f32 %v8736_v15, %v3368_v42  ;;  %v4779_v2 = vmul.f32 %v8885_v26, %v4713_v46  ;;  %v4780_v52 = vmul.f32 %v8885_v26, %v4714_v21 }
 0x2bd   :  { %v705_v49 = vadd.f32 3.0, %v637_v4  ;;  %v1006_v29 = vadd.s32 320, %v10929_v61  ;;  %v1007_v53 = vadd.s32 328, %v10929_v61  ;;  %v11086_v15 = vrot.slane %v11081_v8, 7 }
 0x2be   :  { %v3698_v27 = vadd.f32 %v3634_v11, %v3369_v10  ;;  %v4146_v3 = vadd.f32 %v4082_v9, %v3697_v20  ;;  %v11087_v50 = vrot.slane %v7844_v13, 7  ;;  %v11089_v5 = vrot.slane %v11088_v28, 7 }
 0x2bf   :  { %v11090_v42 = vmov %v11086_v15  ;;  %v769_v57 = vmax.f32 %v705_v49, 0.0  ;;  %v703_v21 = vadd.f32 3.0, %v629_v24  ;;  %v1070_v17 = vand.u32 15, %v1006_v29 }
 0x2c0   :  { %v8897_v48 = vsel %vm1284_vm2, %v11087_v50, %v11086_v15  ;;  %v8904_v46 = vsel %vm1284_vm2, %v11090_v42, %v11089_v5  ;;  %v1071_v55 = vand.u32 15, %v1007_v53  ;;  %v4147_v11 = vadd.f32 %v4083_v38, %v3698_v27 }
 0x2c1   :  { %v4463_v9 = vadd.f32 %v4400_v30, %v4146_v3  ;;  %v1134_v10 = vshra.s32 %v1006_v29, 4  ;;  %v1135_v20 = vshra.s32 %v1007_v53, 4  ;;  %v833_v1 = vmin.f32 %v769_v57, 6.0  ;;  %v8922_v53 = vld [vmem:[%s10565_s4] ss:$0 sm:$0xff] }
 0x2c2   :  { %v767_v36 = vmax.f32 %v703_v21, 0.0  ;;  %vm8906_vm1 = vcmp.ge.s32.totalorder %v1070_v17, 1  ;;  %v2379_v50 = vrot.slane %v11088_v28, 1  ;;  %v4464_v59 = vadd.f32 %v4401_v31, %v4147_v11 }
 0x2c3   :  { %v4842_v7 = vadd.f32 %v4779_v2, %v4463_v9  ;;  %v8911_v5 = vand.u32 15, %v1134_v10  ;;  %v1199_v49 = vand.u32 15, %v1135_v20  ;;  %v897_v42 = vmul.f32 %v833_v1, %v637_v4 }
 0x2c4   :  { %v831_v62 = vmin.f32 %v767_v36, 6.0  ;;  %v11093_v38 = vrot.slane %v11081_v8, 1  ;;  %v10710_v29 = vrot.slane %v7964_v39, 1  ;;  %v4843_v17 = vadd.f32 %v4780_v52, %v4464_v59 }
 0x2c5   :  { %v4913_v31 = vadd.f32 %v8922_v53, %v4842_v7  ;;  %vm1510_vm0 = vcmp.ge.s32.totalorder %v8911_v5, 1  ;;  %vm1511_vm13 = vcmp.ge.s32.totalorder %v1199_v49, 1  ;;  %v8926_v1 = vmul.f32 0.16666667, %v897_v42 }
 0x2c6   :  { %v8916_v30 = vsel %vm2293_vm12, %v11093_v38, %v2379_v50  ;;  %v895_v36 = vmul.f32 %v831_v62, %v629_v24  ;;  %vm1636_vm6 = vmand %vm1510_vm0, %vm8906_vm1  ;;  %v1823_v59 = vsel %vm1511_vm13, %v8661_v33, 0.0  ;;  %v2138_v4 = vsel %vm1510_vm0, %v11058_v23, 0.0 }
 0x2c7   :  { %11094 = vst [vmem:[#allocation61_spill] sm:$0xff] %v8926_v1  ;;  %v4914_v7 = vadd.f32 %v8922_v53, %v4843_v17  ;;  %v4977_v2 = vmax.f32 %v4913_v31, 0.0  ;;  %v1822_v52 = vsel %vm1636_vm6, %v8654_v14, 0.0  ;;  %v1890_v27 = vmul.f32 %v6083_v60, %v1823_v59 }
 0x2c8   :  { %v8944_v3 = vmul.f32 %v6149_v35, %v8926_v1  ;;  %v8946_v33 = vmul.f32 0.16666667, %v895_v36  ;;  %v1889_v21 = vmul.f32 %v6083_v60, %v1822_v52  ;;  %v2139_v11 = vsel %vm1511_vm13, %v11065_v41, 0.0 }
 0x2c9   :  { %v4978_v57 = vmax.f32 %v4914_v7, 0.0  ;;  %v2205_v14 = vmul.f32 %v6080_v58, %v2138_v4  ;;  %v2206_v10 = vmul.f32 %v6080_v58, %v2139_v11  ;;  %v8957_v20 = vsel %vm2293_vm12, %v2379_v50, %v10710_v29 }
 0x2ca   :  { %11095 = vst [vmem:[#allocation62_spill] sm:$0xff] %v8944_v3  ;;  %vm8959_vm10 = vcmp.le.s32.totalorder %v1071_v55, 14  ;;  %v2775_v31 = vsel %vm1510_vm0, %v8675_v18, 0.0  ;;  %v3106_v36 = vsel %vm8906_vm1, %v8773_v40, 0.0  ;;  %v3306_v18 = vmul.f32 %v6149_v35, %v7714_v22 }
 0x2cb   :  { %v5022_v38 = vpack.c.bf16 %v4978_v57, %v4977_v2  ;;  %v2268_v17 = vadd.f32 %v2205_v14, %v1889_v21  ;;  %vm2587_vm9 = vmand %vm1511_vm13, %vm8959_vm10  ;;  %v2269_v50 = vadd.f32 %v2206_v10, %v1890_v27  ;;  %v2843_v59 = vmul.f32 %v6101_v6, %v2775_v31  ;;  %v5738_v27 = vpop.f32.mrf.mxu0 }
 0x2cc   :  { %v2776_v55 = vsel %vm2587_vm9, %v8704_v54, 0.0  ;;  %v3174_v4 = vmul.f32 %v6147_v34, %v3106_v36  ;;  %v8978_v2 = vmul.f32 %v6147_v34, %v8904_v46  ;;  %v3307_v52 = vmul.f32 %v6149_v35, %v7844_v13 }
 0x2cd   :  { %5792 = vmatmul.mubr.bf16.gmra.mxu1 %v5022_v38  ;;  %v2844_v7 = vmul.f32 %v6101_v6, %v2776_v55  ;;  %v2907_v57 = vadd.f32 %v2843_v59, %v2268_v17  ;;  %v3568_v54 = vsel %vm8959_vm10, %v8823_v37, 0.0  ;;  %v8989_v21 = vmul.f32 %v6162_v44, %v8916_v30  ;;  %v631_v59 = vpop.f32.mrf.mxu0 }
 0x2ce   :  { %vm3765_vm14 = vcmp.le.s32.totalorder %v8911_v5, 14  ;;  %v3636_v14 = vmul.f32 %v6162_v44, %v3568_v54  ;;  %vm3766_vm4 = vcmp.le.s32.totalorder %v1199_v49, 14 }
 0x2cf   :  { %v2908_v11 = vadd.f32 %v2844_v7, %v2269_v50  ;;  %vm3828_vm15 = vmand %vm3765_vm14, %vm8906_vm1  ;;  %v4336_v10 = vsel %vm3765_vm14, %v11081_v8, 0.0  ;;  %v3238_v38 = vadd.f32 %v3174_v4, %v2907_v57  ;;  %v4018_v31 = vsel %vm3766_vm4, %v8904_v46, 0.0 }
 0x2d0   :  { %v4017_v17 = vsel %vm3828_vm15, %v8897_v48, 0.0  ;;  %v4337_v36 = vsel %vm3766_vm4, %v11088_v28, 0.0  ;;  %vm4530_vm11 = vmand %vm3766_vm4, %vm8959_vm10  ;;  %v4085_v50 = vmul.f32 %v6167_v47, %v4018_v31  ;;  %v4402_v55 = vmul.f32 %v6164_v45, %v4336_v10 }
 0x2d1   :  { %v3239_v49 = vadd.f32 %v8842_v51, %v2908_v11  ;;  %v4084_v15 = vmul.f32 %v6167_v47, %v4017_v17  ;;  %v3370_v7 = vadd.f32 %v3306_v18, %v3238_v38  ;;  %v4403_v4 = vmul.f32 %v6164_v45, %v4337_v36 }
 0x2d2   :  { %v4715_v57 = vsel %vm3765_vm14, %v8916_v30, 0.0  ;;  %v4716_v54 = vsel %vm4530_vm11, %v8957_v20, 0.0  ;;  %v640_v11 = vadd.f32 %v8402_v25, %v5738_v27  ;;  %v632_v10 = vadd.f32 %v8402_v25, %v631_v59 }
 0x2d3   :  { %v3371_v42 = vadd.f32 %v3307_v52, %v3239_v49  ;;  %v4781_v24 = vmul.f32 %v8885_v26, %v4715_v57  ;;  %v4782_v51 = vmul.f32 %v8885_v26, %v4716_v54  ;;  %v3699_v17 = vadd.f32 %v8855_v19, %v3370_v7  ;;  %v11100_v57 = vld [vmem:[#allocation49_spill] sm:$0xff] }
 0x2d4   :  { %v1008_v18 = vadd.s32 336, %v10929_v61  ;;  %v1009_v38 = vadd.s32 344, %v10929_v61  ;;  %v706_v5 = vadd.f32 3.0, %v640_v11  ;;  %v11098_v36 = vrot.slane %v7964_v39, 7 }
 0x2d5   :  { %v3700_v31 = vadd.f32 %v3636_v14, %v3371_v42  ;;  %v11099_v52 = vrot.slane %v11088_v28, 7  ;;  %v11101_v54 = vrot.slane %v11100_v57, 7  ;;  %v4148_v25 = vadd.f32 %v4084_v15, %v3699_v17 }
 0x2d6   :  { %v11102_v27 = vmov %v11098_v36  ;;  %v704_v59 = vadd.f32 3.0, %v632_v10  ;;  %v1072_v7 = vand.u32 15, %v1008_v18  ;;  %v1073_v62 = vand.u32 15, %v1009_v38 }
 0x2d7   :  { %v9026_v49 = vsel %vm1284_vm2, %v11099_v52, %v11098_v36  ;;  %v9033_v19 = vsel %vm1284_vm2, %v11102_v27, %v11101_v54  ;;  %v4149_v14 = vadd.f32 %v4085_v50, %v3700_v31  ;;  %v770_v42 = vmax.f32 %v706_v5, 0.0 }
 0x2d8   :  { %v1136_v9 = vshra.s32 %v1008_v18, 4  ;;  %v1137_v29 = vshra.s32 %v1009_v38, 4  ;;  %v4465_v41 = vadd.f32 %v4402_v55, %v4148_v25  ;;  %v768_v23 = vmax.f32 %v704_v59, 0.0  ;;  %v11106_v55 = vld [vmem:[#allocation46_spill] sm:$0xff] }
 0x2d9   :  { %vm9035_vm7 = vcmp.ge.s32.totalorder %v1072_v7, 1  ;;  %v2383_v52 = vrot.slane %v11100_v57, 1  ;;  %v4466_v3 = vadd.f32 %v4403_v4, %v4149_v14  ;;  %v834_v1 = vmin.f32 %v770_v42, 6.0 }
 0x2da   :  { %v9040_v54 = vand.u32 15, %v1136_v9  ;;  %v1201_v15 = vand.u32 15, %v1137_v29  ;;  %v4844_v17 = vadd.f32 %v4781_v24, %v4465_v41  ;;  %v832_v27 = vmin.f32 %v768_v23, 6.0 }
 0x2db   :  { %v11105_v50 = vrot.slane %v7964_v39, 1  ;;  %v10715_v38 = vrot.slane %v11106_v55, 1  ;;  %v4845_v31 = vadd.f32 %v4782_v51, %v4466_v3  ;;  %v898_v5 = vmul.f32 %v834_v1, %v640_v11 }
 0x2dc   :  { %vm1512_vm8 = vcmp.ge.s32.totalorder %v9040_v54, 1  ;;  %vm1513_vm3 = vcmp.ge.s32.totalorder %v1201_v15, 1  ;;  %v4915_v4 = vadd.f32 %v8922_v53, %v4844_v17  ;;  %v896_v25 = vmul.f32 %v832_v27, %v632_v10 }
 0x2dd   :  { %v9045_v18 = vsel %vm2293_vm12, %v11105_v50, %v2383_v52  ;;  %vm1638_vm5 = vmand %vm1512_vm8, %vm9035_vm7  ;;  %v1825_v23 = vsel %vm1513_vm3, %v8780_v56, 0.0  ;;  %v2140_v41 = vsel %vm1512_vm8, %v7714_v22, 0.0  ;;  %v4916_v29 = vadd.f32 %v8922_v53, %v4845_v31 }
 0x2de   :  { %v9060_v1 = vmul.f32 0.16666667, %v898_v5  ;;  %v1824_v24 = vsel %vm1638_vm5, %v8773_v40, 0.0  ;;  %v1892_v3 = vmul.f32 %v6083_v60, %v1825_v23  ;;  %v4979_v9 = vmax.f32 %v4915_v4, 0.0  ;;  %v11114_v40 = vld [vmem:[#allocation51_spill] sm:$0xff] }
 0x2df   :  { %v9064_v51 = vmul.f32 0.16666667, %v896_v25  ;;  %v1891_v11 = vmul.f32 %v6083_v60, %v1824_v24  ;;  %v2141_v56 = vsel %vm1513_vm3, %v7844_v13, 0.0  ;;  %v4980_v10 = vmax.f32 %v4916_v29, 0.0 }
 0x2e0   :  { %v9072_v7 = vmul.f32 %v6149_v35, %v9060_v1  ;;  %v2207_v14 = vmul.f32 %v6080_v58, %v2140_v41  ;;  %v2208_v42 = vmul.f32 %v6080_v58, %v2141_v56  ;;  %v9080_v17 = vsel %vm2293_vm12, %v2383_v52, %v10715_v38 }
 0x2e1   :  { %vm9082_vm1 = vcmp.le.s32.totalorder %v1073_v62, 14  ;;  %v5023_v50 = vpack.c.bf16 %v4980_v10, %v4979_v9  ;;  %v2777_v5 = vsel %vm1512_vm8, %v8792_v16, 0.0  ;;  %v3108_v4 = vsel %vm9035_vm7, %v8897_v48, 0.0 }
 0x2e2   :  { %v2270_v31 = vadd.f32 %v2207_v14, %v1891_v11  ;;  %vm2589_vm0 = vmand %vm1513_vm3, %vm9082_vm1  ;;  %v2271_v52 = vadd.f32 %v2208_v42, %v1892_v3  ;;  %v2845_v25 = vmul.f32 %v6101_v6, %v2777_v5  ;;  %v3176_v23 = vmul.f32 %v6147_v34, %v3108_v4 }
 0x2e3   :  { %v2778_v62 = vsel %vm2589_vm0, %v8823_v37, 0.0  ;;  %5795 = vmatprep.mubr.bf16.mxu1 %v5023_v50  ;;  %v9101_v29 = vmul.f32 %v6147_v34, %v9033_v19  ;;  %v3308_v16 = vmul.f32 %v6149_v35, %v11081_v8  ;;  %v3309_v24 = vmul.f32 %v6149_v35, %v11088_v28 }
 0x2e4   :  { %v2846_v41 = vmul.f32 %v6101_v6, %v2778_v62  ;;  %v2909_v3 = vadd.f32 %v2845_v25, %v2270_v31  ;;  %v3570_v37 = vsel %vm9082_vm1, %v8957_v20, 0.0  ;;  %v9112_v9 = vmul.f32 %v6162_v44, %v9045_v18 }
 0x2e5   :  { %vm3767_vm13 = vcmp.le.s32.totalorder %v9040_v54, 14  ;;  %v3638_v56 = vmul.f32 %v6162_v44, %v3570_v37  ;;  %vm3768_vm6 = vcmp.le.s32.totalorder %v1201_v15, 14  ;;  %v10718_v38 = vrot.slane %v11114_v40, 1 }
 0x2e6   :  { %v2910_v11 = vadd.f32 %v2846_v41, %v2271_v52  ;;  %vm3830_vm10 = vmand %vm3767_vm13, %vm9035_vm7  ;;  %v4338_v10 = vsel %vm3767_vm13, %v7964_v39, 0.0  ;;  %v3240_v14 = vadd.f32 %v3176_v23, %v2909_v3  ;;  %v4020_v50 = vsel %vm3768_vm6, %v9033_v19, 0.0 }
 0x2e7   :  { %v4019_v42 = vsel %vm3830_vm10, %v9026_v49, 0.0  ;;  %v4339_v31 = vsel %vm3768_vm6, %v11100_v57, 0.0  ;;  %vm4532_vm9 = vmand %vm3768_vm6, %vm9082_vm1  ;;  %v4087_v5 = vmul.f32 %v6167_v47, %v4020_v50  ;;  %v4404_v4 = vmul.f32 %v6164_v45, %v4338_v10 }
 0x2e8   :  { %v3241_v15 = vadd.f32 %v8978_v2, %v2910_v11  ;;  %v4086_v36 = vmul.f32 %v6167_v47, %v4019_v42  ;;  %v3372_v52 = vadd.f32 %v3308_v16, %v3240_v14  ;;  %v4405_v62 = vmul.f32 %v6164_v45, %v4339_v31  ;;  %v11111_v14 = vld [vmem:[#allocation48_spill] sm:$0xff] }
 0x2e9   :  { %v4717_v25 = vsel %vm3767_vm13, %v9045_v18, 0.0  ;;  %v4718_v23 = vsel %vm4532_vm9, %v9080_v17, 0.0  ;;  %v1010_v3 = vadd.s32 352, %v10929_v61  ;;  %v1011_v11 = vadd.s32 360, %v10929_v61 }
 0x2ea   :  { %v3373_v41 = vadd.f32 %v3309_v24, %v3241_v15  ;;  %v4783_v27 = vmul.f32 %v8885_v26, %v4717_v25  ;;  %v4784_v2 = vmul.f32 %v8885_v26, %v4718_v23  ;;  %v3701_v37 = vadd.f32 %v8989_v21, %v3372_v52 }
 0x2eb   :  { %v11109_v16 = vrot.slane %v11106_v55, 7  ;;  %v11110_v10 = vrot.slane %v11100_v57, 7  ;;  %v11112_v42 = vrot.slane %v11111_v14, 7  ;;  %v1074_v15 = vand.u32 15, %v1010_v3 }
 0x2ec   :  { %v3702_v31 = vadd.f32 %v3638_v56, %v3373_v41  ;;  %v1138_v25 = vshra.s32 %v1010_v3, 4  ;;  %v2387_v21 = vrot.slane %v11111_v14, 1  ;;  %v4150_v52 = vadd.f32 %v4086_v36, %v3701_v37 }
 0x2ed   :  { %v9147_v54 = vsel %vm1284_vm2, %v11110_v10, %v11109_v16  ;;  %v11113_v24 = vmov %v11109_v16  ;;  %v1075_v23 = vand.u32 15, %v1011_v11  ;;  %v1139_v59 = vshra.s32 %v1011_v11, 4 }
 0x2ee   :  { %v9154_v50 = vsel %vm1284_vm2, %v11113_v24, %v11112_v42  ;;  %v4151_v13 = vadd.f32 %v4087_v5, %v3702_v31  ;;  %v1202_v16 = vand.u32 15, %v1138_v25  ;;  %vm9158_vm14 = vcmp.ge.s32.totalorder %v1074_v15, 1 }
 0x2ef   :  { %v11117_v22 = vrot.slane %v11106_v55, 1  ;;  %v4467_v56 = vadd.f32 %v4404_v4, %v4150_v52  ;;  %v1203_v41 = vand.u32 15, %v1139_v59  ;;  %v9170_v36 = vsel %vm2293_vm12, %v2387_v21, %v10718_v38 }
 0x2f0   :  { %vm9172_vm4 = vcmp.le.s32.totalorder %v1075_v23, 14  ;;  %v4468_v5 = vadd.f32 %v4405_v62, %v4151_v13  ;;  %vm1514_vm15 = vcmp.ge.s32.totalorder %v1202_v16, 1  ;;  %v3110_v37 = vsel %vm9158_vm14, %v9026_v49, 0.0 }
 0x2f1   :  { %v9165_v42 = vsel %vm2293_vm12, %v11117_v22, %v2387_v21  ;;  %v9181_v22 = vmul.f32 %v6147_v34, %v9154_v50  ;;  %v4846_v59 = vadd.f32 %v4783_v27, %v4467_v56  ;;  %vm1515_vm11 = vcmp.ge.s32.totalorder %v1203_v41, 1  ;;  %vm1640_vm7 = vmand %vm1514_vm15, %vm9158_vm14 }
 0x2f2   :  { %v2142_v4 = vsel %vm1514_vm15, %v11081_v8, 0.0  ;;  %v2779_v11 = vsel %vm1514_vm15, %v8916_v30, 0.0  ;;  %v4847_v24 = vadd.f32 %v4784_v2, %v4468_v5  ;;  %v1826_v13 = vsel %vm1640_vm7, %v8897_v48, 0.0  ;;  %vm2591_vm8 = vmand %vm1515_vm11, %vm9172_vm4 }
 0x2f3   :  { %v1827_v62 = vsel %vm1515_vm11, %v8904_v46, 0.0  ;;  %v2143_v31 = vsel %vm1515_vm11, %v11088_v28, 0.0  ;;  %v4917_v27 = vadd.f32 %v8922_v53, %v4846_v59  ;;  %v1893_v15 = vmul.f32 %v6083_v60, %v1826_v13 }
 0x2f4   :  { %v1894_v25 = vmul.f32 %v6083_v60, %v1827_v62  ;;  %v2209_v21 = vmul.f32 %v6080_v58, %v2142_v4  ;;  %v4918_v30 = vadd.f32 %v8922_v53, %v4847_v24  ;;  %v2210_v2 = vmul.f32 %v6080_v58, %v2143_v31 }
 0x2f5   :  { %v2780_v48 = vsel %vm2591_vm8, %v8957_v20, 0.0  ;;  %v2847_v46 = vmul.f32 %v6101_v6, %v2779_v11  ;;  %v4981_v52 = vmax.f32 %v4917_v27, 0.0  ;;  %v3178_v5 = vmul.f32 %v6147_v34, %v3110_v37 }
 0x2f6   :  { %v2272_v23 = vadd.f32 %v2209_v21, %v1893_v15  ;;  %v2848_v56 = vmul.f32 %v6101_v6, %v2780_v48  ;;  %v4982_v59 = vmax.f32 %v4918_v30, 0.0  ;;  %v2273_v13 = vadd.f32 %v2210_v2, %v1894_v25 }
 0x2f7   :  { %v3310_v62 = vmul.f32 %v6149_v35, %v7964_v39  ;;  %v3311_v4 = vmul.f32 %v6149_v35, %v11100_v57  ;;  %v3572_v20 = vsel %vm9172_vm4, %v9080_v17, 0.0  ;;  %v9211_v11 = vmul.f32 %v6162_v44, %v9165_v42 }
 0x2f8   :  { %v2911_v24 = vadd.f32 %v2847_v46, %v2272_v23  ;;  %vm3769_vm3 = vcmp.le.s32.totalorder %v1202_v16, 14  ;;  %v5024_v31 = vpack.c.bf16 %v4982_v59, %v4981_v52  ;;  %v2912_v37 = vadd.f32 %v2848_v56, %v2273_v13 }
 0x2f9   :  { %v3640_v27 = vmul.f32 %v6162_v44, %v3572_v20  ;;  %vm3770_vm5 = vcmp.le.s32.totalorder %v1203_v41, 14  ;;  %vm3832_vm1 = vmand %vm3769_vm3, %vm9158_vm14  ;;  %v4340_v30 = vsel %vm3769_vm3, %v11106_v55, 0.0  ;;  %v4719_v56 = vsel %vm3769_vm3, %v9165_v42, 0.0 }
 0x2fa   :  { %v3242_v15 = vadd.f32 %v3178_v5, %v2911_v24  ;;  %v4021_v25 = vsel %vm3832_vm1, %v9147_v54, 0.0  ;;  %v4022_v21 = vsel %vm3770_vm5, %v9154_v50, 0.0  ;;  %vm4534_vm0 = vmand %vm3770_vm5, %vm9172_vm4  ;;  %5796 = vmatmul.mubr.bf16.gmra.mxu1 %v5024_v31  ;;  %v3243_v2 = vadd.f32 %v9101_v29, %v2912_v37 }
 0x2fb   :  { %v4088_v41 = vmul.f32 %v6167_v47, %v4021_v25  ;;  %v4089_v10 = vmul.f32 %v6167_v47, %v4022_v21  ;;  %v4341_v48 = vsel %vm3770_vm5, %v11111_v14, 0.0  ;;  %v4406_v52 = vmul.f32 %v6164_v45, %v4340_v30  ;;  %v11122_v25 = vld [vmem:[#allocation53_spill] sm:$0xff] }
 0x2fc   :  { %v3374_v46 = vadd.f32 %v3310_v62, %v3242_v15  ;;  %v4407_v23 = vmul.f32 %v6164_v45, %v4341_v48  ;;  %v3375_v5 = vadd.f32 %v3311_v4, %v3243_v2  ;;  %v4720_v3 = vsel %vm4534_vm0, %v9170_v36, 0.0 }
 0x2fd   :  { %v4785_v59 = vmul.f32 %v8885_v26, %v4719_v56  ;;  %v1012_v29 = vadd.s32 368, %v10929_v61  ;;  %v4786_v24 = vmul.f32 %v8885_v26, %v4720_v3  ;;  %v1013_v62 = vadd.s32 376, %v10929_v61 }
 0x2fe   :  { %v3703_v13 = vadd.f32 %v9112_v9, %v3374_v46  ;;  %v11120_v20 = vrot.slane %v11114_v40, 7  ;;  %v11121_v31 = vrot.slane %v11111_v14, 7  ;;  %v3704_v4 = vadd.f32 %v3640_v27, %v3375_v5  ;;  %v11127_v27 = vld [vmem:[#allocation50_spill] sm:$0xff] }
 0x2ff   :  { %v1076_v37 = vand.u32 15, %v1012_v29  ;;  %v1140_v15 = vshra.s32 %v1012_v29, 4  ;;  %v11123_v21 = vrot.slane %v11122_v25, 7  ;;  %v1077_v48 = vand.u32 15, %v1013_v62 }
 0x300   :  { %v9242_v16 = vsel %vm1284_vm2, %v11121_v31, %v11120_v20  ;;  %v11124_v30 = vmov %v11120_v20  ;;  %v4152_v2 = vadd.f32 %v4088_v41, %v3703_v13  ;;  %v1141_v46 = vshra.s32 %v1013_v62, 4 }
 0x301   :  { %v9249_v9 = vsel %vm1284_vm2, %v11124_v30, %v11123_v21  ;;  %v2391_v56 = vrot.slane %v11122_v25, 1  ;;  %v4153_v3 = vadd.f32 %v4089_v10, %v3704_v4  ;;  %v1204_v38 = vand.u32 15, %v1140_v15 }
 0x302   :  { %vm9252_vm13 = vcmp.ge.s32.totalorder %v1076_v37, 1  ;;  %v2393_v5 = vrot.slane %v11127_v27, 1  ;;  %v4469_v29 = vadd.f32 %v4406_v52, %v4152_v2  ;;  %v1205_v31 = vand.u32 15, %v1141_v46 }
 0x303   :  { %v11128_v28 = vrot.slane %v11114_v40, 1  ;;  %vm9262_vm6 = vcmp.le.s32.totalorder %v1077_v48, 14  ;;  %v4470_v13 = vadd.f32 %v4407_v23, %v4153_v3  ;;  %vm1516_vm10 = vcmp.ge.s32.totalorder %v1204_v38, 1 }
 0x304   :  { %v9269_v10 = vsel %vm2293_vm12, %v2391_v56, %v2393_v5  ;;  %v3112_v52 = vsel %vm9252_vm13, %v9147_v54, 0.0  ;;  %v4848_v62 = vadd.f32 %v4785_v59, %v4469_v29  ;;  %vm1517_vm9 = vcmp.ge.s32.totalorder %v1205_v31, 1  ;;  %vm1642_vm14 = vmand %vm1516_vm10, %vm9252_vm13 }
 0x305   :  { %v9260_v21 = vsel %vm2293_vm12, %v11128_v28, %v2391_v56  ;;  %v2144_v28 = vsel %vm1516_vm10, %v7964_v39, 0.0  ;;  %v2781_v4 = vsel %vm1516_vm10, %v9045_v18, 0.0  ;;  %v4849_v23 = vadd.f32 %v4786_v24, %v4470_v13  ;;  %vm2593_vm4 = vmand %vm1517_vm9, %vm9262_vm6 }
 0x306   :  { %v1828_v37 = vsel %vm1642_vm14, %v9026_v49, 0.0  ;;  %v1829_v15 = vsel %vm1517_vm9, %v9033_v19, 0.0  ;;  %v2145_v30 = vsel %vm1517_vm9, %v11100_v57, 0.0  ;;  %v4919_v59 = vadd.f32 %v8922_v53, %v4848_v62 }
 0x307   :  { %v1895_v2 = vmul.f32 %v6083_v60, %v1828_v37  ;;  %v1896_v48 = vmul.f32 %v6083_v60, %v1829_v15  ;;  %v2211_v46 = vmul.f32 %v6080_v58, %v2144_v28  ;;  %v4920_v18 = vadd.f32 %v8922_v53, %v4849_v23 }
 0x308   :  { %v2212_v24 = vmul.f32 %v6080_v58, %v2145_v30  ;;  %v2782_v49 = vsel %vm2593_vm4, %v9080_v17, 0.0  ;;  %v2849_v19 = vmul.f32 %v6101_v6, %v2781_v4  ;;  %v4983_v56 = vmax.f32 %v4919_v59, 0.0 }
 0x309   :  { %v2274_v3 = vadd.f32 %v2211_v46, %v1895_v2  ;;  %v2850_v29 = vmul.f32 %v6101_v6, %v2782_v49  ;;  %v3180_v13 = vmul.f32 %v6147_v34, %v3112_v52  ;;  %v4984_v62 = vmax.f32 %v4920_v18, 0.0 }
 0x30a   :  { %v2275_v37 = vadd.f32 %v2212_v24, %v1896_v48  ;;  %v9295_v15 = vmul.f32 %v6147_v34, %v9249_v9  ;;  %v3312_v28 = vmul.f32 %v6149_v35, %v11106_v55  ;;  %v3313_v17 = vmul.f32 %v6149_v35, %v11111_v14 }
 0x30b   :  { %v2913_v23 = vadd.f32 %v2849_v19, %v2274_v3  ;;  %v3574_v4 = vsel %vm9262_vm6, %v9170_v36, 0.0  ;;  %v9306_v52 = vmul.f32 %v6162_v44, %v9260_v21  ;;  %v5025_v30 = vpack.c.bf16 %v4984_v62, %v4983_v56 }
 0x30c   :  { %v2914_v59 = vadd.f32 %v2850_v29, %v2275_v37  ;;  %v3642_v2 = vmul.f32 %v6162_v44, %v3574_v4  ;;  %vm3771_vm15 = vcmp.le.s32.totalorder %v1204_v38, 14  ;;  %vm3772_vm11 = vcmp.le.s32.totalorder %v1205_v31, 14 }
 0x30d   :  { %v3244_v48 = vadd.f32 %v3180_v13, %v2913_v23  ;;  %vm3834_vm7 = vmand %vm3771_vm15, %vm9252_vm13  ;;  %v4342_v46 = vsel %vm3771_vm15, %v11114_v40, 0.0  ;;  %v4721_v18 = vsel %vm3771_vm15, %v9260_v21, 0.0  ;;  %5799 = vmatprep.mubr.bf16.mxu1 %v5025_v30  ;;  %v4024_v19 = vsel %vm3772_vm11, %v9249_v9, 0.0 }
 0x30e   :  { %v3245_v24 = vadd.f32 %v9181_v22, %v2914_v59  ;;  %v4023_v49 = vsel %vm3834_vm7, %v9242_v16, 0.0  ;;  %v4343_v56 = vsel %vm3772_vm11, %v11122_v25, 0.0  ;;  %vm4536_vm8 = vmand %vm3772_vm11, %vm9262_vm6  ;;  %v4091_v31 = vmul.f32 %v6167_v47, %v4024_v19 }
 0x30f   :  { %v3376_v38 = vadd.f32 %v3312_v28, %v3244_v48  ;;  %v4090_v20 = vmul.f32 %v6167_v47, %v4023_v49  ;;  %v4408_v3 = vmul.f32 %v6164_v45, %v4342_v46  ;;  %v4409_v13 = vmul.f32 %v6164_v45, %v4343_v56  ;;  %v11133_v48 = vld [vmem:[#allocation52_spill] sm:$0xff] }
 0x310   :  { %v3377_v29 = vadd.f32 %v3313_v17, %v3245_v24  ;;  %v4722_v22 = vsel %vm4536_vm8, %v9269_v10, 0.0  ;;  %v4787_v62 = vmul.f32 %v8885_v26, %v4721_v18  ;;  %v1014_v41 = vadd.s32 384, %v10929_v61 }
 0x311   :  { %v3705_v37 = vadd.f32 %v9211_v11, %v3376_v38  ;;  %v4788_v23 = vmul.f32 %v8885_v26, %v4722_v22  ;;  %v1015_v28 = vadd.s32 392, %v10929_v61  ;;  %v11131_v30 = vrot.slane %v11127_v27, 7 }
 0x312   :  { %v3706_v4 = vadd.f32 %v3642_v2, %v3377_v29  ;;  %v11132_v59 = vrot.slane %v11122_v25, 7  ;;  %v11134_v46 = vrot.slane %v11133_v48, 7  ;;  %v2395_v24 = vrot.slane %v11133_v48, 1 }
 0x313   :  { %v11135_v18 = vmov %v11131_v30  ;;  %v4154_v49 = vadd.f32 %v4090_v20, %v3705_v37  ;;  %v1078_v19 = vand.u32 15, %v1014_v41  ;;  %v1079_v56 = vand.u32 15, %v1015_v28 }
 0x314   :  { %v9334_v17 = vsel %vm1284_vm2, %v11132_v59, %v11131_v30  ;;  %v9341_v11 = vsel %vm1284_vm2, %v11135_v18, %v11134_v46  ;;  %v1142_v2 = vshra.s32 %v1014_v41, 4  ;;  %v4155_v38 = vadd.f32 %v4091_v31, %v3706_v4 }
 0x315   :  { %v1143_v29 = vshra.s32 %v1015_v28, 4  ;;  %v9347_v22 = vsel %vm2293_vm12, %v2393_v5, %v2395_v24  ;;  %v10721_v30 = vrot.slane %v8455_v43, 1  ;;  %v4471_v59 = vadd.f32 %v4408_v3, %v4154_v49 }
 0x316   :  { %v1206_v57 = vand.u32 15, %v1142_v2  ;;  %vm9350_vm3 = vcmp.ge.s32.totalorder %v1078_v19, 1  ;;  %vm9354_vm5 = vcmp.le.s32.totalorder %v1079_v56, 14  ;;  %v4472_v37 = vadd.f32 %v4409_v13, %v4155_v38 }
 0x317   :  { %v1207_v31 = vand.u32 15, %v1143_v29  ;;  %v9361_v41 = vsel %vm2293_vm12, %v2395_v24, %v10721_v30  ;;  %v3114_v5 = vsel %vm9350_vm3, %v9242_v16, 0.0  ;;  %v4850_v3 = vadd.f32 %v4787_v62, %v4471_v59 }
 0x318   :  { %vm1518_vm1 = vcmp.ge.s32.totalorder %v1206_v57, 1  ;;  %v3182_v28 = vmul.f32 %v6147_v34, %v3114_v5  ;;  %v9369_v4 = vmul.f32 %v6147_v34, %v9341_v11  ;;  %v4851_v18 = vadd.f32 %v4788_v23, %v4472_v37 }
 0x319   :  { %vm1519_vm0 = vcmp.ge.s32.totalorder %v1207_v31, 1  ;;  %vm1644_vm13 = vmand %vm1518_vm1, %vm9350_vm3  ;;  %v2146_v13 = vsel %vm1518_vm1, %v11106_v55, 0.0  ;;  %v2783_v24 = vsel %vm1518_vm1, %v9165_v42, 0.0  ;;  %v4921_v49 = vadd.f32 %v8922_v53, %v4850_v3 }
 0x31a   :  { %v1830_v62 = vsel %vm1644_vm13, %v9147_v54, 0.0  ;;  %v1831_v19 = vsel %vm1519_vm0, %v9154_v50, 0.0  ;;  %v2147_v56 = vsel %vm1519_vm0, %v11111_v14, 0.0  ;;  %vm2595_vm6 = vmand %vm1519_vm0, %vm9354_vm5  ;;  %v4922_v23 = vadd.f32 %v8922_v53, %v4851_v18 }
 0x31b   :  { %v1897_v2 = vmul.f32 %v6083_v60, %v1830_v62  ;;  %v1898_v38 = vmul.f32 %v6083_v60, %v1831_v19  ;;  %v2213_v29 = vmul.f32 %v6080_v58, %v2146_v13  ;;  %v4985_v42 = vmax.f32 %v4921_v49, 0.0 }
 0x31c   :  { %v2214_v59 = vmul.f32 %v6080_v58, %v2147_v56  ;;  %v2784_v54 = vsel %vm2595_vm6, %v9170_v36, 0.0  ;;  %v2851_v50 = vmul.f32 %v6101_v6, %v2783_v24  ;;  %v4986_v37 = vmax.f32 %v4922_v23, 0.0 }
 0x31d   :  { %v2276_v5 = vadd.f32 %v2213_v29, %v1897_v2  ;;  %v2852_v3 = vmul.f32 %v6101_v6, %v2784_v54  ;;  %v3314_v18 = vmul.f32 %v6149_v35, %v11114_v40  ;;  %v3315_v62 = vmul.f32 %v6149_v35, %v11122_v25 }
 0x31e   :  { %v2277_v30 = vadd.f32 %v2214_v59, %v1898_v38  ;;  %v3576_v13 = vsel %vm9354_vm5, %v9269_v10, 0.0  ;;  %v9398_v36 = vmul.f32 %v6162_v44, %v9347_v22  ;;  %v5026_v24 = vpack.c.bf16 %v4986_v37, %v4985_v42 }
 0x31f   :  { %v2915_v49 = vadd.f32 %v2851_v50, %v2276_v5  ;;  %v3644_v19 = vmul.f32 %v6162_v44, %v3576_v13  ;;  %vm3773_vm10 = vcmp.le.s32.totalorder %v1206_v57, 14  ;;  %vm3774_vm9 = vcmp.le.s32.totalorder %v1207_v31, 14 }
 0x320   :  { %v2916_v56 = vadd.f32 %v2852_v3, %v2277_v30  ;;  %vm3836_vm14 = vmand %vm3773_vm10, %vm9350_vm3  ;;  %v4344_v23 = vsel %vm3773_vm10, %v11127_v27, 0.0  ;;  %v4723_v2 = vsel %vm3773_vm10, %v9347_v22, 0.0  ;;  %5800 = vmatmul.mubr.bf16.gmra.mxu1 %v5026_v24  ;;  %v4026_v59 = vsel %vm3774_vm9, %v9341_v11, 0.0 }
 0x321   :  { %v3246_v38 = vadd.f32 %v3182_v28, %v2915_v49  ;;  %v4025_v29 = vsel %vm3836_vm14, %v9334_v17, 0.0  ;;  %v4345_v42 = vsel %vm3774_vm9, %v11133_v48, 0.0  ;;  %vm4538_vm4 = vmand %vm3774_vm9, %vm9354_vm5  ;;  %v4093_v46 = vmul.f32 %v6167_v47, %v4026_v59 }
 0x322   :  { %v3247_v57 = vadd.f32 %v9295_v15, %v2916_v56  ;;  %v4092_v30 = vmul.f32 %v6167_v47, %v4025_v29  ;;  %v4410_v31 = vmul.f32 %v6164_v45, %v4344_v23  ;;  %v4411_v28 = vmul.f32 %v6164_v45, %v4345_v42 }
 0x323   :  { %v3378_v54 = vadd.f32 %v3314_v18, %v3246_v38  ;;  %v4724_v50 = vsel %vm4538_vm4, %v9361_v41, 0.0  ;;  %v4789_v37 = vmul.f32 %v8885_v26, %v4723_v2  ;;  %v1016_v20 = vadd.s32 400, %v10929_v61 }
 0x324   :  { %v3379_v5 = vadd.f32 %v3315_v62, %v3247_v57  ;;  %v4790_v3 = vmul.f32 %v8885_v26, %v4724_v50  ;;  %v1017_v15 = vadd.s32 408, %v10929_v61  ;;  %v11140_v24 = vrot.slane %v8455_v43, 7 }
 0x325   :  { %v3707_v13 = vadd.f32 %v9306_v52, %v3378_v54  ;;  %v11141_v49 = vrot.slane %v11133_v48, 7  ;;  %v11142_v56 = vrot.slane %v8561_v0, 7  ;;  %v2399_v2 = vrot.slane %v8561_v0, 1 }
 0x326   :  { %v11143_v23 = vmov %v11140_v24  ;;  %v3708_v38 = vadd.f32 %v3644_v19, %v3379_v5  ;;  %v1080_v29 = vand.u32 15, %v1016_v20  ;;  %v1081_v59 = vand.u32 15, %v1017_v15 }
 0x327   :  { %v9426_v18 = vsel %vm1284_vm2, %v11141_v49, %v11140_v24  ;;  %v9433_v62 = vsel %vm1284_vm2, %v11143_v23, %v11142_v56  ;;  %v1144_v52 = vshra.s32 %v1016_v20, 4  ;;  %v4156_v42 = vadd.f32 %v4092_v30, %v3707_v13  ;;  %v11145_v24 = vld [vmem:[#allocation54_spill] sm:$0xff] }
 0x328   :  { %v1145_v57 = vshra.s32 %v1017_v15, 4  ;;  %v11144_v54 = vrot.slane %v8455_v43, 1  ;;  %v10724_v49 = vrot.slane %v11145_v24, 1  ;;  %v4157_v14 = vadd.f32 %v4093_v46, %v3708_v38 }
 0x329   :  { %v1208_v39 = vand.u32 15, %v1144_v52  ;;  %vm9442_vm15 = vcmp.ge.s32.totalorder %v1080_v29, 1  ;;  %vm9446_vm11 = vcmp.le.s32.totalorder %v1081_v59, 14  ;;  %v4473_v5 = vadd.f32 %v4410_v31, %v4156_v42 }
 0x32a   :  { %v9439_v50 = vsel %vm2293_vm12, %v11144_v54, %v2399_v2  ;;  %v1209_v30 = vand.u32 15, %v1145_v57  ;;  %v9453_v20 = vsel %vm2293_vm12, %v2399_v2, %v10724_v49  ;;  %v3116_v46 = vsel %vm9442_vm15, %v9334_v17, 0.0 }
 0x32b   :  { %v4474_v15 = vadd.f32 %v4411_v28, %v4157_v14  ;;  %vm1520_vm7 = vcmp.ge.s32.totalorder %v1208_v39, 1  ;;  %v3184_v13 = vmul.f32 %v6147_v34, %v3116_v46  ;;  %v9461_v23 = vmul.f32 %v6147_v34, %v9433_v62 }
 0x32c   :  { %v4852_v38 = vadd.f32 %v4789_v37, %v4473_v5  ;;  %vm1521_vm8 = vcmp.ge.s32.totalorder %v1209_v30, 1  ;;  %vm1646_vm3 = vmand %vm1520_vm7, %vm9442_vm15  ;;  %v2148_v31 = vsel %vm1520_vm7, %v11114_v40, 0.0  ;;  %v2785_v2 = vsel %vm1520_vm7, %v9260_v21, 0.0 }
 0x32d   :  { %v4853_v29 = vadd.f32 %v4790_v3, %v4474_v15  ;;  %v1832_v59 = vsel %vm1646_vm3, %v9242_v16, 0.0  ;;  %v1833_v14 = vsel %vm1521_vm8, %v9249_v9, 0.0  ;;  %v2149_v28 = vsel %vm1521_vm8, %v11122_v25, 0.0  ;;  %vm2597_vm5 = vmand %vm1521_vm8, %vm9446_vm11 }
 0x32e   :  { %v4923_v37 = vadd.f32 %v8922_v53, %v4852_v38  ;;  %v1899_v52 = vmul.f32 %v6083_v60, %v1832_v59  ;;  %v1900_v42 = vmul.f32 %v6083_v60, %v1833_v14  ;;  %v2215_v57 = vmul.f32 %v6080_v58, %v2148_v31 }
 0x32f   :  { %v4924_v21 = vadd.f32 %v8922_v53, %v4853_v29  ;;  %v2216_v3 = vmul.f32 %v6080_v58, %v2149_v28  ;;  %v2786_v16 = vsel %vm2597_vm5, %v9269_v10, 0.0  ;;  %v2853_v9 = vmul.f32 %v6101_v6, %v2785_v2  ;;  %v9488_v29 = vpop.f32.mrf.mxu1 }
 0x330   :  { %v4987_v54 = vmax.f32 %v4923_v37, 0.0  ;;  %v2278_v5 = vadd.f32 %v2215_v57, %v1899_v52  ;;  %v2854_v46 = vmul.f32 %v6101_v6, %v2786_v16  ;;  %v3316_v15 = vmul.f32 %v6149_v35, %v11127_v27 }
 0x331   :  { %v4988_v38 = vmax.f32 %v4924_v21, 0.0  ;;  %v2279_v59 = vadd.f32 %v2216_v3, %v1900_v42  ;;  %v3317_v31 = vmul.f32 %v6149_v35, %v11133_v48  ;;  %v3578_v53 = vsel %vm9446_vm11, %v9361_v41, 0.0  ;;  %v9500_v42 = vpop.f32.mrf.mxu1 }
 0x332   :  { %v2917_v10 = vadd.f32 %v2853_v9, %v2278_v5  ;;  %v3646_v2 = vmul.f32 %v6162_v44, %v3578_v53  ;;  %v9493_v14 = vmul.f32 %v6162_v44, %v9439_v50  ;;  %vm3775_vm1 = vcmp.le.s32.totalorder %v1208_v39, 14 }
 0x333   :  { %v5027_v28 = vpack.c.bf16 %v4988_v38, %v4987_v54  ;;  %v2918_v37 = vadd.f32 %v2854_v46, %v2279_v59  ;;  %vm3776_vm0 = vcmp.le.s32.totalorder %v1209_v30, 14  ;;  %vm3838_vm13 = vmand %vm3775_vm1, %vm9442_vm15  ;;  %v4346_v52 = vsel %vm3775_vm1, %v8455_v43, 0.0  ;;  %v9511_v5 = vpop.f32.mrf.mxu1 }
 0x334   :  { %v3248_v57 = vadd.f32 %v3184_v13, %v2917_v10  ;;  %v4027_v21 = vsel %vm3838_vm13, %v9426_v18, 0.0  ;;  %v4028_v3 = vsel %vm3776_vm0, %v9433_v62, 0.0  ;;  %v4347_v16 = vsel %vm3776_vm0, %v8561_v0, 0.0  ;;  %vm4540_vm6 = vmand %vm3776_vm0, %vm9446_vm11 }
 0x335   :  { %5803 = vmatprep.mubr.bf16.mxu1 %v5027_v28  ;;  %v3249_v56 = vadd.f32 %v9369_v4, %v2918_v37  ;;  %v4094_v30 = vmul.f32 %v6167_v47, %v4027_v21  ;;  %v4095_v9 = vmul.f32 %v6167_v47, %v4028_v3  ;;  %v4412_v54 = vmul.f32 %v6164_v45, %v4346_v52  ;;  %v9520_v28 = vpop.f32.mrf.mxu1 }
 0x336   :  { %v3380_v13 = vadd.f32 %v3316_v15, %v3248_v57  ;;  %v4413_v46 = vmul.f32 %v6164_v45, %v4347_v16  ;;  %v4725_v38 = vsel %vm3775_vm1, %v9439_v50, 0.0  ;;  %v4726_v19 = vsel %vm4540_vm6, %v9453_v20, 0.0 }
 0x337   :  { %v3381_v59 = vadd.f32 %v3317_v31, %v3249_v56  ;;  %v4791_v53 = vmul.f32 %v8885_v26, %v4725_v38  ;;  %v4792_v4 = vmul.f32 %v8885_v26, %v4726_v19  ;;  %v1018_v10 = vadd.s32 416, %v10929_v61  ;;  %v11152_v31 = vld [vmem:[#allocation56_spill] sm:$0xff] }
 0x338   :  { %v3709_v37 = vadd.f32 %v9398_v36, %v3380_v13  ;;  %v1019_v15 = vadd.s32 424, %v10929_v61  ;;  %v11150_v52 = vrot.slane %v11145_v24, 7  ;;  %v11151_v39 = vrot.slane %v8561_v0, 7  ;;  %v9539_v13 = vpop.f32.mrf.mxu1 }
 0x339   :  { %v11153_v21 = vrot.slane %v11152_v31, 7  ;;  %v3710_v16 = vadd.f32 %v3646_v2, %v3381_v59  ;;  %v1082_v56 = vand.u32 15, %v1018_v10  ;;  %v1146_v38 = vshra.s32 %v1018_v10, 4 }
 0x33a   :  { %v9529_v57 = vsel %vm1284_vm2, %v11151_v39, %v11150_v52  ;;  %v11154_v3 = vmov %v11150_v52  ;;  %v2403_v36 = vrot.slane %v11152_v31, 1  ;;  %v4158_v19 = vadd.f32 %v4094_v30, %v3709_v37  ;;  %v9553_v10 = vpop.f32.mrf.mxu1 }
 0x33b   :  { %v9536_v26 = vsel %vm1284_vm2, %v11154_v3, %v11153_v21  ;;  %v1083_v49 = vand.u32 15, %v1019_v15  ;;  %v1147_v25 = vshra.s32 %v1019_v15, 4  ;;  %v10728_v52 = vrot.slane %v8681_v32, 1 }
 0x33c   :  { %v4159_v39 = vadd.f32 %v4095_v9, %v3710_v16  ;;  %v9542_v40 = vand.u32 15, %v1146_v38  ;;  %vm9544_vm10 = vcmp.ge.s32.totalorder %v1082_v56, 1  ;;  %v11157_v2 = vrot.slane %v11145_v24, 1 }
 0x33d   :  { %v4475_v21 = vadd.f32 %v4412_v54, %v4158_v19  ;;  %v1211_v30 = vand.u32 15, %v1147_v25  ;;  %v9558_v37 = vsel %vm2293_vm12, %v2403_v36, %v10728_v52  ;;  %vm9560_vm9 = vcmp.le.s32.totalorder %v1083_v49, 14  ;;  %v9572_v25 = vpop.f32.mrf.mxu1 }
 0x33e   :  { %v9551_v59 = vsel %vm2293_vm12, %v11157_v2, %v2403_v36  ;;  %v4476_v15 = vadd.f32 %v4413_v46, %v4159_v39  ;;  %vm1522_vm14 = vcmp.ge.s32.totalorder %v9542_v40, 1  ;;  %v3118_v3 = vsel %vm9544_vm10, %v9426_v18, 0.0  ;;  %11160 = vst [vmem:[#allocation63_spill] sm:$0xff] %v9572_v25 }
 0x33f   :  { %v9570_v54 = vmul.f32 %v6147_v34, %v9536_v26  ;;  %v4854_v16 = vadd.f32 %v4791_v53, %v4475_v21  ;;  %vm1523_vm4 = vcmp.ge.s32.totalorder %v1211_v30, 1  ;;  %vm1648_vm15 = vmand %vm1522_vm14, %vm9544_vm10  ;;  %v2150_v49 = vsel %vm1522_vm14, %v11127_v27, 0.0  ;;  %v9583_v39 = vpop.f32.mrf.mxu1  ;;  %v9588_v53 = vld [vmem:[%s10565_s4] ss:$0 sm:$0xff] }
 0x340   :  { %v2787_v46 = vsel %vm1522_vm14, %v9347_v22, 0.0  ;;  %v4855_v56 = vadd.f32 %v4792_v4, %v4476_v15  ;;  %v1834_v38 = vsel %vm1648_vm15, %v9334_v17, 0.0  ;;  %v1835_v36 = vsel %vm1523_vm4, %v9341_v11, 0.0  ;;  %vm2599_vm11 = vmand %vm1523_vm4, %vm9560_vm9  ;;  %11161 = vst [vmem:[#allocation64_spill] sm:$0xff] %v9583_v39 }
 0x341   :  { %v2151_v19 = vsel %vm1523_vm4, %v11133_v48, 0.0  ;;  %v4925_v2 = vadd.f32 %v9588_v53, %v4854_v16  ;;  %v1901_v22 = vmul.f32 %v6083_v60, %v1834_v38  ;;  %v1902_v17 = vmul.f32 %v6083_v60, %v1835_v36  ;;  %v9598_v48 = vpop.f32.mrf.mxu1 }
 0x342   :  { %v2217_v11 = vmul.f32 %v6080_v58, %v2150_v49  ;;  %v4926_v4 = vadd.f32 %v9588_v53, %v4855_v56  ;;  %v2218_v21 = vmul.f32 %v6080_v58, %v2151_v19  ;;  %v2788_v15 = vsel %vm2599_vm11, %v9361_v41, 0.0  ;;  %11162 = vst [vmem:[#allocation65_spill] sm:$0xff] %v9598_v48 }
 0x343   :  { %v2855_v52 = vmul.f32 %v6101_v6, %v2787_v46  ;;  %v4989_v27 = vmax.f32 %v4925_v2, 0.0  ;;  %v2856_v16 = vmul.f32 %v6101_v6, %v2788_v15  ;;  %v3186_v38 = vmul.f32 %v6147_v34, %v3118_v3  ;;  %v9606_v19 = vpop.f32.mrf.mxu1 }
 0x344   :  { %v2280_v8 = vadd.f32 %v2217_v11, %v1901_v22  ;;  %v4990_v39 = vmax.f32 %v4926_v4, 0.0  ;;  %v2281_v36 = vadd.f32 %v2218_v21, %v1902_v17  ;;  %v3318_v49 = vmul.f32 %v6149_v35, %v8455_v43  ;;  %11163 = vst [vmem:[#allocation66_spill] sm:$0xff] %v9606_v19 }
 0x345   :  { %v3319_v56 = vmul.f32 %v6149_v35, %v8561_v0  ;;  %v3580_v46 = vsel %vm9560_vm9, %v9453_v20, 0.0  ;;  %v9613_v2 = vmul.f32 %v6162_v44, %v9551_v59  ;;  %vm3777_vm7 = vcmp.le.s32.totalorder %v9542_v40, 14 }
 0x346   :  { %v2919_v41 = vadd.f32 %v2855_v52, %v2280_v8  ;;  %v5028_v3 = vpack.c.bf16 %v4990_v39, %v4989_v27  ;;  %v2920_v22 = vadd.f32 %v2856_v16, %v2281_v36  ;;  %v3648_v17 = vmul.f32 %v6162_v44, %v3580_v46  ;;  %vm3840_vm3 = vmand %vm3777_vm7, %vm9544_vm10  ;;  %v9621_v8 = vpop.f32.mrf.mxu1 }
 0x347   :  { %vm3778_vm8 = vcmp.le.s32.totalorder %v1211_v30, 14  ;;  %11164 = vst [vmem:[#allocation67_spill] sm:$0xff] %v9621_v8  ;;  %v4029_v11 = vsel %vm3840_vm3, %v9529_v57, 0.0  ;;  %v4348_v27 = vsel %vm3777_vm7, %v11145_v24, 0.0  ;;  %v2407_v48 = vrot.slane %v8811_v12, 1 }
 0x348   :  { %v3250_v52 = vadd.f32 %v3186_v38, %v2919_v41  ;;  %v4030_v4 = vsel %vm3778_vm8, %v9536_v26, 0.0  ;;  %vm9630_vm5 = vmand %vm3778_vm8, %vm9560_vm9  ;;  %5804 = vmatmul.mubr.bf16.gmra.mxu1 %v5028_v3  ;;  %v3251_v55 = vadd.f32 %v9461_v23, %v2920_v22  ;;  %v4096_v39 = vmul.f32 %v6167_v47, %v4029_v11  ;;  %v9638_v16 = vpop.f32.mrf.mxu1  ;;  %v9651_v3 = vld [vmem:[%s10563_s3 + $0x8] ss:$0 sm:$0xff] }
 0x349   :  { %v4097_v21 = vmul.f32 %v6167_v47, %v4030_v4  ;;  %v4349_v15 = vsel %vm3778_vm8, %v11152_v31, 0.0  ;;  %11167 = vst [vmem:[#allocation68_spill] sm:$0xff] %v9638_v16  ;;  %v4414_v36 = vmul.f32 %v6164_v45, %v4348_v27  ;;  %v4727_v41 = vsel %vm3777_vm7, %v9551_v59, 0.0 }
 0x34a   :  { %v3382_v38 = vadd.f32 %v3318_v49, %v3250_v52  ;;  %v4415_v9 = vmul.f32 %v6164_v45, %v4349_v15  ;;  %v3383_v46 = vadd.f32 %v3319_v56, %v3251_v55  ;;  %v4728_v23 = vsel %vm9630_vm5, %v9558_v37, 0.0  ;;  %v9655_v52 = vpop.f32.mrf.mxu1 }
 0x34b   :  { %v4793_v49 = vmul.f32 %v9651_v3, %v4727_v41  ;;  %v1020_v22 = vadd.s32 432, %v10929_v61  ;;  %11168 = vst [vmem:[#allocation69_spill] sm:$0xff] %v9655_v52  ;;  %v4794_v40 = vmul.f32 %v9651_v3, %v4728_v23  ;;  %v1021_v56 = vadd.s32 440, %v10929_v61 }
 0x34c   :  { %v3711_v11 = vadd.f32 %v9493_v14, %v3382_v38  ;;  %v11169_v4 = vrot.slane %v8681_v32, 7  ;;  %v11170_v27 = vrot.slane %v11152_v31, 7  ;;  %v3712_v55 = vadd.f32 %v3648_v17, %v3383_v46  ;;  %v9674_v38 = vpop.f32.mrf.mxu1 }
 0x34d   :  { %v1084_v15 = vand.u32 15, %v1020_v22  ;;  %v1148_v41 = vshra.s32 %v1020_v22, 4  ;;  %v11171_v16 = vrot.slane %v8811_v12, 7  ;;  %v1085_v8 = vand.u32 15, %v1021_v56 }
 0x34e   :  { %v9665_v30 = vsel %vm1284_vm2, %v11170_v27, %v11169_v4  ;;  %v11172_v52 = vmov %v11169_v4  ;;  %v4160_v23 = vadd.f32 %v4096_v39, %v3711_v11  ;;  %v1149_v19 = vshra.s32 %v1021_v56, 4 }
 0x34f   :  { %v9672_v14 = vsel %vm1284_vm2, %v11172_v52, %v11171_v16  ;;  %v4161_v25 = vadd.f32 %v4097_v21, %v3712_v55  ;;  %v1212_v4 = vand.u32 15, %v1148_v41  ;;  %vm9677_vm1 = vcmp.ge.s32.totalorder %v1084_v15, 1 }
 0x350   :  { %v10732_v46 = vrot.slane %v8670_v63, 1  ;;  %v4477_v22 = vadd.f32 %v4414_v36, %v4160_v23  ;;  %v1213_v27 = vand.u32 15, %v1149_v19  ;;  %v11175_v16 = vrot.slane %v8681_v32, 1  ;;  %v9699_v36 = vpop.f32.mrf.mxu1 }
 0x351   :  { %vm9687_vm0 = vcmp.le.s32.totalorder %v1085_v8, 14  ;;  %v4478_v11 = vadd.f32 %v4415_v9, %v4161_v25  ;;  %vm1524_vm13 = vcmp.ge.s32.totalorder %v1212_v4, 1  ;;  %v3120_v19 = vsel %vm9677_vm1, %v9529_v57, 0.0  ;;  %11178 = vst [vmem:[#allocation70_spill] sm:$0xff] %v9699_v36 }
 0x352   :  { %v9685_v52 = vsel %vm2293_vm12, %v11175_v16, %v2407_v48  ;;  %v9694_v21 = vsel %vm2293_vm12, %v2407_v48, %v10732_v46  ;;  %v4856_v56 = vadd.f32 %v4793_v49, %v4477_v22  ;;  %vm1525_vm6 = vcmp.ge.s32.totalorder %v1213_v27, 1  ;;  %vm1650_vm10 = vmand %vm1524_vm13, %vm9677_vm1  ;;  %v9718_v16 = vpop.f32.mrf.mxu1 }
 0x353   :  { %v2152_v8 = vsel %vm1524_vm13, %v8455_v43, 0.0  ;;  %v2789_v25 = vsel %vm1524_vm13, %v9439_v50, 0.0  ;;  %v4857_v9 = vadd.f32 %v4794_v40, %v4478_v11  ;;  %v1836_v55 = vsel %vm1650_vm10, %v9426_v18, 0.0  ;;  %vm2601_vm9 = vmand %vm1525_vm6, %vm9687_vm0  ;;  %11179 = vst [vmem:[#allocation71_spill] sm:$0xff] %v9718_v16 }
 0x354   :  { %v1837_v48 = vsel %vm1525_vm6, %v9433_v62, 0.0  ;;  %v2153_v15 = vsel %vm1525_vm6, %v8561_v0, 0.0  ;;  %v4927_v49 = vadd.f32 %v9588_v53, %v4856_v56  ;;  %v1903_v41 = vmul.f32 %v6083_v60, %v1836_v55 }
 0x355   :  { %v1904_v23 = vmul.f32 %v6083_v60, %v1837_v48  ;;  %v2219_v22 = vmul.f32 %v6080_v58, %v2152_v8  ;;  %v4928_v50 = vadd.f32 %v9588_v53, %v4857_v9  ;;  %v2220_v40 = vmul.f32 %v6080_v58, %v2153_v15 }
 0x356   :  { %v2790_v18 = vsel %vm2601_vm9, %v9453_v20, 0.0  ;;  %v2857_v62 = vmul.f32 %v6101_v6, %v2789_v25  ;;  %v4991_v11 = vmax.f32 %v4927_v49, 0.0  ;;  %v3188_v55 = vmul.f32 %v6147_v34, %v3120_v19 }
 0x357   :  { %v2282_v46 = vadd.f32 %v2219_v22, %v1903_v41  ;;  %v2858_v56 = vmul.f32 %v6101_v6, %v2790_v18  ;;  %v4992_v0 = vmax.f32 %v4928_v50, 0.0  ;;  %v2283_v48 = vadd.f32 %v2220_v40, %v1904_v23  ;;  %v9738_v22 = vpop.f32.mrf.mxu1 }
 0x358   :  { %v9724_v8 = vmul.f32 %v6147_v34, %v9672_v14  ;;  %v3320_v9 = vmul.f32 %v6149_v35, %v11145_v24  ;;  %v3321_v25 = vmul.f32 %v6149_v35, %v11152_v31  ;;  %v3582_v15 = vsel %vm9687_vm0, %v9558_v37, 0.0  ;;  %11180 = vst [vmem:[#allocation72_spill] sm:$0xff] %v9738_v22 }
 0x359   :  { %v2921_v20 = vadd.f32 %v2857_v62, %v2282_v46  ;;  %v9735_v19 = vmul.f32 %v6162_v44, %v9685_v52  ;;  %v5029_v49 = vpack.c.bf16 %v4992_v0, %v4991_v11  ;;  %v2922_v41 = vadd.f32 %v2858_v56, %v2283_v48 }
 0x35a   :  { %v3650_v23 = vmul.f32 %v6162_v44, %v3582_v15  ;;  %vm3779_vm14 = vcmp.le.s32.totalorder %v1212_v4, 14  ;;  %vm3780_vm4 = vcmp.le.s32.totalorder %v1213_v27, 14  ;;  %v9756_v15 = vpop.f32.mrf.mxu1  ;;  %v11187_v22 = vrot.slane %v8670_v63, 1 }
 0x35b   :  { %v3252_v50 = vadd.f32 %v3188_v55, %v2921_v20  ;;  %vm3842_vm15 = vmand %vm3779_vm14, %vm9677_vm1  ;;  %v4350_v46 = vsel %vm3779_vm14, %v8681_v32, 0.0  ;;  %v4729_v40 = vsel %vm3779_vm14, %v9685_v52, 0.0  ;;  %5807 = vmatprep.mubr.bf16.mxu1 %v5029_v49  ;;  %v3253_v18 = vadd.f32 %v9570_v54, %v2922_v41  ;;  %11181 = vst [vmem:[#allocation73_spill] sm:$0xff] %v9756_v15 }
 0x35c   :  { %v4031_v0 = vsel %vm3842_vm15, %v9665_v30, 0.0  ;;  %v4032_v62 = vsel %vm3780_vm4, %v9672_v14, 0.0  ;;  %v4351_v4 = vsel %vm3780_vm4, %v8811_v12, 0.0  ;;  %vm4544_vm11 = vmand %vm3780_vm4, %vm9687_vm0  ;;  %v4416_v56 = vmul.f32 %v6164_v45, %v4350_v46  ;;  %v9783_v16 = vpop.f32.mrf.mxu1 }
 0x35d   :  { %v3384_v27 = vadd.f32 %v3320_v9, %v3252_v50  ;;  %v4098_v17 = vmul.f32 %v6167_v47, %v4031_v0  ;;  %v4099_v11 = vmul.f32 %v6167_v47, %v4032_v62  ;;  %v3385_v55 = vadd.f32 %v3321_v25, %v3253_v18  ;;  %v11184_v0 = vld [vmem:[#allocation59_spill] sm:$0xff] }
 0x35e   :  { %v4417_v48 = vmul.f32 %v6164_v45, %v4351_v4  ;;  %v4730_v54 = vsel %vm4544_vm11, %v9694_v21, 0.0  ;;  %v4795_v20 = vmul.f32 %v9651_v3, %v4729_v40  ;;  %v1022_v9 = vadd.s32 448, %v10929_v61  ;;  %11188 = vst [vmem:[#allocation59_spill] sm:$0xff] %v9783_v16 }
 0x35f   :  { %v3713_v49 = vadd.f32 %v9613_v2, %v3384_v27  ;;  %v4796_v39 = vmul.f32 %v9651_v3, %v4730_v54  ;;  %v1023_v41 = vadd.s32 456, %v10929_v61  ;;  %v3714_v50 = vadd.f32 %v3650_v23, %v3385_v55 }
 0x360   :  { %v11182_v46 = vrot.slane %v8670_v63, 7  ;;  %v11183_v25 = vrot.slane %v8811_v12, 7  ;;  %v11185_v40 = vrot.slane %v11184_v0, 7  ;;  %v2411_v4 = vrot.slane %v11184_v0, 1 }
 0x361   :  { %v4162_v27 = vadd.f32 %v4098_v17, %v3713_v49  ;;  %v1086_v54 = vand.u32 15, %v1022_v9  ;;  %v1087_v43 = vand.u32 15, %v1023_v41  ;;  %v1150_v23 = vshra.s32 %v1022_v9, 4 }
 0x362   :  { %v9767_v18 = vsel %vm1284_vm2, %v11183_v25, %v11182_v46  ;;  %v11186_v62 = vmov %v11182_v46  ;;  %v4163_v55 = vadd.f32 %v4099_v11, %v3714_v50  ;;  %v1151_v15 = vshra.s32 %v1023_v41, 4 }
 0x363   :  { %v9774_v2 = vsel %vm1284_vm2, %v11186_v62, %v11185_v40  ;;  %v9780_v46 = vsel %vm2293_vm12, %v11187_v22, %v2411_v4  ;;  %v10735_v25 = vrot.slane %v8946_v33, 1  ;;  %v4479_v36 = vadd.f32 %v4416_v56, %v4162_v27 }
 0x364   :  { %v1214_v40 = vand.u32 15, %v1150_v23  ;;  %vm9785_vm7 = vcmp.ge.s32.totalorder %v1086_v54, 1  ;;  %vm9789_vm8 = vcmp.le.s32.totalorder %v1087_v43, 14  ;;  %v4480_v11 = vadd.f32 %v4417_v48, %v4163_v55 }
 0x365   :  { %v1215_v49 = vand.u32 15, %v1151_v15  ;;  %v9796_v22 = vsel %vm2293_vm12, %v2411_v4, %v10735_v25  ;;  %v3122_v56 = vsel %vm9785_vm7, %v9665_v30, 0.0  ;;  %v4858_v9 = vadd.f32 %v4795_v20, %v4479_v36  ;;  %v9810_v4 = vpop.f32.mrf.mxu1 }
 0x366   :  { %vm1526_vm3 = vcmp.ge.s32.totalorder %v1214_v40, 1  ;;  %v3190_v41 = vmul.f32 %v6147_v34, %v3122_v56  ;;  %v9804_v43 = vmul.f32 %v6147_v34, %v9774_v2  ;;  %v4859_v50 = vadd.f32 %v4796_v39, %v4480_v11  ;;  %11193 = vst [vmem:[#allocation74_spill] sm:$0xff] %v9810_v4 }
 0x367   :  { %vm1527_vm5 = vcmp.ge.s32.totalorder %v1215_v49, 1  ;;  %vm1652_vm1 = vmand %vm1526_vm3, %vm9785_vm7  ;;  %v2154_v48 = vsel %vm1526_vm3, %v11145_v24, 0.0  ;;  %v2791_v15 = vsel %vm1526_vm3, %v9551_v59, 0.0  ;;  %v4929_v36 = vadd.f32 %v9588_v53, %v4858_v9  ;;  %v9828_v24 = vpop.f32.mrf.mxu1 }
 0x368   :  { %v1838_v20 = vsel %vm1652_vm1, %v9529_v57, 0.0  ;;  %v1839_v27 = vsel %vm1527_vm5, %v9536_v26, 0.0  ;;  %v2155_v54 = vsel %vm1527_vm5, %v11152_v31, 0.0  ;;  %vm2603_vm0 = vmand %vm1527_vm5, %vm9789_vm8  ;;  %v4930_v39 = vadd.f32 %v9588_v53, %v4859_v50  ;;  %11194 = vst [vmem:[#allocation75_spill] sm:$0xff] %v9828_v24 }
 0x369   :  { %v1905_v23 = vmul.f32 %v6083_v60, %v1838_v20  ;;  %v1906_v55 = vmul.f32 %v6083_v60, %v1839_v27  ;;  %v2221_v59 = vmul.f32 %v6080_v58, %v2154_v48  ;;  %v4993_v11 = vmax.f32 %v4929_v36, 0.0 }
 0x36a   :  { %v2222_v56 = vmul.f32 %v6080_v58, %v2155_v54  ;;  %v2792_v57 = vsel %vm2603_vm0, %v9558_v37, 0.0  ;;  %v2859_v26 = vmul.f32 %v6101_v6, %v2791_v15  ;;  %v4994_v9 = vmax.f32 %v4930_v39, 0.0 }
 0x36b   :  { %v2284_v25 = vadd.f32 %v2221_v59, %v1905_v23  ;;  %v2860_v31 = vmul.f32 %v6101_v6, %v2792_v57  ;;  %v3322_v50 = vmul.f32 %v6149_v35, %v8681_v32  ;;  %v3323_v48 = vmul.f32 %v6149_v35, %v8811_v12 }
 0x36c   :  { %v2285_v20 = vadd.f32 %v2222_v56, %v1906_v55  ;;  %v3584_v36 = vsel %vm9789_vm8, %v9694_v21, 0.0  ;;  %v9837_v37 = vmul.f32 %v6162_v44, %v9780_v46  ;;  %v5030_v15 = vpack.c.bf16 %v4994_v9, %v4993_v11 }
 0x36d   :  { %v2923_v27 = vadd.f32 %v2859_v26, %v2284_v25  ;;  %v3652_v54 = vmul.f32 %v6162_v44, %v3584_v36  ;;  %vm3781_vm13 = vcmp.le.s32.totalorder %v1214_v40, 14  ;;  %vm3782_vm6 = vcmp.le.s32.totalorder %v1215_v49, 14 }
 0x36e   :  { %v2924_v39 = vadd.f32 %v2860_v31, %v2285_v20  ;;  %vm3844_vm10 = vmand %vm3781_vm13, %vm9785_vm7  ;;  %v4352_v23 = vsel %vm3781_vm13, %v8670_v63, 0.0  ;;  %v4731_v55 = vsel %vm3781_vm13, %v9780_v46, 0.0  ;;  %5808 = vmatmul.mubr.bf16.gmra.mxu1 %v5030_v15  ;;  %v4034_v57 = vsel %vm3782_vm6, %v9774_v2, 0.0  ;;  %v9849_v31 = vpop.f32.mrf.mxu1 }
 0x36f   :  { %v3254_v59 = vadd.f32 %v3190_v41, %v2923_v27  ;;  %v4033_v56 = vsel %vm3844_vm10, %v9767_v18, 0.0  ;;  %v4353_v25 = vsel %vm3782_vm6, %v11184_v0, 0.0  ;;  %vm4546_vm9 = vmand %vm3782_vm6, %vm9789_vm8  ;;  %11195 = vst [vmem:[#allocation76_spill] sm:$0xff] %v9849_v31  ;;  %v4101_v49 = vmul.f32 %v6167_v47, %v4034_v57 }
 0x370   :  { %v3255_v40 = vadd.f32 %v9724_v8, %v2924_v39  ;;  %v4100_v62 = vmul.f32 %v6167_v47, %v4033_v56  ;;  %v4418_v11 = vmul.f32 %v6164_v45, %v4352_v23  ;;  %v4419_v26 = vmul.f32 %v6164_v45, %v4353_v25  ;;  %v9879_v57 = vpop.f32.mrf.mxu1 }
 0x371   :  { %v3386_v41 = vadd.f32 %v3322_v50, %v3254_v59  ;;  %v4732_v9 = vsel %vm4546_vm9, %v9796_v22, 0.0  ;;  %v4797_v20 = vmul.f32 %v9651_v3, %v4731_v55  ;;  %v1024_v15 = vadd.s32 464, %v10929_v61 }
 0x372   :  { %v3387_v36 = vadd.f32 %v3323_v48, %v3255_v40  ;;  %v4798_v17 = vmul.f32 %v9651_v3, %v4732_v9  ;;  %v1025_v8 = vadd.s32 472, %v10929_v61  ;;  %v9863_v39 = vadd.s32 496, %v10929_v61 }
 0x373   :  { %v3715_v27 = vadd.f32 %v9735_v19, %v3386_v41  ;;  %v11196_v50 = vrot.slane %v8946_v33, 7  ;;  %v11197_v23 = vrot.slane %v11184_v0, 7  ;;  %v11198_v48 = vrot.slane %v9064_v51, 7 }
 0x374   :  { %v3716_v19 = vadd.f32 %v3652_v54, %v3387_v36  ;;  %v1088_v25 = vand.u32 15, %v1024_v15  ;;  %v1089_v40 = vand.u32 15, %v1025_v8  ;;  %v1152_v41 = vshra.s32 %v1024_v15, 4 }
 0x375   :  { %v9870_v59 = vsel %vm1284_vm2, %v11197_v23, %v11196_v50  ;;  %v11199_v55 = vmov %v11196_v50  ;;  %v4164_v9 = vadd.f32 %v4100_v62, %v3715_v27  ;;  %v1153_v31 = vshra.s32 %v1025_v8, 4 }
 0x376   :  { %v9877_v56 = vsel %vm1284_vm2, %v11199_v55, %v11198_v48  ;;  %v1156_v24 = vshra.s32 %v9863_v39, 4  ;;  %v2415_v50 = vrot.slane %v9064_v51, 1  ;;  %v4165_v23 = vadd.f32 %v4101_v49, %v3716_v19  ;;  %v9900_v49 = vpop.f32.mrf.mxu1  ;;  %v11206_v55 = vld [vmem:[#allocation61_spill] sm:$0xff] }
 0x377   :  { %v9883_v4 = vand.u32 15, %v1152_v41  ;;  %vm9885_vm14 = vcmp.ge.s32.totalorder %v1088_v25, 1  ;;  %vm9889_vm4 = vcmp.le.s32.totalorder %v1089_v40, 14  ;;  %v4481_v54 = vadd.f32 %v4418_v11, %v4164_v9  ;;  %11205 = vst [vmem:[#allocation77_spill] sm:$0xff] %v9900_v49 }
 0x378   :  { %v1217_v36 = vand.u32 15, %v1153_v31  ;;  %v9893_v15 = vand.u32 15, %v1156_v24  ;;  %v11204_v62 = vrot.slane %v8946_v33, 1  ;;  %v4482_v27 = vadd.f32 %v4419_v26, %v4165_v23 }
 0x379   :  { %vm1528_vm15 = vcmp.ge.s32.totalorder %v9883_v4, 1  ;;  %v11207_v19 = vrot.slane %v11206_v55, 1  ;;  %v3124_v24 = vsel %vm9885_vm14, %v9767_v18, 0.0  ;;  %v4860_v31 = vadd.f32 %v4797_v20, %v4481_v54 }
 0x37a   :  { %v9898_v8 = vsel %vm2293_vm12, %v11204_v62, %v2415_v50  ;;  %vm1529_vm11 = vcmp.ge.s32.totalorder %v1217_v36, 1  ;;  %vm1532_vm7 = vcmp.ge.s32.totalorder %v9893_v15, 1  ;;  %vm1654_vm8 = vmand %vm1528_vm15, %vm9885_vm14  ;;  %v2156_v11 = vsel %vm1528_vm15, %v8681_v32, 0.0 }
 0x37b   :  { %v9906_v25 = vsel %vm2293_vm12, %v2415_v50, %v11207_v19  ;;  %v4861_v26 = vadd.f32 %v4798_v17, %v4482_v27  ;;  %v1840_v40 = vsel %vm1654_vm8, %v9665_v30, 0.0  ;;  %v1841_v41 = vsel %vm1529_vm11, %v9672_v14, 0.0  ;;  %vm9924_vm3 = vmand %vm1529_vm11, %vm9889_vm4  ;;  %v9934_v17 = vpop.f32.mrf.mxu1 }
 0x37c   :  { %v2157_v9 = vsel %vm1529_vm11, %v8811_v12, 0.0  ;;  %v4931_v50 = vadd.f32 %v9588_v53, %v4860_v31  ;;  %v1907_v23 = vmul.f32 %v6083_v60, %v1840_v40  ;;  %v1908_v54 = vmul.f32 %v6083_v60, %v1841_v41  ;;  %11210 = vst [vmem:[#allocation61_spill] sm:$0xff] %v9934_v17 }
 0x37d   :  { %v2160_v30 = vsel %vm1532_vm7, %v8946_v33, 0.0  ;;  %v4932_v14 = vadd.f32 %v9588_v53, %v4861_v26  ;;  %v2223_v62 = vmul.f32 %v6080_v58, %v2156_v11  ;;  %v2224_v27 = vmul.f32 %v6080_v58, %v2157_v9 }
 0x37e   :  { %v9940_v19 = vmul.f32 %v6080_v58, %v2160_v30  ;;  %v4995_v31 = vmax.f32 %v4931_v50, 0.0  ;;  %v2793_v40 = vsel %vm1528_vm15, %v9685_v52, 0.0  ;;  %v2794_v41 = vsel %vm9924_vm3, %v9694_v21, 0.0  ;;  %v9961_v21 = vpop.f32.mrf.mxu1 }
 0x37f   :  { %v2797_v26 = vsel %vm1532_vm7, %v9898_v8, 0.0  ;;  %v4996_v12 = vmax.f32 %v4932_v14, 0.0  ;;  %v2286_v11 = vadd.f32 %v2223_v62, %v1907_v23  ;;  %v2287_v32 = vadd.f32 %v2224_v27, %v1908_v54  ;;  %11211 = vst [vmem:[#allocation78_spill] sm:$0xff] %v9961_v21 }
 0x380   :  { %v2861_v9 = vmul.f32 %v6101_v6, %v2793_v40  ;;  %v2862_v30 = vmul.f32 %v6101_v6, %v2794_v41  ;;  %v9954_v50 = vmul.f32 %v6101_v6, %v2797_v26  ;;  %v3192_v52 = vmul.f32 %v6147_v34, %v3124_v24 }
 0x381   :  { %v9959_v20 = vmul.f32 %v6147_v34, %v9877_v56  ;;  %v5031_v17 = vpack.c.bf16 %v4996_v12, %v4995_v31  ;;  %v3324_v23 = vmul.f32 %v6149_v35, %v8670_v63  ;;  %v3325_v54 = vmul.f32 %v6149_v35, %v11184_v0 }
 0x382   :  { %v2925_v49 = vadd.f32 %v2861_v9, %v2286_v11  ;;  %v2926_v14 = vadd.f32 %v2862_v30, %v2287_v32  ;;  %v3586_v62 = vsel %vm9889_vm4, %v9796_v22, 0.0  ;;  %v9972_v24 = vmul.f32 %v6162_v44, %v9898_v8 }
 0x383   :  { %vm3783_vm5 = vcmp.le.s32.totalorder %v9883_v4, 14  ;;  %5811 = vmatprep.mubr.bf16.mxu1 %v5031_v17  ;;  %v3654_v27 = vmul.f32 %v6162_v44, %v3586_v62  ;;  %vm3784_vm1 = vcmp.le.s32.totalorder %v1217_v36, 14  ;;  %v9989_v36 = vpop.f32.mrf.mxu1  ;;  %v1026_v62 = vadd.s32 480, %v10929_v61 }
 0x384   :  { %v3256_v12 = vadd.f32 %v3192_v52, %v2925_v49  ;;  %vm3846_vm0 = vmand %vm3783_vm5, %vm9885_vm14  ;;  %v4354_v32 = vsel %vm3783_vm5, %v8946_v33, 0.0  ;;  %v3257_v31 = vadd.f32 %v9804_v43, %v2926_v14  ;;  %v4036_v41 = vsel %vm3784_vm1, %v9877_v56, 0.0  ;;  %11212 = vst [vmem:[#allocation79_spill] sm:$0xff] %v9989_v36 }
 0x385   :  { %v4035_v40 = vsel %vm3846_vm0, %v9870_v59, 0.0  ;;  %v4355_v49 = vsel %vm3784_vm1, %v9064_v51, 0.0  ;;  %vm4548_vm13 = vmand %vm3784_vm1, %vm9889_vm4  ;;  %v4103_v26 = vmul.f32 %v6167_v47, %v4036_v41  ;;  %v4420_v11 = vmul.f32 %v6164_v45, %v4354_v32 }
 0x386   :  { %v3388_v16 = vadd.f32 %v3324_v23, %v3256_v12  ;;  %v4102_v17 = vmul.f32 %v6167_v47, %v4035_v40  ;;  %v3389_v9 = vadd.f32 %v3325_v54, %v3257_v31  ;;  %v4421_v43 = vmul.f32 %v6164_v45, %v4355_v49  ;;  %v10006_v40 = vpop.f32.mrf.mxu1 }
 0x387   :  { %v4733_v30 = vsel %vm3783_vm5, %v9898_v8, 0.0  ;;  %v4734_v52 = vsel %vm4548_vm13, %v9906_v25, 0.0  ;;  %v1027_v32 = vadd.s32 488, %v10929_v61  ;;  %v1029_v54 = vadd.s32 504, %v10929_v61 }
 0x388   :  { %v3717_v48 = vadd.f32 %v9837_v37, %v3388_v16  ;;  %v4799_v14 = vmul.f32 %v9651_v3, %v4733_v30  ;;  %v4800_v23 = vmul.f32 %v9651_v3, %v4734_v52  ;;  %v3718_v12 = vadd.f32 %v3654_v27, %v3389_v9 }
 0x389   :  { %v1092_v31 = vand.u32 15, %v9863_v39  ;;  %v1090_v8 = vand.u32 15, %v1026_v62  ;;  %v1154_v41 = vshra.s32 %v1026_v62, 4  ;;  %v11213_v37 = vrot.slane %v11206_v55, 7 }
 0x38a   :  { %v4166_v4 = vadd.f32 %v4102_v17, %v3717_v48  ;;  %v11214_v49 = vrot.slane %v9064_v51, 7  ;;  %v4167_v30 = vadd.f32 %v4103_v26, %v3718_v12  ;;  %v1091_v27 = vand.u32 15, %v1027_v32  ;;  %v10031_v12 = vpop.f32.mrf.mxu1 }
 0x38b   :  { %v1093_v9 = vand.u32 15, %v1029_v54  ;;  %v1155_v52 = vshra.s32 %v1027_v32, 4  ;;  %v1157_v61 = vshra.s32 %v1029_v54, 4  ;;  %v10015_v21 = vand.u32 15, %v1154_v41 }
 0x38c   :  { %v10013_v16 = vsel %vm1284_vm2, %v11214_v49, %v11213_v37  ;;  %v4483_v36 = vadd.f32 %v4420_v11, %v4166_v4  ;;  %vm10017_vm6 = vcmp.ge.s32.totalorder %v1090_v8, 1  ;;  %v4484_v17 = vadd.f32 %v4421_v43, %v4167_v30 }
 0x38d   :  { %v10021_v48 = vand.u32 15, %v1155_v52  ;;  %vm10023_vm10 = vcmp.ge.s32.totalorder %v1092_v31, 1  ;;  %vm10027_vm9 = vcmp.le.s32.totalorder %v1091_v27, 14  ;;  %v1221_v32 = vand.u32 15, %v1157_v61  ;;  %v10080_v27 = vpop.f32.mrf.mxu1 }
 0x38e   :  { %v4862_v11 = vadd.f32 %v4799_v14, %v4483_v36  ;;  %vm1530_vm14 = vcmp.ge.s32.totalorder %v10015_v21, 1  ;;  %vm10038_vm4 = vmand %vm1532_vm7, %vm10023_vm10  ;;  %vm10042_vm15 = vcmp.le.s32.totalorder %v1093_v9, 14  ;;  %v4863_v31 = vadd.f32 %v4800_v23, %v4484_v17 }
 0x38f   :  { %vm1531_vm11 = vcmp.ge.s32.totalorder %v10021_v48, 1  ;;  %vm1656_vm8 = vmand %vm1530_vm14, %vm10017_vm6  ;;  %v1844_v36 = vsel %vm10038_vm4, %v9870_v59, 0.0  ;;  %v2158_v14 = vsel %vm1530_vm14, %v8670_v63, 0.0  ;;  %vm1533_vm7 = vcmp.ge.s32.totalorder %v1221_v32, 1 }
 0x390   :  { %v4933_v4 = vadd.f32 %v9588_v53, %v4862_v11  ;;  %v1842_v23 = vsel %vm1656_vm8, %v9767_v18, 0.0  ;;  %v1843_v8 = vsel %vm1531_vm11, %v9774_v2, 0.0  ;;  %vm10066_vm3 = vmand %vm1531_vm11, %vm10027_vm9  ;;  %v4934_v37 = vadd.f32 %v9588_v53, %v4863_v31 }
 0x391   :  { %v1845_v49 = vsel %vm1533_vm7, %v9877_v56, 0.0  ;;  %v1909_v30 = vmul.f32 %v6083_v60, %v1842_v23  ;;  %v1910_v18 = vmul.f32 %v6083_v60, %v1843_v8  ;;  %vm10076_vm5 = vmand %vm1533_vm7, %vm10042_vm15  ;;  %v10083_v52 = vmul.f32 %v6083_v60, %v1844_v36 }
 0x392   :  { %v4997_v9 = vmax.f32 %v4933_v4, 0.0  ;;  %v1912_v61 = vmul.f32 %v6083_v60, %v1845_v49  ;;  %v2159_v56 = vsel %vm1531_vm11, %v11184_v0, 0.0  ;;  %v4998_v17 = vmax.f32 %v4934_v37, 0.0  ;;  %v10103_v49 = vpop.f32.mrf.mxu1 }
 0x393   :  { %v2161_v11 = vsel %vm1533_vm7, %v9064_v51, 0.0  ;;  %v2225_v32 = vmul.f32 %v6080_v58, %v2158_v14  ;;  %v2226_v43 = vmul.f32 %v6080_v58, %v2159_v56  ;;  %v2795_v36 = vsel %vm1530_vm14, %v9780_v46, 0.0 }
 0x394   :  { %v2228_v31 = vmul.f32 %v6080_v58, %v2161_v11  ;;  %v2796_v60 = vsel %vm10066_vm3, %v9796_v22, 0.0  ;;  %v2798_v4 = vsel %vm10076_vm5, %v9906_v25, 0.0  ;;  %v5032_v23 = vpack.c.bf16 %v4998_v17, %v4997_v9 }
 0x395   :  { %v2288_v8 = vadd.f32 %v2225_v32, %v1909_v30  ;;  %v2289_v37 = vadd.f32 %v2226_v43, %v1910_v18  ;;  %v2863_v14 = vmul.f32 %v6101_v6, %v2795_v36  ;;  %v2864_v56 = vmul.f32 %v6101_v6, %v2796_v60  ;;  %v10129_v60 = vpop.f32.mrf.mxu1 }
 0x396   :  { %v2291_v58 = vadd.f32 %v2228_v31, %v1912_v61  ;;  %v2866_v46 = vmul.f32 %v6101_v6, %v2798_v4  ;;  %v11229_v11 = vrot.slane %v9060_v1, 7  ;;  %v11230_v22 = vrot.slane %v11206_v55, 7  ;;  %5812 = vmatmul.mubr.bf16.gmra.mxu1 %v5032_v23 }
 0x397   :  { %v2927_v2 = vadd.f32 %v2863_v14, %v2288_v8  ;;  %v3126_v30 = vsel %vm10017_vm6, %v9870_v59, 0.0  ;;  %v3128_v18 = vsel %vm10023_vm10, %v10013_v16, 0.0  ;;  %v2928_v61 = vadd.f32 %v2864_v56, %v2289_v37 }
 0x398   :  { %v2935_v41 = vsel %vm1284_vm2, %v11230_v22, %v11229_v11  ;;  %v2930_v6 = vadd.f32 %v2866_v46, %v2291_v58  ;;  %v3194_v17 = vmul.f32 %v6147_v34, %v3126_v30  ;;  %v3196_v32 = vmul.f32 %v6147_v34, %v3128_v18 }
 0x399   :  { %v3197_v9 = vmul.f32 %v6147_v34, %v2935_v41  ;;  %v3326_v43 = vmul.f32 %v6149_v35, %v8946_v33  ;;  %v3327_v31 = vmul.f32 %v6149_v35, %v9064_v51  ;;  %v3394_v59 = vrot.slane %v9060_v1, 1 }
 0x39a   :  { %v3588_v36 = vsel %vm10027_vm9, %v9906_v25, 0.0  ;;  %v3258_v4 = vadd.f32 %v3194_v17, %v2927_v2  ;;  %v3259_v23 = vadd.f32 %v9959_v20, %v2928_v61  ;;  %vm3785_vm1 = vcmp.le.s32.totalorder %v10015_v21, 14  ;;  %v10158_v2 = vpop.f32.mrf.mxu1  ;;  %v10180_v21 = vld [vmem:[%s10566_s6] ss:$0 sm:$0xff] }
 0x39b   :  { %v3656_v8 = vmul.f32 %v6162_v44, %v3588_v36  ;;  %v11231_v34 = vrot.slane %v11206_v55, 1  ;;  %v3398_v35 = vsel %vm2293_vm12, %v3394_v59, 0.0  ;;  %vm3786_vm0 = vcmp.le.s32.totalorder %v10021_v48, 14  ;;  %vm3848_vm13 = vmand %vm3785_vm1, %vm10017_vm6 }
 0x39c   :  { %v4356_v25 = vsel %vm3785_vm1, %v11206_v55, 0.0  ;;  %v3390_v20 = vadd.f32 %v3326_v43, %v3258_v4  ;;  %v3391_v14 = vadd.f32 %v3327_v31, %v3259_v23  ;;  %v3590_v58 = vsel %vm10042_vm15, %v3398_v35, 0.0 }
 0x39d   :  { %v3395_v37 = vsel %vm2293_vm12, %v11231_v34, %v3394_v59  ;;  %vm10151_vm12 = vmand %vm3786_vm0, %vm10027_vm9  ;;  %v3658_v39 = vmul.f32 %v6162_v44, %v3590_v58  ;;  %v4037_v46 = vsel %vm3848_vm13, %v10013_v16, 0.0  ;;  %v4038_v11 = vsel %vm3786_vm0, %v2935_v41, 0.0 }
 0x39e   :  { %v3657_v56 = vmul.f32 %v6162_v44, %v3395_v37  ;;  %v4357_v22 = vsel %vm3786_vm0, %v9060_v1, 0.0  ;;  %v3719_v54 = vadd.f32 %v9972_v24, %v3390_v20  ;;  %v3720_v30 = vadd.f32 %v3656_v8, %v3391_v14  ;;  %v10182_v8 = vpop.f32.mrf.mxu1 }
 0x39f   :  { %v4104_v18 = vmul.f32 %v6167_v47, %v4037_v46  ;;  %v4105_v26 = vmul.f32 %v6167_v47, %v4038_v11  ;;  %v4422_v61 = vmul.f32 %v6164_v45, %v4356_v25  ;;  %v4423_v17 = vmul.f32 %v6164_v45, %v4357_v22  ;;  %v11235_v11 = vld [vmem:[#allocation16_spill] sm:$0xff] }
 0x3a0   :  { %v4735_v44 = vsel %vm3785_vm1, %v3395_v37, 0.0  ;;  %v4736_v16 = vsel %vm10151_vm12, %v3398_v35, 0.0  ;;  %v2290_v59 = vadd.f32 %v9940_v19, %v10083_v52  ;;  %v3261_v36 = vadd.f32 %v3197_v9, %v2930_v6 }
 0x3a1   :  { %v4168_v41 = vadd.f32 %v4104_v18, %v3719_v54  ;;  %v4169_v43 = vadd.f32 %v4105_v26, %v3720_v30  ;;  %v4801_v31 = vmul.f32 %v9651_v3, %v4735_v44  ;;  %v4802_v24 = vmul.f32 %v9651_v3, %v4736_v16  ;;  %v11237_v54 = vld [vmem:[#allocation18_spill] sm:$0xff] }
 0x3a2   :  { %v11234_v4 = vrot.slane %v9060_v1, 7  ;;  %vm3787_vm6 = vcmp.le.s32.totalorder %v9893_v15, 14  ;;  %v4107_v19 = vmul.f32 0.0, %v6167_v47  ;;  %v4424_v52 = vmul.f32 0.0, %v6164_v45 }
 0x3a3   :  { %v4485_v34 = vadd.f32 %v4422_v61, %v4168_v41  ;;  %v4486_v37 = vadd.f32 %v4423_v17, %v4169_v43  ;;  %vm3850_vm9 = vmand %vm3787_vm6, %vm10023_vm10  ;;  %v2929_v9 = vadd.f32 %v9954_v50, %v2290_v59  ;;  %v3393_v15 = vadd.f32 %v9072_v7, %v3261_v36  ;;  %v10198_v50 = vpop.f32.mrf.mxu1  ;;  %v11239_v61 = vld [vmem:[#allocation20_spill] sm:$0xff]  ;;  %v11240_v43 = vld [vmem:[#allocation63_spill] sm:$0xff] }
 0x3a4   :  { %v3724_v23 = vsel %vm1284_vm2, %v11234_v4, 0.0  ;;  %v4803_v35 = vmul.f32 0.0, %v9651_v3  ;;  %v5149_v58 = vadd.f32 %v9488_v29, %v10180_v21  ;;  %v5141_v46 = vadd.f32 %v10180_v21, %v9500_v42  ;;  %v11236_v29 = vld [vmem:[#allocation62_spill] sm:$0xff]  ;;  %v11238_v42 = vld [vmem:[#allocation19_spill] sm:$0xff]  ;;  %v11242_v36 = vld [vmem:[#allocation64_spill] sm:$0xff] }
 0x3a5   :  { %v4039_v6 = vsel %vm3850_vm9, %v3724_v23, 0.0  ;;  %v4864_v25 = vadd.f32 %v4801_v31, %v4485_v34  ;;  %v4865_v20 = vadd.f32 %v4802_v24, %v4486_v37  ;;  %v3260_v62 = vadd.f32 %v3196_v32, %v2929_v9  ;;  %v10224_v24 = vpop.f32.mrf.mxu1  ;;  %v11243_v23 = vld [vmem:[#allocation65_spill] sm:$0xff] }
 0x3a6   :  { %v4106_v14 = vmul.f32 %v6167_v47, %v4039_v6  ;;  %v3722_v48 = vadd.f32 %v3658_v39, %v3393_v15  ;;  %v5152_v45 = vadd.f32 %v9511_v5, %v10180_v21  ;;  %v5397_v22 = vadd.f32 %v5149_v58, %v11235_v11  ;;  %v11245_v15 = vld [vmem:[#allocation23_spill] sm:$0xff]  ;;  %v11247_v58 = vld [vmem:[#allocation25_spill] sm:$0xff]  ;;  %v11250_v11 = vld [vmem:[#allocation68_spill] sm:$0xff] }
 0x3a7   :  { %v4935_v7 = vadd.f32 %v9588_v53, %v4864_v25  ;;  %v4936_v3 = vadd.f32 %v9588_v53, %v4865_v20  ;;  %v5144_v47 = vadd.f32 %v10180_v21, %v9520_v28  ;;  %v3392_v32 = vadd.f32 %v11236_v29, %v3260_v62  ;;  %v11246_v25 = vld [vmem:[#allocation24_spill] sm:$0xff] }
 0x3a8   :  { %v4171_v39 = vadd.f32 %v4107_v19, %v3722_v48  ;;  %v5395_v30 = vadd.f32 %v5141_v46, %v11237_v54  ;;  %v5398_v18 = vadd.f32 %v5152_v45, %v11238_v42  ;;  %5461 = vst [vmem:[%s10567_s7 + $0x10] sm:$0xff] %v5397_v22  ;;  %v5165_v44 = vadd.f32 %v9539_v13, %v10180_v21  ;;  %v11241_v13 = vld [vmem:[#allocation21_spill] sm:$0xff]  ;;  %v11244_v19 = vld [vmem:[#allocation22_spill] sm:$0xff]  ;;  %v11249_v45 = vld [vmem:[#allocation67_spill] sm:$0xff] }
 0x3a9   :  { %v4999_v26 = vmax.f32 %v4935_v7, 0.0  ;;  %v5000_v5 = vmax.f32 %v4936_v3, 0.0  ;;  %v5396_v17 = vadd.f32 %v5144_v47, %v11239_v61  ;;  %v3721_v16 = vadd.f32 %v3657_v56, %v3392_v32  ;;  %v11248_v48 = vld [vmem:[#allocation66_spill] sm:$0xff]  ;;  %v11251_v47 = vld [vmem:[#allocation69_spill] sm:$0xff]  ;;  %v10256_v32 = vpop.f32.mrf.mxu1  ;;  %v11253_v54 = vld [vmem:[#allocation27_spill] sm:$0xff] }
 0x3aa   :  { %v4488_v28 = vadd.f32 %v4424_v52, %v4171_v39  ;;  %5459 = vst [vmem:[%s10567_s7] sm:$0xff] %v5395_v30  ;;  %5462 = vst [vmem:[%s10567_s7 + $0x18] sm:$0xff] %v5398_v18  ;;  %v5157_v41 = vadd.f32 %v10180_v21, %v9553_v10  ;;  %v5168_v31 = vadd.f32 %v11240_v43, %v10180_v21  ;;  %v11254_v18 = vld [vmem:[#allocation70_spill] sm:$0xff] }
 0x3ab   :  { %v5033_v59 = vpack.c.bf16 %v5000_v5, %v4999_v26  ;;  %5460 = vst [vmem:[%s10567_s7 + $0x8] sm:$0xff] %v5396_v17  ;;  %v5401_v56 = vadd.f32 %v5165_v44, %v11241_v13  ;;  %v5160_v4 = vadd.f32 %v10180_v21, %v11242_v36  ;;  %v5181_v34 = vadd.f32 %v11243_v23, %v10180_v21  ;;  %v11255_v17 = vld [vmem:[#allocation28_spill] sm:$0xff] }
 0x3ac   :  { %v4170_v37 = vadd.f32 %v4106_v14, %v3721_v16  ;;  %v4867_v10 = vadd.f32 %v4803_v35, %v4488_v28  ;;  %v5399_v9 = vadd.f32 %v5157_v41, %v11244_v19  ;;  %v5402_v6 = vadd.f32 %v5168_v31, %v11245_v15  ;;  %v11256_v16 = vld [vmem:[#allocation29_spill] sm:$0xff]  ;;  %v11257_v41 = vld [vmem:[#allocation30_spill] sm:$0xff]  ;;  %v11260_v13 = vld [vmem:[#allocation72_spill] sm:$0xff] }
 0x3ad   :  { %5815 = vmatprep.mubr.bf16.mxu1 %v5033_v59  ;;  %5465 = vst [vmem:[%s10567_s7 + $0x30] sm:$0xff] %v5401_v56  ;;  %v5400_v20 = vadd.f32 %v5160_v4, %v11246_v25  ;;  %v5405_v62 = vadd.f32 %v5181_v34, %v11247_v58  ;;  %v5173_v46 = vadd.f32 %v10180_v21, %v11248_v48  ;;  %v11259_v59 = vld [vmem:[#allocation71_spill] sm:$0xff]  ;;  %v11261_v4 = vld [vmem:[#allocation73_spill] sm:$0xff] }
 0x3ae   :  { %v5184_v14 = vadd.f32 %v11249_v45, %v10180_v21  ;;  %v4487_v7 = vadd.f32 %v4424_v52, %v4170_v37  ;;  %v4938_v3 = vadd.f32 %v9588_v53, %v4867_v10  ;;  %5463 = vst [vmem:[%s10567_s7 + $0x20] sm:$0xff] %v5399_v9  ;;  %5466 = vst [vmem:[%s10567_s7 + $0x38] sm:$0xff] %v5402_v6  ;;  %v11252_v52 = vld [vmem:[#allocation26_spill] sm:$0xff]  ;;  %v11262_v34 = vld [vmem:[#allocation59_spill] sm:$0xff]  ;;  %v5284_v9 = vpop.f32.mrf.mxu1 }
 0x3af   :  { %v5176_v22 = vadd.f32 %v10180_v21, %v11250_v11  ;;  %v5197_v29 = vadd.f32 %v11251_v47, %v10180_v21  ;;  %5464 = vst [vmem:[%s10567_s7 + $0x28] sm:$0xff] %v5400_v20  ;;  %5469 = vst [vmem:[%s10567_s7 + $0x50] sm:$0xff] %v5405_v62  ;;  %v5403_v39 = vadd.f32 %v5173_v46, %v11252_v52  ;;  %v11263_v10 = vld [vmem:[#allocation74_spill] sm:$0xff]  ;;  %v11265_v6 = vld [vmem:[#allocation33_spill] sm:$0xff] }
 0x3b0   :  { %v5406_v30 = vadd.f32 %v5184_v14, %v11253_v54  ;;  %v5189_v42 = vadd.f32 %v10180_v21, %v9674_v38  ;;  %v5200_v26 = vadd.f32 %v11254_v18, %v10180_v21  ;;  %v4866_v5 = vadd.f32 %v4803_v35, %v4487_v7  ;;  %v11258_v38 = vld [vmem:[#allocation31_spill] sm:$0xff]  ;;  %v11267_v62 = vld [vmem:[#allocation76_spill] sm:$0xff]  ;;  %v11268_v45 = vld [vmem:[#allocation34_spill] sm:$0xff] }
 0x3b1   :  { %v5002_v61 = vmax.f32 %v4938_v3, 0.0  ;;  %v5404_v44 = vadd.f32 %v5176_v22, %v11255_v17  ;;  %v5409_v28 = vadd.f32 %v5197_v29, %v11256_v16  ;;  %5467 = vst [vmem:[%s10567_s7 + $0x40] sm:$0xff] %v5403_v39  ;;  %v5192_v35 = vadd.f32 %v10180_v21, %v11259_v59  ;;  %v11266_v20 = vld [vmem:[#allocation75_spill] sm:$0xff]  ;;  %v11270_v11 = vld [vmem:[#allocation36_spill] sm:$0xff]  ;;  %v11271_v47 = vld [vmem:[#allocation37_spill] sm:$0xff]  ;;  %v5794_v16 = vpop.f32.mrf.mxu1 }
 0x3b2   :  { %5470 = vst [vmem:[%s10567_s7 + $0x58] sm:$0xff] %v5406_v30  ;;  %v5407_v43 = vadd.f32 %v5189_v42, %v11257_v41  ;;  %v5410_v31 = vadd.f32 %v5200_v26, %v11258_v38  ;;  %v5213_v56 = vadd.f32 %v11260_v13, %v10180_v21  ;;  %v4937_v36 = vadd.f32 %v9588_v53, %v4866_v5  ;;  %v11264_v53 = vld [vmem:[#allocation32_spill] sm:$0xff]  ;;  %v11269_v7 = vld [vmem:[#allocation35_spill] sm:$0xff]  ;;  %v11272_v52 = vld [vmem:[#allocation38_spill] sm:$0xff] }
 0x3b3   :  { %5468 = vst [vmem:[%s10567_s7 + $0x48] sm:$0xff] %v5404_v44  ;;  %5473 = vst [vmem:[%s10567_s7 + $0x70] sm:$0xff] %v5409_v28  ;;  %v5205_v23 = vadd.f32 %v10180_v21, %v11261_v4  ;;  %v5216_v37 = vadd.f32 %v11262_v34, %v10180_v21  ;;  %v5208_v19 = vadd.f32 %v10180_v21, %v11263_v10  ;;  %v11273_v30 = vld [vmem:[#allocation77_spill] sm:$0xff]  ;;  %v11277_v28 = vld [vmem:[#allocation39_spill] sm:$0xff] }
 0x3b4   :  { %5471 = vst [vmem:[%s10567_s7 + $0x60] sm:$0xff] %v5407_v43  ;;  %5474 = vst [vmem:[%s10567_s7 + $0x78] sm:$0xff] %v5410_v31  ;;  %v5408_v15 = vadd.f32 %v5192_v35, %v11264_v53  ;;  %v5413_v25 = vadd.f32 %v5213_v56, %v11265_v6  ;;  %v5229_v58 = vadd.f32 %v11266_v20, %v10180_v21  ;;  %v5001_v46 = vmax.f32 %v4937_v36, 0.0  ;;  %v11274_v26 = vld [vmem:[#allocation61_spill] sm:$0xff]  ;;  %v11278_v43 = vld [vmem:[#allocation40_spill] sm:$0xff] }
 0x3b5   :  { %v5221_v48 = vadd.f32 %v10180_v21, %v11267_v62  ;;  %v5411_v14 = vadd.f32 %v5205_v23, %v11268_v45  ;;  %v5414_v3 = vadd.f32 %v5216_v37, %v11269_v7  ;;  %v5412_v22 = vadd.f32 %v5208_v19, %v11270_v11  ;;  %v11279_v35 = vld [vmem:[#allocation3_spill] sm:$0xff]  ;;  %v11280_v56 = vld [vmem:[#allocation9_spill] sm:$0xff]  ;;  %v11281_v4 = vld [vmem:[#allocation10_spill] sm:$0xff] }
 0x3b6   :  { %5472 = vst [vmem:[%s10567_s7 + $0x68] sm:$0xff] %v5408_v15  ;;  %5477 = vst [vmem:[%s10567_s7 + $0x90] sm:$0xff] %v5413_v25  ;;  %v5417_v29 = vadd.f32 %v5229_v58, %v11271_v47  ;;  %v5232_v54 = vadd.f32 %v9879_v57, %v10180_v21  ;;  %v5224_v42 = vadd.f32 %v10180_v21, %v11273_v30  ;;  %v11275_v57 = vld [vmem:[#allocation78_spill] sm:$0xff]  ;;  %v11283_v37 = vld [vmem:[#allocation5_spill] sm:$0xff]  ;;  %v5287_v25 = vpop.f32.mrf.mxu1 }
 0x3b7   :  { %v5415_v39 = vadd.f32 %v5221_v48, %v11272_v52  ;;  %v5034_v18 = vpack.c.bf16 %v5002_v61, %v5001_v46  ;;  %5475 = vst [vmem:[%s10567_s7 + $0x80] sm:$0xff] %v5411_v14  ;;  %5478 = vst [vmem:[%s10567_s7 + $0x98] sm:$0xff] %v5414_v3  ;;  %v5245_v5 = vadd.f32 %v11274_v26, %v10180_v21  ;;  %v11276_v61 = vld [vmem:[#allocation79_spill] sm:$0xff]  ;;  %v11285_v20 = vld [vmem:[#allocation12_spill] sm:$0xff] }
 0x3b8   :  { %5476 = vst [vmem:[%s10567_s7 + $0x88] sm:$0xff] %v5412_v22  ;;  %v5237_v17 = vadd.f32 %v10180_v21, %v11275_v57  ;;  %v5248_v44 = vadd.f32 %v11276_v61, %v10180_v21  ;;  %5481 = vst [vmem:[%s10567_s7 + $0xb0] sm:$0xff] %v5417_v29  ;;  %v5418_v41 = vadd.f32 %v5232_v54, %v11277_v28  ;;  %v11286_v62 = vld [vmem:[#allocation6_spill] sm:$0xff]  ;;  %v11288_v45 = vld [vmem:[#allocation13_spill] sm:$0xff] }
 0x3b9   :  { %5479 = vst [vmem:[%s10567_s7 + $0xa0] sm:$0xff] %v5415_v39  ;;  %v5416_v38 = vadd.f32 %v5224_v42, %v11278_v43  ;;  %v5240_v31 = vadd.f32 %v10180_v21, %v10006_v40  ;;  %v5261_v59 = vadd.f32 %v10031_v12, %v10180_v21  ;;  %5816 = vmatmul.mubr.bf16.gmra.mxu1 %v5034_v18  ;;  %v11282_v40 = vld [vmem:[#allocation4_spill] sm:$0xff]  ;;  %v11289_v7 = vld [vmem:[#allocation15_spill] sm:$0xff]  ;;  %v11291_v22 = vld [vmem:[#allocation14_spill] sm:$0xff] }
 0x3ba   :  { %v5421_v13 = vadd.f32 %v5245_v5, %v11279_v35  ;;  %v5419_v36 = vadd.f32 %v5237_v17, %v11280_v56  ;;  %v5422_v23 = vadd.f32 %v5248_v44, %v11281_v4  ;;  %v5253_v34 = vadd.f32 %v10180_v21, %v10080_v27  ;;  %5482 = vst [vmem:[%s10567_s7 + $0xb8] sm:$0xff] %v5418_v41  ;;  %v11284_v27 = vld [vmem:[#allocation11_spill] sm:$0xff]  ;;  %v11293_v54 = vld [vmem:[#allocation2_spill] sm:$0xff]  ;;  %v11294_v42 = vld [vmem:[#allocation41_spill] sm:$0xff]  ;;  %v5797_v26 = vpop.f32.mrf.mxu1 }
 0x3bb   :  { %5480 = vst [vmem:[%s10567_s7 + $0xa8] sm:$0xff] %v5416_v38  ;;  %v5420_v12 = vadd.f32 %v5240_v31, %v11282_v40  ;;  %v5425_v10 = vadd.f32 %v5261_v59, %v11283_v37  ;;  %v5264_v19 = vadd.f32 %v10103_v49, %v10180_v21  ;;  %v5256_v53 = vadd.f32 %v10180_v21, %v10129_v60  ;;  %v11295_v17 = vld [vmem:[#allocation42_spill] sm:$0xff]  ;;  %v11296_v28 = vld [vmem:[#allocation43_spill] sm:$0xff]  ;;  %v11297_v31 = vld [vmem:[#allocation44_spill] sm:$0xff] }
 0x3bc   :  { %5485 = vst [vmem:[%s10567_s7 + $0xd0] sm:$0xff] %v5421_v13  ;;  %5483 = vst [vmem:[%s10567_s7 + $0xc0] sm:$0xff] %v5419_v36  ;;  %v5423_v15 = vadd.f32 %v5253_v34, %v11284_v27  ;;  %v5277_v49 = vadd.f32 %v10158_v2, %v10180_v21  ;;  %v5269_v60 = vadd.f32 %v10180_v21, %v10182_v8  ;;  %v5300_v57 = vpop.f32.mrf.mxu1  ;;  %v11298_v13 = vld [vmem:[#allocation45_spill] sm:$0xff]  ;;  %v11299_v34 = vld [vmem:[#allocation46_spill] sm:$0xff] }
 0x3bd   :  { %5486 = vst [vmem:[%s10567_s7 + $0xd8] sm:$0xff] %v5422_v23  ;;  %v5280_v6 = vadd.f32 %v10198_v50, %v10180_v21  ;;  %5484 = vst [vmem:[%s10567_s7 + $0xc8] sm:$0xff] %v5420_v12  ;;  %v5426_v58 = vadd.f32 %v5264_v19, %v11285_v20  ;;  %v5424_v48 = vadd.f32 %v5256_v53, %v11286_v62  ;;  %v11287_v50 = vld [vmem:[#allocation7_spill] sm:$0xff] }
 0x3be   :  { %5489 = vst [vmem:[%s10567_s7 + $0xf0] sm:$0xff] %v5425_v10  ;;  %v5272_v2 = vadd.f32 %v10180_v21, %v10224_v24  ;;  %v5293_v8 = vadd.f32 %v10256_v32, %v10180_v21  ;;  %5487 = vst [vmem:[%s10567_s7 + $0xe0] sm:$0xff] %v5423_v15  ;;  %v5429_v46 = vadd.f32 %v5277_v49, %v11287_v50  ;;  %v11290_v24 = vld [vmem:[#allocation8_spill] sm:$0xff]  ;;  %v11300_v10 = vld [vmem:[#allocation47_spill] sm:$0xff] }
 0x3bf   :  { %v5427_v14 = vadd.f32 %v5269_v60, %v11288_v45  ;;  %v5430_v3 = vadd.f32 %v5280_v6, %v11289_v7  ;;  %v5285_v11 = vadd.f32 %v10180_v21, %v5284_v9  ;;  %5490 = vst [vmem:[%s10567_s7 + $0xf8] sm:$0xff] %v5426_v58  ;;  %5488 = vst [vmem:[%s10567_s7 + $0xe8] sm:$0xff] %v5424_v48  ;;  %v11292_v9 = vld [vmem:[#allocation17_spill] sm:$0xff]  ;;  %v11301_v15 = vld [vmem:[#allocation48_spill] sm:$0xff] }
 0x3c0   :  { %v5428_v32 = vadd.f32 %v5272_v2, %v11290_v24  ;;  %v5433_v47 = vadd.f32 %v5293_v8, %v11291_v22  ;;  %v5296_v29 = vadd.f32 %v5794_v16, %v10180_v21  ;;  %v5288_v52 = vadd.f32 %v10180_v21, %v5287_v25  ;;  %5493 = vst [vmem:[%s10567_s7 + $0x110] sm:$0xff] %v5429_v46  ;;  %v5798_v16 = vpop.f32.mrf.mxu1  ;;  %v11302_v6 = vld [vmem:[#allocation49_spill] sm:$0xff]  ;;  %v11303_v48 = vld [vmem:[#allocation50_spill] sm:$0xff]  ;;  %v11304_v46 = vld [vmem:[#allocation51_spill] sm:$0xff] }
 0x3c1   :  { %5491 = vst [vmem:[%s10567_s7 + $0x100] sm:$0xff] %v5427_v14  ;;  %5494 = vst [vmem:[%s10567_s7 + $0x118] sm:$0xff] %v5430_v3  ;;  %v5431_v39 = vadd.f32 %v5285_v11, %v11292_v9  ;;  %v5309_v5 = vadd.f32 %v5797_v26, %v10180_v21  ;;  %v5301_v44 = vadd.f32 %v10180_v21, %v5300_v57  ;;  %v11305_v3 = vld [vmem:[#allocation52_spill] sm:$0xff]  ;;  %v11307_v9 = vld [vmem:[#allocation54_spill] sm:$0xff] }
 0x3c2   :  { %5492 = vst [vmem:[%s10567_s7 + $0x108] sm:$0xff] %v5428_v32  ;;  %5497 = vst [vmem:[%s10567_s7 + $0x130] sm:$0xff] %v5433_v47  ;;  %v5434_v30 = vadd.f32 %v5296_v29, %v11293_v54  ;;  %v5432_v18 = vadd.f32 %v5288_v52, %v11294_v42  ;;  %v5312_v43 = vadd.f32 %v5798_v16, %v10180_v21  ;;  %v5303_v38 = vpop.f32.mrf.mxu1  ;;  %v11306_v32 = vld [vmem:[#allocation53_spill] sm:$0xff]  ;;  %v11308_v42 = vld [vmem:[#allocation55_spill] sm:$0xff] }
 0x3c3   :  { %5495 = vst [vmem:[%s10567_s7 + $0x120] sm:$0xff] %v5431_v39  ;;  %v5437_v61 = vadd.f32 %v5309_v5, %v11295_v17  ;;  %v5435_v41 = vadd.f32 %v5301_v44, %v11296_v28  ;;  %v5304_v35 = vadd.f32 %v10180_v21, %v5303_v38  ;;  %v11309_v57 = vld [vmem:[#allocation56_spill] sm:$0xff]  ;;  %v11310_v44 = vld [vmem:[#allocation57_spill] sm:$0xff] }
 0x3c4   :  { %5498 = vst [vmem:[%s10567_s7 + $0x138] sm:$0xff] %v5434_v30  ;;  %5496 = vst [vmem:[%s10567_s7 + $0x128] sm:$0xff] %v5432_v18  ;;  %v5438_v59 = vadd.f32 %v5312_v43, %v11297_v31 }
 0x3c5   :  { %5501 = vst [vmem:[%s10567_s7 + $0x150] sm:$0xff] %v5437_v61  ;;  %5499 = vst [vmem:[%s10567_s7 + $0x140] sm:$0xff] %v5435_v41  ;;  %v5436_v56 = vadd.f32 %v5304_v35, %v11298_v13  ;;  %v11311_v35 = vld [vmem:[#allocation58_spill] sm:$0xff] }
 0x3c6   :  { %5502 = vst [vmem:[%s10567_s7 + $0x158] sm:$0xff] %v5438_v59 }
 0x3c7   :  { %5500 = vst [vmem:[%s10567_s7 + $0x148] sm:$0xff] %v5436_v56 }
 0x3e0   :  { %v5801_v36 = vpop.f32.mrf.mxu1 }
 0x3e1   :  { %v5325_v4 = vadd.f32 %v5801_v36, %v10180_v21 }
 0x3e2   :  { %v5316_v23 = vpop.f32.mrf.mxu1 }
 0x3e3   :  { %v5441_v40 = vadd.f32 %v5325_v4, %v11299_v34  ;;  %v5317_v12 = vadd.f32 %v10180_v21, %v5316_v23  ;;  %v11312_v23 = vld [vmem:[#allocation60_spill] sm:$0xff] }
 0x3e4   :  { %v5802_v37 = vpop.f32.mrf.mxu1 }
 0x3e5   :  { %5505 = vst [vmem:[%s10567_s7 + $0x170] sm:$0xff] %v5441_v40  ;;  %v5439_v19 = vadd.f32 %v5317_v12, %v11300_v10  ;;  %v5328_v53 = vadd.f32 %v5802_v37, %v10180_v21 }
 0x3e6   :  { %v5319_v27 = vpop.f32.mrf.mxu1 }
 0x3e7   :  { %5503 = vst [vmem:[%s10567_s7 + $0x160] sm:$0xff] %v5439_v19  ;;  %v5442_v49 = vadd.f32 %v5328_v53, %v11301_v15  ;;  %v5320_v60 = vadd.f32 %v10180_v21, %v5319_v27 }
 0x3e9   :  { %5506 = vst [vmem:[%s10567_s7 + $0x178] sm:$0xff] %v5442_v49  ;;  %v5440_v25 = vadd.f32 %v5320_v60, %v11302_v6 }
 0x3eb   :  { %5504 = vst [vmem:[%s10567_s7 + $0x168] sm:$0xff] %v5440_v25 }
 0x408   :  { %v5805_v20 = vpop.f32.mrf.mxu1 }
 0x409   :  { %v5341_v58 = vadd.f32 %v5805_v20, %v10180_v21 }
 0x40a   :  { %v5332_v62 = vpop.f32.mrf.mxu1 }
 0x40b   :  { %v5445_v2 = vadd.f32 %v5341_v58, %v11303_v48  ;;  %v5333_v8 = vadd.f32 %v10180_v21, %v5332_v62 }
 0x40c   :  { %v5806_v50 = vpop.f32.mrf.mxu1 }
 0x40d   :  { %5509 = vst [vmem:[%s10567_s7 + $0x190] sm:$0xff] %v5445_v2  ;;  %v5443_v45 = vadd.f32 %v5333_v8, %v11304_v46  ;;  %v5344_v14 = vadd.f32 %v5806_v50, %v10180_v21 }
 0x40e   :  { %v5335_v7 = vpop.f32.mrf.mxu1 }
 0x40f   :  { %5507 = vst [vmem:[%s10567_s7 + $0x180] sm:$0xff] %v5443_v45  ;;  %v5446_v11 = vadd.f32 %v5344_v14, %v11305_v3  ;;  %v5336_v24 = vadd.f32 %v10180_v21, %v5335_v7 }
 0x411   :  { %5510 = vst [vmem:[%s10567_s7 + $0x198] sm:$0xff] %v5446_v11  ;;  %v5444_v22 = vadd.f32 %v5336_v24, %v11306_v32 }
 0x413   :  { %5508 = vst [vmem:[%s10567_s7 + $0x188] sm:$0xff] %v5444_v22 }
 0x42e   :  { %v5809_v47 = vpop.f32.mrf.mxu1 }
 0x42f   :  { %v5357_v29 = vadd.f32 %v5809_v47, %v10180_v21 }
 0x430   :  { %v5348_v52 = vpop.f32.mrf.mxu1 }
 0x431   :  { %v5449_v39 = vadd.f32 %v5357_v29, %v11307_v9  ;;  %v5349_v54 = vadd.f32 %v10180_v21, %v5348_v52 }
 0x432   :  { %v5810_v30 = vpop.f32.mrf.mxu1 }
 0x433   :  { %5513 = vst [vmem:[%s10567_s7 + $0x1b0] sm:$0xff] %v5449_v39  ;;  %v5447_v18 = vadd.f32 %v5349_v54, %v11308_v42  ;;  %v5360_v26 = vadd.f32 %v5810_v30, %v10180_v21 }
 0x434   :  { %v5351_v5 = vpop.f32.mrf.mxu1 }
 0x435   :  { %5511 = vst [vmem:[%s10567_s7 + $0x1a0] sm:$0xff] %v5447_v18  ;;  %v5450_v17 = vadd.f32 %v5360_v26, %v11309_v57  ;;  %v5352_v61 = vadd.f32 %v10180_v21, %v5351_v5 }
 0x437   :  { %5514 = vst [vmem:[%s10567_s7 + $0x1b8] sm:$0xff] %v5450_v17  ;;  %v5448_v16 = vadd.f32 %v5352_v61, %v11310_v44 }
 0x439   :  { %5512 = vst [vmem:[%s10567_s7 + $0x1a8] sm:$0xff] %v5448_v16 }
 0x456   :  { %v5813_v28 = vpop.f32.mrf.mxu1 }
 0x457   :  { %v5373_v41 = vadd.f32 %v5813_v28, %v10180_v21 }
 0x458   :  { %v5364_v43 = vpop.f32.mrf.mxu1 }
 0x459   :  { %v5453_v38 = vadd.f32 %v5373_v41, %v8670_v63  ;;  %v5365_v31 = vadd.f32 %v10180_v21, %v5364_v43 }
 0x45a   :  { %v5814_v59 = vpop.f32.mrf.mxu1 }
 0x45b   :  { %5517 = vst [vmem:[%s10567_s7 + $0x1d0] sm:$0xff] %v5453_v38  ;;  %v5451_v13 = vadd.f32 %v5365_v31, %v11311_v35  ;;  %v5376_v56 = vadd.f32 %v5814_v59, %v10180_v21 }
 0x45c   :  { %v5367_v36 = vpop.f32.mrf.mxu1 }
 0x45d   :  { %5515 = vst [vmem:[%s10567_s7 + $0x1c0] sm:$0xff] %v5451_v13  ;;  %v5454_v4 = vadd.f32 %v5376_v56, %v11184_v0  ;;  %v5368_v63 = vadd.f32 %v10180_v21, %v5367_v36 }
 0x45f   :  { %5518 = vst [vmem:[%s10567_s7 + $0x1d8] sm:$0xff] %v5454_v4  ;;  %v5452_v34 = vadd.f32 %v5368_v63, %v11312_v23 }
 0x461   :  { %5516 = vst [vmem:[%s10567_s7 + $0x1c8] sm:$0xff] %v5452_v34 }
 0x479   :  { %v5817_v40 = vpop.f32.mrf.mxu1 }
 0x47a   :  { %v5389_v12 = vadd.f32 %v5817_v40, %v10180_v21 }
 0x47b   :  { %v5380_v37 = vpop.f32.mrf.mxu1 }
 0x47c   :  { %v5457_v10 = vadd.f32 %v5389_v12, %v11206_v55  ;;  %v5381_v0 = vadd.f32 %v10180_v21, %v5380_v37 }
 0x47d   :  { %v5818_v19 = vpop.f32.mrf.mxu1 }
 0x47e   :  { %5521 = vst [vmem:[%s10567_s7 + $0x1f0] sm:$0xff] %v5457_v10  ;;  %v5455_v53 = vadd.f32 %v5381_v0, %v8946_v33  ;;  %v5392_v27 = vadd.f32 %v5818_v19, %v10180_v21 }
 0x47f   :  { %v5383_v15 = vpop.f32.mrf.mxu1 }
 0x480   :  { %5519 = vst [vmem:[%s10567_s7 + $0x1e0] sm:$0xff] %v5455_v53  ;;  %v5458_v49 = vadd.f32 %v5392_v27, %v9060_v1  ;;  %v5384_v55 = vadd.f32 %v10180_v21, %v5383_v15 }
 0x482   :  { %5522 = vst [vmem:[%s10567_s7 + $0x1f8] sm:$0xff] %v5458_v49  ;;  %v5456_v60 = vadd.f32 %v5384_v55, %v9064_v51 }
 0x484   :  { %5520 = vst [vmem:[%s10567_s7 + $0x1e8] sm:$0xff] %v5456_v60 }

</bundles_post_ra>
